<compile_context>
chip_gen: v5e
topology: v5e:2x2
jax: 0.10.0
libtpu: 0.0.40
codegen_flags: <defaults>
</compile_context>

<pallas_src>
import functools

import jax
import jax.numpy as jnp
from jax.experimental import pallas as pl
from jax.experimental.pallas import tpu as pltpu

INPUT_SIZE = 28 * 28
HIDDEN = (400, 300, 200, 100)
OUTPUT_SIZE = 10
BN_EPS = 1e-5
_LANE = 128

REAL_DIMS = (INPUT_SIZE,) + HIDDEN + (OUTPUT_SIZE,)  # (784, 400, 300, 200, 100, 10)


def _pad128(n):
    return -(-n // _LANE) * _LANE


# Layer-output widths padded to lane multiples of 128; the input width (784)
# stays unpadded because it is only ever a contraction dimension.
PAD_DIMS = (INPUT_SIZE,) + tuple(_pad128(d) for d in REAL_DIMS[1:])  # (784,512,384,256,128,128)

# Fused (whole-batch-in-VMEM) path auto-selected up to this batch; beyond it the
# batch-tiled streaming path keeps VMEM bounded (v7x: 64 MiB physical per TC).
FUSED_MAX_BATCH = 512
DEFAULT_BATCH_TILE = 256  # multiple of 16 (bf16 sublane pack), good MXU M tiles


def _build_vec_layout():
    """One packed (1, N) f32 row: [b1,g1,be1,ws1, ..., b4,g4,be4,ws4, b5,ws5].

    b = Linear bias, g/be = BatchNorm gamma/beta, ws = per-output-channel int8
    weight scale.  Every segment width is a multiple of 128, so in-kernel slices
    are static, lane-aligned, and the whole thing is one small DMA.
    """
    layout = {}
    off = 0

    def add(name, width):
        nonlocal off
        layout[name] = (off, width)
        off += width

    for i in range(1, 5):
        for name in (f"b{i}", f"g{i}", f"be{i}", f"ws{i}"):
            add(name, PAD_DIMS[i])
    add("b5", PAD_DIMS[5])
    add("ws5", PAD_DIMS[5])
    return layout, off


VEC_LAYOUT, VEC_TOTAL = _build_vec_layout()


def _vec_row(vec, name):
    off, width = VEC_LAYOUT[name]
    return vec[:, off:off + width]


# --------------------------------------------------------------------------- #
# Fused path: whole batch + all (int8) weights resident in VMEM.              #
# --------------------------------------------------------------------------- #
def _fused_kernel(x_ref, w1, w2, w3, w4, w5, vec_ref, o_ref):
    ws = (w1, w2, w3, w4, w5)

    def vrow(name):
        off, width = VEC_LAYOUT[name]
        return vec_ref[:, off:off + width]  # static, 128-aligned slice

    def linear(h, layer):
        # int8 weights dequantized on the fly; MXU sees bf16, accumulates f32.
        wq = ws[layer - 1][...].astype(jnp.float32).astype(jnp.bfloat16)
        acc = jnp.dot(h.astype(jnp.bfloat16), wq,
                      preferred_element_type=jnp.float32)
        # per-output-channel weight scale folded into the epilogue
        return acc * vrow(f"ws{layer}") + vrow(f"b{layer}")

    def batchnorm(h, layer):
        # PyTorch training-mode BatchNorm1d: biased variance over the batch.
        mean = jnp.mean(h, axis=0, keepdims=True)
        diff = h - mean
        var = jnp.mean(diff * diff, axis=0, keepdims=True)
        scale = vrow(f"g{layer}") * jax.lax.rsqrt(var + BN_EPS)  # (1,N) row math first
        return diff * scale + vrow(f"be{layer}")

    h = x_ref[...]  # (B, 784) f32
    for layer in range(1, 5):
        h = jnp.maximum(linear(h, layer), 0.0)
        h = batchnorm(h, layer)
    o_ref[...] = linear(h, 5)  # (B, 128) lane-dense store


def _forward_fused(x2d, params):
    qws, vec = params[:5], params[5]
    batch = x2d.shape[0]
    w_bytes = sum(int(w.size) for w in qws)  # int8 -> 1 byte/elem
    act_bytes = 4 * batch * (PAD_DIMS[0] + 3 * sum(PAD_DIMS[1:5]) + PAD_DIMS[5])
    # Honest request (never clamped below the footprint); the FUSED_MAX_BATCH
    # switch keeps this far under v7x's 64 MiB-per-TensorCore VMEM.
    vmem_limit = int(max(16 << 20,
                         4 * w_bytes + 4 * int(vec.size) + act_bytes + (8 << 20)))

    vmem = pl.BlockSpec(memory_space=pltpu.MemorySpace.VMEM)
    return pl.pallas_call(
        _fused_kernel,
        out_shape=jax.ShapeDtypeStruct((batch, PAD_DIMS[5]), jnp.float32),
        in_specs=[vmem] * 7,
        out_specs=vmem,
        compiler_params=pltpu.CompilerParams(vmem_limit_bytes=vmem_limit),
    )(x2d, *qws, vec)


# --------------------------------------------------------------------------- #
# Tiled path: per-layer batch-tiled pipeline with full-batch BN statistics.   #
# --------------------------------------------------------------------------- #
def _make_layer_kernel(*, apply_relu, batch, tile):
    """One layer: input affine (= previous layer's BatchNorm, built from
    FULL-batch statistics in the wrapper), Linear (+ ReLU), and accumulation of
    this layer's full-batch sum / sum-of-squares across batch tiles."""
    needs_mask = (batch % tile) != 0

    def kernel(h_ref, w_ref, isc_ref, ish_ref, wsc_ref, b_ref,
               o_ref, sum_ref, sq_ref, wbf_ref):
        i = pl.program_id(0)

        @pl.when(i == 0)
        def _init():
            # Dequantize the resident int8 weight once per call.
            wbf_ref[...] = w_ref[...].astype(jnp.float32).astype(jnp.bfloat16)
            sum_ref[...] = jnp.zeros_like(sum_ref)
            sq_ref[...] = jnp.zeros_like(sq_ref)

        h = h_ref[...]
        if needs_mask:
            rows = i * tile + jax.lax.broadcasted_iota(jnp.int32, (tile, 1), 0)
            valid = rows < batch
            h = jnp.where(valid, h, 0.0)  # neutralize OOB rows of a partial tile
        h = h * isc_ref[...] + ish_ref[...]  # previous layer's BatchNorm as affine
        y = jnp.dot(h.astype(jnp.bfloat16), wbf_ref[...],
                    preferred_element_type=jnp.float32)
        y = y * wsc_ref[...] + b_ref[...]
        if apply_relu:
            y = jnp.maximum(y, 0.0)
        o_ref[...] = y

        ym = jnp.where(valid, y, 0.0) if needs_mask else y
        sum_ref[...] += jnp.sum(ym, axis=0, keepdims=True)
        sq_ref[...] += jnp.sum(ym * ym, axis=0, keepdims=True)

    return kernel


def _layer_call(h, w_q, in_scale, in_shift, w_scale, bias, *, apply_relu, tile):
    batch, in_dim = h.shape
    out_dim = w_q.shape[1]
    num_tiles = pl.cdiv(batch, tile)
    kernel = _make_layer_kernel(apply_relu=apply_relu, batch=batch, tile=tile)

    # Honest VMEM request: resident int8 weight + bf16 dequant scratch, double-
    # buffered streamed h/out tiles, parameter rows, temporaries, + headroom.
    w_elems = int(w_q.size)
    need = (4 * w_elems + 12 * tile * in_dim + 16 * tile * out_dim
            + 64 * (in_dim + out_dim) + (1 << 20))
    vmem_limit = int(max(need + (4 << 20), 8 << 20))

    grid_spec = pltpu.PrefetchScalarGridSpec(
        num_scalar_prefetch=0,
        grid=(num_tiles,),
        in_specs=[
            pl.BlockSpec((tile, in_dim), lambda i: (i, 0)),     # streamed activations
            pl.BlockSpec((in_dim, out_dim), lambda i: (0, 0)),  # resident int8 weight
            pl.BlockSpec((1, in_dim), lambda i: (0, 0)),        # resident in_scale row
            pl.BlockSpec((1, in_dim), lambda i: (0, 0)),        # resident in_shift row
            pl.BlockSpec((1, out_dim), lambda i: (0, 0)),       # resident weight-scale row
            pl.BlockSpec((1, out_dim), lambda i: (0, 0)),       # resident bias row
        ],
        out_specs=(
            pl.BlockSpec((tile, out_dim), lambda i: (i, 0)),    # streamed output
            pl.BlockSpec((1, out_dim), lambda i: (0, 0)),       # resident sum accumulator
            pl.BlockSpec((1, out_dim), lambda i: (0, 0)),       # resident sum-of-squares
        ),
        scratch_shapes=[pltpu.VMEM((in_dim, out_dim), jnp.bfloat16)],
    )
    # TODO(synk): v7x megacore - make this axis "parallel" with per-core partial
    # BN sums combined afterwards; the cross-tile accumulators force "arbitrary".
    return pl.pallas_call(
        kernel,
        out_shape=(jax.ShapeDtypeStruct((batch, out_dim), jnp.float32),
                   jax.ShapeDtypeStruct((1, out_dim), jnp.float32),
                   jax.ShapeDtypeStruct((1, out_dim), jnp.float32)),
        grid_spec=grid_spec,
        compiler_params=pltpu.CompilerParams(
            dimension_semantics=("arbitrary",),
            vmem_limit_bytes=vmem_limit),
    )(h, w_q, in_scale, in_shift, w_scale, bias)


def _forward_tiled(x2d, params, tile):
    qws, vec = params[:5], params[5]
    batch = x2d.shape[0]
    tile = max(8, min(-(-int(tile) // 8) * 8, -(-batch // 8) * 8))

    h = x2d
    in_scale = jnp.ones((1, INPUT_SIZE), jnp.float32)   # layer 1: identity affine
    in_shift = jnp.zeros((1, INPUT_SIZE), jnp.float32)
    for layer in range(1, 6):
        last = layer == 5
        y, s1, s2 = _layer_call(
            h, qws[layer - 1], in_scale, in_shift,
            _vec_row(vec, f"ws{layer}"), _vec_row(vec, f"b{layer}"),
            apply_relu=not last, tile=tile)
        if last:
            return y
        # Full-batch training-mode BN statistics -> next layer's input affine.
        mean = s1 / batch
        var = jnp.maximum(s2 / batch - mean * mean, 0.0)  # biased variance
        in_scale = _vec_row(vec, f"g{layer}") * jax.lax.rsqrt(var + BN_EPS)
        in_shift = _vec_row(vec, f"be{layer}") - mean * in_scale
        h = y


# --------------------------------------------------------------------------- #
# Public forward + parameter init + pure-JAX reference.                        #
# --------------------------------------------------------------------------- #
@functools.partial(jax.jit, static_argnames=("batch_tile",))
def fcn_forward(x, params, batch_tile=None):
    """Forward pass.  batch_tile=None: auto (fused for small batch, tiled for
    large); batch_tile=0: force fused; batch_tile=k>0: force tiled with tile k."""
    x2d = x.reshape(-1, INPUT_SIZE).astype(jnp.float32)  # x.view(-1, 784)
    batch = x2d.shape[0]
    if batch < 2:
        raise ValueError("training-mode BatchNorm1d needs batch >= 2 "
                         "(PyTorch raises on batch == 1)")
    if batch_tile is None:
        batch_tile = 0 if batch <= FUSED_MAX_BATCH else DEFAULT_BATCH_TILE
    if batch_tile == 0:
        out = _forward_fused(x2d, params)
    else:
        out = _forward_tiled(x2d, params, int(batch_tile))
    # TODO(synk): downstream consumers could keep the lane-padded (B, 128) logits
    # and fuse this slice away.
    return out[:, :OUTPUT_SIZE]


def init_params(key):
    """Parameters matching fresh nn.Module defaults, stored kernel-ready:
    5 int8 weight matrices (in, out_pad) with per-output-channel scales, plus a
    single packed (1, VEC_TOTAL) f32 row of biases / gammas / betas / scales."""
    qweights = []
    vec = jnp.zeros((1, VEC_TOTAL), jnp.float32)
    for layer in range(1, 6):
        fan_in, fan_out = REAL_DIMS[layer - 1], REAL_DIMS[layer]
        in_store, out_pad = PAD_DIMS[layer - 1], PAD_DIMS[layer]
        key, wk, bk = jax.random.split(key, 3)
        bound = 1.0 / float(fan_in) ** 0.5
        w = jax.random.uniform(wk, (fan_in, fan_out), jnp.float32, -bound, bound)
        b = jax.random.uniform(bk, (fan_out,), jnp.float32, -bound, bound)
        # Symmetric per-output-channel int8 quantization; scale folded into the
        # epilogue.  Halves weight DMA; padded rows/cols stay exactly zero.
        scale = jnp.maximum(jnp.max(jnp.abs(w), axis=0), 1e-12) / 127.0
        q = jnp.clip(jnp.round(w / scale), -127.0, 127.0).astype(jnp.int8)
        q_pad = jnp.zeros((in_store, out_pad), jnp.int8).at[:fan_in, :fan_out].set(q)
        qweights.append(q_pad)

        b_off, _ = VEC_LAYOUT[f"b{layer}"]
        vec = vec.at[0, b_off:b_off + fan_out].set(b)
        s_off, _ = VEC_LAYOUT[f"ws{layer}"]
        vec = vec.at[0, s_off:s_off + fan_out].set(scale)
        if layer < 5:
            g_off, _ = VEC_LAYOUT[f"g{layer}"]
            vec = vec.at[0, g_off:g_off + fan_out].set(1.0)  # BN gamma = 1
            # BN beta stays 0 (and padded lanes stay exactly 0 end-to-end).
    return tuple(qweights) + (vec,)


def fcn_reference(x, params):
    """Pure-JAX (XLA) reference using the same int8 weights / packed vector."""
    qws, vec = params[:5], params[5]
    h = x.reshape(-1, INPUT_SIZE).astype(jnp.float32)
    for layer in range(1, 6):
        wq = qws[layer - 1].astype(jnp.float32).astype(jnp.bfloat16)
        y = jnp.dot(h.astype(jnp.bfloat16), wq, preferred_element_type=jnp.float32)
        y = y * _vec_row(vec, f"ws{layer}") + _vec_row(vec, f"b{layer}")
        if layer == 5:
            return y[:, :OUTPUT_SIZE]
        h = jnp.maximum(y, 0.0)
        mean = jnp.mean(h, axis=0, keepdims=True)
        var = jnp.mean((h - mean) ** 2, axis=0, keepdims=True)
        scale = _vec_row(vec, f"g{layer}") * jax.lax.rsqrt(var + BN_EPS)
        h = (h - mean) * scale + _vec_row(vec, f"be{layer}")


if __name__ == "__main__":
    key = jax.random.PRNGKey(0)
    key, xk, pk = jax.random.split(key, 3)

    # Batch of 128: multiple of 16 (bf16 sublane pack) and a full MXU M block,
    # per the review's guidance; still a small demo shape.
    batch = 128
    x = jax.random.normal(xk, (batch, 1, 28, 28), jnp.float32)  # NCHW, flattened inside
    params = init_params(pk)

    out_fused = jax.block_until_ready(fcn_forward(x, params))                   # fused path
    out_tiled = jax.block_until_ready(fcn_forward(x, params, batch_tile=64))    # streamed path
    ref = fcn_reference(x, params)

    assert out_fused.shape == (batch, OUTPUT_SIZE), out_fused.shape
    assert out_tiled.shape == (batch, OUTPUT_SIZE), out_tiled.shape
    assert jnp.allclose(out_fused, ref, atol=1e-2, rtol=1e-2), "fused path mismatch vs reference"
    assert jnp.allclose(out_tiled, ref, atol=1e-2, rtol=1e-2), "tiled path mismatch vs reference"
    assert jnp.allclose(out_tiled, out_fused, atol=1e-2, rtol=1e-2), "paths disagree"

    print("KERNEL_OK")
</pallas_src>

<mosaic_0001>
module attributes {stable_mosaic.version = 11 : i64} {
  func.func @_fused_kernel(%arg0: memref<128x784xf32, #tpu.memory_space<vmem>>, %arg1: memref<784x512xi8, #tpu.memory_space<vmem>>, %arg2: memref<512x384xi8, #tpu.memory_space<vmem>>, %arg3: memref<384x256xi8, #tpu.memory_space<vmem>>, %arg4: memref<256x128xi8, #tpu.memory_space<vmem>>, %arg5: memref<128x128xi8, #tpu.memory_space<vmem>>, %arg6: memref<1x5376xf32, #tpu.memory_space<vmem>>, %arg7: memref<128x128xf32, #tpu.memory_space<vmem>>) attributes {dimension_semantics = [], scalar_prefetch = 0 : i64, scratch_operands = 0 : i64, tpu.core_type = #tpu.core_type<tc>} {
    %c0 = arith.constant 0 : index
    %c0_0 = arith.constant 0 : index
    %0 = vector.load %arg0[%c0, %c0_0] : memref<128x784xf32, #tpu.memory_space<vmem>>, vector<128x784xf32>
    %c0_1 = arith.constant 0 : index
    %c0_2 = arith.constant 0 : index
    %1 = vector.load %arg1[%c0_1, %c0_2] : memref<784x512xi8, #tpu.memory_space<vmem>>, vector<784x512xi8>
    %2 = arith.sitofp %1 : vector<784x512xi8> to vector<784x512xf32>
    %3 = arith.truncf %2 : vector<784x512xf32> to vector<784x512xbf16>
    %4 = arith.truncf %0 : vector<128x784xf32> to vector<128x784xbf16>
    %cst = arith.constant dense<0.000000e+00> : vector<128x512xf32>
    %5 = tpu.matmul %4, %3, %cst {dimension_numbers = #tpu.dot_dimension_numbers<[1], [0], [0], [1], [0, 0, 1, 1], [], []>} : vector<128x784xbf16>, vector<784x512xbf16>, vector<128x512xf32> -> vector<128x512xf32>
    %c0_3 = arith.constant 0 : index
    %c1536 = arith.constant 1536 : index
    %6 = vector.load %arg6[%c0_3, %c1536] : memref<1x5376xf32, #tpu.memory_space<vmem>>, vector<1x512xf32>
    %7 = vector.broadcast %6 : vector<1x512xf32> to vector<128x512xf32>
    %8 = arith.mulf %5, %7 : vector<128x512xf32>
    %c0_4 = arith.constant 0 : index
    %c0_5 = arith.constant 0 : index
    %9 = vector.load %arg6[%c0_4, %c0_5] : memref<1x5376xf32, #tpu.memory_space<vmem>>, vector<1x512xf32>
    %10 = vector.broadcast %9 : vector<1x512xf32> to vector<128x512xf32>
    %11 = arith.addf %8, %10 : vector<128x512xf32>
    %cst_6 = arith.constant 0.000000e+00 : f32
    %12 = vector.broadcast %cst_6 : f32 to vector<128x512xf32>
    %13 = arith.maximumf %11, %12 : vector<128x512xf32>
    %cst_7 = arith.constant dense<0.000000e+00> : vector<512xf32>
    %14 = vector.multi_reduction <add>, %13, %cst_7 [0] : vector<128x512xf32> to vector<512xf32>
    %15 = vector.shape_cast %14 : vector<512xf32> to vector<1x512xf32>
    %cst_8 = arith.constant 1.280000e+02 : f32
    %16 = vector.broadcast %cst_8 : f32 to vector<1x512xf32>
    %17 = arith.divf %15, %16 : vector<1x512xf32>
    %18 = vector.broadcast %17 : vector<1x512xf32> to vector<128x512xf32>
    %19 = arith.subf %13, %18 : vector<128x512xf32>
    %20 = arith.mulf %19, %19 : vector<128x512xf32>
    %cst_9 = arith.constant dense<0.000000e+00> : vector<512xf32>
    %21 = vector.multi_reduction <add>, %20, %cst_9 [0] : vector<128x512xf32> to vector<512xf32>
    %22 = vector.shape_cast %21 : vector<512xf32> to vector<1x512xf32>
    %cst_10 = arith.constant 1.280000e+02 : f32
    %23 = vector.broadcast %cst_10 : f32 to vector<1x512xf32>
    %24 = arith.divf %22, %23 : vector<1x512xf32>
    %c0_11 = arith.constant 0 : index
    %c512 = arith.constant 512 : index
    %25 = vector.load %arg6[%c0_11, %c512] : memref<1x5376xf32, #tpu.memory_space<vmem>>, vector<1x512xf32>
    %cst_12 = arith.constant 9.99999974E-6 : f32
    %26 = vector.broadcast %cst_12 : f32 to vector<1x512xf32>
    %27 = arith.addf %24, %26 : vector<1x512xf32>
    %28 = math.rsqrt %27 : vector<1x512xf32>
    %29 = arith.mulf %25, %28 : vector<1x512xf32>
    %30 = vector.broadcast %29 : vector<1x512xf32> to vector<128x512xf32>
    %31 = arith.mulf %19, %30 : vector<128x512xf32>
    %c0_13 = arith.constant 0 : index
    %c1024 = arith.constant 1024 : index
    %32 = vector.load %arg6[%c0_13, %c1024] : memref<1x5376xf32, #tpu.memory_space<vmem>>, vector<1x512xf32>
    %33 = vector.broadcast %32 : vector<1x512xf32> to vector<128x512xf32>
    %34 = arith.addf %31, %33 : vector<128x512xf32>
    %c0_14 = arith.constant 0 : index
    %c0_15 = arith.constant 0 : index
    %35 = vector.load %arg2[%c0_14, %c0_15] : memref<512x384xi8, #tpu.memory_space<vmem>>, vector<512x384xi8>
    %36 = arith.sitofp %35 : vector<512x384xi8> to vector<512x384xf32>
    %37 = arith.truncf %36 : vector<512x384xf32> to vector<512x384xbf16>
    %38 = arith.truncf %34 : vector<128x512xf32> to vector<128x512xbf16>
    %cst_16 = arith.constant dense<0.000000e+00> : vector<128x384xf32>
    %39 = tpu.matmul %38, %37, %cst_16 {dimension_numbers = #tpu.dot_dimension_numbers<[1], [0], [0], [1], [0, 0, 1, 1], [], []>} : vector<128x512xbf16>, vector<512x384xbf16>, vector<128x384xf32> -> vector<128x384xf32>
    %c0_17 = arith.constant 0 : index
    %c3200 = arith.constant 3200 : index
    %40 = vector.load %arg6[%c0_17, %c3200] : memref<1x5376xf32, #tpu.memory_space<vmem>>, vector<1x384xf32>
    %41 = vector.broadcast %40 : vector<1x384xf32> to vector<128x384xf32>
    %42 = arith.mulf %39, %41 : vector<128x384xf32>
    %c0_18 = arith.constant 0 : index
    %c2048 = arith.constant 2048 : index
    %43 = vector.load %arg6[%c0_18, %c2048] : memref<1x5376xf32, #tpu.memory_space<vmem>>, vector<1x384xf32>
    %44 = vector.broadcast %43 : vector<1x384xf32> to vector<128x384xf32>
    %45 = arith.addf %42, %44 : vector<128x384xf32>
    %cst_19 = arith.constant 0.000000e+00 : f32
    %46 = vector.broadcast %cst_19 : f32 to vector<128x384xf32>
    %47 = arith.maximumf %45, %46 : vector<128x384xf32>
    %cst_20 = arith.constant dense<0.000000e+00> : vector<384xf32>
    %48 = vector.multi_reduction <add>, %47, %cst_20 [0] : vector<128x384xf32> to vector<384xf32>
    %49 = vector.shape_cast %48 : vector<384xf32> to vector<1x384xf32>
    %cst_21 = arith.constant 1.280000e+02 : f32
    %50 = vector.broadcast %cst_21 : f32 to vector<1x384xf32>
    %51 = arith.divf %49, %50 : vector<1x384xf32>
    %52 = vector.broadcast %51 : vector<1x384xf32> to vector<128x384xf32>
    %53 = arith.subf %47, %52 : vector<128x384xf32>
    %54 = arith.mulf %53, %53 : vector<128x384xf32>
    %cst_22 = arith.constant dense<0.000000e+00> : vector<384xf32>
    %55 = vector.multi_reduction <add>, %54, %cst_22 [0] : vector<128x384xf32> to vector<384xf32>
    %56 = vector.shape_cast %55 : vector<384xf32> to vector<1x384xf32>
    %cst_23 = arith.constant 1.280000e+02 : f32
    %57 = vector.broadcast %cst_23 : f32 to vector<1x384xf32>
    %58 = arith.divf %56, %57 : vector<1x384xf32>
    %c0_24 = arith.constant 0 : index
    %c2432 = arith.constant 2432 : index
    %59 = vector.load %arg6[%c0_24, %c2432] : memref<1x5376xf32, #tpu.memory_space<vmem>>, vector<1x384xf32>
    %cst_25 = arith.constant 9.99999974E-6 : f32
    %60 = vector.broadcast %cst_25 : f32 to vector<1x384xf32>
    %61 = arith.addf %58, %60 : vector<1x384xf32>
    %62 = math.rsqrt %61 : vector<1x384xf32>
    %63 = arith.mulf %59, %62 : vector<1x384xf32>
    %64 = vector.broadcast %63 : vector<1x384xf32> to vector<128x384xf32>
    %65 = arith.mulf %53, %64 : vector<128x384xf32>
    %c0_26 = arith.constant 0 : index
    %c2816 = arith.constant 2816 : index
    %66 = vector.load %arg6[%c0_26, %c2816] : memref<1x5376xf32, #tpu.memory_space<vmem>>, vector<1x384xf32>
    %67 = vector.broadcast %66 : vector<1x384xf32> to vector<128x384xf32>
    %68 = arith.addf %65, %67 : vector<128x384xf32>
    %c0_27 = arith.constant 0 : index
    %c0_28 = arith.constant 0 : index
    %69 = vector.load %arg3[%c0_27, %c0_28] : memref<384x256xi8, #tpu.memory_space<vmem>>, vector<384x256xi8>
    %70 = arith.sitofp %69 : vector<384x256xi8> to vector<384x256xf32>
    %71 = arith.truncf %70 : vector<384x256xf32> to vector<384x256xbf16>
    %72 = arith.truncf %68 : vector<128x384xf32> to vector<128x384xbf16>
    %cst_29 = arith.constant dense<0.000000e+00> : vector<128x256xf32>
    %73 = tpu.matmul %72, %71, %cst_29 {dimension_numbers = #tpu.dot_dimension_numbers<[1], [0], [0], [1], [0, 0, 1, 1], [], []>} : vector<128x384xbf16>, vector<384x256xbf16>, vector<128x256xf32> -> vector<128x256xf32>
    %c0_30 = arith.constant 0 : index
    %c4352 = arith.constant 4352 : index
    %74 = vector.load %arg6[%c0_30, %c4352] : memref<1x5376xf32, #tpu.memory_space<vmem>>, vector<1x256xf32>
    %75 = vector.broadcast %74 : vector<1x256xf32> to vector<128x256xf32>
    %76 = arith.mulf %73, %75 : vector<128x256xf32>
    %c0_31 = arith.constant 0 : index
    %c3584 = arith.constant 3584 : index
    %77 = vector.load %arg6[%c0_31, %c3584] : memref<1x5376xf32, #tpu.memory_space<vmem>>, vector<1x256xf32>
    %78 = vector.broadcast %77 : vector<1x256xf32> to vector<128x256xf32>
    %79 = arith.addf %76, %78 : vector<128x256xf32>
    %cst_32 = arith.constant 0.000000e+00 : f32
    %80 = vector.broadcast %cst_32 : f32 to vector<128x256xf32>
    %81 = arith.maximumf %79, %80 : vector<128x256xf32>
    %cst_33 = arith.constant dense<0.000000e+00> : vector<256xf32>
    %82 = vector.multi_reduction <add>, %81, %cst_33 [0] : vector<128x256xf32> to vector<256xf32>
    %83 = vector.shape_cast %82 : vector<256xf32> to vector<1x256xf32>
    %cst_34 = arith.constant 1.280000e+02 : f32
    %84 = vector.broadcast %cst_34 : f32 to vector<1x256xf32>
    %85 = arith.divf %83, %84 : vector<1x256xf32>
    %86 = vector.broadcast %85 : vector<1x256xf32> to vector<128x256xf32>
    %87 = arith.subf %81, %86 : vector<128x256xf32>
    %88 = arith.mulf %87, %87 : vector<128x256xf32>
    %cst_35 = arith.constant dense<0.000000e+00> : vector<256xf32>
    %89 = vector.multi_reduction <add>, %88, %cst_35 [0] : vector<128x256xf32> to vector<256xf32>
    %90 = vector.shape_cast %89 : vector<256xf32> to vector<1x256xf32>
    %cst_36 = arith.constant 1.280000e+02 : f32
    %91 = vector.broadcast %cst_36 : f32 to vector<1x256xf32>
    %92 = arith.divf %90, %91 : vector<1x256xf32>
    %c0_37 = arith.constant 0 : index
    %c3840 = arith.constant 3840 : index
    %93 = vector.load %arg6[%c0_37, %c3840] : memref<1x5376xf32, #tpu.memory_space<vmem>>, vector<1x256xf32>
    %cst_38 = arith.constant 9.99999974E-6 : f32
    %94 = vector.broadcast %cst_38 : f32 to vector<1x256xf32>
    %95 = arith.addf %92, %94 : vector<1x256xf32>
    %96 = math.rsqrt %95 : vector<1x256xf32>
    %97 = arith.mulf %93, %96 : vector<1x256xf32>
    %98 = vector.broadcast %97 : vector<1x256xf32> to vector<128x256xf32>
    %99 = arith.mulf %87, %98 : vector<128x256xf32>
    %c0_39 = arith.constant 0 : index
    %c4096 = arith.constant 4096 : index
    %100 = vector.load %arg6[%c0_39, %c4096] : memref<1x5376xf32, #tpu.memory_space<vmem>>, vector<1x256xf32>
    %101 = vector.broadcast %100 : vector<1x256xf32> to vector<128x256xf32>
    %102 = arith.addf %99, %101 : vector<128x256xf32>
    %c0_40 = arith.constant 0 : index
    %c0_41 = arith.constant 0 : index
    %103 = vector.load %arg4[%c0_40, %c0_41] : memref<256x128xi8, #tpu.memory_space<vmem>>, vector<256x128xi8>
    %104 = arith.sitofp %103 : vector<256x128xi8> to vector<256x128xf32>
    %105 = arith.truncf %104 : vector<256x128xf32> to vector<256x128xbf16>
    %106 = arith.truncf %102 : vector<128x256xf32> to vector<128x256xbf16>
    %cst_42 = arith.constant dense<0.000000e+00> : vector<128x128xf32>
    %107 = tpu.matmul %106, %105, %cst_42 {dimension_numbers = #tpu.dot_dimension_numbers<[1], [0], [0], [1], [0, 0, 1, 1], [], []>} : vector<128x256xbf16>, vector<256x128xbf16>, vector<128x128xf32> -> vector<128x128xf32>
    %c0_43 = arith.constant 0 : index
    %c4992 = arith.constant 4992 : index
    %108 = vector.load %arg6[%c0_43, %c4992] : memref<1x5376xf32, #tpu.memory_space<vmem>>, vector<1x128xf32>
    %109 = vector.broadcast %108 : vector<1x128xf32> to vector<128x128xf32>
    %110 = arith.mulf %107, %109 : vector<128x128xf32>
    %c0_44 = arith.constant 0 : index
    %c4608 = arith.constant 4608 : index
    %111 = vector.load %arg6[%c0_44, %c4608] : memref<1x5376xf32, #tpu.memory_space<vmem>>, vector<1x128xf32>
    %112 = vector.broadcast %111 : vector<1x128xf32> to vector<128x128xf32>
    %113 = arith.addf %110, %112 : vector<128x128xf32>
    %cst_45 = arith.constant 0.000000e+00 : f32
    %114 = vector.broadcast %cst_45 : f32 to vector<128x128xf32>
    %115 = arith.maximumf %113, %114 : vector<128x128xf32>
    %cst_46 = arith.constant dense<0.000000e+00> : vector<128xf32>
    %116 = vector.multi_reduction <add>, %115, %cst_46 [0] : vector<128x128xf32> to vector<128xf32>
    %117 = vector.shape_cast %116 : vector<128xf32> to vector<1x128xf32>
    %cst_47 = arith.constant 1.280000e+02 : f32
    %118 = vector.broadcast %cst_47 : f32 to vector<1x128xf32>
    %119 = arith.divf %117, %118 : vector<1x128xf32>
    %120 = vector.broadcast %119 : vector<1x128xf32> to vector<128x128xf32>
    %121 = arith.subf %115, %120 : vector<128x128xf32>
    %122 = arith.mulf %121, %121 : vector<128x128xf32>
    %cst_48 = arith.constant dense<0.000000e+00> : vector<128xf32>
    %123 = vector.multi_reduction <add>, %122, %cst_48 [0] : vector<128x128xf32> to vector<128xf32>
    %124 = vector.shape_cast %123 : vector<128xf32> to vector<1x128xf32>
    %cst_49 = arith.constant 1.280000e+02 : f32
    %125 = vector.broadcast %cst_49 : f32 to vector<1x128xf32>
    %126 = arith.divf %124, %125 : vector<1x128xf32>
    %c0_50 = arith.constant 0 : index
    %c4736 = arith.constant 4736 : index
    %127 = vector.load %arg6[%c0_50, %c4736] : memref<1x5376xf32, #tpu.memory_space<vmem>>, vector<1x128xf32>
    %cst_51 = arith.constant 9.99999974E-6 : f32
    %128 = vector.broadcast %cst_51 : f32 to vector<1x128xf32>
    %129 = arith.addf %126, %128 : vector<1x128xf32>
    %130 = math.rsqrt %129 : vector<1x128xf32>
    %131 = arith.mulf %127, %130 : vector<1x128xf32>
    %132 = vector.broadcast %131 : vector<1x128xf32> to vector<128x128xf32>
    %133 = arith.mulf %121, %132 : vector<128x128xf32>
    %c0_52 = arith.constant 0 : index
    %c4864 = arith.constant 4864 : index
    %134 = vector.load %arg6[%c0_52, %c4864] : memref<1x5376xf32, #tpu.memory_space<vmem>>, vector<1x128xf32>
    %135 = vector.broadcast %134 : vector<1x128xf32> to vector<128x128xf32>
    %136 = arith.addf %133, %135 : vector<128x128xf32>
    %c0_53 = arith.constant 0 : index
    %c0_54 = arith.constant 0 : index
    %137 = vector.load %arg5[%c0_53, %c0_54] : memref<128x128xi8, #tpu.memory_space<vmem>>, vector<128x128xi8>
    %138 = arith.sitofp %137 : vector<128x128xi8> to vector<128x128xf32>
    %139 = arith.truncf %138 : vector<128x128xf32> to vector<128x128xbf16>
    %140 = arith.truncf %136 : vector<128x128xf32> to vector<128x128xbf16>
    %cst_55 = arith.constant dense<0.000000e+00> : vector<128x128xf32>
    %141 = tpu.matmul %140, %139, %cst_55 {dimension_numbers = #tpu.dot_dimension_numbers<[1], [0], [0], [1], [0, 0, 1, 1], [], []>} : vector<128x128xbf16>, vector<128x128xbf16>, vector<128x128xf32> -> vector<128x128xf32>
    %c0_56 = arith.constant 0 : index
    %c5248 = arith.constant 5248 : index
    %142 = vector.load %arg6[%c0_56, %c5248] : memref<1x5376xf32, #tpu.memory_space<vmem>>, vector<1x128xf32>
    %143 = vector.broadcast %142 : vector<1x128xf32> to vector<128x128xf32>
    %144 = arith.mulf %141, %143 : vector<128x128xf32>
    %c0_57 = arith.constant 0 : index
    %c5120 = arith.constant 5120 : index
    %145 = vector.load %arg6[%c0_57, %c5120] : memref<1x5376xf32, #tpu.memory_space<vmem>>, vector<1x128xf32>
    %146 = vector.broadcast %145 : vector<1x128xf32> to vector<128x128xf32>
    %147 = arith.addf %144, %146 : vector<128x128xf32>
    %c0_58 = arith.constant 0 : index
    %c0_59 = arith.constant 0 : index
    %148 = vector.load %arg7[%c0_58, %c0_59] : memref<128x128xf32, #tpu.memory_space<vmem>>, vector<128x128xf32>
    tpu.vector_store %arg7[%c0_58, %c0_59], %147 {strides = array<i32>} : memref<128x128xf32, #tpu.memory_space<vmem>>, vector<128x128xf32>,
    return
  }
}

</mosaic_0001>

<bundles_post_ra>
// kernel: fcn_forward.1
= control target key start
LH: loop header
LB: loop body
LE: loop exit
PB: predicated region body
PF: predicated region fallthrough
CT: control target
= control target key end

     0   :  { %vm1273_vm0 = vcmask 130048   ;;  %vm3245_vm8 = vcmask 1040384   ;;  %vm3247_vm14 = vcmask 1042434   ;;  %vm3249_vm15 = vcmask 1041408   ;;  %s13011_s1 = inlined_call_operand.vmem [shape: s8[784,512], index: 1, kind: input, shape index: {}]   ;;  %s13012_s0 = inlined_call_operand.vmem [shape: f32[128,784], index: 0, kind: input, shape index: {}]   ;;  %s13013_s6 = inlined_call_operand.vmem [shape: f32[1,5376], index: 6, kind: input, shape index: {}]   ;;  %s13014_s2 = inlined_call_operand.vmem [shape: s8[512,384], index: 2, kind: input, shape index: {}]   ;;  %s13015_s3 = inlined_call_operand.vmem [shape: s8[384,256], index: 3, kind: input, shape index: {}]   ;;  %s13016_s4 = inlined_call_operand.vmem [shape: s8[256,128], index: 4, kind: input, shape index: {}]   ;;  %s13017_s5 = inlined_call_operand.vmem [shape: s8[128,128], index: 5, kind: input, shape index: {}]   ;;  %s13018_s7 = inlined_call_operand.vmem [shape: f32[128,128], index: 7, kind: output, shape index: {}]  }
   0x1   :  { %v6947_v0 = vld [vmem:[%s13011_s1 + $0x70] sm:$0xff]  ;;  %v6952_v1 = vld [vmem:[%s13011_s1 + $0x78] sm:$0xff]  ;;  %v6957_v2 = vld [vmem:[%s13011_s1 + $0x60] sm:$0xff] }
   0x2   :  { %v293_v3 = vunpack.c.0.s8 %v6947_v0  ;;  %v297_v4 = vunpack.c.0.s8 %v6952_v1  ;;  %v6964_v5 = vld [vmem:[%s13011_s1 + $0x68] sm:$0xff]  ;;  %v285_v6 = vunpack.c.0.s8 %v6957_v2  ;;  %v6970_v7 = vld [vmem:[%s13011_s1 + $0x50] sm:$0xff]  ;;  %v6975_v8 = vld [vmem:[%s13011_s1 + $0x58] sm:$0xff] }
   0x3   :  { %v289_v9 = vunpack.c.0.s8 %v6964_v5  ;;  %v277_v10 = vunpack.c.0.s8 %v6970_v7  ;;  %v281_v11 = vunpack.c.0.s8 %v6975_v8  ;;  %v6983_v12 = vld [vmem:[%s13011_s1 + $0x40] sm:$0xff]  ;;  %v6988_v16 = vld [vmem:[%s13011_s1 + $0x48] sm:$0xff]  ;;  %v6995_v23 = vld [vmem:[%s13011_s1 + $0x30] sm:$0xff] }
   0x4   :  { %13336 = vst [vmem:[#allocation2_spill] sm:$0xff] %v6983_v12  ;;  %v685_v13 = vcvt.s32.f32 %v293_v3  ;;  %v689_v14 = vcvt.s32.f32 %v297_v4  ;;  %v677_v15 = vcvt.s32.f32 %v285_v6  ;;  %v269_v21 = vunpack.c.0.s8 %v6983_v12  ;;  %v7000_v24 = vld [vmem:[%s13011_s1 + $0x38] sm:$0xff]  ;;  %v7005_v25 = vld [vmem:[%s13011_s1 + $0x20] sm:$0xff]  ;;  %v7010_v27 = vld [vmem:[%s13011_s1 + $0x28] sm:$0xff] }
   0x5   :  { %13337 = vst [vmem:[#allocation3_spill] sm:$0xff] %v6988_v16  ;;  %v681_v17 = vcvt.s32.f32 %v289_v9  ;;  %v669_v19 = vcvt.s32.f32 %v277_v10  ;;  %v673_v20 = vcvt.s32.f32 %v281_v11  ;;  %v273_v22 = vunpack.c.0.s8 %v6988_v16  ;;  %v141_v28 = vld [vmem:[%s13011_s1 + $0x10] sm:$0xff]  ;;  %v142_v29 = vld [vmem:[%s13011_s1 + $0x18] sm:$0xff]  ;;  %v139_v30 = vld [vmem:[%s13011_s1] sm:$0xff] }
   0x6   :  { %v1049_v18 = vpack.c.bf16 %v689_v14, %v685_v13  ;;  %13338 = vst [vmem:[#allocation4_spill] sm:$0xff] %v6995_v23  ;;  %v140_v31 = vld [vmem:[%s13011_s1 + $0x8] sm:$0xff]  ;;  %v185_v32 = vld [vmem:[%s13011_s1 + $0x170] sm:$0xff]  ;;  %v661_v34 = vcvt.s32.f32 %v269_v21  ;;  %v261_v35 = vunpack.c.0.s8 %v6995_v23  ;;  %v265_v36 = vunpack.c.0.s8 %v7000_v24  ;;  %v186_v37 = vld [vmem:[%s13011_s1 + $0x178] sm:$0xff] }
   0x7   :  { %13339 = vst [vmem:[#allocation5_spill] sm:$0xff] %v7000_v24  ;;  %v1045_v26 = vpack.c.bf16 %v681_v17, %v677_v15  ;;  %v1041_v33 = vpack.c.bf16 %v673_v20, %v669_v19  ;;  %v7035_v38 = vld [vmem:[%s13011_s1 + $0xf0] sm:$0xff]  ;;  %v7040_v39 = vld [vmem:[%s13011_s1 + $0xf8] sm:$0xff]  ;;  %v665_v40 = vcvt.s32.f32 %v273_v22  ;;  %v253_v41 = vunpack.c.0.s8 %v7005_v25  ;;  %v183_v57 = vld [vmem:[%s13011_s1 + $0x160] sm:$0xff] }
   0x8   :  { %13340 = vst [vmem:[#allocation6_spill] sm:$0xff] %v7005_v25  ;;  %6615 = vmatpush.bf16.msra.mxu1 %v1049_v18  ;;  %6616 = vmatpush.bf16.msra.mxu2 %v1049_v18  ;;  %v257_v42 = vunpack.c.0.s8 %v7010_v27  ;;  %v245_v43 = vunpack.c.0.s8 %v141_v28  ;;  %v201_v44 = vld [vmem:[%s13011_s1 + $0x1f0] sm:$0xff]  ;;  %v202_v45 = vld [vmem:[%s13011_s1 + $0x1f8] sm:$0xff]  ;;  %v249_v46 = vunpack.c.0.s8 %v142_v29  ;;  %v237_v47 = vunpack.c.0.s8 %v139_v30  ;;  %v55_v62 = vld [vmem:[%s13012_s0 + $0xe0] sm:$0xff] }
   0x9   :  { %13341 = vst [vmem:[#allocation7_spill] sm:$0xff] %v7010_v27  ;;  %6617 = vmatpush.bf16.msra.mxu3 %v1049_v18  ;;  %1298 = vmatpush.bf16.msra.mxu0 %v1049_v18  ;;  %v241_v48 = vunpack.c.0.s8 %v140_v31  ;;  %v421_v49 = vunpack.c.0.s8 %v185_v32  ;;  %v425_v50 = vunpack.c.0.s8 %v186_v37  ;;  %v357_v51 = vunpack.c.0.s8 %v7035_v38  ;;  %v62_v63 = vld [vmem:[%s13012_s0 + $0x118] sm:$0xff]  ;;  %v184_v3 = vld [vmem:[%s13011_s1 + $0x168] sm:$0xff]  ;;  %v83_v10 = vld [vmem:[%s13012_s0 + $0x1c0] sm:$0xff] }
   0xa   :  { %13342 = vst [vmem:[#allocation8_spill] sm:$0xff] %v7035_v38  ;;  %v361_v52 = vunpack.c.0.s8 %v7040_v39  ;;  %v653_v53 = vcvt.s32.f32 %v261_v35  ;;  %v657_v54 = vcvt.s32.f32 %v265_v36  ;;  %v485_v55 = vunpack.c.0.s8 %v201_v44  ;;  %v90_v11 = vld [vmem:[%s13012_s0 + $0x1f8] sm:$0xff]  ;;  %v111_v13 = vld [vmem:[%s13012_s0 + $0x2a0] sm:$0xff]  ;;  %v7092_v22 = vld [vmem:[%s13011_s1 + $0xe8] sm:$0xff] }
   0xb   :  { %13343 = vst [vmem:[#allocation9_spill] sm:$0xff] %v7040_v39  ;;  %v489_v56 = vunpack.c.0.s8 %v202_v45  ;;  %v1037_v58 = vpack.c.bf16 %v665_v40, %v661_v34  ;;  %v645_v59 = vcvt.s32.f32 %v253_v41  ;;  %v649_v60 = vcvt.s32.f32 %v257_v42  ;;  %v118_v15 = vld [vmem:[%s13012_s0 + $0x2d8] sm:$0xff]  ;;  %v7087_v21 = vld [vmem:[%s13011_s1 + $0xe0] sm:$0xff]  ;;  %v200_v35 = vld [vmem:[%s13011_s1 + $0x1e8] sm:$0xff] }
   0xc   :  { %6618 = vmatpush.bf16.msra.mxu1 %v1045_v26  ;;  %6619 = vmatpush.bf16.msra.mxu2 %v1045_v26  ;;  %v637_v61 = vcvt.s32.f32 %v245_v43  ;;  %v641_v4 = vcvt.s32.f32 %v249_v46  ;;  %v629_v6 = vcvt.s32.f32 %v237_v47  ;;  %v633_v9 = vcvt.s32.f32 %v241_v48  ;;  %13344 = vst [vmem:[#allocation10_spill] sm:$0xff] %v7087_v21  ;;  %v199_v34 = vld [vmem:[%s13011_s1 + $0x1e0] sm:$0xff]  ;;  %v217_v36 = vld [vmem:[%s13011_s1 + $0x270] sm:$0xff]  ;;  %v218_v43 = vld [vmem:[%s13011_s1 + $0x278] sm:$0xff] }
   0xd   :  { %6620 = vmatpush.bf16.msra.mxu3 %v1045_v26  ;;  %1299 = vmatpush.bf16.msra.mxu0 %v1045_v26  ;;  %v7073_v14 = vcvt.s32.f32 %v421_v49  ;;  %v7078_v17 = vcvt.s32.f32 %v425_v50  ;;  %v7080_v18 = vcvt.s32.f32 %v357_v51  ;;  %v7082_v19 = vcvt.s32.f32 %v361_v52  ;;  %13345 = vst [vmem:[#allocation11_spill] sm:$0xff] %v7092_v22  ;;  %v181_v44 = vld [vmem:[%s13011_s1 + $0x150] sm:$0xff]  ;;  %v182_v45 = vld [vmem:[%s13011_s1 + $0x158] sm:$0xff]  ;;  %v175_v25 = vld [vmem:[%s13011_s1 + $0x120] sm:$0xff] }
   0xe   :  { %v413_v20 = vunpack.c.0.s8 %v183_v57  ;;  %v7094_v26 = vcvt.s32.f32 %v485_v55  ;;  %v7096_v28 = vcvt.s32.f32 %v489_v56  ;;  %v417_v29 = vunpack.c.0.s8 %v184_v3  ;;  %v7139_v50 = vld [vmem:[%s13011_s1 + $0xd0] sm:$0xff]  ;;  %v7144_v51 = vld [vmem:[%s13011_s1 + $0xd8] sm:$0xff]  ;;  %v179_v3 = vld [vmem:[%s13011_s1 + $0x140] sm:$0xff] }
   0xf   :  { %v1033_v30 = vpack.c.bf16 %v657_v54, %v653_v53  ;;  %v7098_v31 = vpack.c.bf16 %v649_v60, %v645_v59  ;;  %v7100_v32 = vpack.c.bf16 %v62_v63, %v55_v62  ;;  %v7113_v37 = vpack.c.bf16 %v641_v4, %v637_v61  ;;  %13349 = vst [vmem:[#allocation15_spill] sm:$0xff] %v7139_v50  ;;  %v197_v52 = vld [vmem:[%s13011_s1 + $0x1d0] sm:$0xff]  ;;  %v198_v57 = vld [vmem:[%s13011_s1 + $0x1d8] sm:$0xff]  ;;  %v216_v59 = vld [vmem:[%s13011_s1 + $0x268] sm:$0xff] }
  0x10   :  { %6621 = vmatpush.bf16.msra.mxu1 %v1041_v33  ;;  %6622 = vmatpush.bf16.msra.mxu2 %v1041_v33  ;;  %v7115_v40 = vpack.c.bf16 %v118_v15, %v111_v13  ;;  %v349_v41 = vunpack.c.0.s8 %v7087_v21  ;;  %v353_v42 = vunpack.c.0.s8 %v7092_v22  ;;  %v7128_v46 = vpack.c.bf16 %v633_v9, %v629_v6  ;;  %13350 = vst [vmem:[#allocation16_spill] sm:$0xff] %v7144_v51  ;;  %v180_v4 = vld [vmem:[%s13011_s1 + $0x148] sm:$0xff]  ;;  %v211_v22 = vld [vmem:[%s13011_s1 + $0x240] sm:$0xff] }
  0x11   :  { %6623 = vmatpush.bf16.msra.mxu3 %v1041_v33  ;;  %1300 = vmatpush.bf16.msra.mxu0 %v1041_v33  ;;  %13346 = vst [vmem:[#allocation12_spill] sm:$0xff] %v7100_v32  ;;  %v7102_v33 = vpack.c.bf16 %v90_v11, %v83_v10  ;;  %v7134_v49 = vcvt.s32.f32 %v413_v20  ;;  %v7151_v54 = vcvt.s32.f32 %v417_v29  ;;  %v477_v55 = vunpack.c.0.s8 %v199_v34  ;;  %v7177_v34 = vld [vmem:[%s13011_s1 + $0xc0] sm:$0xff]  ;;  %v212_v21 = vld [vmem:[%s13011_s1 + $0x248] sm:$0xff] }
  0x12   :  { %13348 = vst [vmem:[#allocation14_spill] sm:$0xff] %v7115_v40  ;;  %v481_v56 = vunpack.c.0.s8 %v200_v35  ;;  %v549_v60 = vunpack.c.0.s8 %v217_v36  ;;  %v553_v61 = vunpack.c.0.s8 %v218_v43  ;;  %v405_v62 = vunpack.c.0.s8 %v181_v44  ;;  %v7182_v35 = vld [vmem:[%s13011_s1 + $0xc8] sm:$0xff] }
  0x13   :  { %13347 = vst [vmem:[#allocation13_spill] sm:$0xff] %v7102_v33  ;;  %v409_v63 = vunpack.c.0.s8 %v182_v45  ;;  %v7168_v6 = vcvt.s32.f32 %v349_v41  ;;  %v7170_v9 = vcvt.s32.f32 %v353_v42  ;;  %v341_v10 = vunpack.c.0.s8 %v7139_v50  ;;  %v97_v50 = vld [vmem:[%s13012_s0 + $0x230] sm:$0xff] }
  0x14   :  { %6624 = vmatpush.bf16.msra.mxu1 %v1037_v58  ;;  %6625 = vmatpush.bf16.msra.mxu2 %v1037_v58  ;;  %v345_v11 = vunpack.c.0.s8 %v7144_v51  ;;  %v469_v13 = vunpack.c.0.s8 %v197_v52  ;;  %v473_v15 = vunpack.c.0.s8 %v198_v57  ;;  %v545_v29 = vunpack.c.0.s8 %v216_v59  ;;  %13351 = vst [vmem:[#allocation17_spill] sm:$0xff] %v7177_v34  ;;  %v195_v57 = vld [vmem:[%s13011_s1 + $0x1c0] sm:$0xff]  ;;  %v193_v51 = vld [vmem:[%s13011_s1 + $0x1b0] sm:$0xff] }
  0x15   :  { %6626 = vmatpush.bf16.msra.mxu3 %v1037_v58  ;;  %1301 = vmatpush.bf16.msra.mxu0 %v1037_v58  ;;  %v215_v58 = vld [vmem:[%s13011_s1 + $0x260] sm:$0xff]  ;;  %13352 = vst [vmem:[#allocation18_spill] sm:$0xff] %v7182_v35  ;;  %v7184_v36 = vcvt.s32.f32 %v477_v55  ;;  %v7186_v41 = vcvt.s32.f32 %v481_v56  ;;  %v397_v42 = vunpack.c.0.s8 %v179_v3  ;;  %v7188_v43 = vcvt.s32.f32 %v549_v60  ;;  %v196_v55 = vld [vmem:[%s13011_s1 + $0x1c8] sm:$0xff] }
  0x16   :  { %v541_v20 = vunpack.c.0.s8 %v215_v58  ;;  %v7190_v44 = vcvt.s32.f32 %v553_v61  ;;  %v7192_v45 = vcvt.s32.f32 %v405_v62  ;;  %v7194_v52 = vcvt.s32.f32 %v409_v63  ;;  %v27_v56 = vld [vmem:[%s13012_s0] sm:$0xff]  ;;  %v34_v58 = vld [vmem:[%s13012_s0 + $0x38] sm:$0xff] }
  0x17   :  { %v7210_v59 = vcvt.s32.f32 %v341_v10  ;;  %v7212_v60 = vcvt.s32.f32 %v345_v11  ;;  %v333_v61 = vunpack.c.0.s8 %v7177_v34  ;;  %v337_v62 = vunpack.c.0.s8 %v7182_v35  ;;  %v213_v10 = vld [vmem:[%s13011_s1 + $0x250] sm:$0xff]  ;;  %v76_v34 = vld [vmem:[%s13012_s0 + $0x188] sm:$0xff] }
  0x18   :  { %6627 = vmatpush.bf16.msra.mxu1 %v1033_v30  ;;  %6628 = vmatpush.bf16.msra.mxu2 %v1033_v30  ;;  %v7218_v63 = vcvt.s32.f32 %v469_v13  ;;  %v7220_v3 = vcvt.s32.f32 %v473_v15  ;;  %v7224_v53 = vcvt.s32.f32 %v545_v29  ;;  %v7229_v11 = vcvt.s32.f32 %v397_v42  ;;  %v177_v42 = vld [vmem:[%s13011_s1 + $0x130] sm:$0xff] }
  0x19   :  { %6629 = vmatpush.bf16.msra.mxu3 %v1033_v30  ;;  %1302 = vmatpush.bf16.msra.mxu0 %v1033_v30  ;;  %v401_v30 = vunpack.c.0.s8 %v180_v4  ;;  %v7222_v4 = vcvt.s32.f32 %v541_v20  ;;  %v461_v47 = vunpack.c.0.s8 %v195_v57  ;;  %v465_v35 = vunpack.c.0.s8 %v196_v55  ;;  %v7264_v20 = vld [vmem:[%s13011_s1 + $0xb0] sm:$0xff] }
  0x1a   :  { %v7242_v29 = vpack.c.bf16 %v34_v58, %v27_v56  ;;  %v7251_v57 = vcvt.s32.f32 %v333_v61  ;;  %v7253_v55 = vcvt.s32.f32 %v337_v62  ;;  %v533_v15 = vunpack.c.0.s8 %v213_v10  ;;  %v69_v56 = vld [vmem:[%s13012_s0 + $0x150] sm:$0xff]  ;;  %v178_v58 = vld [vmem:[%s13011_s1 + $0x138] sm:$0xff]  ;;  %13354 = vst [vmem:[#allocation20_spill] sm:$0xff] %v7264_v20  ;;  %v104_v10 = vld [vmem:[%s13012_s0 + $0x268] sm:$0xff] }
  0x1b   :  { %v7231_v48 = vcvt.s32.f32 %v401_v30  ;;  %v7269_v61 = vld [vmem:[%s13011_s1 + $0xb8] sm:$0xff]  ;;  %v7292_v30 = vcvt.s32.f32 %v461_v47  ;;  %v125_v47 = vld [vmem:[%s13012_s0 + $0x310] sm:$0xff]  ;;  %v389_v62 = vunpack.c.0.s8 %v177_v42  ;;  %v393_v39 = vunpack.c.0.s8 %v178_v58 }
  0x1c   :  { %6630 = vmatpush.bf16.msra.mxu1 %v7098_v31  ;;  %6631 = vmatpush.bf16.msra.mxu2 %v7098_v31  ;;  %13353 = vst [vmem:[#allocation19_spill] sm:$0xff] %v7242_v29  ;;  %v325_v38 = vunpack.c.0.s8 %v7264_v20  ;;  %v329_v27 = vunpack.c.0.s8 %v7269_v61  ;;  %v7320_v24 = vcvt.s32.f32 %v533_v15  ;;  %v453_v23 = vunpack.c.0.s8 %v193_v51  ;;  %v176_v51 = vld [vmem:[%s13011_s1 + $0x128] sm:$0xff] }
  0x1d   :  { %6632 = vmatpush.bf16.msra.mxu3 %v7098_v31  ;;  %1303 = vmatpush.bf16.msra.mxu0 %v7098_v31  ;;  %v214_v31 = vld [vmem:[%s13011_s1 + $0x258] sm:$0xff]  ;;  %13355 = vst [vmem:[#allocation21_spill] sm:$0xff] %v7269_v61  ;;  %v13356_v42 = vpack.c.bf16 %v7078_v17, %v7073_v14  ;;  %v7328_v61 = vpack.c.bf16 %v76_v34, %v69_v56  ;;  %v525_v20 = vunpack.c.0.s8 %v211_v22  ;;  %v529_v12 = vunpack.c.0.s8 %v212_v21  ;;  %v7351_v34 = vld [vmem:[%s13011_s1 + $0xa0] sm:$0xff]  ;;  %v192_v56 = vld [vmem:[%s13011_s1 + $0x1a8] sm:$0xff] }
  0x1e   :  { %v537_v13 = vunpack.c.0.s8 %v214_v31  ;;  %v7294_v31 = vcvt.s32.f32 %v465_v35  ;;  %v132_v35 = vld [vmem:[%s13012_s0 + $0x348] sm:$0xff]  ;;  %v13358_v15 = vpack.c.bf16 %v7082_v19, %v7080_v18  ;;  %v13359_v14 = vpack.c.bf16 %v7096_v28, %v7094_v26 }
  0x1f   :  { %13357 = vst [vmem:[#allocation22_spill] sm:$0xff] %v7328_v61  ;;  %v7344_v21 = vpack.c.bf16 %v104_v10, %v97_v50  ;;  %v7346_v22 = vpack.c.bf16 %v132_v35, %v125_v47  ;;  %v7356_v18 = vld [vmem:[%s13011_s1 + $0xa8] sm:$0xff]  ;;  %v7360_v19 = vcvt.s32.f32 %v389_v62  ;;  %v7362_v26 = vcvt.s32.f32 %v393_v39  ;;  %v209_v10 = vld [vmem:[%s13011_s1 + $0x230] sm:$0xff]  ;;  %v174_v35 = vld [vmem:[%s13011_s1 + $0x118] sm:$0xff] }
  0x20   :  { %6633 = vmatpush.bf16.msra.mxu1 %v7113_v37  ;;  %6634 = vmatpush.bf16.msra.mxu2 %v7113_v37  ;;  %v7326_v58 = vcvt.s32.f32 %v537_v13  ;;  %v1133_v17 = vpack.c.bf16 %v7294_v31, %v7292_v30  ;;  %v7364_v28 = vcvt.s32.f32 %v325_v38  ;;  %v7366_v50 = vcvt.s32.f32 %v329_v27  ;;  %v191_v13 = vld [vmem:[%s13011_s1 + $0x1a0] sm:$0xff]  ;;  %v173_v47 = vld [vmem:[%s13011_s1 + $0x110] sm:$0xff] }
  0x21   :  { %6635 = vmatpush.bf16.msra.mxu3 %v7113_v37  ;;  %1304 = vmatpush.bf16.msra.mxu0 %v7113_v37  ;;  %v194_v37 = vld [vmem:[%s13011_s1 + $0x1b8] sm:$0xff]  ;;  %13360 = vst [vmem:[#allocation23_spill] sm:$0xff] %v7344_v21  ;;  %v7379_v38 = vcvt.s32.f32 %v453_v23  ;;  %v381_v39 = vunpack.c.0.s8 %v175_v25  ;;  %v385_v62 = vunpack.c.0.s8 %v176_v51  ;;  %v13362_v23 = vpack.c.bf16 %v7151_v54, %v7134_v49 }
  0x22   :  { %v457_v16 = vunpack.c.0.s8 %v194_v37  ;;  %13361 = vst [vmem:[#allocation24_spill] sm:$0xff] %v7346_v22  ;;  %v210_v37 = vld [vmem:[%s13011_s1 + $0x238] sm:$0xff]  ;;  %v1169_v25 = vpack.c.bf16 %v7326_v58, %v7320_v24  ;;  %v317_v51 = vunpack.c.0.s8 %v7351_v34  ;;  %v13365_v49 = vpack.c.bf16 %v7186_v41, %v7184_v36 }
  0x23   :  { %v321_v54 = vunpack.c.0.s8 %v7356_v18  ;;  %v7420_v24 = vld [vmem:[%s13011_s1 + $0x98] sm:$0xff]  ;;  %v373_v36 = vunpack.c.0.s8 %v173_v47  ;;  %v377_v41 = vunpack.c.0.s8 %v174_v35  ;;  %v189_v47 = vld [vmem:[%s13011_s1 + $0x190] sm:$0xff]  ;;  %v13366_v35 = vpack.c.bf16 %v7194_v52, %v7192_v45  ;;  %v207_v45 = vld [vmem:[%s13011_s1 + $0x220] sm:$0xff] }
  0x24   :  { %6636 = vmatpush.bf16.msra.mxu1 %v7128_v46  ;;  %6637 = vmatpush.bf16.msra.mxu2 %v7128_v46  ;;  %v7381_v27 = vcvt.s32.f32 %v457_v16  ;;  %v13363_v16 = vpack.c.bf16 %v7190_v44, %v7188_v43  ;;  %v445_v43 = vunpack.c.0.s8 %v191_v13  ;;  %v449_v44 = vunpack.c.0.s8 %v192_v56  ;;  %v206_v58 = vld [vmem:[%s13011_s1 + $0x218] sm:$0xff] }
  0x25   :  { %6638 = vmatpush.bf16.msra.mxu3 %v7128_v46  ;;  %1305 = vmatpush.bf16.msra.mxu0 %v7128_v46  ;;  %v7400_v46 = vcvt.s32.f32 %v525_v20  ;;  %v7429_v13 = vcvt.s32.f32 %v381_v39  ;;  %v7431_v56 = vcvt.s32.f32 %v385_v62  ;;  %v13367_v39 = vpack.c.bf16 %v7224_v53, %v7222_v4  ;;  %v208_v53 = vld [vmem:[%s13011_s1 + $0x228] sm:$0xff] }
  0x26   :  { %v13368_v52 = vpack.c.bf16 %v7212_v60, %v7210_v59  ;;  %v13369_v4 = vpack.c.bf16 %v7220_v3, %v7218_v63  ;;  %v172_v59 = vld [vmem:[%s13011_s1 + $0x108] sm:$0xff]  ;;  %v7485_v63 = vcvt.s32.f32 %v373_v36  ;;  %v7487_v3 = vcvt.s32.f32 %v377_v41 }
  0x27   :  { %1316 = vmatmul.bf16.vlgmr.msra.gmra.mxu1 %v7100_v32  ;;  %1326 = vmatmul.bf16.vlgmr.msra.gmra.mxu2 %v7102_v33  ;;  %v369_v20 = vunpack.c.0.s8 %v172_v59  ;;  %v13373_v59 = vpack.c.bf16 %v7366_v50, %v7364_v28  ;;  %v234_v28 = vld [vmem:[%s13011_s1 + $0x2f8] sm:$0xff] }
  0x28   :  { %1396 = vmatpush.bf16.msrb.mxu2 %v13356_v42  ;;  %1347 = vmatpush.bf16.msrb.mxu1 %v13358_v15  ;;  %v7402_v42 = vcvt.s32.f32 %v529_v12  ;;  %v13364_v15 = vpack.c.bf16 %v7170_v9, %v7168_v6  ;;  %v7415_v12 = vld [vmem:[%s13011_s1 + $0x90] sm:$0xff]  ;;  %v1097_v6 = vpack.c.bf16 %v7362_v26, %v7360_v19  ;;  %v521_v9 = vunpack.c.0.s8 %v210_v37  ;;  %v48_v37 = vld [vmem:[%s13012_s0 + $0xa8] sm:$0xff] }
  0x29   :  { %1445 = vmatpush.bf16.msrb.mxu3 %v13359_v14  ;;  %1494 = vmatpush.bf16.msrb.mxu0 %v13363_v16  ;;  %v517_v14 = vunpack.c.0.s8 %v209_v10  ;;  %v41_v10 = vld [vmem:[%s13012_s0 + $0x70] sm:$0xff]  ;;  %v309_v16 = vunpack.c.0.s8 %v7415_v12  ;;  %v1089_v30 = vpack.c.bf16 %v7487_v3, %v7485_v63  ;;  %v13374_v19 = vpack.c.bf16 %v7381_v27, %v7379_v38  ;;  %v204_v63 = vld [vmem:[%s13011_s1 + $0x208] sm:$0xff] }
  0x2a   :  { %1336 = vmatmul.bf16.vlgmr.msra.gmra.mxu3 %v7115_v40  ;;  %1306 = vmatmul.bf16.vlgmr.msra.gmra.mxu0 %v7242_v29  ;;  %v1165_v62 = vpack.c.bf16 %v7402_v42, %v7400_v46  ;;  %v7469_v46 = vcvt.s32.f32 %v321_v54  ;;  %v7471_v42 = vcvt.s32.f32 %v445_v43  ;;  %v7483_v60 = vcvt.s32.f32 %v521_v9  ;;  %v205_v43 = vld [vmem:[%s13011_s1 + $0x210] sm:$0xff] }
  0x2b   :  { %v437_v54 = vunpack.c.0.s8 %v189_v47  ;;  %v13371_v9 = vpack.c.bf16 %v7231_v48, %v7229_v11  ;;  %v7500_v36 = vcvt.s32.f32 %v309_v16  ;;  %v1093_v48 = vpack.c.bf16 %v7431_v56, %v7429_v13  ;;  %v7524_v16 = vld [vmem:[%s13011_s1 + $0x88] sm:$0xff] }
  0x2c   :  { %1397 = vmatpush.bf16.msrb.mxu2 %v13362_v23  ;;  %1348 = vmatpush.bf16.msrb.mxu1 %v13364_v15  ;;  %v7450_v23 = vcvt.s32.f32 %v317_v51  ;;  %v313_v15 = vunpack.c.0.s8 %v7420_v24  ;;  %v7473_v51 = vcvt.s32.f32 %v449_v44  ;;  %v7492_v44 = vpack.c.bf16 %v48_v37, %v41_v10  ;;  %v7507_v10 = vld [vmem:[%s13011_s1 + $0x80] sm:$0xff]  ;;  %v188_v13 = vld [vmem:[%s13011_s1 + $0x188] sm:$0xff] }
  0x2d   :  { %1446 = vmatpush.bf16.msrb.mxu3 %v13365_v49  ;;  %1495 = vmatpush.bf16.msrb.mxu0 %v13367_v39  ;;  %v190_v49 = vld [vmem:[%s13011_s1 + $0x198] sm:$0xff]  ;;  %v171_v39 = vld [vmem:[%s13011_s1 + $0x100] sm:$0xff]  ;;  %v13372_v37 = vpack.c.bf16 %v7253_v55, %v7251_v57  ;;  %v501_v57 = vunpack.c.0.s8 %v205_v43  ;;  %v7530_v31 = vcvt.s32.f32 %v437_v54  ;;  %v505_v56 = vunpack.c.0.s8 %v206_v58 }
  0x2e   :  { %13370 = vst [vmem:[#allocation25_spill] sm:$0xff] %v7492_v44  ;;  %v7502_v41 = vcvt.s32.f32 %v313_v15  ;;  %v365_v47 = vunpack.c.0.s8 %v171_v39  ;;  %v1061_v11 = vpack.c.bf16 %v7469_v46, %v7450_v23  ;;  %v236_v46 = vld [vmem:[%s13011_s1 + $0x308] sm:$0xff]  ;;  %v233_v39 = vld [vmem:[%s13011_s1 + $0x2f0] sm:$0xff]  ;;  %v294_v27 = vunpack.c.1.s8 %v6947_v0  ;;  %v231_v0 = vld [vmem:[%s13011_s1 + $0x2e0] sm:$0xff] }
  0x2f   :  { %v625_v38 = vunpack.c.0.s8 %v236_v46  ;;  %v298_v3 = vunpack.c.1.s8 %v6952_v1  ;;  %v232_v1 = vld [vmem:[%s13011_s1 + $0x2e8] sm:$0xff] }
  0x30   :  { %1398 = vmatpush.bf16.msrb.mxu2 %v13366_v35  ;;  %1349 = vmatpush.bf16.msrb.mxu1 %v13368_v52  ;;  %v7475_v35 = vcvt.s32.f32 %v517_v14  ;;  %v441_v14 = vunpack.c.0.s8 %v190_v49  ;;  %v509_v52 = vunpack.c.0.s8 %v207_v45  ;;  %v301_v45 = vunpack.c.0.s8 %v7507_v10 }
  0x31   :  { %1447 = vmatpush.bf16.msrb.mxu3 %v13369_v4  ;;  %v513_v4 = vunpack.c.0.s8 %v208_v53  ;;  %1496 = vmatpush.bf16.msrb.mxu0 %v1169_v25  ;;  %v1125_v25 = vpack.c.bf16 %v7473_v51, %v7471_v42  ;;  %v235_v53 = vld [vmem:[%s13011_s1 + $0x300] sm:$0xff]  ;;  %v1057_v58 = vpack.c.bf16 %v7502_v41, %v7500_v36  ;;  %v7552_v42 = vcvt.s32.f32 %v365_v47 }
  0x32   :  { %v1161_v55 = vpack.c.bf16 %v7483_v60, %v7475_v35  ;;  %v7538_v23 = vcvt.s32.f32 %v441_v14  ;;  %v901_v15 = vcvt.s32.f32 %v509_v52  ;;  %v7554_v51 = vcvt.s32.f32 %v369_v20  ;;  %v203_v20 = vld [vmem:[%s13011_s1 + $0x200] sm:$0xff] }
  0x33   :  { %v905_v49 = vcvt.s32.f32 %v513_v4  ;;  %v305_v35 = vunpack.c.0.s8 %v7524_v16  ;;  %v897_v60 = vcvt.s32.f32 %v505_v56  ;;  %v621_v50 = vunpack.c.0.s8 %v235_v53 }
  0x34   :  { %1399 = vmatpush.bf16.msrb.mxu2 %v13371_v9  ;;  %1350 = vmatpush.bf16.msrb.mxu1 %v13372_v37  ;;  %v1121_v54 = vpack.c.bf16 %v7538_v23, %v7530_v31  ;;  %v693_v14 = vcvt.s32.f32 %v301_v45  ;;  %v613_v52 = vunpack.c.0.s8 %v233_v39  ;;  %v493_v9 = vunpack.c.0.s8 %v203_v20 }
  0x35   :  { %1448 = vmatpush.bf16.msrb.mxu3 %v1133_v17  ;;  %v187_v17 = vld [vmem:[%s13011_s1 + $0x180] sm:$0xff]  ;;  %1497 = vmatpush.bf16.msrb.mxu0 %v1165_v62  ;;  %v893_v62 = vcvt.s32.f32 %v501_v57  ;;  %v1157_v43 = vpack.c.bf16 %v905_v49, %v901_v15  ;;  %v697_v4 = vcvt.s32.f32 %v305_v35  ;;  %v497_v36 = vunpack.c.0.s8 %v204_v63 }
  0x36   :  { %v429_v26 = vunpack.c.0.s8 %v187_v17  ;;  %v617_v41 = vunpack.c.0.s8 %v234_v28  ;;  %v1085_v47 = vpack.c.bf16 %v7554_v51, %v7552_v42  ;;  %v1017_v31 = vcvt.s32.f32 %v625_v38  ;;  %v28_v51 = vld [vmem:[%s13012_s0 + $0x8] sm:$0xff]  ;;  %v31_v38 = vld [vmem:[%s13012_s0 + $0x20] sm:$0xff] }
  0x37   :  { %1321 = vmatmul.bf16.gmra.mxu1 %v7328_v61  ;;  %1331 = vmatmul.bf16.gmra.mxu2 %v7344_v21  ;;  %v1153_v57 = vpack.c.bf16 %v897_v60, %v893_v62  ;;  %v686_v17 = vcvt.s32.f32 %v294_v27  ;;  %v1005_v56 = vcvt.s32.f32 %v613_v52  ;;  %v605_v15 = vunpack.c.0.s8 %v231_v0  ;;  %v38_v27 = vld [vmem:[%s13012_s0 + $0x58] sm:$0xff] }
  0x38   :  { %1400 = vmatpush.bf16.msrb.mxu2 %v1097_v6  ;;  %1351 = vmatpush.bf16.msrb.mxu1 %v13373_v59  ;;  %v433_v6 = vunpack.c.0.s8 %v188_v13  ;;  %v821_v37 = vcvt.s32.f32 %v429_v26  ;;  %v690_v13 = vcvt.s32.f32 %v298_v3  ;;  %v1009_v23 = vcvt.s32.f32 %v617_v41  ;;  %v30_v26 = vld [vmem:[%s13012_s0 + $0x18] sm:$0xff] }
  0x39   :  { %1449 = vmatpush.bf16.msrb.mxu3 %v13374_v19  ;;  %1498 = vmatpush.bf16.msrb.mxu0 %v1161_v55  ;;  %v1013_v55 = vcvt.s32.f32 %v621_v50  ;;  %v609_v49 = vunpack.c.0.s8 %v232_v1  ;;  %v286_v45 = vunpack.c.1.s8 %v6957_v2  ;;  %v290_v53 = vunpack.c.1.s8 %v6964_v5  ;;  %v29_v2 = vld [vmem:[%s13012_s0 + $0x10] sm:$0xff]  ;;  %v36_v5 = vld [vmem:[%s13012_s0 + $0x48] sm:$0xff] }
  0x3a   :  { %1341 = vmatmul.bf16.gmra.mxu3 %v7346_v22  ;;  %1311 = vmatmul.bf16.gmra.mxu0 %v7492_v44  ;;  %v1053_v46 = vpack.c.bf16 %v697_v4, %v693_v14  ;;  %v1050_v39 = vpack.c.bf16 %v690_v13, %v686_v17  ;;  %v997_v59 = vcvt.s32.f32 %v605_v15  ;;  %v7613_v28 = vpack.c.bf16 %v36_v5, %v29_v2  ;;  %v229_v4 = vld [vmem:[%s13011_s1 + $0x2d0] sm:$0xff]  ;;  %v44_v17 = vld [vmem:[%s13012_s0 + $0x88] sm:$0xff]  ;;  %v51_v13 = vld [vmem:[%s13012_s0 + $0xc0] sm:$0xff] }
  0x3b   :  { %v1213_v35 = vpack.c.bf16 %v1017_v31, %v1013_v55  ;;  %v1001_v19 = vcvt.s32.f32 %v609_v49  ;;  %v678_v60 = vcvt.s32.f32 %v286_v45  ;;  %v682_v20 = vcvt.s32.f32 %v290_v53  ;;  %v43_v55 = vld [vmem:[%s13012_s0 + $0x80] sm:$0xff]  ;;  %v50_v31 = vld [vmem:[%s13012_s0 + $0xb8] sm:$0xff]  ;;  %v45_v49 = vld [vmem:[%s13012_s0 + $0x90] sm:$0xff] }
  0x3c   :  { %1401 = vmatpush.bf16.msrb.mxu2 %v1093_v48  ;;  %1352 = vmatpush.bf16.msrb.mxu1 %v1061_v11  ;;  %v825_v48 = vcvt.s32.f32 %v433_v6  ;;  %v885_v11 = vcvt.s32.f32 %v493_v9  ;;  %v37_v6 = vld [vmem:[%s13012_s0 + $0x50] sm:$0xff]  ;;  %13376 = vst [vmem:[#allocation27_spill] sm:$0xff] %v7613_v28  ;;  %v278_v14 = vunpack.c.1.s8 %v6970_v7  ;;  %v282_v52 = vunpack.c.1.s8 %v6975_v8  ;;  %v230_v9 = vld [vmem:[%s13011_s1 + $0x2d8] sm:$0xff]  ;;  %v13383_v45 = vld [vmem:[#allocation2_spill] sm:$0xff] }
  0x3d   :  { %1450 = vmatpush.bf16.msrb.mxu3 %v1125_v25  ;;  %1499 = vmatpush.bf16.msrb.mxu0 %v1157_v43  ;;  %v889_v25 = vcvt.s32.f32 %v497_v36  ;;  %v7615_v50 = vpack.c.bf16 %v37_v6, %v30_v26  ;;  %v1205_v3 = vpack.c.bf16 %v1001_v19, %v997_v59  ;;  %v7625_v43 = vpack.c.bf16 %v38_v27, %v31_v38  ;;  %v42_v8 = vld [vmem:[%s13012_s0 + $0x78] sm:$0xff]  ;;  %v56_v6 = vld [vmem:[%s13012_s0 + $0xe8] sm:$0xff]  ;;  %v65_v27 = vld [vmem:[%s13012_s0 + $0x130] sm:$0xff] }
  0x3e   :  { %v1117_v42 = vpack.c.bf16 %v825_v48, %v821_v37  ;;  %v597_v36 = vunpack.c.0.s8 %v229_v4  ;;  %v601_v41 = vunpack.c.0.s8 %v230_v9  ;;  %v670_v0 = vcvt.s32.f32 %v278_v14  ;;  %v58_v38 = vld [vmem:[%s13012_s0 + $0xf8] sm:$0xff] }
  0x3f   :  { %v1149_v62 = vpack.c.bf16 %v889_v25, %v885_v11  ;;  %13377 = vst [vmem:[#allocation28_spill] sm:$0xff] %v7615_v50  ;;  %v674_v1 = vcvt.s32.f32 %v282_v52  ;;  %v7659_v15 = vpack.c.bf16 %v51_v13, %v44_v17  ;;  %v52_v11 = vld [vmem:[%s13012_s0 + $0xc8] sm:$0xff]  ;;  %v270_v53 = vunpack.c.1.s8 %v13383_v45  ;;  %v59_v52 = vld [vmem:[%s13012_s0 + $0x100] sm:$0xff]  ;;  %v66_v4 = vld [vmem:[%s13012_s0 + $0x138] sm:$0xff] }
  0x40   :  { %1402 = vmatpush.bf16.msrb.mxu2 %v1089_v30  ;;  %1353 = vmatpush.bf16.msrb.mxu1 %v1057_v58  ;;  %v35_v30 = vld [vmem:[%s13012_s0 + $0x40] sm:$0xff]  ;;  %v1209_v58 = vpack.c.bf16 %v1009_v23, %v1005_v56  ;;  %13378 = vst [vmem:[#allocation29_spill] sm:$0xff] %v7625_v43  ;;  %v993_v37 = vcvt.s32.f32 %v601_v41  ;;  %v7657_v23 = vpack.c.bf16 %v50_v31, %v43_v55 }
  0x41   :  { %1451 = vmatpush.bf16.msrb.mxu3 %v1121_v54  ;;  %1500 = vmatpush.bf16.msrb.mxu0 %v1153_v57  ;;  %v7611_v63 = vpack.c.bf16 %v35_v30, %v28_v51  ;;  %v1046_v54 = vpack.c.bf16 %v682_v20, %v678_v60  ;;  %v1042_v7 = vpack.c.bf16 %v674_v1, %v670_v0  ;;  %v49_v57 = vld [vmem:[%s13012_s0 + $0xb0] sm:$0xff]  ;;  %v227_v51 = vld [vmem:[%s13011_s1 + $0x2c0] sm:$0xff]  ;;  %v662_v2 = vcvt.s32.f32 %v270_v53  ;;  %v64_v20 = vld [vmem:[%s13012_s0 + $0x128] sm:$0xff] }
  0x42   :  { %v7655_v56 = vpack.c.bf16 %v49_v57, %v42_v8  ;;  %13380 = vst [vmem:[#allocation31_spill] sm:$0xff] %v7657_v23  ;;  %v7669_v25 = vpack.c.bf16 %v52_v11, %v45_v49  ;;  %v57_v60 = vld [vmem:[%s13012_s0 + $0xf0] sm:$0xff]  ;;  %v7703_v14 = vpack.c.bf16 %v65_v27, %v58_v38  ;;  %v7713_v9 = vpack.c.bf16 %v66_v4, %v59_v52  ;;  %v13390_v0 = vld [vmem:[#allocation5_spill] sm:$0xff]  ;;  %v71_v45 = vld [vmem:[%s13012_s0 + $0x160] sm:$0xff] }
  0x43   :  { %13375 = vst [vmem:[#allocation26_spill] sm:$0xff] %v7611_v63  ;;  %v266_v1 = vunpack.c.1.s8 %v13390_v0  ;;  %v70_v49 = vld [vmem:[%s13012_s0 + $0x158] sm:$0xff]  ;;  %v77_v11 = vld [vmem:[%s13012_s0 + $0x190] sm:$0xff]  ;;  %v84_v0 = vld [vmem:[%s13012_s0 + $0x1c8] sm:$0xff] }
  0x44   :  { %1403 = vmatpush.bf16.msrb.mxu2 %v1085_v47  ;;  %1354 = vmatpush.bf16.msrb.mxu1 %v1053_v46  ;;  %v989_v47 = vcvt.s32.f32 %v597_v36  ;;  %13379 = vst [vmem:[#allocation30_spill] sm:$0xff] %v7655_v56  ;;  %v13384_v46 = vld [vmem:[#allocation3_spill] sm:$0xff]  ;;  %v13389_v36 = vld [vmem:[#allocation4_spill] sm:$0xff]  ;;  %v78_v53 = vld [vmem:[%s13012_s0 + $0x198] sm:$0xff] }
  0x45   :  { %1452 = vmatpush.bf16.msrb.mxu3 %v1117_v42  ;;  %1501 = vmatpush.bf16.msrb.mxu0 %v1149_v62  ;;  %13381 = vst [vmem:[#allocation32_spill] sm:$0xff] %v7659_v15  ;;  %v274_v42 = vunpack.c.1.s8 %v13384_v46  ;;  %v63_v62 = vld [vmem:[%s13012_s0 + $0x120] sm:$0xff]  ;;  %v262_v41 = vunpack.c.1.s8 %v13389_v36  ;;  %v658_v57 = vcvt.s32.f32 %v266_v1  ;;  %v72_v46 = vld [vmem:[%s13012_s0 + $0x168] sm:$0xff] }
  0x46   :  { %v1201_v48 = vpack.c.bf16 %v993_v37, %v989_v47  ;;  %13382 = vst [vmem:[#allocation33_spill] sm:$0xff] %v7669_v25  ;;  %v7721_v47 = vld [vmem:[%s13011_s1 + $0x2b0] sm:$0xff]  ;;  %v7726_v37 = vld [vmem:[%s13011_s1 + $0x2b8] sm:$0xff]  ;;  %v91_v1 = vld [vmem:[%s13012_s0 + $0x200] sm:$0xff] }
  0x47   :  { %1355 = vmatmul.bf16.vlgmr.msrb.gmra.mxu1 %v7611_v63  ;;  %1404 = vmatmul.bf16.vlgmr.msrb.gmra.mxu2 %v7613_v28  ;;  %v666_v5 = vcvt.s32.f32 %v274_v42  ;;  %13387 = vst [vmem:[#allocation34_spill] sm:$0xff] %v7703_v14  ;;  %v654_v8 = vcvt.s32.f32 %v262_v41  ;;  %v79_v42 = vld [vmem:[%s13012_s0 + $0x1a0] sm:$0xff] }
  0x48   :  { %1599 = vmatpush.bf16.msra.mxu2 %v1213_v35  ;;  %1543 = vmatpush.bf16.msra.mxu1 %v1209_v58  ;;  %v228_v35 = vld [vmem:[%s13011_s1 + $0x2c8] sm:$0xff]  ;;  %13388 = vst [vmem:[#allocation35_spill] sm:$0xff] %v7713_v9 }
  0x49   :  { %1641 = vmatpush.bf16.msra.mxu3 %v1050_v39  ;;  %v589_v39 = vunpack.c.0.s8 %v227_v51  ;;  %v593_v30 = vunpack.c.0.s8 %v228_v35  ;;  %v1038_v19 = vpack.c.bf16 %v666_v5, %v662_v2  ;;  %v1034_v17 = vpack.c.bf16 %v658_v57, %v654_v8  ;;  %v80_v2 = vld [vmem:[%s13012_s0 + $0x1a8] sm:$0xff]  ;;  %v86_v8 = vld [vmem:[%s13012_s0 + $0x1d8] sm:$0xff]  ;;  %v93_v57 = vld [vmem:[%s13012_s0 + $0x210] sm:$0xff] }
  0x4a   :  { %1453 = vmatmul.bf16.vlgmr.msrb.gmra.mxu3 %v7615_v50  ;;  %1502 = vmatmul.bf16.vlgmr.msrb.gmra.mxu0 %v7625_v43  ;;  %v7749_v51 = vpack.c.bf16 %v77_v11, %v70_v49  ;;  %v7751_v35 = vpack.c.bf16 %v78_v53, %v71_v45  ;;  %v94_v49 = vld [vmem:[%s13012_s0 + $0x218] sm:$0xff]  ;;  %v6667_v45 = vld [vmem:[%s13011_s1 + $0x10] sm:$0xff] }
  0x4b   :  { %v981_v58 = vcvt.s32.f32 %v589_v39  ;;  %v985_v59 = vcvt.s32.f32 %v593_v30  ;;  %v7753_v39 = vpack.c.bf16 %v79_v42, %v72_v46  ;;  %v73_v30 = vld [vmem:[%s13012_s0 + $0x170] sm:$0xff]  ;;  %v246_v53 = vunpack.c.1.s8 %v6667_v45  ;;  %v6668_v46 = vld [vmem:[%s13011_s1 + $0x18] sm:$0xff] }
  0x4c   :  { %1544 = vmatpush.bf16.msra.mxu1 %v1205_v3  ;;  %v7699_v3 = vpack.c.bf16 %v63_v62, %v56_v6  ;;  %13391 = vst [vmem:[#allocation4_spill] sm:$0xff] %v7749_v51  ;;  %v7763_v5 = vpack.c.bf16 %v80_v2, %v73_v30  ;;  %v7771_v6 = vld [vmem:[%s13011_s1 + $0x2a0] sm:$0xff]  ;;  %v7776_v62 = vld [vmem:[%s13011_s1 + $0x2a8] sm:$0xff]  ;;  %v250_v42 = vunpack.c.1.s8 %v6668_v46  ;;  %v13401_v30 = vld [vmem:[#allocation8_spill] sm:$0xff] }
  0x4d   :  { %1642 = vmatpush.bf16.msra.mxu3 %v1046_v54  ;;  %v1197_v26 = vpack.c.bf16 %v985_v59, %v981_v58  ;;  %v7701_v54 = vpack.c.bf16 %v64_v20, %v57_v60  ;;  %13392 = vst [vmem:[#allocation5_spill] sm:$0xff] %v7751_v35  ;;  %v13395_v58 = vld [vmem:[#allocation6_spill] sm:$0xff]  ;;  %v573_v60 = vunpack.c.0.s8 %v7771_v6  ;;  %v577_v20 = vunpack.c.0.s8 %v7776_v62 }
  0x4e   :  { %13385 = vst [vmem:[#allocation2_spill] sm:$0xff] %v7699_v3  ;;  %v254_v59 = vunpack.c.1.s8 %v13395_v58  ;;  %v358_v2 = vunpack.c.1.s8 %v13401_v30  ;;  %v13402_v58 = vld [vmem:[#allocation9_spill] sm:$0xff]  ;;  %v99_v46 = vld [vmem:[%s13012_s0 + $0x240] sm:$0xff] }
  0x4f   :  { %13386 = vst [vmem:[#allocation3_spill] sm:$0xff] %v7701_v54  ;;  %v965_v52 = vcvt.s32.f32 %v573_v60  ;;  %v969_v4 = vcvt.s32.f32 %v577_v20  ;;  %v7828_v60 = vld [vmem:[%s13011_s1 + $0x290] sm:$0xff]  ;;  %v7833_v20 = vld [vmem:[%s13011_s1 + $0x298] sm:$0xff] }
  0x50   :  { %1545 = vmatpush.bf16.msra.mxu1 %v1201_v48  ;;  %v585_v48 = vunpack.c.0.s8 %v7726_v37  ;;  %13393 = vst [vmem:[#allocation36_spill] sm:$0xff] %v7753_v39  ;;  %v646_v38 = vcvt.s32.f32 %v254_v59  ;;  %v362_v59 = vunpack.c.1.s8 %v13402_v58  ;;  %v107_v58 = vld [vmem:[%s13012_s0 + $0x280] sm:$0xff] }
  0x51   :  { %1643 = vmatpush.bf16.msra.mxu3 %v1042_v7  ;;  %v581_v7 = vunpack.c.0.s8 %v7721_v47  ;;  %13394 = vst [vmem:[#allocation37_spill] sm:$0xff] %v7763_v5  ;;  %v1189_v41 = vpack.c.bf16 %v969_v4, %v965_v52  ;;  %v565_v4 = vunpack.c.0.s8 %v7828_v60 }
  0x52   :  { %v977_v31 = vcvt.s32.f32 %v585_v48  ;;  %v92_v48 = vld [vmem:[%s13012_s0 + $0x208] sm:$0xff] }
  0x53   :  { %v973_v55 = vcvt.s32.f32 %v581_v7  ;;  %v85_v7 = vld [vmem:[%s13012_s0 + $0x1d0] sm:$0xff] }
  0x54   :  { %1546 = vmatpush.bf16.msra.mxu1 %v1197_v26 }
  0x55   :  { %1644 = vmatpush.bf16.msra.mxu3 %v1038_v19  ;;  %v1193_v13 = vpack.c.bf16 %v977_v31, %v973_v55  ;;  %v13396_v19 = vld [vmem:[#allocation7_spill] sm:$0xff]  ;;  %v7799_v55 = vpack.c.bf16 %v91_v1, %v84_v0  ;;  %v7801_v31 = vpack.c.bf16 %v92_v48, %v85_v7  ;;  %v13403_v0 = vld [vmem:[#allocation10_spill] sm:$0xff] }
  0x56   :  { %v258_v26 = vunpack.c.1.s8 %v13396_v19  ;;  %v638_v19 = vcvt.s32.f32 %v246_v53  ;;  %v350_v1 = vunpack.c.1.s8 %v13403_v0  ;;  %v13404_v7 = vld [vmem:[#allocation11_spill] sm:$0xff]  ;;  %v105_v53 = vld [vmem:[%s13012_s0 + $0x270] sm:$0xff] }
  0x57   :  { %1360 = vmatmul.bf16.gmra.mxu1 %v7655_v56  ;;  %1409 = vmatmul.bf16.gmra.mxu2 %v7657_v23  ;;  %13397 = vst [vmem:[#allocation6_spill] sm:$0xff] %v7799_v55  ;;  %v354_v48 = vunpack.c.1.s8 %v13404_v7  ;;  %v108_v7 = vld [vmem:[%s13012_s0 + $0x288] sm:$0xff] }
  0x58   :  { %1547 = vmatpush.bf16.msra.mxu1 %v1193_v13  ;;  %v650_v27 = vcvt.s32.f32 %v258_v26  ;;  %13398 = vst [vmem:[#allocation7_spill] sm:$0xff] %v7801_v31  ;;  %v87_v13 = vld [vmem:[%s13012_s0 + $0x1e0] sm:$0xff]  ;;  %v642_v26 = vcvt.s32.f32 %v250_v42  ;;  %v106_v42 = vld [vmem:[%s13012_s0 + $0x278] sm:$0xff] }
  0x59   :  { %1645 = vmatpush.bf16.msra.mxu3 %v1034_v17  ;;  %v7803_v17 = vpack.c.bf16 %v93_v57, %v86_v8  ;;  %v7813_v11 = vpack.c.bf16 %v94_v49, %v87_v13  ;;  %v957_v8 = vcvt.s32.f32 %v565_v4  ;;  %v98_v13 = vld [vmem:[%s13012_s0 + $0x238] sm:$0xff]  ;;  %v742_v49 = vcvt.s32.f32 %v350_v1  ;;  %v101_v1 = vld [vmem:[%s13012_s0 + $0x250] sm:$0xff] }
  0x5a   :  { %1458 = vmatmul.bf16.gmra.mxu3 %v7659_v15  ;;  %1507 = vmatmul.bf16.gmra.mxu0 %v7669_v25  ;;  %v1030_v36 = vpack.c.bf16 %v650_v27, %v646_v38  ;;  %v750_v38 = vcvt.s32.f32 %v358_v2  ;;  %v754_v27 = vcvt.s32.f32 %v362_v59  ;;  %v1026_v52 = vpack.c.bf16 %v642_v26, %v638_v19  ;;  %v100_v2 = vld [vmem:[%s13012_s0 + $0x248] sm:$0xff] }
  0x5b   :  { %13399 = vst [vmem:[#allocation38_spill] sm:$0xff] %v7803_v17  ;;  %v746_v45 = vcvt.s32.f32 %v354_v48  ;;  %v13405_v19 = vld [vmem:[#allocation15_spill] sm:$0xff]  ;;  %v7861_v4 = vpack.c.bf16 %v106_v42, %v99_v46  ;;  %v7863_v0 = vpack.c.bf16 %v107_v58, %v100_v2  ;;  %v6669_v42 = vld [vmem:[%s13011_s1] sm:$0xff] }
  0x5c   :  { %1548 = vmatpush.bf16.msra.mxu1 %v1189_v41  ;;  %13400 = vst [vmem:[#allocation39_spill] sm:$0xff] %v7813_v11  ;;  %v1082_v41 = vpack.c.bf16 %v754_v27, %v750_v38  ;;  %v342_v26 = vunpack.c.1.s8 %v13405_v19  ;;  %v13406_v38 = vld [vmem:[#allocation16_spill] sm:$0xff]  ;;  %v6670_v2 = vld [vmem:[%s13011_s1 + $0x8] sm:$0xff] }
  0x5d   :  { %1646 = vmatpush.bf16.msra.mxu3 %v1030_v36  ;;  %v569_v36 = vunpack.c.0.s8 %v7833_v20  ;;  %v1078_v59 = vpack.c.bf16 %v746_v45, %v742_v49  ;;  %v346_v27 = vunpack.c.1.s8 %v13406_v38  ;;  %13408 = vst [vmem:[#allocation9_spill] sm:$0xff] %v7861_v4  ;;  %v7875_v45 = vpack.c.bf16 %v108_v7, %v101_v1  ;;  %v13413_v19 = vld [vmem:[#allocation20_spill] sm:$0xff]  ;;  %v13414_v38 = vld [vmem:[#allocation21_spill] sm:$0xff]  ;;  %v7890_v1 = vld [vmem:[%s13011_s1 + $0x280] sm:$0xff] }
  0x5e   :  { %1690 = vmatpush.bf16.msra.mxu0 %v1082_v41  ;;  %13409 = vst [vmem:[#allocation10_spill] sm:$0xff] %v7863_v0  ;;  %v242_v58 = vunpack.c.1.s8 %v6670_v2  ;;  %v7895_v7 = vld [vmem:[%s13011_s1 + $0x288] sm:$0xff] }
  0x5f   :  { %v961_v57 = vcvt.s32.f32 %v569_v36  ;;  %v734_v36 = vcvt.s32.f32 %v342_v26  ;;  %v738_v41 = vcvt.s32.f32 %v346_v27  ;;  %13412 = vst [vmem:[#allocation11_spill] sm:$0xff] %v7875_v45  ;;  %v326_v26 = vunpack.c.1.s8 %v13413_v19 }
  0x60   :  { %v330_v27 = vunpack.c.1.s8 %v13414_v38  ;;  %v113_v38 = vld [vmem:[%s13012_s0 + $0x2b0] sm:$0xff] }
  0x61   :  { %1647 = vmatpush.bf16.msra.mxu3 %v1026_v52  ;;  %v1185_v30 = vpack.c.bf16 %v961_v57, %v957_v8  ;;  %v7859_v52 = vpack.c.bf16 %v105_v53, %v98_v13  ;;  %v1074_v48 = vpack.c.bf16 %v738_v41, %v734_v36  ;;  %v13410_v8 = vld [vmem:[#allocation17_spill] sm:$0xff]  ;;  %v13411_v13 = vld [vmem:[#allocation18_spill] sm:$0xff]  ;;  %v634_v41 = vcvt.s32.f32 %v242_v58  ;;  %v112_v58 = vld [vmem:[%s13012_s0 + $0x2a8] sm:$0xff] }
  0x62   :  { %1691 = vmatpush.bf16.msra.mxu0 %v1078_v59  ;;  %v334_v57 = vunpack.c.1.s8 %v13410_v8  ;;  %v338_v49 = vunpack.c.1.s8 %v13411_v13  ;;  %v722_v8 = vcvt.s32.f32 %v330_v27  ;;  %v557_v13 = vunpack.c.0.s8 %v7890_v1  ;;  %v114_v27 = vld [vmem:[%s13012_s0 + $0x2b8] sm:$0xff] }
  0x63   :  { %1549 = vmatpush.bf16.msra.mxu1 %v1185_v30  ;;  %13407 = vst [vmem:[#allocation8_spill] sm:$0xff] %v7859_v52  ;;  %v238_v30 = vunpack.c.1.s8 %v6669_v42  ;;  %v322_v42 = vunpack.c.1.s8 %v7356_v18 }
  0x64   :  { %v726_v53 = vcvt.s32.f32 %v334_v57  ;;  %v730_v46 = vcvt.s32.f32 %v338_v49  ;;  %v561_v49 = vunpack.c.0.s8 %v7895_v7 }
  0x65   :  { %v630_v36 = vcvt.s32.f32 %v238_v30  ;;  %v949_v30 = vcvt.s32.f32 %v557_v13 }
  0x66   :  { %1692 = vmatpush.bf16.msra.mxu0 %v1074_v48  ;;  %v1070_v59 = vpack.c.bf16 %v730_v46, %v726_v53  ;;  %v718_v48 = vcvt.s32.f32 %v326_v26  ;;  %v318_v46 = vunpack.c.1.s8 %v7351_v34  ;;  %v953_v2 = vcvt.s32.f32 %v561_v49  ;;  %v120_v34 = vld [vmem:[%s13012_s0 + $0x2e8] sm:$0xff] }
  0x67   :  { %1365 = vmatmul.bf16.gmra.mxu1 %v7699_v3  ;;  %1414 = vmatmul.bf16.gmra.mxu2 %v7701_v54  ;;  %v1022_v57 = vpack.c.bf16 %v634_v41, %v630_v36  ;;  %v714_v26 = vcvt.s32.f32 %v322_v42  ;;  %v121_v36 = vld [vmem:[%s13012_s0 + $0x2f0] sm:$0xff]  ;;  %v7923_v13 = vpack.c.bf16 %v120_v34, %v113_v38 }
  0x68   :  { %v1066_v53 = vpack.c.bf16 %v722_v8, %v718_v48  ;;  %v710_v19 = vcvt.s32.f32 %v318_v46  ;;  %v1181_v18 = vpack.c.bf16 %v953_v2, %v949_v30  ;;  %v310_v48 = vunpack.c.1.s8 %v7415_v12  ;;  %v115_v30 = vld [vmem:[%s13012_s0 + $0x2c0] sm:$0xff]  ;;  %v122_v12 = vld [vmem:[%s13012_s0 + $0x2f8] sm:$0xff]  ;;  %v6671_v34 = vld [vmem:[%s13011_s1 + $0x1f0] sm:$0xff] }
  0x69   :  { %1648 = vmatpush.bf16.msra.mxu3 %v1022_v57  ;;  %v314_v8 = vunpack.c.1.s8 %v7420_v24  ;;  %13416 = vst [vmem:[#allocation16_spill] sm:$0xff] %v7923_v13  ;;  %v7927_v42 = vpack.c.bf16 %v121_v36, %v114_v27  ;;  %v302_v2 = vunpack.c.1.s8 %v7507_v10  ;;  %v486_v10 = vunpack.c.1.s8 %v6671_v34  ;;  %v6673_v27 = vld [vmem:[%s13011_s1 + $0x270] sm:$0xff] }
  0x6a   :  { %1463 = vmatmul.bf16.gmra.mxu3 %v7703_v14  ;;  %1512 = vmatmul.bf16.gmra.mxu0 %v7713_v9  ;;  %v1062_v41 = vpack.c.bf16 %v714_v26, %v710_v19  ;;  %v702_v49 = vcvt.s32.f32 %v310_v48  ;;  %v7939_v19 = vpack.c.bf16 %v122_v12, %v115_v30  ;;  %v550_v36 = vunpack.c.1.s8 %v6673_v27 }
  0x6b   :  { %1693 = vmatpush.bf16.msra.mxu0 %v1070_v59  ;;  %v119_v59 = vld [vmem:[%s13012_s0 + $0x2e0] sm:$0xff]  ;;  %1550 = vmatpush.bf16.msra.mxu1 %v1181_v18  ;;  %13417 = vst [vmem:[#allocation17_spill] sm:$0xff] %v7927_v42  ;;  %v694_v26 = vcvt.s32.f32 %v302_v2 }
  0x6c   :  { %v7921_v57 = vpack.c.bf16 %v119_v59, %v112_v58  ;;  %v306_v58 = vunpack.c.1.s8 %v7524_v16  ;;  %13418 = vst [vmem:[#allocation18_spill] sm:$0xff] %v7939_v19  ;;  %v6672_v16 = vld [vmem:[%s13011_s1 + $0x1f8] sm:$0xff]  ;;  %v942_v12 = vcvt.s32.f32 %v550_v36 }
  0x6d   :  { %v490_v18 = vunpack.c.1.s8 %v6672_v16 }
  0x6e   :  { %13415 = vst [vmem:[#allocation15_spill] sm:$0xff] %v7921_v57  ;;  %v698_v59 = vcvt.s32.f32 %v306_v58 }
  0x6f   :  { %1694 = vmatpush.bf16.msra.mxu0 %v1066_v53  ;;  %v706_v53 = vcvt.s32.f32 %v314_v8  ;;  %v882_v30 = vcvt.s32.f32 %v490_v18  ;;  %v6676_v18 = vld [vmem:[%s13011_s1 + $0x178] sm:$0xff] }
  0x70   :  { %v1054_v8 = vpack.c.bf16 %v698_v59, %v694_v26  ;;  %v126_v26 = vld [vmem:[%s13012_s0 + $0x318] sm:$0xff]  ;;  %v6675_v59 = vld [vmem:[%s13011_s1 + $0x170] sm:$0xff]  ;;  %v426_v27 = vunpack.c.1.s8 %v6676_v18 }
  0x71   :  { %v1058_v24 = vpack.c.bf16 %v706_v53, %v702_v49  ;;  %v878_v53 = vcvt.s32.f32 %v486_v10  ;;  %v422_v10 = vunpack.c.1.s8 %v6675_v59 }
  0x73   :  { %1695 = vmatpush.bf16.msra.mxu0 %v1062_v41  ;;  %v6674_v41 = vld [vmem:[%s13011_s1 + $0x278] sm:$0xff]  ;;  %v1146_v34 = vpack.c.bf16 %v882_v30, %v878_v53  ;;  %v128_v53 = vld [vmem:[%s13012_s0 + $0x328] sm:$0xff]  ;;  %v135_v30 = vld [vmem:[%s13012_s0 + $0x360] sm:$0xff] }
  0x74   :  { %v554_v48 = vunpack.c.1.s8 %v6674_v41  ;;  %v133_v41 = vld [vmem:[%s13012_s0 + $0x350] sm:$0xff] }
  0x75   :  { %1788 = vmatpush.bf16.msrb.mxu2 %v1146_v34  ;;  %v7993_v59 = vpack.c.bf16 %v133_v41, %v126_v26  ;;  %v6677_v41 = vld [vmem:[%s13011_s1 + $0x1e0] sm:$0xff] }
  0x77   :  { %1370 = vmatmul.bf16.gmra.mxu1 %v7749_v51  ;;  %1419 = vmatmul.bf16.gmra.mxu2 %v7751_v35  ;;  %13419 = vst [vmem:[#allocation20_spill] sm:$0xff] %v7993_v59 }
  0x78   :  { %1696 = vmatpush.bf16.msra.mxu0 %v1058_v24  ;;  %v946_v24 = vcvt.s32.f32 %v554_v48  ;;  %v127_v48 = vld [vmem:[%s13012_s0 + $0x320] sm:$0xff] }
  0x7a   :  { %1468 = vmatmul.bf16.gmra.mxu3 %v7753_v39  ;;  %1517 = vmatmul.bf16.gmra.mxu0 %v7763_v5  ;;  %v1178_v16 = vpack.c.bf16 %v946_v24, %v942_v12  ;;  %v814_v12 = vcvt.s32.f32 %v422_v10  ;;  %v818_v24 = vcvt.s32.f32 %v426_v27  ;;  %v136_v10 = vld [vmem:[%s13012_s0 + $0x368] sm:$0xff] }
  0x7c   :  { %1697 = vmatpush.bf16.msra.mxu0 %v1054_v8  ;;  %1837 = vmatpush.bf16.msrb.mxu3 %v1178_v16  ;;  %v134_v8 = vld [vmem:[%s13012_s0 + $0x358] sm:$0xff] }
  0x7d   :  { %v7995_v18 = vpack.c.bf16 %v134_v8, %v127_v48  ;;  %v478_v48 = vunpack.c.1.s8 %v6677_v41  ;;  %v6678_v8 = vld [vmem:[%s13011_s1 + $0x1e8] sm:$0xff] }
  0x7f   :  { %13420 = vst [vmem:[#allocation21_spill] sm:$0xff] %v7995_v18 }
  0x87   :  { %1375 = vmatmul.bf16.gmra.mxu1 %v7799_v55  ;;  %1424 = vmatmul.bf16.gmra.mxu2 %v7801_v31 }
  0x8a   :  { %1473 = vmatmul.bf16.gmra.mxu3 %v7803_v17  ;;  %1522 = vmatmul.bf16.gmra.mxu0 %v7813_v11 }
  0x97   :  { %1380 = vmatmul.bf16.gmra.mxu1 %v7859_v52  ;;  %1429 = vmatmul.bf16.gmra.mxu2 %v7861_v4 }
  0x9a   :  { %1478 = vmatmul.bf16.gmra.mxu3 %v7863_v0  ;;  %1527 = vmatmul.bf16.gmra.mxu0 %v7875_v45  ;;  %v129_v45 = vld [vmem:[%s13012_s0 + $0x330] sm:$0xff] }
  0x9b   :  { %v8009_v26 = vpack.c.bf16 %v136_v10, %v129_v45  ;;  %v870_v10 = vcvt.s32.f32 %v478_v48  ;;  %v6681_v48 = vld [vmem:[%s13011_s1 + $0x160] sm:$0xff] }
  0x9d   :  { %13422 = vst [vmem:[#allocation41_spill] sm:$0xff] %v8009_v26 }
  0xa4   :  { %v7925_v46 = vpop.f32.mrf.mxu1 }
  0xa7   :  { %1385 = vmatmul.bf16.gmra.mxu1 %v7921_v57  ;;  %1434 = vmatmul.bf16.gmra.mxu2 %v7923_v13  ;;  %v7942_v38 = vpop.f32.mrf.mxu0  ;;  %v7999_v13 = vpack.c.bf16 %v135_v30, %v128_v53  ;;  %v6679_v53 = vld [vmem:[%s13011_s1 + $0x260] sm:$0xff]  ;;  %v6680_v30 = vld [vmem:[%s13011_s1 + $0x268] sm:$0xff] }
  0xa8   :  { %v542_v45 = vunpack.c.1.s8 %v6679_v53  ;;  %v32_v53 = vld [vmem:[%s13012_s0 + $0x28] sm:$0xff] }
  0xa9   :  { %13421 = vst [vmem:[#allocation40_spill] sm:$0xff] %v7999_v13 }
  0xaa   :  { %1483 = vmatmul.bf16.gmra.mxu3 %v7927_v42  ;;  %v7956_v49 = vpop.f32.mrf.mxu2  ;;  %1532 = vmatmul.bf16.gmra.mxu0 %v7939_v19  ;;  %v1114_v19 = vpack.c.bf16 %v818_v24, %v814_v12  ;;  %v546_v12 = vunpack.c.1.s8 %v6680_v30  ;;  %v934_v41 = vcvt.s32.f32 %v542_v45  ;;  %v6682_v45 = vld [vmem:[%s13011_s1 + $0x168] sm:$0xff] }
  0xab   :  { %v418_v30 = vunpack.c.1.s8 %v6682_v45 }
  0xac   :  { %v7961_v58 = vpop.f32.mrf.mxu1  ;;  %1739 = vmatpush.bf16.msrb.mxu1 %v1114_v19  ;;  %v482_v19 = vunpack.c.1.s8 %v6678_v8 }
  0xad   :  { %v7958_v2 = vpop.f32.mrf.mxu3 }
  0xaf   :  { %v7972_v36 = vpop.f32.mrf.mxu0 }
  0xb2   :  { %v7989_v34 = vpop.f32.mrf.mxu2 }
  0xb4   :  { %v7997_v42 = vpop.f32.mrf.mxu1 }
  0xb5   :  { %v7991_v16 = vpop.f32.mrf.mxu3 }
  0xb7   :  { %1390 = vmatmul.bf16.gmra.mxu1 %v7993_v59  ;;  %1439 = vmatmul.bf16.gmra.mxu2 %v7995_v18  ;;  %v8012_v27 = vpop.f32.mrf.mxu0  ;;  %v938_v18 = vcvt.s32.f32 %v546_v12 }
  0xb9   :  { %v1174_v11 = vpack.c.bf16 %v938_v18, %v934_v41 }
  0xba   :  { %1488 = vmatmul.bf16.gmra.mxu3 %v7999_v13  ;;  %v8026_v24 = vpop.f32.mrf.mxu2  ;;  %v874_v13 = vcvt.s32.f32 %v482_v19  ;;  %1537 = vmatmul.bf16.gmra.mxu0 %v8009_v26  ;;  %v414_v19 = vunpack.c.1.s8 %v6681_v48 }
  0xbb   :  { %1838 = vmatpush.bf16.msrb.mxu3 %v1174_v11  ;;  %v39_v11 = vld [vmem:[%s13012_s0 + $0x60] sm:$0xff] }
  0xbc   :  { %v8031_v8 = vpop.f32.mrf.mxu1  ;;  %v1142_v4 = vpack.c.bf16 %v874_v13, %v870_v10  ;;  %v40_v13 = vld [vmem:[%s13012_s0 + $0x68] sm:$0xff]  ;;  %v806_v18 = vcvt.s32.f32 %v414_v19  ;;  %v810_v10 = vcvt.s32.f32 %v418_v30  ;;  %v8057_v45 = vpack.c.bf16 %v39_v11, %v32_v53  ;;  %v6683_v53 = vld [vmem:[%s13011_s1 + $0x1d0] sm:$0xff]  ;;  %v6684_v11 = vld [vmem:[%s13011_s1 + $0x1d8] sm:$0xff] }
  0xbd   :  { %v8028_v0 = vpop.f32.mrf.mxu3  ;;  %v470_v30 = vunpack.c.1.s8 %v6683_v53 }
  0xbe   :  { %1789 = vmatpush.bf16.msrb.mxu2 %v1142_v4  ;;  %v33_v4 = vld [vmem:[%s13012_s0 + $0x30] sm:$0xff]  ;;  %13423 = vst [vmem:[#allocation42_spill] sm:$0xff] %v8057_v45  ;;  %v1110_v17 = vpack.c.bf16 %v810_v10, %v806_v18 }
  0xbf   :  { %v8042_v12 = vpop.f32.mrf.mxu0  ;;  %v8059_v26 = vpack.c.bf16 %v40_v13, %v33_v4  ;;  %v474_v4 = vunpack.c.1.s8 %v6684_v11  ;;  %v862_v10 = vcvt.s32.f32 %v470_v30  ;;  %v46_v30 = vld [vmem:[%s13012_s0 + $0x98] sm:$0xff] }
  0xc0   :  { %1740 = vmatpush.bf16.msrb.mxu1 %v1110_v17 }
  0xc1   :  { %13424 = vst [vmem:[#allocation43_spill] sm:$0xff] %v8059_v26 }
  0xc2   :  { %v8053_v41 = vpop.f32.mrf.mxu2 }
  0xc4   :  { %v1356_v31 = vpop.f32.mrf.mxu1 }
  0xc5   :  { %v8055_v48 = vpop.f32.mrf.mxu3  ;;  %v1357_v5 = vadd.f32 %v1356_v31, %v7942_v38  ;;  %v6685_v31 = vld [vmem:[%s13011_s1 + $0x250] sm:$0xff]  ;;  %v6686_v38 = vld [vmem:[%s13011_s1 + $0x258] sm:$0xff] }
  0xc6   :  { %v534_v17 = vunpack.c.1.s8 %v6685_v31  ;;  %v538_v13 = vunpack.c.1.s8 %v6686_v38 }
  0xc7   :  { %1551 = vmatmul.bf16.vlgmr.msra.gmra.mxu1 %v8057_v45  ;;  %6583 = vmatmul.msk.bf16.vlgmr.msra.gmra.mxu2 %vm1273_vm0, %v8059_v26  ;;  %v1503_v19 = vpop.f32.mrf.mxu0 }
  0xc8   :  { %v926_v26 = vcvt.s32.f32 %v534_v17  ;;  %v930_v53 = vcvt.s32.f32 %v538_v13 }
  0xca   :  { %1649 = vmatmul.bf16.vlgmr.msra.gmra.mxu3 %v7242_v29  ;;  %v1405_v18 = vpop.f32.mrf.mxu2  ;;  %v866_v29 = vcvt.s32.f32 %v474_v4  ;;  %1698 = vmatmul.bf16.vlgmr.msra.gmra.mxu0 %v7611_v63  ;;  %v1170_v14 = vpack.c.bf16 %v930_v53, %v926_v26 }
  0xcb   :  { %v1406_v39 = vadd.f32 %v1405_v18, %v1357_v5  ;;  %v6687_v5 = vld [vmem:[%s13011_s1 + $0x150] sm:$0xff] }
  0xcc   :  { %v1358_v11 = vpop.f32.mrf.mxu1  ;;  %v1138_v9 = vpack.c.bf16 %v866_v29, %v862_v10  ;;  %1839 = vmatpush.bf16.msrb.mxu3 %v1170_v14  ;;  %v406_v4 = vunpack.c.1.s8 %v6687_v5  ;;  %v6688_v29 = vld [vmem:[%s13011_s1 + $0x158] sm:$0xff]  ;;  %v47_v14 = vld [vmem:[%s13012_s0 + $0xa0] sm:$0xff] }
  0xcd   :  { %v1454_v35 = vpop.f32.mrf.mxu3  ;;  %v1359_v31 = vadd.f32 %v1358_v11, %v7972_v36 }
  0xce   :  { %v1455_v54 = vadd.f32 %v1454_v35, %v1406_v39  ;;  %1790 = vmatpush.bf16.msrb.mxu2 %v1138_v9  ;;  %v410_v35 = vunpack.c.1.s8 %v6688_v29  ;;  %v54_v9 = vld [vmem:[%s13012_s0 + $0xd8] sm:$0xff]  ;;  %v798_v36 = vcvt.s32.f32 %v406_v4 }
  0xcf   :  { %v1505_v39 = vpop.f32.mrf.mxu0  ;;  %v8102_v18 = vpack.c.bf16 %v54_v9, %v47_v14  ;;  %v6692_v14 = vld [vmem:[%s13011_s1 + $0x248] sm:$0xff] }
  0xd0   :  { %v8080_v25 = vadd.f32 %v1503_v19, %v1455_v54  ;;  %v53_v54 = vld [vmem:[%s13012_s0 + $0xd0] sm:$0xff]  ;;  %v802_v26 = vcvt.s32.f32 %v410_v35  ;;  %v530_v9 = vunpack.c.1.s8 %v6692_v14 }
  0xd1   :  { %v8100_v13 = vpack.c.bf16 %v53_v54, %v46_v30  ;;  %13426 = vst [vmem:[#allocation45_spill] sm:$0xff] %v8102_v18  ;;  %v6689_v30 = vld [vmem:[%s13011_s1 + $0x1c0] sm:$0xff] }
  0xd2   :  { %v1407_v19 = vpop.f32.mrf.mxu2  ;;  %v1106_v10 = vpack.c.bf16 %v802_v26, %v798_v36  ;;  %v462_v4 = vunpack.c.1.s8 %v6689_v30 }
  0xd3   :  { %v1408_v17 = vadd.f32 %v1407_v19, %v1359_v31  ;;  %13425 = vst [vmem:[#allocation44_spill] sm:$0xff] %v8100_v13 }
  0xd4   :  { %v1361_v53 = vpop.f32.mrf.mxu1  ;;  %1741 = vmatpush.bf16.msrb.mxu1 %v1106_v10  ;;  %v854_v26 = vcvt.s32.f32 %v462_v4  ;;  %v60_v4 = vld [vmem:[%s13012_s0 + $0x108] sm:$0xff] }
  0xd5   :  { %v1456_v38 = vpop.f32.mrf.mxu3  ;;  %v1362_v5 = vadd.f32 %v1361_v53, %v8012_v27  ;;  %v6690_v27 = vld [vmem:[%s13011_s1 + $0x1c8] sm:$0xff] }
  0xd6   :  { %v1457_v11 = vadd.f32 %v1456_v38, %v1408_v17  ;;  %v466_v35 = vunpack.c.1.s8 %v6690_v27  ;;  %v922_v38 = vcvt.s32.f32 %v530_v9 }
  0xd7   :  { %1556 = vmatmul.bf16.gmra.mxu1 %v8100_v13  ;;  %6584 = vmatmul.msk.bf16.gmra.mxu2 %vm1273_vm0, %v8102_v18  ;;  %v1508_v31 = vpop.f32.mrf.mxu0 }
  0xd8   :  { %v8105_v29 = vadd.f32 %v1505_v39, %v1457_v11  ;;  %v6691_v39 = vld [vmem:[%s13011_s1 + $0x240] sm:$0xff]  ;;  %v858_v19 = vcvt.s32.f32 %v466_v35 }
  0xd9   :  { %v526_v54 = vunpack.c.1.s8 %v6691_v39 }
  0xda   :  { %1654 = vmatmul.bf16.gmra.mxu3 %v7492_v44  ;;  %v1410_v36 = vpop.f32.mrf.mxu2  ;;  %1703 = vmatmul.bf16.gmra.mxu0 %v7655_v56  ;;  %v1134_v30 = vpack.c.bf16 %v858_v19, %v854_v26 }
  0xdb   :  { %v918_v17 = vcvt.s32.f32 %v526_v54  ;;  %v1411_v10 = vadd.f32 %v1410_v36, %v1362_v5  ;;  %v6693_v5 = vld [vmem:[%s13011_s1 + $0x140] sm:$0xff]  ;;  %v6694_v54 = vld [vmem:[%s13011_s1 + $0x148] sm:$0xff] }
  0xdc   :  { %v1363_v11 = vpop.f32.mrf.mxu1  ;;  %1791 = vmatpush.bf16.msrb.mxu2 %v1134_v30  ;;  %v398_v35 = vunpack.c.1.s8 %v6693_v5  ;;  %v402_v14 = vunpack.c.1.s8 %v6694_v54 }
  0xdd   :  { %v1459_v53 = vpop.f32.mrf.mxu3  ;;  %v1166_v27 = vpack.c.bf16 %v922_v38, %v918_v17  ;;  %v1364_v39 = vadd.f32 %v1363_v11, %v8042_v12  ;;  %v61_v12 = vld [vmem:[%s13012_s0 + $0x110] sm:$0xff] }
  0xde   :  { %v1460_v44 = vadd.f32 %v1459_v53, %v1411_v10  ;;  %v790_v36 = vcvt.s32.f32 %v398_v35  ;;  %v794_v26 = vcvt.s32.f32 %v402_v14 }
  0xdf   :  { %1840 = vmatpush.bf16.msrb.mxu3 %v1166_v27  ;;  %v1510_v9 = vpop.f32.mrf.mxu0 }
  0xe0   :  { %v8125_v18 = vadd.f32 %v1508_v31, %v1460_v44  ;;  %v67_v44 = vld [vmem:[%s13012_s0 + $0x140] sm:$0xff]  ;;  %v68_v31 = vld [vmem:[%s13012_s0 + $0x148] sm:$0xff]  ;;  %v1102_v11 = vpack.c.bf16 %v794_v26, %v790_v36 }
  0xe1   :  { %v8145_v10 = vpack.c.bf16 %v67_v44, %v60_v4  ;;  %v8147_v53 = vpack.c.bf16 %v68_v31, %v61_v12  ;;  %v6695_v4 = vld [vmem:[%s13011_s1 + $0x1b0] sm:$0xff]  ;;  %v6698_v12 = vld [vmem:[%s13011_s1 + $0x238] sm:$0xff] }
  0xe2   :  { %v1412_v19 = vpop.f32.mrf.mxu2  ;;  %1742 = vmatpush.bf16.msrb.mxu1 %v1102_v11  ;;  %v454_v35 = vunpack.c.1.s8 %v6695_v4  ;;  %v522_v31 = vunpack.c.1.s8 %v6698_v12  ;;  %v75_v12 = vld [vmem:[%s13012_s0 + $0x180] sm:$0xff] }
  0xe3   :  { %v1413_v17 = vadd.f32 %v1412_v19, %v1364_v39  ;;  %13427 = vst [vmem:[#allocation46_spill] sm:$0xff] %v8145_v10 }
  0xe4   :  { %13428 = vst [vmem:[#allocation47_spill] sm:$0xff] %v8147_v53  ;;  %v1366_v30 = vpop.f32.mrf.mxu1  ;;  %v846_v26 = vcvt.s32.f32 %v454_v35  ;;  %v74_v35 = vld [vmem:[%s13012_s0 + $0x178] sm:$0xff] }
  0xe5   :  { %v1461_v38 = vpop.f32.mrf.mxu3  ;;  %v1367_v5 = vadd.f32 %v1366_v30, %v7925_v46  ;;  %v6696_v46 = vld [vmem:[%s13011_s1 + $0x1b8] sm:$0xff] }
  0xe6   :  { %v1462_v27 = vadd.f32 %v1461_v38, %v1413_v17  ;;  %v458_v14 = vunpack.c.1.s8 %v6696_v46  ;;  %v914_v38 = vcvt.s32.f32 %v522_v31  ;;  %v82_v31 = vld [vmem:[%s13012_s0 + $0x1b8] sm:$0xff] }
  0xe7   :  { %1561 = vmatmul.bf16.gmra.mxu1 %v8145_v10  ;;  %6585 = vmatmul.msk.bf16.gmra.mxu2 %vm1273_vm0, %v8147_v53  ;;  %v1513_v39 = vpop.f32.mrf.mxu0 }
  0xe8   :  { %v8150_v54 = vadd.f32 %v1510_v9, %v1462_v27  ;;  %v6697_v9 = vld [vmem:[%s13011_s1 + $0x230] sm:$0xff]  ;;  %v850_v19 = vcvt.s32.f32 %v458_v14 }
  0xe9   :  { %v518_v44 = vunpack.c.1.s8 %v6697_v9 }
  0xea   :  { %1659 = vmatmul.bf16.gmra.mxu3 %v7100_v32  ;;  %v1415_v36 = vpop.f32.mrf.mxu2  ;;  %1708 = vmatmul.bf16.gmra.mxu0 %v7699_v3  ;;  %v1130_v4 = vpack.c.bf16 %v850_v19, %v846_v26 }
  0xeb   :  { %v910_v17 = vcvt.s32.f32 %v518_v44  ;;  %v1416_v11 = vadd.f32 %v1415_v36, %v1367_v5  ;;  %v8178_v5 = vld [vmem:[%s13011_s1 + $0x130] sm:$0xff]  ;;  %v8184_v44 = vld [vmem:[%s13011_s1 + $0x138] sm:$0xff] }
  0xec   :  { %v1368_v27 = vpop.f32.mrf.mxu1  ;;  %1792 = vmatpush.bf16.msrb.mxu2 %v1130_v4  ;;  %13429 = vst [vmem:[#allocation48_spill] sm:$0xff] %v8178_v5  ;;  %v390_v14 = vunpack.c.1.s8 %v8178_v5  ;;  %v6717_v5 = vld [vmem:[%s13011_s1 + $0x2d0] sm:$0xff] }
  0xed   :  { %v1464_v30 = vpop.f32.mrf.mxu3  ;;  %v1162_v46 = vpack.c.bf16 %v914_v38, %v910_v17  ;;  %v1369_v9 = vadd.f32 %v1368_v27, %v7961_v58  ;;  %13430 = vst [vmem:[#allocation49_spill] sm:$0xff] %v8184_v44  ;;  %v394_v58 = vunpack.c.1.s8 %v8184_v44 }
  0xee   :  { %v1465_v32 = vadd.f32 %v1464_v30, %v1416_v11  ;;  %v782_v36 = vcvt.s32.f32 %v390_v14  ;;  %v8198_v30 = vpack.c.bf16 %v82_v31, %v75_v12  ;;  %v6704_v12 = vld [vmem:[%s13011_s1 + $0x228] sm:$0xff] }
  0xef   :  { %1841 = vmatpush.bf16.msrb.mxu3 %v1162_v46  ;;  %v786_v26 = vcvt.s32.f32 %v394_v58  ;;  %v514_v31 = vunpack.c.1.s8 %v6704_v12  ;;  %v89_v12 = vld [vmem:[%s13012_s0 + $0x1f0] sm:$0xff] }
  0xf0   :  { %v8170_v53 = vadd.f32 %v1513_v39, %v1465_v32  ;;  %v1515_v32 = vpop.f32.mrf.mxu0  ;;  %v81_v39 = vld [vmem:[%s13012_s0 + $0x1b0] sm:$0xff]  ;;  %13432 = vst [vmem:[#allocation51_spill] sm:$0xff] %v8198_v30 }
  0xf1   :  { %v8196_v11 = vpack.c.bf16 %v81_v39, %v74_v35  ;;  %v1098_v27 = vpack.c.bf16 %v786_v26, %v782_v36  ;;  %v6701_v35 = vld [vmem:[%s13011_s1 + $0x1a0] sm:$0xff] }
  0xf2   :  { %v1417_v19 = vpop.f32.mrf.mxu2  ;;  %v446_v14 = vunpack.c.1.s8 %v6701_v35 }
  0xf3   :  { %v1418_v17 = vadd.f32 %v1417_v19, %v1369_v9  ;;  %13431 = vst [vmem:[#allocation50_spill] sm:$0xff] %v8196_v11  ;;  %1743 = vmatpush.bf16.msrb.mxu1 %v1098_v27 }
  0xf4   :  { %v1371_v4 = vpop.f32.mrf.mxu1  ;;  %v838_v26 = vcvt.s32.f32 %v446_v14  ;;  %v88_v14 = vld [vmem:[%s13012_s0 + $0x1e8] sm:$0xff] }
  0xf5   :  { %v1466_v38 = vpop.f32.mrf.mxu3  ;;  %v1372_v3 = vadd.f32 %v1371_v4, %v7997_v42  ;;  %v6702_v42 = vld [vmem:[%s13011_s1 + $0x1a8] sm:$0xff] }
  0xf6   :  { %v1467_v46 = vadd.f32 %v1466_v38, %v1418_v17  ;;  %v450_v58 = vunpack.c.1.s8 %v6702_v42  ;;  %v906_v38 = vcvt.s32.f32 %v514_v31  ;;  %v96_v31 = vld [vmem:[%s13012_s0 + $0x228] sm:$0xff] }
  0xf7   :  { %1566 = vmatmul.bf16.gmra.mxu1 %v8196_v11  ;;  %6586 = vmatmul.msk.bf16.gmra.mxu2 %vm1273_vm0, %v8198_v30 }
  0xf8   :  { %v8201_v56 = vadd.f32 %v1515_v32, %v1467_v46  ;;  %v1518_v9 = vpop.f32.mrf.mxu0  ;;  %v6703_v32 = vld [vmem:[%s13011_s1 + $0x220] sm:$0xff]  ;;  %v842_v19 = vcvt.s32.f32 %v450_v58 }
  0xf9   :  { %v510_v39 = vunpack.c.1.s8 %v6703_v32 }
  0xfa   :  { %1664 = vmatmul.bf16.gmra.mxu3 %v7328_v61  ;;  %v1420_v36 = vpop.f32.mrf.mxu2  ;;  %1713 = vmatmul.bf16.gmra.mxu0 %v7749_v51  ;;  %v1126_v35 = vpack.c.bf16 %v842_v19, %v838_v26 }
  0xfb   :  { %v902_v17 = vcvt.s32.f32 %v510_v39  ;;  %v1421_v27 = vadd.f32 %v1420_v36, %v1372_v3  ;;  %v8229_v3 = vld [vmem:[%s13011_s1 + $0x120] sm:$0xff]  ;;  %v8235_v39 = vld [vmem:[%s13011_s1 + $0x128] sm:$0xff] }
  0xfc   :  { %v1373_v46 = vpop.f32.mrf.mxu1  ;;  %1793 = vmatpush.bf16.msrb.mxu2 %v1126_v35  ;;  %13433 = vst [vmem:[#allocation52_spill] sm:$0xff] %v8229_v3  ;;  %v382_v58 = vunpack.c.1.s8 %v8229_v3 }
  0xfd   :  { %v1469_v4 = vpop.f32.mrf.mxu3  ;;  %v1158_v42 = vpack.c.bf16 %v906_v38, %v902_v17  ;;  %v1374_v32 = vadd.f32 %v1373_v46, %v8031_v8  ;;  %13434 = vst [vmem:[#allocation53_spill] sm:$0xff] %v8235_v39  ;;  %v386_v8 = vunpack.c.1.s8 %v8235_v39 }
  0xfe   :  { %v1470_v61 = vadd.f32 %v1469_v4, %v1421_v27  ;;  %v774_v36 = vcvt.s32.f32 %v382_v58  ;;  %v8249_v4 = vpack.c.bf16 %v96_v31, %v89_v12  ;;  %v6710_v31 = vld [vmem:[%s13011_s1 + $0x218] sm:$0xff] }
  0xff   :  { %1842 = vmatpush.bf16.msrb.mxu3 %v1158_v42  ;;  %v778_v26 = vcvt.s32.f32 %v386_v8  ;;  %v6708_v8 = vld [vmem:[%s13011_s1 + $0x198] sm:$0xff] }
 0x100   :  { %v8221_v30 = vadd.f32 %v1518_v9, %v1470_v61  ;;  %v1520_v61 = vpop.f32.mrf.mxu0  ;;  %v95_v9 = vld [vmem:[%s13012_s0 + $0x220] sm:$0xff]  ;;  %13436 = vst [vmem:[#allocation55_spill] sm:$0xff] %v8249_v4 }
 0x101   :  { %v8247_v27 = vpack.c.bf16 %v95_v9, %v88_v14  ;;  %v1094_v46 = vpack.c.bf16 %v778_v26, %v774_v36  ;;  %v442_v9 = vunpack.c.1.s8 %v6708_v8  ;;  %v506_v36 = vunpack.c.1.s8 %v6710_v31  ;;  %v6711_v8 = vld [vmem:[%s13011_s1 + $0x2f0] sm:$0xff]  ;;  %v6712_v31 = vld [vmem:[%s13011_s1 + $0x2f8] sm:$0xff] }
 0x102   :  { %v1422_v19 = vpop.f32.mrf.mxu2 }
 0x103   :  { %v1423_v17 = vadd.f32 %v1422_v19, %v1374_v32  ;;  %13435 = vst [vmem:[#allocation54_spill] sm:$0xff] %v8247_v27  ;;  %1744 = vmatpush.bf16.msrb.mxu1 %v1094_v46  ;;  %v6707_v32 = vld [vmem:[%s13011_s1 + $0x190] sm:$0xff] }
 0x104   :  { %v1376_v35 = vpop.f32.mrf.mxu1  ;;  %v438_v14 = vunpack.c.1.s8 %v6707_v32 }
 0x105   :  { %v1471_v38 = vpop.f32.mrf.mxu3  ;;  %v1377_v26 = vadd.f32 %v1376_v35, %v7956_v49 }
 0x106   :  { %v1472_v42 = vadd.f32 %v1471_v38, %v1423_v17  ;;  %v830_v17 = vcvt.s32.f32 %v438_v14  ;;  %v834_v38 = vcvt.s32.f32 %v442_v9 }
 0x107   :  { %1571 = vmatmul.bf16.gmra.mxu1 %v8247_v27  ;;  %6587 = vmatmul.msk.bf16.gmra.mxu2 %vm1273_vm0, %v8249_v4  ;;  %v618_v4 = vunpack.c.1.s8 %v6712_v31 }
 0x108   :  { %v8251_v51 = vadd.f32 %v1520_v61, %v1472_v42  ;;  %v1523_v58 = vpop.f32.mrf.mxu0  ;;  %v6709_v61 = vld [vmem:[%s13011_s1 + $0x210] sm:$0xff]  ;;  %v898_v42 = vcvt.s32.f32 %v506_v36  ;;  %v1122_v35 = vpack.c.bf16 %v834_v38, %v830_v17  ;;  %v103_v17 = vld [vmem:[%s13012_s0 + $0x260] sm:$0xff]  ;;  %v8300_v38 = vld [vmem:[%s13011_s1 + $0x118] sm:$0xff] }
 0x109   :  { %v502_v12 = vunpack.c.1.s8 %v6709_v61  ;;  %v614_v61 = vunpack.c.1.s8 %v6711_v8  ;;  %v1010_v36 = vcvt.s32.f32 %v618_v4  ;;  %v109_v8 = vld [vmem:[%s13012_s0 + $0x290] sm:$0xff]  ;;  %13438 = vst [vmem:[#allocation57_spill] sm:$0xff] %v8300_v38 }
 0x10a   :  { %1669 = vmatmul.bf16.gmra.mxu3 %v7102_v33  ;;  %v1425_v19 = vpop.f32.mrf.mxu2  ;;  %1718 = vmatmul.bf16.gmra.mxu0 %v7799_v55  ;;  %v8294_v4 = vld [vmem:[%s13011_s1 + $0x110] sm:$0xff] }
 0x10b   :  { %v894_v46 = vcvt.s32.f32 %v502_v12  ;;  %v1426_v32 = vadd.f32 %v1425_v19, %v1377_v26  ;;  %v1006_v12 = vcvt.s32.f32 %v614_v61  ;;  %v102_v26 = vld [vmem:[%s13012_s0 + $0x258] sm:$0xff]  ;;  %1794 = vmatpush.bf16.msrb.mxu2 %v1122_v35  ;;  %13437 = vst [vmem:[#allocation56_spill] sm:$0xff] %v8294_v4  ;;  %v6715_v61 = vld [vmem:[%s13011_s1 + $0x2e0] sm:$0xff]  ;;  %v6716_v35 = vld [vmem:[%s13011_s1 + $0x2e8] sm:$0xff] }
 0x10c   :  { %v1378_v49 = vpop.f32.mrf.mxu1  ;;  %v606_v31 = vunpack.c.1.s8 %v6715_v61  ;;  %v8310_v39 = vpack.c.bf16 %v109_v8, %v102_v26 }
 0x10d   :  { %v1474_v33 = vpop.f32.mrf.mxu3  ;;  %v1154_v14 = vpack.c.bf16 %v898_v42, %v894_v46  ;;  %v378_v46 = vunpack.c.1.s8 %v8300_v38  ;;  %v1210_v42 = vpack.c.bf16 %v1010_v36, %v1006_v12 }
 0x10e   :  { %v1475_v9 = vadd.f32 %v1474_v33, %v1426_v32  ;;  %v110_v33 = vld [vmem:[%s13012_s0 + $0x298] sm:$0xff]  ;;  %13439 = vst [vmem:[#allocation58_spill] sm:$0xff] %v8310_v39  ;;  %v998_v36 = vcvt.s32.f32 %v606_v31 }
 0x10f   :  { %1843 = vmatpush.bf16.msrb.mxu3 %v1154_v14  ;;  %v610_v14 = vunpack.c.1.s8 %v6716_v35  ;;  %v770_v63 = vcvt.s32.f32 %v378_v46  ;;  %1886 = vmatpush.bf16.msrb.mxu0 %v1210_v42  ;;  %v8312_v12 = vpack.c.bf16 %v110_v33, %v103_v17  ;;  %v598_v35 = vunpack.c.1.s8 %v6717_v5  ;;  %v6721_v46 = vld [vmem:[%s13011_s1 + $0x188] sm:$0xff] }
 0x110   :  { %v8280_v19 = vadd.f32 %v1523_v58, %v1475_v9  ;;  %v374_v58 = vunpack.c.1.s8 %v8294_v4  ;;  %v1525_v32 = vpop.f32.mrf.mxu0  ;;  %v1379_v9 = vadd.f32 %v1378_v49, %v7989_v34  ;;  %v6718_v34 = vld [vmem:[%s13011_s1 + $0x2d8] sm:$0xff]  ;;  %v434_v42 = vunpack.c.1.s8 %v6721_v46 }
 0x111   :  { %13440 = vst [vmem:[#allocation59_spill] sm:$0xff] %v8312_v12  ;;  %v1002_v38 = vcvt.s32.f32 %v610_v14  ;;  %v602_v49 = vunpack.c.1.s8 %v6718_v34  ;;  %v990_v17 = vcvt.s32.f32 %v598_v35  ;;  %v6723_v14 = vld [vmem:[%s13011_s1 + $0x208] sm:$0xff] }
 0x112   :  { %v766_v55 = vcvt.s32.f32 %v374_v58  ;;  %v1427_v4 = vpop.f32.mrf.mxu2 }
 0x113   :  { %v1428_v3 = vadd.f32 %v1427_v4, %v1379_v9  ;;  %v1206_v26 = vpack.c.bf16 %v1002_v38, %v998_v36  ;;  %v994_v33 = vcvt.s32.f32 %v602_v49  ;;  %v498_v9 = vunpack.c.1.s8 %v6723_v14 }
 0x114   :  { %v1090_v61 = vpack.c.bf16 %v770_v63, %v766_v55  ;;  %v1381_v58 = vpop.f32.mrf.mxu1  ;;  %v6719_v55 = vld [vmem:[%s13011_s1 + $0x2c0] sm:$0xff] }
 0x115   :  { %v1476_v44 = vpop.f32.mrf.mxu3  ;;  %1887 = vmatpush.bf16.msrb.mxu0 %v1206_v26  ;;  %v1202_v63 = vpack.c.bf16 %v994_v33, %v990_v17  ;;  %v590_v5 = vunpack.c.1.s8 %v6719_v55  ;;  %v1382_v36 = vadd.f32 %v1381_v58, %v8026_v24  ;;  %v890_v33 = vcvt.s32.f32 %v498_v9  ;;  %v8365_v9 = vld [vmem:[%s13011_s1 + $0x100] sm:$0xff] }
 0x116   :  { %v1477_v8 = vadd.f32 %v1476_v44, %v1428_v3  ;;  %1745 = vmatpush.bf16.msrb.mxu1 %v1090_v61  ;;  %v6720_v3 = vld [vmem:[%s13011_s1 + $0x180] sm:$0xff]  ;;  %v6724_v61 = vld [vmem:[%s13011_s1 + $0x2c8] sm:$0xff]  ;;  %v586_v24 = vunpack.c.1.s8 %v7726_v37  ;;  %v117_v37 = vld [vmem:[%s13012_s0 + $0x2d0] sm:$0xff] }
 0x117   :  { %1576 = vmatmul.bf16.gmra.mxu1 %v8310_v39  ;;  %6588 = vmatmul.msk.bf16.gmra.mxu2 %vm1273_vm0, %v8312_v12  ;;  %v430_v38 = vunpack.c.1.s8 %v6720_v3  ;;  %v594_v35 = vunpack.c.1.s8 %v6724_v61  ;;  %v982_v34 = vcvt.s32.f32 %v590_v5 }
 0x118   :  { %v8320_v4 = vadd.f32 %v1525_v32, %v1477_v8  ;;  %v1528_v44 = vpop.f32.mrf.mxu0  ;;  %v6722_v32 = vld [vmem:[%s13011_s1 + $0x200] sm:$0xff]  ;;  %v826_v8 = vcvt.s32.f32 %v434_v42 }
 0x119   :  { %v494_v31 = vunpack.c.1.s8 %v6722_v32  ;;  %v822_v26 = vcvt.s32.f32 %v430_v38  ;;  %1888 = vmatpush.bf16.msrb.mxu0 %v1202_v63  ;;  %v986_v46 = vcvt.s32.f32 %v594_v35  ;;  %v582_v32 = vunpack.c.1.s8 %v7721_v47  ;;  %v116_v63 = vld [vmem:[%s13012_s0 + $0x2c8] sm:$0xff]  ;;  %v123_v47 = vld [vmem:[%s13012_s0 + $0x300] sm:$0xff] }
 0x11a   :  { %1674 = vmatmul.bf16.gmra.mxu3 %v7344_v21  ;;  %v1430_v49 = vpop.f32.mrf.mxu2  ;;  %1723 = vmatmul.bf16.gmra.mxu0 %v7859_v52  ;;  %v978_v38 = vcvt.s32.f32 %v586_v24  ;;  %v574_v35 = vunpack.c.1.s8 %v7771_v6  ;;  %v566_v6 = vunpack.c.1.s8 %v7828_v60  ;;  %v562_v60 = vunpack.c.1.s8 %v7895_v7  ;;  %v6730_v7 = vld [vmem:[%s13011_s1 + $0xf8] sm:$0xff] }
 0x11b   :  { %v886_v17 = vcvt.s32.f32 %v494_v31  ;;  %v1431_v55 = vadd.f32 %v1430_v49, %v1382_v36  ;;  %v1118_v14 = vpack.c.bf16 %v826_v8, %v822_v26  ;;  %v1198_v5 = vpack.c.bf16 %v986_v46, %v982_v34  ;;  %v124_v31 = vld [vmem:[%s13012_s0 + $0x308] sm:$0xff] }
 0x11c   :  { %v1383_v58 = vpop.f32.mrf.mxu1  ;;  %v974_v21 = vcvt.s32.f32 %v582_v32  ;;  %v578_v26 = vunpack.c.1.s8 %v7776_v62  ;;  %v8377_v46 = vpack.c.bf16 %v123_v47, %v116_v63  ;;  %v8379_v32 = vpack.c.bf16 %v124_v31, %v117_v37  ;;  %v6727_v37 = vld [vmem:[%s13011_s1 + $0x70] sm:$0xff] }
 0x11d   :  { %v1479_v3 = vpop.f32.mrf.mxu3  ;;  %v1150_v12 = vpack.c.bf16 %v890_v33, %v886_v17  ;;  %1795 = vmatpush.bf16.msrb.mxu2 %v1118_v14  ;;  %1889 = vmatpush.bf16.msrb.mxu0 %v1198_v5  ;;  %v1384_v8 = vadd.f32 %v1383_v58, %v8053_v41  ;;  %v958_v58 = vcvt.s32.f32 %v566_v6  ;;  %v558_v47 = vunpack.c.1.s8 %v7890_v1  ;;  %v6729_v1 = vld [vmem:[%s13011_s1 + $0xf0] sm:$0xff] }
 0x11e   :  { %v1480_v61 = vadd.f32 %v1479_v3, %v1431_v55  ;;  %v1194_v49 = vpack.c.bf16 %v978_v38, %v974_v21  ;;  %v966_v55 = vcvt.s32.f32 %v574_v35  ;;  %13441 = vst [vmem:[#allocation60_spill] sm:$0xff] %v8377_v46  ;;  %v970_v24 = vcvt.s32.f32 %v578_v26  ;;  %v6728_v35 = vld [vmem:[%s13011_s1 + $0x78] sm:$0xff] }
 0x11f   :  { %1844 = vmatpush.bf16.msrb.mxu3 %v1150_v12  ;;  %v366_v12 = vunpack.c.1.s8 %v8365_v9  ;;  %13442 = vst [vmem:[#allocation61_spill] sm:$0xff] %v8379_v32  ;;  %v570_v21 = vunpack.c.1.s8 %v7833_v20  ;;  %v295_v31 = vunpack.c.2.s8 %v6727_v37  ;;  %v363_v26 = vunpack.c.2.s8 %v6730_v7  ;;  %v138_v37 = vld [vmem:[%s13012_s0 + $0x378] sm:$0xff] }
 0x120   :  { %v8351_v42 = vadd.f32 %v1528_v44, %v1480_v61  ;;  %v8371_v44 = vld [vmem:[%s13011_s1 + $0x108] sm:$0xff]  ;;  %v1530_v34 = vpop.f32.mrf.mxu0  ;;  %v1190_v38 = vpack.c.bf16 %v970_v24, %v966_v55 }
 0x121   :  { %v370_v36 = vunpack.c.1.s8 %v8371_v44  ;;  %v758_v17 = vcvt.s32.f32 %v366_v12  ;;  %1890 = vmatpush.bf16.msrb.mxu0 %v1194_v49  ;;  %v962_v12 = vcvt.s32.f32 %v570_v21  ;;  %v359_v49 = vunpack.c.2.s8 %v6729_v1 }
 0x122   :  { %v1432_v3 = vpop.f32.mrf.mxu2 }
 0x123   :  { %v762_v33 = vcvt.s32.f32 %v370_v36  ;;  %v1433_v14 = vadd.f32 %v1432_v3, %v1384_v8  ;;  %v1186_v63 = vpack.c.bf16 %v962_v12, %v958_v58  ;;  %v687_v3 = vcvt.s32.f32 %v295_v31  ;;  %v6731_v31 = vld [vmem:[%s13011_s1 + $0x300] sm:$0xff] }
 0x124   :  { %v1386_v62 = vpop.f32.mrf.mxu1 }
 0x125   :  { %v1481_v61 = vpop.f32.mrf.mxu3  ;;  %v1086_v5 = vpack.c.bf16 %v762_v33, %v758_v17  ;;  %1891 = vmatpush.bf16.msrb.mxu0 %v1190_v38  ;;  %v1387_v8 = vadd.f32 %v1386_v62, %v7958_v2  ;;  %v950_v17 = vcvt.s32.f32 %v558_v47  ;;  %v954_v33 = vcvt.s32.f32 %v562_v60  ;;  %v130_v62 = vld [vmem:[%s13012_s0 + $0x338] sm:$0xff]  ;;  %v137_v47 = vld [vmem:[%s13012_s0 + $0x370] sm:$0xff] }
 0x126   :  { %v1482_v41 = vadd.f32 %v1481_v61, %v1433_v14  ;;  %v751_v14 = vcvt.s32.f32 %v359_v49  ;;  %v755_v61 = vcvt.s32.f32 %v363_v26  ;;  %v8426_v7 = vpack.c.bf16 %v137_v47, %v130_v62  ;;  %v6735_v47 = vld [vmem:[%s13011_s1 + $0xe0] sm:$0xff] }
 0x127   :  { %1746 = vmatpush.bf16.msrb.mxu1 %v1086_v5  ;;  %6589 = vmatmul.msk.bf16.gmra.mxu2 %vm1273_vm0, %v8379_v32  ;;  %v1182_v58 = vpack.c.bf16 %v954_v33, %v950_v17 }
 0x128   :  { %v8383_v36 = vadd.f32 %v1530_v34, %v1482_v41  ;;  %1581 = vmatmul.bf16.gmra.mxu1 %v8377_v46  ;;  %v1533_v20 = vpop.f32.mrf.mxu0  ;;  %v299_v34 = vunpack.c.2.s8 %v6728_v35  ;;  %v1083_v41 = vpack.c.bf16 %v755_v61, %v751_v14  ;;  %v622_v35 = vunpack.c.1.s8 %v6731_v31  ;;  %13443 = vst [vmem:[#allocation62_spill] sm:$0xff] %v8426_v7 }
 0x129   :  { %1892 = vmatpush.bf16.msrb.mxu0 %v1186_v63  ;;  %v131_v63 = vld [vmem:[%s13012_s0 + $0x340] sm:$0xff] }
 0x12a   :  { %1679 = vmatmul.bf16.gmra.mxu3 %v7115_v40  ;;  %v1435_v55 = vpop.f32.mrf.mxu2  ;;  %v691_v24 = vcvt.s32.f32 %v299_v34  ;;  %1728 = vmatmul.bf16.gmra.mxu0 %v7921_v57  ;;  %v6732_v34 = vld [vmem:[%s13011_s1 + $0x308] sm:$0xff]  ;;  %v8428_v17 = vpack.c.bf16 %v138_v37, %v131_v63  ;;  %v1014_v33 = vcvt.s32.f32 %v622_v35 }
 0x12b   :  { %v1436_v5 = vadd.f32 %v1435_v55, %v1387_v8  ;;  %2033 = vmatpush.bf16.msra.mxu3 %v1083_v41  ;;  %v626_v1 = vunpack.c.1.s8 %v6732_v34  ;;  %v6733_v41 = vld [vmem:[%s13011_s1 + $0x60] sm:$0xff]  ;;  %v6736_v63 = vld [vmem:[%s13011_s1 + $0xe8] sm:$0xff] }
 0x12c   :  { %v1388_v21 = vpop.f32.mrf.mxu1  ;;  %v1051_v38 = vpack.c.bf16 %v691_v24, %v687_v3  ;;  %13444 = vst [vmem:[#allocation63_spill] sm:$0xff] %v8428_v17  ;;  %v355_v37 = vunpack.c.2.s8 %v6736_v63 }
 0x12d   :  { %v1484_v6 = vpop.f32.mrf.mxu3  ;;  %1893 = vmatpush.bf16.msrb.mxu0 %v1182_v58  ;;  %v1018_v55 = vcvt.s32.f32 %v626_v1  ;;  %v287_v58 = vunpack.c.2.s8 %v6733_v41 }
 0x12e   :  { %v1485_v12 = vadd.f32 %v1484_v6, %v1436_v5  ;;  %1984 = vmatpush.bf16.msra.mxu2 %v1051_v38  ;;  %v747_v1 = vcvt.s32.f32 %v355_v37 }
 0x12f   :  { %v1214_v24 = vpack.c.bf16 %v1018_v55, %v1014_v33  ;;  %v679_v31 = vcvt.s32.f32 %v287_v58 }
 0x130   :  { %v8405_v2 = vadd.f32 %v1533_v20, %v1485_v12  ;;  %v1535_v60 = vpop.f32.mrf.mxu0  ;;  %v1389_v20 = vadd.f32 %v1388_v21, %v7991_v16  ;;  %v6734_v12 = vld [vmem:[%s13011_s1 + $0x68] sm:$0xff] }
 0x131   :  { %1942 = vmatpush.bf16.msra.mxu1 %v1214_v24  ;;  %v291_v62 = vunpack.c.2.s8 %v6734_v12 }
 0x132   :  { %v1437_v49 = vpop.f32.mrf.mxu2 }
 0x133   :  { %v1438_v26 = vadd.f32 %v1437_v49, %v1389_v20  ;;  %v683_v35 = vcvt.s32.f32 %v291_v62 }
 0x134   :  { %v1391_v16 = vpop.f32.mrf.mxu1 }
 0x135   :  { %v1486_v8 = vpop.f32.mrf.mxu3  ;;  %v1392_v5 = vadd.f32 %v1391_v16, %v8028_v0  ;;  %v351_v0 = vunpack.c.2.s8 %v6735_v47  ;;  %v6738_v47 = vld [vmem:[%s13011_s1 + $0x58] sm:$0xff] }
 0x136   :  { %v1487_v3 = vadd.f32 %v1486_v8, %v1438_v26  ;;  %v1047_v26 = vpack.c.bf16 %v683_v35, %v679_v31  ;;  %v6740_v31 = vld [vmem:[%s13011_s1 + $0xd8] sm:$0xff] }
 0x137   :  { %6590 = vmatmul.msk.bf16.gmra.mxu2 %vm1273_vm0, %v8428_v17  ;;  %v743_v34 = vcvt.s32.f32 %v351_v0  ;;  %v283_v0 = vunpack.c.2.s8 %v6738_v47  ;;  %v347_v35 = vunpack.c.2.s8 %v6740_v31 }
 0x138   :  { %v8430_v14 = vadd.f32 %v1535_v60, %v1487_v3  ;;  %1586 = vmatmul.bf16.gmra.mxu1 %v8426_v7  ;;  %v1538_v61 = vpop.f32.mrf.mxu0  ;;  %1985 = vmatpush.bf16.msra.mxu2 %v1047_v26 }
 0x139   :  { %v1079_v33 = vpack.c.bf16 %v747_v1, %v743_v34 }
 0x13a   :  { %1684 = vmatmul.bf16.gmra.mxu3 %v7346_v22  ;;  %v1440_v6 = vpop.f32.mrf.mxu2  ;;  %1733 = vmatmul.bf16.gmra.mxu0 %v7993_v59 }
 0x13b   :  { %v1441_v21 = vadd.f32 %v1440_v6, %v1392_v5  ;;  %2034 = vmatpush.bf16.msra.mxu3 %v1079_v33  ;;  %v2744_v33 = vld [vmem:[%s13013_s6] sm:$0xf] }
 0x13c   :  { %v1393_v60 = vpop.f32.mrf.mxu1 }
 0x13d   :  { %v1489_v38 = vpop.f32.mrf.mxu3  ;;  %v1394_v55 = vadd.f32 %v1393_v60, %v8055_v48  ;;  %v2670_v48 = vld [vmem:[%s13013_s6 + $0xc] sm:$0xf]  ;;  %v6739_v60 = vld [vmem:[%s13011_s1 + $0xd0] sm:$0xff] }
 0x13e   :  { %v1490_v20 = vadd.f32 %v1489_v38, %v1441_v21  ;;  %v343_v63 = vunpack.c.2.s8 %v6739_v60  ;;  %v8477_v34 = vperm.slane %v2670_v48, 0 }
 0x140   :  { %v8450_v49 = vadd.f32 %v1538_v61, %v1490_v20  ;;  %v1540_v8 = vpop.f32.mrf.mxu0 }
 0x142   :  { %v1442_v16 = vpop.f32.mrf.mxu2 }
 0x143   :  { %v1443_v3 = vadd.f32 %v1442_v16, %v1394_v55  ;;  %v735_v55 = vcvt.s32.f32 %v343_v63  ;;  %v739_v16 = vcvt.s32.f32 %v347_v35 }
 0x144   :  { %v1552_v5 = vpop.f32.mrf.mxu1 }
 0x145   :  { %v1491_v24 = vpop.f32.mrf.mxu3  ;;  %v1553_v21 = vadd.f32 %v1552_v5, %v8080_v25  ;;  %v6737_v25 = vld [vmem:[%s13011_s1 + $0x50] sm:$0xff]  ;;  %v1075_v5 = vpack.c.bf16 %v739_v16, %v735_v55 }
 0x146   :  { %v1492_v6 = vadd.f32 %v1491_v24, %v1443_v3  ;;  %v279_v62 = vunpack.c.2.s8 %v6737_v25 }
 0x147   :  { %1796 = vmatmul.bf16.vlgmr.msrb.gmra.mxu2 %v7615_v50  ;;  %2035 = vmatpush.bf16.msra.mxu3 %v1075_v5 }
 0x148   :  { %v8454_v38 = vadd.f32 %v1540_v8, %v1492_v6  ;;  %1747 = vmatmul.bf16.vlgmr.msrb.gmra.mxu1 %v7613_v28  ;;  %v1699_v61 = vpop.f32.mrf.mxu0  ;;  %v671_v26 = vcvt.s32.f32 %v279_v62  ;;  %v675_v8 = vcvt.s32.f32 %v283_v0 }
 0x14a   :  { %1845 = vmatmul.bf16.vlgmr.msrb.gmra.mxu3 %v7625_v43  ;;  %v1601_v41 = vpop.f32.mrf.mxu2  ;;  %1894 = vmatmul.bf16.vlgmr.msrb.gmra.mxu0 %v8057_v45  ;;  %v1043_v3 = vpack.c.bf16 %v675_v8, %v671_v26  ;;  %v6741_v26 = vld [vmem:[%s13011_s1 + $0x40] sm:$0xff] }
 0x14b   :  { %v1602_v58 = vadd.f32 %v1601_v41, %v1553_v21  ;;  %v8484_v21 = vperm.slane %v2744_v33, 0  ;;  %v271_v8 = vunpack.c.2.s8 %v6741_v26  ;;  %v6742_v33 = vld [vmem:[%s13011_s1 + $0x48] sm:$0xff] }
 0x14c   :  { %v1554_v20 = vpop.f32.mrf.mxu1  ;;  %1986 = vmatpush.bf16.msra.mxu2 %v1043_v3  ;;  %v275_v55 = vunpack.c.2.s8 %v6742_v33 }
 0x14d   :  { %v1650_v12 = vpop.f32.mrf.mxu3  ;;  %v1555_v1 = vadd.f32 %v1554_v20, %v8105_v29  ;;  %v2680_v6 = vmul.f32 %v8477_v34, %v1602_v58  ;;  %v13445_v58 = vld [vmem:[#allocation33_spill] sm:$0xff] }
 0x14e   :  { %v8472_v37 = vadd.f32 %v1699_v61, %v1650_v12 }
 0x14f   :  { %v8489_v25 = vadd.f32 %v8484_v21, %v2680_v6  ;;  %v6744_v6 = vld [vmem:[%s13011_s1 + $0xc8] sm:$0xff] }
 0x150   :  { %v1701_v24 = vpop.f32.mrf.mxu0 }
 0x151   :  { %v13116_v63 = vmax.f32 %v8489_v25, 0.0 }
 0x152   :  { %v1603_v61 = vpop.f32.mrf.mxu2 }
 0x153   :  { %v1604_v41 = vadd.f32 %v1603_v61, %v1555_v1  ;;  %v339_v61 = vunpack.c.2.s8 %v6744_v6 }
 0x154   :  { %v1557_v12 = vpop.f32.mrf.mxu1 }
 0x155   :  { %v1652_v29 = vpop.f32.mrf.mxu3  ;;  %v2684_v62 = vmul.f32 %v8477_v34, %v1604_v41  ;;  %v1558_v47 = vadd.f32 %v1557_v12, %v8125_v18  ;;  %v663_v12 = vcvt.s32.f32 %v271_v8 }
 0x156   :  { %v8486_v48 = vadd.f32 %v1701_v24, %v1652_v29  ;;  %v6743_v24 = vld [vmem:[%s13011_s1 + $0xc0] sm:$0xff] }
 0x157   :  { %v8494_v0 = vadd.f32 %v8484_v21, %v2684_v62  ;;  %1801 = vmatmul.bf16.gmra.mxu2 %v7659_v15  ;;  %v335_v5 = vunpack.c.2.s8 %v6743_v24  ;;  %v667_v62 = vcvt.s32.f32 %v275_v55 }
 0x158   :  { %1752 = vmatmul.bf16.gmra.mxu1 %v7657_v23  ;;  %v1704_v60 = vpop.f32.mrf.mxu0 }
 0x159   :  { %v13113_v20 = vmax.f32 %v8494_v0, 0.0 }
 0x15a   :  { %1850 = vmatmul.bf16.gmra.mxu3 %v13445_v58  ;;  %v1606_v31 = vpop.f32.mrf.mxu2  ;;  %1899 = vmatmul.bf16.gmra.mxu0 %v8100_v13 }
 0x15b   :  { %v2882_v18 = vadd.f32 %v13113_v20, %v13116_v63  ;;  %v1607_v35 = vadd.f32 %v1606_v31, %v1558_v47  ;;  %v727_v47 = vcvt.s32.f32 %v335_v5 }
 0x15c   :  { %v1559_v3 = vpop.f32.mrf.mxu1 }
 0x15d   :  { %v1655_v1 = vpop.f32.mrf.mxu3  ;;  %v2688_v41 = vmul.f32 %v8477_v34, %v1607_v35  ;;  %v1560_v29 = vadd.f32 %v1559_v3, %v8150_v54 }
 0x15e   :  { %v8512_v16 = vadd.f32 %v1704_v60, %v1655_v1  ;;  %v731_v60 = vcvt.s32.f32 %v339_v61  ;;  %v1039_v1 = vpack.c.bf16 %v667_v62, %v663_v12  ;;  %v13447_v12 = vld [vmem:[#allocation34_spill] sm:$0xff]  ;;  %v13448_v62 = vld [vmem:[#allocation35_spill] sm:$0xff] }
 0x15f   :  { %v8523_v31 = vadd.f32 %v8484_v21, %v2688_v41  ;;  %v13446_v41 = vld [vmem:[#allocation3_spill] sm:$0xff] }
 0x160   :  { %v1706_v26 = vpop.f32.mrf.mxu0  ;;  %v1071_v33 = vpack.c.bf16 %v731_v60, %v727_v47  ;;  %1987 = vmatpush.bf16.msra.mxu2 %v1039_v1 }
 0x161   :  { %v13115_v24 = vmax.f32 %v8523_v31, 0.0 }
 0x162   :  { %v1608_v20 = vpop.f32.mrf.mxu2  ;;  %2036 = vmatpush.bf16.msra.mxu3 %v1071_v33  ;;  %v6746_v33 = vld [vmem:[%s13011_s1 + $0x38] sm:$0xff] }
 0x163   :  { %v2883_v35 = vadd.f32 %v2882_v18, %v13115_v24  ;;  %v1609_v6 = vadd.f32 %v1608_v20, %v1560_v29 }
 0x164   :  { %v1562_v55 = vpop.f32.mrf.mxu1 }
 0x165   :  { %v1657_v54 = vpop.f32.mrf.mxu3  ;;  %v2692_v3 = vmul.f32 %v8477_v34, %v1609_v6  ;;  %v1563_v5 = vadd.f32 %v1562_v55, %v8170_v53  ;;  %v6745_v53 = vld [vmem:[%s13011_s1 + $0x30] sm:$0xff]  ;;  %v267_v6 = vunpack.c.2.s8 %v6746_v33 }
 0x166   :  { %v8528_v8 = vadd.f32 %v1706_v26, %v1657_v54  ;;  %v263_v26 = vunpack.c.2.s8 %v6745_v53 }
 0x167   :  { %v8533_v61 = vadd.f32 %v8484_v21, %v2692_v3  ;;  %1806 = vmatmul.bf16.gmra.mxu2 %v13447_v12  ;;  %v659_v63 = vcvt.s32.f32 %v267_v6 }
 0x168   :  { %1757 = vmatmul.bf16.gmra.mxu1 %v13446_v41  ;;  %v1709_v47 = vpop.f32.mrf.mxu0  ;;  %v655_v24 = vcvt.s32.f32 %v263_v26 }
 0x169   :  { %v13114_v20 = vmax.f32 %v8533_v61, 0.0 }
 0x16a   :  { %1855 = vmatmul.bf16.gmra.mxu3 %v13448_v62  ;;  %v1611_v18 = vpop.f32.mrf.mxu2  ;;  %1904 = vmatmul.bf16.gmra.mxu0 %v8145_v10  ;;  %v1035_v10 = vpack.c.bf16 %v659_v63, %v655_v24  ;;  %v13449_v24 = vld [vmem:[#allocation5_spill] sm:$0xff] }
 0x16b   :  { %v2884_v29 = vadd.f32 %v2883_v35, %v13114_v20  ;;  %v1612_v60 = vadd.f32 %v1611_v18, %v1563_v5  ;;  %v6747_v35 = vld [vmem:[%s13011_s1 + $0xb0] sm:$0xff]  ;;  %v6748_v5 = vld [vmem:[%s13011_s1 + $0xb8] sm:$0xff] }
 0x16c   :  { %v1564_v55 = vpop.f32.mrf.mxu1  ;;  %v327_v3 = vunpack.c.2.s8 %v6747_v35  ;;  %v331_v18 = vunpack.c.2.s8 %v6748_v5  ;;  %1988 = vmatpush.bf16.msra.mxu2 %v1035_v10  ;;  %v13450_v10 = vld [vmem:[#allocation36_spill] sm:$0xff] }
 0x16d   :  { %v1660_v1 = vpop.f32.mrf.mxu3  ;;  %v2696_v53 = vmul.f32 %v8477_v34, %v1612_v60  ;;  %v1565_v20 = vadd.f32 %v1564_v55, %v8201_v56 }
 0x16e   :  { %v8548_v54 = vadd.f32 %v1709_v47, %v1660_v1  ;;  %v719_v33 = vcvt.s32.f32 %v327_v3  ;;  %v723_v47 = vcvt.s32.f32 %v331_v18 }
 0x16f   :  { %v8559_v1 = vadd.f32 %v8484_v21, %v2696_v53 }
 0x170   :  { %v1711_v12 = vpop.f32.mrf.mxu0  ;;  %v1067_v62 = vpack.c.bf16 %v723_v47, %v719_v33  ;;  %v6750_v47 = vld [vmem:[%s13011_s1 + $0x28] sm:$0xff] }
 0x171   :  { %v13122_v35 = vmax.f32 %v8559_v1, 0.0 }
 0x172   :  { %v1613_v13 = vpop.f32.mrf.mxu2  ;;  %2037 = vmatpush.bf16.msra.mxu3 %v1067_v62  ;;  %v13451_v62 = vld [vmem:[#allocation37_spill] sm:$0xff] }
 0x173   :  { %v2885_v60 = vadd.f32 %v2884_v29, %v13122_v35  ;;  %v1614_v5 = vadd.f32 %v1613_v13, %v1565_v20 }
 0x174   :  { %v1567_v6 = vpop.f32.mrf.mxu1 }
 0x175   :  { %v1662_v56 = vpop.f32.mrf.mxu3  ;;  %v2700_v55 = vmul.f32 %v8477_v34, %v1614_v5  ;;  %v1568_v3 = vadd.f32 %v1567_v6, %v8221_v30  ;;  %v6749_v30 = vld [vmem:[%s13011_s1 + $0x20] sm:$0xff]  ;;  %v259_v5 = vunpack.c.2.s8 %v6750_v47 }
 0x176   :  { %v8564_v26 = vadd.f32 %v1711_v12, %v1662_v56  ;;  %v255_v33 = vunpack.c.2.s8 %v6749_v30 }
 0x177   :  { %v8569_v63 = vadd.f32 %v8484_v21, %v2700_v55  ;;  %1811 = vmatmul.bf16.gmra.mxu2 %v13450_v10 }
 0x178   :  { %1762 = vmatmul.bf16.gmra.mxu1 %v13449_v24  ;;  %v1714_v18 = vpop.f32.mrf.mxu0  ;;  %v647_v35 = vcvt.s32.f32 %v255_v33 }
 0x179   :  { %v13121_v13 = vmax.f32 %v8569_v63, 0.0 }
 0x17a   :  { %1860 = vmatmul.bf16.gmra.mxu3 %v13451_v62  ;;  %v1616_v20 = vpop.f32.mrf.mxu2  ;;  %1909 = vmatmul.bf16.gmra.mxu0 %v8196_v11  ;;  %v651_v11 = vcvt.s32.f32 %v259_v5 }
 0x17b   :  { %v2886_v12 = vadd.f32 %v2885_v60, %v13121_v13  ;;  %v1617_v29 = vadd.f32 %v1616_v20, %v1568_v3  ;;  %v6751_v60 = vld [vmem:[%s13011_s1 + $0xa0] sm:$0xff]  ;;  %v6752_v3 = vld [vmem:[%s13011_s1 + $0xa8] sm:$0xff] }
 0x17c   :  { %v1569_v6 = vpop.f32.mrf.mxu1  ;;  %v319_v55 = vunpack.c.2.s8 %v6751_v60  ;;  %v323_v20 = vunpack.c.2.s8 %v6752_v3  ;;  %v1031_v10 = vpack.c.bf16 %v651_v11, %v647_v35  ;;  %v13452_v35 = vld [vmem:[#allocation7_spill] sm:$0xff] }
 0x17d   :  { %v1665_v53 = vpop.f32.mrf.mxu3  ;;  %v2704_v30 = vmul.f32 %v8477_v34, %v1617_v29  ;;  %v1570_v13 = vadd.f32 %v1569_v6, %v8251_v51 }
 0x17e   :  { %v8584_v56 = vadd.f32 %v1714_v18, %v1665_v53  ;;  %v711_v47 = vcvt.s32.f32 %v319_v55  ;;  %v715_v18 = vcvt.s32.f32 %v323_v20  ;;  %1989 = vmatpush.bf16.msra.mxu2 %v1031_v10  ;;  %v13453_v10 = vld [vmem:[#allocation38_spill] sm:$0xff] }
 0x17f   :  { %v8595_v53 = vadd.f32 %v8484_v21, %v2704_v30 }
 0x180   :  { %v1716_v62 = vpop.f32.mrf.mxu0  ;;  %v1063_v15 = vpack.c.bf16 %v715_v18, %v711_v47  ;;  %v6754_v18 = vld [vmem:[%s13011_s1 + $0x18] sm:$0xff] }
 0x181   :  { %v13128_v60 = vmax.f32 %v8595_v53, 0.0 }
 0x182   :  { %v1618_v58 = vpop.f32.mrf.mxu2  ;;  %2038 = vmatpush.bf16.msra.mxu3 %v1063_v15  ;;  %v13454_v15 = vld [vmem:[#allocation39_spill] sm:$0xff] }
 0x183   :  { %v2887_v29 = vadd.f32 %v2886_v12, %v13128_v60  ;;  %v1619_v3 = vadd.f32 %v1618_v58, %v1570_v13 }
 0x184   :  { %v1572_v5 = vpop.f32.mrf.mxu1 }
 0x185   :  { %v1667_v51 = vpop.f32.mrf.mxu3  ;;  %v2708_v6 = vmul.f32 %v8477_v34, %v1619_v3  ;;  %v1573_v55 = vadd.f32 %v1572_v5, %v8280_v19  ;;  %v6753_v19 = vld [vmem:[%s13011_s1 + $0x10] sm:$0xff]  ;;  %v251_v3 = vunpack.c.2.s8 %v6754_v18 }
 0x186   :  { %v8600_v33 = vadd.f32 %v1716_v62, %v1667_v51  ;;  %v247_v47 = vunpack.c.2.s8 %v6753_v19  ;;  %v8631_v19 = vld [vmem:[%s13011_s1 + $0x170] sm:$0xff] }
 0x187   :  { %v8605_v11 = vadd.f32 %v8484_v21, %v2708_v6  ;;  %1816 = vmatmul.bf16.gmra.mxu2 %v13453_v10  ;;  %13455 = vst [vmem:[#allocation64_spill] sm:$0xff] %v8631_v19  ;;  %v423_v18 = vunpack.c.2.s8 %v8631_v19  ;;  %v643_v60 = vcvt.s32.f32 %v251_v3  ;;  %v8639_v10 = vld [vmem:[%s13011_s1 + $0x178] sm:$0xff] }
 0x188   :  { %1767 = vmatmul.bf16.gmra.mxu1 %v13452_v35  ;;  %v1719_v20 = vpop.f32.mrf.mxu0  ;;  %13456 = vst [vmem:[#allocation65_spill] sm:$0xff] %v8639_v10 }
 0x189   :  { %v13127_v58 = vmax.f32 %v8605_v11, 0.0 }
 0x18a   :  { %1865 = vmatmul.bf16.gmra.mxu3 %v13454_v15  ;;  %v1621_v13 = vpop.f32.mrf.mxu2  ;;  %1914 = vmatmul.bf16.gmra.mxu0 %v8247_v27  ;;  %v815_v15 = vcvt.s32.f32 %v423_v18 }
 0x18b   :  { %v2888_v62 = vadd.f32 %v2887_v29, %v13127_v58  ;;  %v1622_v12 = vadd.f32 %v1621_v13, %v1573_v55  ;;  %v6755_v29 = vld [vmem:[%s13011_s1 + $0x90] sm:$0xff]  ;;  %v6756_v55 = vld [vmem:[%s13011_s1 + $0x98] sm:$0xff]  ;;  %v639_v58 = vcvt.s32.f32 %v247_v47  ;;  %v8654_v47 = vld [vmem:[%s13011_s1 + $0x168] sm:$0xff] }
 0x18c   :  { %v1574_v5 = vpop.f32.mrf.mxu1  ;;  %v311_v6 = vunpack.c.2.s8 %v6755_v29  ;;  %v315_v13 = vunpack.c.2.s8 %v6756_v55  ;;  %v427_v55 = vunpack.c.2.s8 %v8639_v10  ;;  %13458 = vst [vmem:[#allocation67_spill] sm:$0xff] %v8654_v47  ;;  %v419_v3 = vunpack.c.2.s8 %v8654_v47  ;;  %v6761_v47 = vld [vmem:[%s13011_s1 + $0x150] sm:$0xff]  ;;  %v13463_v10 = vld [vmem:[#allocation49_spill] sm:$0xff] }
 0x18d   :  { %v1670_v30 = vpop.f32.mrf.mxu3  ;;  %v1027_v50 = vpack.c.bf16 %v643_v60, %v639_v58  ;;  %v407_v22 = vunpack.c.2.s8 %v6761_v47  ;;  %v13459_v47 = vld [vmem:[#allocation9_spill] sm:$0xff]  ;;  %v395_v19 = vunpack.c.2.s8 %v13463_v10 }
 0x18e   :  { %v8620_v51 = vadd.f32 %v1719_v20, %v1670_v30  ;;  %v2712_v20 = vmul.f32 %v8477_v34, %v1622_v12  ;;  %v1575_v30 = vadd.f32 %v1574_v5, %v8320_v4  ;;  %v703_v27 = vcvt.s32.f32 %v311_v6  ;;  %v8648_v4 = vld [vmem:[%s13011_s1 + $0x160] sm:$0xff] }
 0x18f   :  { %v707_v29 = vcvt.s32.f32 %v315_v13  ;;  %13457 = vst [vmem:[#allocation66_spill] sm:$0xff] %v8648_v4  ;;  %v415_v12 = vunpack.c.2.s8 %v8648_v4  ;;  %v819_v13 = vcvt.s32.f32 %v427_v55  ;;  %1990 = vmatpush.bf16.msra.mxu2 %v1027_v50  ;;  %v811_v58 = vcvt.s32.f32 %v419_v3  ;;  %v6762_v55 = vld [vmem:[%s13011_s1 + $0x158] sm:$0xff] }
 0x190   :  { %v8643_v45 = vadd.f32 %v8484_v21, %v2712_v20  ;;  %v1721_v5 = vpop.f32.mrf.mxu0 }
 0x191   :  { %v1059_v6 = vpack.c.bf16 %v707_v29, %v703_v27  ;;  %v807_v60 = vcvt.s32.f32 %v415_v12  ;;  %v1115_v43 = vpack.c.bf16 %v819_v13, %v815_v15  ;;  %v411_v15 = vunpack.c.2.s8 %v6762_v55 }
 0x192   :  { %v13145_v18 = vmax.f32 %v8643_v45, 0.0  ;;  %v1623_v20 = vpop.f32.mrf.mxu2 }
 0x193   :  { %2039 = vmatpush.bf16.msra.mxu3 %v1059_v6  ;;  %v1624_v59 = vadd.f32 %v1623_v20, %v1575_v30  ;;  %2082 = vmatpush.bf16.msra.mxu0 %v1115_v43  ;;  %v1111_v50 = vpack.c.bf16 %v811_v58, %v807_v60  ;;  %v799_v30 = vcvt.s32.f32 %v407_v22  ;;  %v803_v3 = vcvt.s32.f32 %v411_v15  ;;  %v6763_v43 = vld [vmem:[%s13011_s1 + $0x140] sm:$0xff] }
 0x194   :  { %v2889_v4 = vadd.f32 %v2888_v62, %v13145_v18  ;;  %v1577_v29 = vpop.f32.mrf.mxu1 }
 0x195   :  { %v1672_v17 = vpop.f32.mrf.mxu3  ;;  %v2716_v12 = vmul.f32 %v8477_v34, %v1624_v59  ;;  %v1578_v62 = vadd.f32 %v1577_v29, %v8351_v42  ;;  %v6764_v59 = vld [vmem:[%s13011_s1 + $0x148] sm:$0xff]  ;;  %v1107_v60 = vpack.c.bf16 %v803_v3, %v799_v30 }
 0x196   :  { %v8663_v27 = vadd.f32 %v1721_v5, %v1672_v17  ;;  %v13460_v17 = vld [vmem:[#allocation10_spill] sm:$0xff]  ;;  %v399_v5 = vunpack.c.2.s8 %v6763_v43  ;;  %v403_v13 = vunpack.c.2.s8 %v6764_v59  ;;  %v13461_v42 = vld [vmem:[#allocation11_spill] sm:$0xff] }
 0x197   :  { %v8671_v6 = vadd.f32 %v8484_v21, %v2716_v12  ;;  %1821 = vmatmul.bf16.gmra.mxu2 %v13460_v17  ;;  %2083 = vmatpush.bf16.msra.mxu0 %v1111_v50  ;;  %v6765_v59 = vld [vmem:[%s13011_s1] sm:$0xff]  ;;  %v6766_v50 = vld [vmem:[%s13011_s1 + $0x8] sm:$0xff] }
 0x198   :  { %1772 = vmatmul.bf16.gmra.mxu1 %v13459_v47  ;;  %v1724_v22 = vpop.f32.mrf.mxu0  ;;  %v791_v20 = vcvt.s32.f32 %v399_v5  ;;  %v795_v29 = vcvt.s32.f32 %v403_v13  ;;  %v239_v18 = vunpack.c.2.s8 %v6765_v59  ;;  %v243_v30 = vunpack.c.2.s8 %v6766_v50  ;;  %v6768_v13 = vld [vmem:[%s13011_s1 + $0x88] sm:$0xff] }
 0x199   :  { %v13146_v58 = vmax.f32 %v8671_v6, 0.0 }
 0x19a   :  { %1870 = vmatmul.bf16.gmra.mxu3 %v13461_v42  ;;  %v1626_v55 = vpop.f32.mrf.mxu2  ;;  %1919 = vmatmul.bf16.gmra.mxu0 %v8310_v39  ;;  %v1103_v59 = vpack.c.bf16 %v795_v29, %v791_v20  ;;  %v631_v50 = vcvt.s32.f32 %v239_v18  ;;  %v787_v29 = vcvt.s32.f32 %v395_v19 }
 0x19b   :  { %v2890_v15 = vadd.f32 %v2889_v4, %v13146_v58  ;;  %v1627_v12 = vadd.f32 %v1626_v55, %v1578_v62  ;;  %2084 = vmatpush.bf16.msra.mxu0 %v1107_v60  ;;  %v6767_v4 = vld [vmem:[%s13011_s1 + $0x80] sm:$0xff]  ;;  %v307_v55 = vunpack.c.2.s8 %v6768_v13  ;;  %v13462_v60 = vld [vmem:[#allocation48_spill] sm:$0xff]  ;;  %v13465_v13 = vld [vmem:[#allocation53_spill] sm:$0xff] }
 0x19c   :  { %v1579_v5 = vpop.f32.mrf.mxu1  ;;  %v303_v62 = vunpack.c.2.s8 %v6767_v4  ;;  %v391_v42 = vunpack.c.2.s8 %v13462_v60 }
 0x19d   :  { %v1675_v43 = vpop.f32.mrf.mxu3  ;;  %v2720_v58 = vmul.f32 %v8477_v34, %v1627_v12  ;;  %v1580_v39 = vadd.f32 %v1579_v5, %v8383_v36  ;;  %v699_v17 = vcvt.s32.f32 %v307_v55  ;;  %v387_v55 = vunpack.c.2.s8 %v13465_v13 }
 0x19e   :  { %v8692_v3 = vadd.f32 %v1724_v22, %v1675_v43  ;;  %v635_v22 = vcvt.s32.f32 %v243_v30  ;;  %v695_v43 = vcvt.s32.f32 %v303_v62  ;;  %v783_v20 = vcvt.s32.f32 %v391_v42  ;;  %v13464_v62 = vld [vmem:[#allocation52_spill] sm:$0xff] }
 0x19f   :  { %v8705_v4 = vadd.f32 %v8484_v21, %v2720_v58  ;;  %2085 = vmatpush.bf16.msra.mxu0 %v1103_v59  ;;  %v383_v58 = vunpack.c.2.s8 %v13464_v62 }
 0x1a0   :  { %v1023_v57 = vpack.c.bf16 %v635_v22, %v631_v50  ;;  %v1726_v32 = vpop.f32.mrf.mxu0  ;;  %v1055_v40 = vpack.c.bf16 %v699_v17, %v695_v43  ;;  %v1099_v18 = vpack.c.bf16 %v787_v29, %v783_v20  ;;  %v13468_v43 = vld [vmem:[#allocation56_spill] sm:$0xff]  ;;  %v13470_v29 = vld [vmem:[#allocation18_spill] sm:$0xff] }
 0x1a1   :  { %v13160_v12 = vmax.f32 %v8705_v4, 0.0  ;;  %v775_v42 = vcvt.s32.f32 %v383_v58  ;;  %v375_v60 = vunpack.c.2.s8 %v13468_v43 }
 0x1a2   :  { %1991 = vmatpush.bf16.msra.mxu2 %v1023_v57  ;;  %v1628_v36 = vpop.f32.mrf.mxu2  ;;  %2040 = vmatpush.bf16.msra.mxu3 %v1055_v40  ;;  %v779_v40 = vcvt.s32.f32 %v387_v55 }
 0x1a3   :  { %v2891_v30 = vadd.f32 %v2890_v15, %v13160_v12  ;;  %v1629_v5 = vadd.f32 %v1628_v36, %v1580_v39  ;;  %2086 = vmatpush.bf16.msra.mxu0 %v1099_v18  ;;  %v13466_v15 = vld [vmem:[#allocation16_spill] sm:$0xff]  ;;  %v13467_v39 = vld [vmem:[#allocation17_spill] sm:$0xff]  ;;  %v13475_v12 = vld [vmem:[#allocation19_spill] sm:$0xff] }
 0x1a4   :  { %v1095_v22 = vpack.c.bf16 %v779_v40, %v775_v42  ;;  %v371_v40 = vunpack.c.2.s8 %v8371_v44 }
 0x1a5   :  { %v1677_v10 = vpop.f32.mrf.mxu3  ;;  %v1582_v17 = vpop.f32.mrf.mxu1  ;;  %v2724_v19 = vmul.f32 %v8477_v34, %v1629_v5 }
 0x1a6   :  { %v8712_v50 = vadd.f32 %v1726_v32, %v1677_v10  ;;  %v1583_v57 = vadd.f32 %v1582_v17, %v8405_v2  ;;  %v13469_v32 = vld [vmem:[#allocation57_spill] sm:$0xff]  ;;  %v767_v2 = vcvt.s32.f32 %v375_v60  ;;  %v367_v17 = vunpack.c.2.s8 %v8365_v9 }
 0x1a7   :  { %v8717_v59 = vadd.f32 %v8484_v21, %v2724_v19  ;;  %1826 = vmatmul.bf16.gmra.mxu2 %v13467_v39  ;;  %v379_v20 = vunpack.c.2.s8 %v13469_v32  ;;  %2087 = vmatpush.bf16.msra.mxu0 %v1095_v22  ;;  %v763_v32 = vcvt.s32.f32 %v371_v40  ;;  %v13473_v40 = vld [vmem:[#allocation41_spill] sm:$0xff] }
 0x1a8   :  { %1777 = vmatmul.bf16.gmra.mxu1 %v13466_v15  ;;  %v1729_v36 = vpop.f32.mrf.mxu0  ;;  %v759_v60 = vcvt.s32.f32 %v367_v17  ;;  %v13471_v17 = vld [vmem:[#allocation21_spill] sm:$0xff] }
 0x1a9   :  { %v13159_v18 = vmax.f32 %v8717_v59, 0.0  ;;  %v771_v5 = vcvt.s32.f32 %v379_v20 }
 0x1aa   :  { %1875 = vmatmul.bf16.gmra.mxu3 %v13470_v29  ;;  %v1631_v10 = vpop.f32.mrf.mxu2  ;;  %1924 = vmatmul.bf16.gmra.mxu0 %v8377_v46  ;;  %v1087_v20 = vpack.c.bf16 %v763_v32, %v759_v60 }
 0x1ab   :  { %v2892_v62 = vadd.f32 %v2891_v30, %v13159_v18  ;;  %v1632_v58 = vadd.f32 %v1631_v10, %v1583_v57  ;;  %v1091_v55 = vpack.c.bf16 %v771_v5, %v767_v2  ;;  %v13474_v18 = vld [vmem:[#allocation43_spill] sm:$0xff] }
 0x1ad   :  { %v1680_v13 = vpop.f32.mrf.mxu3  ;;  %v1584_v42 = vpop.f32.mrf.mxu1  ;;  %v2728_v22 = vmul.f32 %v8477_v34, %v1632_v58  ;;  %2088 = vmatpush.bf16.msra.mxu0 %v1091_v55 }
 0x1ae   :  { %v8729_v19 = vadd.f32 %v1729_v36, %v1680_v13  ;;  %v1585_v43 = vadd.f32 %v1584_v42, %v8430_v14  ;;  %v13472_v42 = vld [vmem:[#allocation40_spill] sm:$0xff] }
 0x1af   :  { %v8735_v30 = vadd.f32 %v8484_v21, %v2728_v22 }
 0x1b0   :  { %v1731_v57 = vpop.f32.mrf.mxu0 }
 0x1b1   :  { %v13157_v2 = vmax.f32 %v8735_v30, 0.0  ;;  %2089 = vmatpush.bf16.msra.mxu0 %v1087_v20 }
 0x1b2   :  { %v1633_v9 = vpop.f32.mrf.mxu2 }
 0x1b3   :  { %v2893_v36 = vadd.f32 %v2892_v62, %v13157_v2  ;;  %v1634_v44 = vadd.f32 %v1633_v9, %v1585_v43 }
 0x1b5   :  { %v1682_v5 = vpop.f32.mrf.mxu3  ;;  %v1587_v14 = vpop.f32.mrf.mxu1  ;;  %v2732_v58 = vmul.f32 %v8477_v34, %v1634_v44 }
 0x1b6   :  { %v8740_v10 = vadd.f32 %v1731_v57, %v1682_v5  ;;  %v1588_v13 = vadd.f32 %v1587_v14, %v8450_v49  ;;  %v6903_v5 = vmov 128.0  }
 0x1b7   :  { %v8745_v55 = vadd.f32 %v8484_v21, %v2732_v58  ;;  %1831 = vmatmul.bf16.gmra.mxu2 %v13472_v42  ;;  %6645 = vrcp.f32 %v6903_v5 }
 0x1b8   :  { %1782 = vmatmul.bf16.gmra.mxu1 %v13471_v17  ;;  %v1734_v22 = vpop.f32.mrf.mxu0 }
 0x1b9   :  { %v13158_v62 = vmax.f32 %v8745_v55, 0.0 }
 0x1ba   :  { %1880 = vmatmul.bf16.gmra.mxu3 %v13473_v40  ;;  %v1636_v43 = vpop.f32.mrf.mxu2  ;;  %1929 = vmatmul.bf16.gmra.mxu0 %v8426_v7  ;;  %v13476_v7 = vld [vmem:[#allocation26_spill] sm:$0xff] }
 0x1bb   :  { %v2894_v60 = vadd.f32 %v2893_v36, %v13158_v62  ;;  %v1637_v32 = vadd.f32 %v1636_v43, %v1588_v13 }
 0x1bd   :  { %v1685_v57 = vpop.f32.mrf.mxu3  ;;  %v1589_v20 = vpop.f32.mrf.mxu1  ;;  %v2736_v9 = vmul.f32 %v8477_v34, %v1637_v32 }
 0x1be   :  { %v8754_v49 = vadd.f32 %v1734_v22, %v1685_v57  ;;  %v1590_v44 = vadd.f32 %v1589_v20, %v8454_v38  ;;  %v6646_v13 = vpop.eup %6645 }
 0x1bf   :  { %v8759_v14 = vadd.f32 %v8484_v21, %v2736_v9  ;;  %v2967_v5 = vmul.f32 128.0, %v6646_v13  ;;  %vm2971_vm1 = vweird.f32 %v6646_v13 }
 0x1c0   :  { %v1736_v58 = vpop.f32.mrf.mxu0 }
 0x1c1   :  { %v13163_v2 = vmax.f32 %v8759_v14, 0.0 }
 0x1c2   :  { %v1638_v36 = vpop.f32.mrf.mxu2 }
 0x1c3   :  { %v2895_v43 = vadd.f32 %v2894_v60, %v13163_v2  ;;  %v1639_v22 = vadd.f32 %v1638_v36, %v1590_v44  ;;  %v2968_v36 = vsub.f32 1.0, %v2967_v5 }
 0x1c5   :  { %v1687_v57 = vpop.f32.mrf.mxu3  ;;  %v1748_v32 = vpop.f32.mrf.mxu1  ;;  %v2740_v38 = vmul.f32 %v8477_v34, %v1639_v22 }
 0x1c6   :  { %v8764_v62 = vadd.f32 %v1736_v58, %v1687_v57  ;;  %v1749_v20 = vadd.f32 %v1748_v32, %v8472_v37  ;;  %v2969_v32 = vmul.f32 %v6646_v13, %v2968_v36  ;;  %v13479_v36 = vld [vmem:[#allocation25_spill] sm:$0xff] }
 0x1c7   :  { %v2814_v9 = vadd.f32 %v8484_v21, %v2740_v38  ;;  %1992 = vmatmul.bf16.vlgmr.msra.gmra.mxu2 %v13475_v12 }
 0x1c8   :  { %6591 = vmatmul.msk.bf16.vlgmr.msra.gmra.mxu1 %vm1273_vm0, %v13474_v18  ;;  %v1895_v60 = vpop.f32.mrf.mxu0  ;;  %v2970_v46 = vadd.f32 %v6646_v13, %v2969_v32 }
 0x1c9   :  { %v2878_v44 = vmax.f32 %v2814_v9, 0.0 }
 0x1ca   :  { %2041 = vmatmul.bf16.vlgmr.msra.gmra.mxu3 %v13476_v7  ;;  %v1797_v58 = vpop.f32.mrf.mxu2  ;;  %2090 = vmatmul.bf16.vlgmr.msra.gmra.mxu0 %v7613_v28 }
 0x1cb   :  { %v2896_v57 = vadd.f32 %v2895_v43, %v2878_v44  ;;  %v1798_v2 = vadd.f32 %v1797_v58, %v1749_v20 }
 0x1cd   :  { %v1846_v42 = vpop.f32.mrf.mxu3  ;;  %v1750_v37 = vpop.f32.mrf.mxu1  ;;  %v2897_v34 = vrot.slane %v2896_v57, 4 }
 0x1ce   :  { %v1847_v22 = vadd.f32 %v1846_v42, %v1798_v2  ;;  %v1751_v21 = vadd.f32 %v1750_v37, %v8486_v48  ;;  %v8778_v2 = vsel %vm2971_vm1, %v6646_v13, %v2970_v46  ;;  %v13483_v46 = vmax.f32 %v8494_v0, 0.0 }
 0x1cf   :  { %v2898_v38 = vadd.f32 %v2897_v34, %v2896_v57  ;;  %13477 = vst [vmem:[#allocation48_spill] sm:$0xff] %v8778_v2  ;;  %v13480_v57 = vld [vmem:[#allocation30_spill] sm:$0xff] }
 0x1d0   :  { %v8775_v40 = vadd.f32 %v1895_v60, %v1847_v22  ;;  %v1897_v12 = vpop.f32.mrf.mxu0  ;;  %v13478_v60 = vld [vmem:[#allocation45_spill] sm:$0xff]  ;;  %v13481_v22 = vmax.f32 %v8489_v25, 0.0 }
 0x1d1   :  { %v2899_v7 = vrot.slane %v2898_v38, 2 }
 0x1d2   :  { %v1799_v9 = vpop.f32.mrf.mxu2 }
 0x1d3   :  { %v2900_v5 = vadd.f32 %v2899_v7, %v2898_v38  ;;  %v1800_v43 = vadd.f32 %v1799_v9, %v1751_v21  ;;  %v13489_v38 = vmax.f32 %v8559_v1, 0.0  ;;  %v13491_v9 = vmax.f32 %v8569_v63, 0.0 }
 0x1d4   :  { %v13499_v1 = vmax.f32 %v8671_v6, 0.0  ;;  %v13501_v63 = vmax.f32 %v8705_v4, 0.0  ;;  %v13509_v6 = vmax.f32 %v8759_v14, 0.0  ;;  %v13513_v14 = vld [vmem:[#allocation12_spill] sm:$0xff] }
 0x1d5   :  { %v1848_v20 = vpop.f32.mrf.mxu3  ;;  %v1753_v58 = vpop.f32.mrf.mxu1  ;;  %v2901_v39 = vrot.slane %v2900_v5, 1 }
 0x1d6   :  { %v1849_v28 = vadd.f32 %v1848_v20, %v1800_v43  ;;  %v1754_v29 = vadd.f32 %v1753_v58, %v8512_v16  ;;  %v13495_v43 = vmax.f32 %v8605_v11, 0.0  ;;  %v13497_v58 = vmax.f32 %v8643_v45, 0.0 }
 0x1d7   :  { %v2902_v48 = vadd.f32 %v2901_v39, %v2900_v5  ;;  %1997 = vmatmul.bf16.gmra.mxu2 %v13479_v36  ;;  %v13487_v39 = vmax.f32 %v8533_v61, 0.0  ;;  %v13493_v5 = vmax.f32 %v8595_v53, 0.0  ;;  %v13503_v53 = vmax.f32 %v8717_v59, 0.0 }
 0x1d8   :  { %v8780_v42 = vadd.f32 %v1897_v12, %v1849_v28  ;;  %6592 = vmatmul.msk.bf16.gmra.mxu1 %vm1273_vm0, %v13478_v60  ;;  %v1900_v7 = vpop.f32.mrf.mxu0  ;;  %v13485_v28 = vmax.f32 %v8523_v31, 0.0  ;;  %v13505_v11 = vmax.f32 %v8735_v30, 0.0  ;;  %v13507_v45 = vmax.f32 %v8745_v55, 0.0 }
 0x1d9   :  { %v2973_v37 = vmul.f32 %v8778_v2, %v2902_v48 }
 0x1da   :  { %2046 = vmatmul.bf16.gmra.mxu3 %v13480_v57  ;;  %v1802_v34 = vpop.f32.mrf.mxu2  ;;  %2095 = vmatmul.bf16.gmra.mxu0 %v7657_v23 }
 0x1db   :  { %v8789_v21 = vsub.f32 %v13481_v22, %v2973_v37  ;;  %v8793_v16 = vsub.f32 %v13483_v46, %v2973_v37  ;;  %v8797_v12 = vsub.f32 %v13485_v28, %v2973_v37  ;;  %v8801_v13 = vsub.f32 %v13487_v39, %v2973_v37 }
 0x1dc   :  { %v8806_v25 = vsub.f32 %v13489_v38, %v2973_v37  ;;  %v8810_v0 = vsub.f32 %v13491_v9, %v2973_v37  ;;  %v8814_v31 = vsub.f32 %v13493_v5, %v2973_v37  ;;  %v8818_v61 = vsub.f32 %v13495_v43, %v2973_v37 }
 0x1dd   :  { %13482 = vst [vmem:[#allocation49_spill] sm:$0xff] %v8789_v21  ;;  %v1851_v32 = vpop.f32.mrf.mxu3  ;;  %v1755_v20 = vpop.f32.mrf.mxu1  ;;  %v8822_v48 = vsub.f32 %v13497_v58, %v2973_v37  ;;  %v8826_v22 = vsub.f32 %v13499_v1, %v2973_v37  ;;  %v8830_v46 = vsub.f32 %v13501_v63, %v2973_v37  ;;  %v8834_v28 = vsub.f32 %v13503_v53, %v2973_v37  ;;  %v6783_v21 = vld [vmem:[%s13011_s1 + $0x2d0] sm:$0xff] }
 0x1de   :  { %13484 = vst [vmem:[#allocation52_spill] sm:$0xff] %v8793_v16  ;;  %v8838_v39 = vsub.f32 %v13505_v11, %v2973_v37  ;;  %v8842_v38 = vsub.f32 %v13507_v45, %v2973_v37  ;;  %v8846_v9 = vsub.f32 %v13509_v6, %v2973_v37  ;;  %v8848_v5 = vsub.f32 %v2878_v44, %v2973_v37  ;;  %v13514_v44 = vld [vmem:[#allocation2_spill] sm:$0xff] }
 0x1df   :  { %13486 = vst [vmem:[#allocation53_spill] sm:$0xff] %v8797_v12  ;;  %v1803_v58 = vadd.f32 %v1802_v34, %v1754_v29  ;;  %v1756_v59 = vadd.f32 %v1755_v20, %v8528_v8 }
 0x1e0   :  { %13488 = vst [vmem:[#allocation56_spill] sm:$0xff] %v8801_v13  ;;  %v1902_v4 = vpop.f32.mrf.mxu0  ;;  %v13519_v13 = vld [vmem:[#allocation13_spill] sm:$0xff] }
 0x1e1   :  { %13490 = vst [vmem:[#allocation57_spill] sm:$0xff] %v8806_v25  ;;  %v1852_v30 = vadd.f32 %v1851_v32, %v1803_v58 }
 0x1e2   :  { %13492 = vst [vmem:[#allocation68_spill] sm:$0xff] %v8810_v0  ;;  %v1804_v43 = vpop.f32.mrf.mxu2 }
 0x1e3   :  { %13494 = vst [vmem:[#allocation69_spill] sm:$0xff] %v8814_v31  ;;  %v1805_v53 = vadd.f32 %v1804_v43, %v1756_v59  ;;  %v8852_v55 = vadd.f32 %v1900_v7, %v1852_v30 }
 0x1e4   :  { %13496 = vst [vmem:[#allocation70_spill] sm:$0xff] %v8818_v61 }
 0x1e5   :  { %13498 = vst [vmem:[#allocation71_spill] sm:$0xff] %v8822_v48  ;;  %v1853_v1 = vpop.f32.mrf.mxu3  ;;  %v1758_v63 = vpop.f32.mrf.mxu1  ;;  %v6776_v48 = vld [vmem:[%s13011_s1 + $0x268] sm:$0xff] }
 0x1e6   :  { %13500 = vst [vmem:[#allocation72_spill] sm:$0xff] %v8826_v22  ;;  %v1759_v11 = vadd.f32 %v1758_v63, %v8548_v54  ;;  %v1854_v45 = vadd.f32 %v1853_v1, %v1805_v53  ;;  %v547_v61 = vunpack.c.2.s8 %v6776_v48 }
 0x1e7   :  { %13502 = vst [vmem:[#allocation73_spill] sm:$0xff] %v8830_v46  ;;  %2002 = vmatmul.bf16.gmra.mxu2 %v13513_v14 }
 0x1e8   :  { %13504 = vst [vmem:[#allocation74_spill] sm:$0xff] %v8834_v28  ;;  %v1905_v37 = vpop.f32.mrf.mxu0  ;;  %v8858_v29 = vadd.f32 %v1902_v4, %v1854_v45  ;;  %v13516_v45 = vld [vmem:[#allocation22_spill] sm:$0xff] }
 0x1e9   :  { %13506 = vst [vmem:[#allocation75_spill] sm:$0xff] %v8838_v39 }
 0x1ea   :  { %13508 = vst [vmem:[#allocation76_spill] sm:$0xff] %v8842_v38  ;;  %v13512_v38 = vld [vmem:[#allocation47_spill] sm:$0xff]  ;;  %2051 = vmatmul.bf16.gmra.mxu3 %v13514_v44  ;;  %v1807_v8 = vpop.f32.mrf.mxu2  ;;  %2100 = vmatmul.bf16.gmra.mxu0 %v13446_v41 }
 0x1eb   :  { %13510 = vst [vmem:[#allocation77_spill] sm:$0xff] %v8846_v9  ;;  %6593 = vmatmul.msk.bf16.gmra.mxu1 %vm1273_vm0, %v13512_v38  ;;  %v1808_v34 = vadd.f32 %v1807_v8, %v1759_v11  ;;  %v13515_v11 = vld [vmem:[#allocation51_spill] sm:$0xff]  ;;  %v13517_v8 = vld [vmem:[#allocation4_spill] sm:$0xff] }
 0x1ec   :  { %13511 = vst [vmem:[#allocation78_spill] sm:$0xff] %v8848_v5  ;;  %v6812_v44 = vld [vmem:[%s13011_s1 + $0x208] sm:$0xff] }
 0x1ed   :  { %v1856_v20 = vpop.f32.mrf.mxu3  ;;  %v1760_v32 = vpop.f32.mrf.mxu1 }
 0x1ee   :  { %v1857_v54 = vadd.f32 %v1856_v20, %v1808_v34  ;;  %v1761_v7 = vadd.f32 %v1760_v32, %v8564_v26 }
 0x1f0   :  { %v8862_v6 = vadd.f32 %v1905_v37, %v1857_v54  ;;  %v1907_v43 = vpop.f32.mrf.mxu0 }
 0x1f2   :  { %v1809_v58 = vpop.f32.mrf.mxu2 }
 0x1f3   :  { %v1810_v59 = vadd.f32 %v1809_v58, %v1761_v7  ;;  %v6769_v58 = vld [vmem:[%s13011_s1 + $0x270] sm:$0xff] }
 0x1f5   :  { %v1858_v1 = vpop.f32.mrf.mxu3  ;;  %v1763_v63 = vpop.f32.mrf.mxu1 }
 0x1f6   :  { %v1859_v30 = vadd.f32 %v1858_v1, %v1810_v59  ;;  %v1764_v4 = vadd.f32 %v1763_v63, %v8584_v56  ;;  %v551_v59 = vunpack.c.2.s8 %v6769_v58  ;;  %v6770_v1 = vld [vmem:[%s13011_s1 + $0x278] sm:$0xff]  ;;  %v6775_v58 = vld [vmem:[%s13011_s1 + $0x260] sm:$0xff] }
 0x1f7   :  { %2007 = vmatmul.bf16.gmra.mxu2 %v13516_v45  ;;  %v555_v63 = vunpack.c.2.s8 %v6770_v1  ;;  %v543_v1 = vunpack.c.2.s8 %v6775_v58  ;;  %v6777_v58 = vld [vmem:[%s13011_s1 + $0x2e0] sm:$0xff] }
 0x1f8   :  { %v8865_v53 = vadd.f32 %v1907_v43, %v1859_v30  ;;  %v1910_v26 = vpop.f32.mrf.mxu0  ;;  %v6771_v30 = vld [vmem:[%s13011_s1 + $0x2f0] sm:$0xff]  ;;  %v6789_v45 = vld [vmem:[%s13011_s1 + $0x2c0] sm:$0xff] }
 0x1f9   :  { %v947_v5 = vcvt.s32.f32 %v555_v63  ;;  %v935_v25 = vcvt.s32.f32 %v543_v1 }
 0x1fa   :  { %2056 = vmatmul.bf16.gmra.mxu3 %v13517_v8  ;;  %v1812_v37 = vpop.f32.mrf.mxu2  ;;  %2105 = vmatmul.bf16.gmra.mxu0 %v13449_v24 }
 0x1fb   :  { %6594 = vmatmul.msk.bf16.gmra.mxu1 %vm1273_vm0, %v13515_v11  ;;  %v1813_v34 = vadd.f32 %v1812_v37, %v1764_v4  ;;  %v6772_v4 = vld [vmem:[%s13011_s1 + $0x2f8] sm:$0xff] }
 0x1fd   :  { %v1861_v20 = vpop.f32.mrf.mxu3  ;;  %v1765_v32 = vpop.f32.mrf.mxu1 }
 0x1fe   :  { %v1862_v54 = vadd.f32 %v1861_v20, %v1813_v34  ;;  %v8873_v7 = vadd.f32 %v1765_v32, %v8600_v33  ;;  %v615_v33 = vunpack.c.2.s8 %v6771_v30  ;;  %v8896_v34 = vld [vmem:[%s13011_s1 + $0x1f0] sm:$0xff]  ;;  %v8902_v32 = vld [vmem:[%s13011_s1 + $0x1f8] sm:$0xff] }
 0x1ff   :  { %v487_v20 = vunpack.c.2.s8 %v8896_v34 }
 0x200   :  { %v8875_v56 = vadd.f32 %v1910_v26, %v1862_v54  ;;  %v8877_v43 = vpop.f32.mrf.mxu0  ;;  %v619_v26 = vunpack.c.2.s8 %v6772_v4  ;;  %v491_v54 = vunpack.c.2.s8 %v8902_v32  ;;  %v943_v4 = vcvt.s32.f32 %v551_v59 }
 0x201   :  { %v1007_v9 = vcvt.s32.f32 %v615_v33  ;;  %v879_v46 = vcvt.s32.f32 %v487_v20  ;;  %v607_v59 = vunpack.c.2.s8 %v6777_v58  ;;  %v939_v33 = vcvt.s32.f32 %v547_v61 }
 0x202   :  { %v8891_v37 = vpop.f32.mrf.mxu2  ;;  %v1011_v39 = vcvt.s32.f32 %v619_v26  ;;  %v883_v22 = vcvt.s32.f32 %v491_v54  ;;  %v1179_v31 = vpack.c.bf16 %v947_v5, %v943_v4  ;;  %v6778_v26 = vld [vmem:[%s13011_s1 + $0x2e8] sm:$0xff]  ;;  %v6782_v4 = vld [vmem:[%s13011_s1 + $0x258] sm:$0xff] }
 0x203   :  { %v611_v20 = vunpack.c.2.s8 %v6778_v26  ;;  %v13518_v54 = vld [vmem:[#allocation55_spill] sm:$0xff]  ;;  %v999_v48 = vcvt.s32.f32 %v607_v59  ;;  %v1175_v5 = vpack.c.bf16 %v939_v33, %v935_v25  ;;  %v539_v58 = vunpack.c.2.s8 %v6782_v4  ;;  %v13520_v59 = vld [vmem:[#allocation6_spill] sm:$0xff]  ;;  %v6784_v25 = vld [vmem:[%s13011_s1 + $0x2d8] sm:$0xff] }
 0x204   :  { %v1211_v0 = vpack.c.bf16 %v1011_v39, %v1007_v9  ;;  %v1147_v63 = vpack.c.bf16 %v883_v22, %v879_v46  ;;  %2180 = vmatpush.bf16.msrb.mxu2 %v1179_v31  ;;  %v8927_v39 = vld [vmem:[%s13011_s1 + $0x1e0] sm:$0xff]  ;;  %v8933_v22 = vld [vmem:[%s13011_s1 + $0x1e8] sm:$0xff]  ;;  %v6781_v31 = vld [vmem:[%s13011_s1 + $0x250] sm:$0xff]  ;;  %v603_v33 = vunpack.c.2.s8 %v6784_v25 }
 0x205   :  { %v8908_v30 = vpop.f32.mrf.mxu3  ;;  %v8910_v28 = vpop.f32.mrf.mxu1  ;;  %v479_v61 = vunpack.c.2.s8 %v8927_v39  ;;  %v483_v46 = vunpack.c.2.s8 %v8933_v22  ;;  %v1003_v1 = vcvt.s32.f32 %v611_v20 }
 0x206   :  { %2229 = vmatpush.bf16.msrb.mxu3 %v1211_v0  ;;  %v535_v0 = vunpack.c.2.s8 %v6781_v31  ;;  %2131 = vmatpush.bf16.msrb.mxu1 %v1147_v63  ;;  %v599_v31 = vunpack.c.2.s8 %v6783_v21  ;;  %v931_v63 = vcvt.s32.f32 %v539_v58  ;;  %v6787_v58 = vld [vmem:[%s13011_s1 + $0x240] sm:$0xff] }
 0x207   :  { %2012 = vmatmul.bf16.gmra.mxu2 %v13519_v13  ;;  %v871_v26 = vcvt.s32.f32 %v479_v61  ;;  %v875_v12 = vcvt.s32.f32 %v483_v46  ;;  %v1207_v24 = vpack.c.bf16 %v1003_v1, %v999_v48  ;;  %v8963_v48 = vld [vmem:[%s13011_s1 + $0x1d8] sm:$0xff] }
 0x208   :  { %v8939_v9 = vpop.f32.mrf.mxu0  ;;  %v927_v16 = vcvt.s32.f32 %v535_v0  ;;  %2181 = vmatpush.bf16.msrb.mxu2 %v1175_v5  ;;  %v991_v46 = vcvt.s32.f32 %v599_v31  ;;  %v8957_v0 = vld [vmem:[%s13011_s1 + $0x1d0] sm:$0xff]  ;;  %v475_v1 = vunpack.c.2.s8 %v8963_v48 }
 0x209   :  { %v1143_v61 = vpack.c.bf16 %v875_v12, %v871_v26  ;;  %v471_v21 = vunpack.c.2.s8 %v8957_v0  ;;  %v995_v12 = vcvt.s32.f32 %v603_v33  ;;  %v527_v26 = vunpack.c.2.s8 %v6787_v58  ;;  %v6790_v33 = vld [vmem:[%s13011_s1 + $0x2c8] sm:$0xff] }
 0x20a   :  { %2061 = vmatmul.bf16.gmra.mxu3 %v13520_v59  ;;  %v1817_v13 = vpop.f32.mrf.mxu2  ;;  %2110 = vmatmul.bf16.gmra.mxu0 %v13452_v35  ;;  %v1171_v5 = vpack.c.bf16 %v931_v63, %v927_v16  ;;  %v867_v25 = vcvt.s32.f32 %v475_v1  ;;  %v6788_v35 = vld [vmem:[%s13011_s1 + $0x248] sm:$0xff]  ;;  %v595_v58 = vunpack.c.2.s8 %v6790_v33  ;;  %v6793_v33 = vld [vmem:[%s13011_s1 + $0x230] sm:$0xff] }
 0x20b   :  { %6595 = vmatmul.msk.bf16.gmra.mxu1 %vm1273_vm0, %v13518_v54  ;;  %2230 = vmatpush.bf16.msrb.mxu3 %v1207_v24  ;;  %v863_v31 = vcvt.s32.f32 %v471_v21  ;;  %v531_v59 = vunpack.c.2.s8 %v6788_v35  ;;  %v591_v24 = vunpack.c.2.s8 %v6789_v45  ;;  %v1203_v16 = vpack.c.bf16 %v995_v12, %v991_v46  ;;  %v8983_v35 = vld [vmem:[%s13011_s1 + $0x1c0] sm:$0xff]  ;;  %v8991_v46 = vld [vmem:[%s13011_s1 + $0x1c8] sm:$0xff] }
 0x20c   :  { %2132 = vmatpush.bf16.msrb.mxu1 %v1143_v61  ;;  %v919_v63 = vcvt.s32.f32 %v527_v26  ;;  %2182 = vmatpush.bf16.msrb.mxu2 %v1171_v5  ;;  %v463_v8 = vunpack.c.2.s8 %v8983_v35  ;;  %v987_v45 = vcvt.s32.f32 %v595_v58  ;;  %v467_v5 = vunpack.c.2.s8 %v8991_v46 }
 0x20d   :  { %v8951_v20 = vpop.f32.mrf.mxu3  ;;  %v8966_v4 = vpop.f32.mrf.mxu1  ;;  %v1139_v61 = vpack.c.bf16 %v867_v25, %v863_v31  ;;  %v923_v21 = vcvt.s32.f32 %v531_v59  ;;  %v983_v1 = vcvt.s32.f32 %v591_v24  ;;  %v1815_v26 = vadd.f32 %v8891_v37, %v8873_v7  ;;  %v6796_v37 = vld [vmem:[%s13011_s1 + $0x2b8] sm:$0xff] }
 0x20e   :  { %v855_v12 = vcvt.s32.f32 %v463_v8  ;;  %v1769_v31 = vadd.f32 %v8910_v28, %v8620_v51  ;;  %v519_v58 = vunpack.c.2.s8 %v6793_v33  ;;  %v6795_v51 = vld [vmem:[%s13011_s1 + $0x2b0] sm:$0xff] }
 0x20f   :  { %2231 = vmatpush.bf16.msrb.mxu3 %v1203_v16  ;;  %v1167_v59 = vpack.c.bf16 %v923_v21, %v919_v63  ;;  %v1199_v24 = vpack.c.bf16 %v987_v45, %v983_v1  ;;  %v859_v16 = vcvt.s32.f32 %v467_v5  ;;  %v1864_v7 = vadd.f32 %v8908_v30, %v1815_v26  ;;  %v9014_v30 = vld [vmem:[%s13011_s1 + $0x1b0] sm:$0xff] }
 0x210   :  { %v8986_v41 = vpop.f32.mrf.mxu0  ;;  %2133 = vmatpush.bf16.msrb.mxu1 %v1139_v61  ;;  %v6794_v61 = vld [vmem:[%s13011_s1 + $0x238] sm:$0xff]  ;;  %v583_v28 = vunpack.c.2.s8 %v6795_v51  ;;  %v587_v21 = vunpack.c.2.s8 %v6796_v37  ;;  %v1818_v1 = vadd.f32 %v1817_v13, %v1769_v31  ;;  %v911_v33 = vcvt.s32.f32 %v519_v58  ;;  %v13521_v58 = vld [vmem:[#allocation23_spill] sm:$0xff] }
 0x211   :  { %v523_v63 = vunpack.c.2.s8 %v6794_v61  ;;  %2183 = vmatpush.bf16.msrb.mxu2 %v1167_v59  ;;  %v1135_v5 = vpack.c.bf16 %v859_v16, %v855_v12  ;;  %v455_v59 = vunpack.c.2.s8 %v9014_v30  ;;  %v9018_v26 = vadd.f32 %v8877_v43, %v1864_v7  ;;  %v9024_v12 = vld [vmem:[%s13011_s1 + $0x1b8] sm:$0xff] }
 0x212   :  { %v1819_v25 = vpop.f32.mrf.mxu2  ;;  %v975_v51 = vcvt.s32.f32 %v583_v28  ;;  %v979_v14 = vcvt.s32.f32 %v587_v21  ;;  %v1867_v37 = vadd.f32 %v8951_v20, %v1818_v1  ;;  %v459_v31 = vunpack.c.2.s8 %v9024_v12  ;;  %v13522_v20 = vld [vmem:[#allocation59_spill] sm:$0xff] }
 0x213   :  { %2232 = vmatpush.bf16.msrb.mxu3 %v1199_v24  ;;  %v915_v61 = vcvt.s32.f32 %v523_v63  ;;  %v847_v24 = vcvt.s32.f32 %v455_v59  ;;  %v1771_v16 = vadd.f32 %v8966_v4, %v8663_v27  ;;  %v6799_v27 = vld [vmem:[%s13011_s1 + $0x220] sm:$0xff] }
 0x214   :  { %2134 = vmatpush.bf16.msrb.mxu1 %v1135_v5  ;;  %v1195_v43 = vpack.c.bf16 %v979_v14, %v975_v51  ;;  %v9031_v63 = vadd.f32 %v8939_v9, %v1867_v37  ;;  %v851_v28 = vcvt.s32.f32 %v459_v31  ;;  %v511_v4 = vunpack.c.2.s8 %v6799_v27  ;;  %v6800_v14 = vld [vmem:[%s13011_s1 + $0x228] sm:$0xff]  ;;  %v6801_v5 = vld [vmem:[%s13011_s1 + $0x2a0] sm:$0xff] }
 0x215   :  { %v1868_v8 = vpop.f32.mrf.mxu3  ;;  %v1773_v45 = vpop.f32.mrf.mxu1  ;;  %v1163_v13 = vpack.c.bf16 %v915_v61, %v911_v33  ;;  %v1820_v21 = vadd.f32 %v1819_v25, %v1771_v16  ;;  %v515_v9 = vunpack.c.2.s8 %v6800_v14  ;;  %v575_v25 = vunpack.c.2.s8 %v6801_v5 }
 0x216   :  { %v1774_v1 = vadd.f32 %v1773_v45, %v8692_v3  ;;  %v6802_v3 = vld [vmem:[%s13011_s1 + $0x2a8] sm:$0xff]  ;;  %v1131_v61 = vpack.c.bf16 %v851_v28, %v847_v24  ;;  %v903_v51 = vcvt.s32.f32 %v511_v4 }
 0x217   :  { %2017 = vmatmul.bf16.gmra.mxu2 %v13521_v58  ;;  %2233 = vmatpush.bf16.msrb.mxu3 %v1195_v43  ;;  %v579_v45 = vunpack.c.2.s8 %v6802_v3  ;;  %v1869_v59 = vadd.f32 %v1868_v8, %v1820_v21  ;;  %v907_v31 = vcvt.s32.f32 %v515_v9  ;;  %v967_v16 = vcvt.s32.f32 %v575_v25  ;;  %v9056_v3 = vld [vmem:[%s13011_s1 + $0x1a0] sm:$0xff]  ;;  %v9062_v24 = vld [vmem:[%s13011_s1 + $0x1a8] sm:$0xff] }
 0x218   :  { %v1920_v7 = vpop.f32.mrf.mxu0  ;;  %2184 = vmatpush.bf16.msrb.mxu2 %v1163_v13  ;;  %2135 = vmatpush.bf16.msrb.mxu1 %v1131_v61  ;;  %v447_v8 = vunpack.c.2.s8 %v9056_v3  ;;  %v451_v28 = vunpack.c.2.s8 %v9062_v24 }
 0x219   :  { %v971_v43 = vcvt.s32.f32 %v579_v45  ;;  %v9051_v14 = vadd.f32 %v8986_v41, %v1869_v59  ;;  %v1159_v21 = vpack.c.bf16 %v907_v31, %v903_v51  ;;  %v6805_v45 = vld [vmem:[%s13011_s1 + $0x210] sm:$0xff]  ;;  %v6806_v59 = vld [vmem:[%s13011_s1 + $0x218] sm:$0xff] }
 0x21a   :  { %2066 = vmatmul.bf16.gmra.mxu3 %v7859_v52  ;;  %v1822_v33 = vpop.f32.mrf.mxu2  ;;  %2115 = vmatmul.bf16.gmra.mxu0 %v13459_v47  ;;  %v839_v4 = vcvt.s32.f32 %v447_v8  ;;  %v843_v9 = vcvt.s32.f32 %v451_v28  ;;  %v507_v51 = vunpack.c.2.s8 %v6806_v59 }
 0x21b   :  { %6596 = vmatmul.msk.bf16.gmra.mxu1 %vm1273_vm0, %v13522_v20  ;;  %v1823_v37 = vadd.f32 %v1822_v33, %v1774_v1  ;;  %v1191_v1 = vpack.c.bf16 %v971_v43, %v967_v16  ;;  %v503_v33 = vunpack.c.2.s8 %v6805_v45  ;;  %v9083_v43 = vld [vmem:[%s13011_s1 + $0x190] sm:$0xff] }
 0x21c   :  { %2185 = vmatpush.bf16.msrb.mxu2 %v1159_v21  ;;  %v1127_v31 = vpack.c.bf16 %v843_v9, %v839_v4  ;;  %v899_v21 = vcvt.s32.f32 %v507_v51  ;;  %v499_v51 = vunpack.c.2.s8 %v6812_v44  ;;  %v9108_v44 = vld [vmem:[%s13011_s1 + $0x180] sm:$0xff] }
 0x21d   :  { %v1871_v13 = vpop.f32.mrf.mxu3  ;;  %v1775_v27 = vpop.f32.mrf.mxu1  ;;  %2234 = vmatpush.bf16.msrb.mxu3 %v1191_v1  ;;  %v895_v16 = vcvt.s32.f32 %v503_v33 }
 0x21e   :  { %v1872_v5 = vadd.f32 %v1871_v13, %v1823_v37  ;;  %v1776_v41 = vadd.f32 %v1775_v27, %v8712_v50  ;;  %v6807_v50 = vld [vmem:[%s13011_s1 + $0x290] sm:$0xff]  ;;  %v439_v27 = vunpack.c.2.s8 %v9083_v43  ;;  %2136 = vmatpush.bf16.msrb.mxu1 %v1127_v31 }
 0x21f   :  { %v567_v37 = vunpack.c.2.s8 %v6807_v50  ;;  %v6811_v50 = vld [vmem:[%s13011_s1 + $0x200] sm:$0xff]  ;;  %v1155_v52 = vpack.c.bf16 %v899_v21, %v895_v16  ;;  %v6814_v16 = vld [vmem:[%s13011_s1 + $0x288] sm:$0xff] }
 0x220   :  { %v9066_v25 = vadd.f32 %v1920_v7, %v1872_v5  ;;  %v1922_v61 = vpop.f32.mrf.mxu0  ;;  %v6808_v7 = vld [vmem:[%s13011_s1 + $0x298] sm:$0xff]  ;;  %v831_v33 = vcvt.s32.f32 %v439_v27  ;;  %v563_v21 = vunpack.c.2.s8 %v6814_v16  ;;  %v6817_v16 = vld [vmem:[%s13011_s1 + $0xf0] sm:$0xff] }
 0x221   :  { %v571_v13 = vunpack.c.2.s8 %v6808_v7  ;;  %v9089_v5 = vld [vmem:[%s13011_s1 + $0x198] sm:$0xff]  ;;  %v959_v1 = vcvt.s32.f32 %v567_v37  ;;  %v495_v7 = vunpack.c.2.s8 %v6811_v50  ;;  %2186 = vmatpush.bf16.msrb.mxu2 %v1155_v52  ;;  %v9117_v52 = vld [vmem:[%s13011_s1 + $0x188] sm:$0xff] }
 0x222   :  { %v443_v8 = vunpack.c.2.s8 %v9089_v5  ;;  %v1824_v28 = vpop.f32.mrf.mxu2 }
 0x223   :  { %v963_v45 = vcvt.s32.f32 %v571_v13  ;;  %v1825_v4 = vadd.f32 %v1824_v28, %v1776_v41  ;;  %v6813_v41 = vld [vmem:[%s13011_s1 + $0x280] sm:$0xff]  ;;  %v891_v28 = vcvt.s32.f32 %v499_v51 }
 0x224   :  { %v835_v59 = vcvt.s32.f32 %v443_v8  ;;  %v559_v37 = vunpack.c.2.s8 %v6813_v41  ;;  %v887_v8 = vcvt.s32.f32 %v495_v7  ;;  %v13525_v7 = vld [vmem:[#allocation15_spill] sm:$0xff] }
 0x225   :  { %v1873_v9 = vpop.f32.mrf.mxu3  ;;  %v1778_v47 = vpop.f32.mrf.mxu1  ;;  %v1187_v58 = vpack.c.bf16 %v963_v45, %v959_v1  ;;  %v431_v45 = vunpack.c.2.s8 %v9108_v44 }
 0x226   :  { %v1874_v13 = vadd.f32 %v1873_v9, %v1825_v4  ;;  %v1779_v31 = vadd.f32 %v1778_v47, %v8729_v19  ;;  %v1123_v27 = vpack.c.bf16 %v835_v59, %v831_v33  ;;  %v951_v1 = vcvt.s32.f32 %v559_v37  ;;  %v13523_v47 = vld [vmem:[#allocation14_spill] sm:$0xff] }
 0x227   :  { %2235 = vmatpush.bf16.msrb.mxu3 %v1187_v58  ;;  %2022 = vmatmul.bf16.gmra.mxu2 %v13523_v47  ;;  %v435_v19 = vunpack.c.2.s8 %v9117_v52  ;;  %v13524_v58 = vld [vmem:[#allocation61_spill] sm:$0xff]  ;;  %v1151_v33 = vpack.c.bf16 %v891_v28, %v887_v8  ;;  %v955_v59 = vcvt.s32.f32 %v563_v21  ;;  %v823_v50 = vcvt.s32.f32 %v431_v45  ;;  %v6820_v45 = vld [vmem:[%s13011_s1 + $0x308] sm:$0xff] }
 0x228   :  { %v9111_v4 = vadd.f32 %v1922_v61, %v1874_v13  ;;  %2137 = vmatpush.bf16.msrb.mxu1 %v1123_v27  ;;  %v1925_v9 = vpop.f32.mrf.mxu0  ;;  %v360_v47 = vunpack.c.3.s8 %v6817_v16  ;;  %v6818_v8 = vld [vmem:[%s13011_s1 + $0xf8] sm:$0xff] }
 0x229   :  { %v827_v61 = vcvt.s32.f32 %v435_v19  ;;  %2187 = vmatpush.bf16.msrb.mxu2 %v1151_v33  ;;  %v1183_v41 = vpack.c.bf16 %v955_v59, %v951_v1  ;;  %v364_v28 = vunpack.c.3.s8 %v6818_v8  ;;  %v627_v19 = vunpack.c.2.s8 %v6820_v45  ;;  %v13526_v33 = vld [vmem:[#allocation64_spill] sm:$0xff] }
 0x22a   :  { %2071 = vmatmul.bf16.gmra.mxu3 %v13525_v7  ;;  %v1827_v51 = vpop.f32.mrf.mxu2  ;;  %2120 = vmatmul.bf16.gmra.mxu0 %v13466_v15  ;;  %v424_v59 = vunpack.c.3.s8 %v13526_v33  ;;  %v752_v8 = vcvt.s32.f32 %v360_v47  ;;  %v6821_v45 = vld [vmem:[%s13011_s1 + $0x70] sm:$0xff] }
 0x22b   :  { %6597 = vmatmul.msk.bf16.gmra.mxu1 %vm1273_vm0, %v13524_v58  ;;  %v1828_v37 = vadd.f32 %v1827_v51, %v1779_v31  ;;  %v1119_v27 = vpack.c.bf16 %v827_v61, %v823_v50  ;;  %2236 = vmatpush.bf16.msrb.mxu3 %v1183_v41  ;;  %v6819_v31 = vld [vmem:[%s13011_s1 + $0x300] sm:$0xff]  ;;  %v13527_v50 = vld [vmem:[#allocation65_spill] sm:$0xff]  ;;  %v756_v41 = vcvt.s32.f32 %v364_v28  ;;  %v1019_v7 = vcvt.s32.f32 %v627_v19 }
 0x22c   :  { %v623_v1 = vunpack.c.2.s8 %v6819_v31  ;;  %v428_v61 = vunpack.c.3.s8 %v13527_v50  ;;  %v816_v23 = vcvt.s32.f32 %v424_v59  ;;  %v296_v33 = vunpack.c.3.s8 %v6821_v45 }
 0x22d   :  { %v1876_v13 = vpop.f32.mrf.mxu3  ;;  %v1780_v21 = vpop.f32.mrf.mxu1  ;;  %2138 = vmatpush.bf16.msrb.mxu1 %v1119_v27  ;;  %v1084_v57 = vpack.c.bf16 %v756_v41, %v752_v8  ;;  %v13528_v41 = vld [vmem:[#allocation24_spill] sm:$0xff] }
 0x22e   :  { %v1877_v51 = vadd.f32 %v1876_v13, %v1828_v37  ;;  %v1781_v16 = vadd.f32 %v1780_v21, %v8740_v10  ;;  %v1015_v15 = vcvt.s32.f32 %v623_v1  ;;  %v820_v36 = vcvt.s32.f32 %v428_v61  ;;  %v6822_v37 = vld [vmem:[%s13011_s1 + $0x78] sm:$0xff] }
 0x22f   :  { %v300_v10 = vunpack.c.3.s8 %v6822_v37  ;;  %2376 = vmatpush.bf16.msra.mxu2 %v1084_v57  ;;  %v688_v28 = vcvt.s32.f32 %v296_v33  ;;  %v6823_v37 = vld [vmem:[%s13011_s1 + $0xe0] sm:$0xff] }
 0x230   :  { %v9139_v31 = vadd.f32 %v1925_v9, %v1877_v51  ;;  %v1927_v13 = vpop.f32.mrf.mxu0  ;;  %v1215_v47 = vpack.c.bf16 %v1019_v7, %v1015_v15  ;;  %v1116_v27 = vpack.c.bf16 %v820_v36, %v816_v23  ;;  %v13529_v15 = vld [vmem:[#allocation63_spill] sm:$0xff]  ;;  %v13530_v36 = vld [vmem:[#allocation20_spill] sm:$0xff] }
 0x231   :  { %v692_v21 = vcvt.s32.f32 %v300_v10  ;;  %v352_v10 = vunpack.c.3.s8 %v6823_v37 }
 0x232   :  { %v1829_v1 = vpop.f32.mrf.mxu2  ;;  %2285 = vmatpush.bf16.msrb.mxu0 %v1215_v47  ;;  %2425 = vmatpush.bf16.msra.mxu3 %v1116_v27  ;;  %v13531_v27 = vld [vmem:[#allocation66_spill] sm:$0xff] }
 0x233   :  { %v1830_v9 = vadd.f32 %v1829_v1, %v1781_v16  ;;  %v1052_v59 = vpack.c.bf16 %v692_v21, %v688_v28  ;;  %v416_v28 = vunpack.c.3.s8 %v13531_v27  ;;  %v13532_v21 = vld [vmem:[#allocation67_spill] sm:$0xff] }
 0x234   :  { %v420_v1 = vunpack.c.3.s8 %v13532_v21 }
 0x235   :  { %v1878_v19 = vpop.f32.mrf.mxu3  ;;  %v1783_v50 = vpop.f32.mrf.mxu1  ;;  %2327 = vmatpush.bf16.msra.mxu1 %v1052_v59 }
 0x236   :  { %v1879_v61 = vadd.f32 %v1878_v19, %v1830_v9  ;;  %v1784_v51 = vadd.f32 %v1783_v50, %v8754_v49  ;;  %v6825_v9 = vld [vmem:[%s13011_s1 + $0x60] sm:$0xff] }
 0x237   :  { %2027 = vmatmul.bf16.gmra.mxu2 %v13528_v41  ;;  %v288_v19 = vunpack.c.3.s8 %v6825_v9 }
 0x238   :  { %v9148_v8 = vadd.f32 %v1927_v13, %v1879_v61  ;;  %v1930_v23 = vpop.f32.mrf.mxu0  ;;  %v6824_v13 = vld [vmem:[%s13011_s1 + $0xe8] sm:$0xff]  ;;  %v744_v61 = vcvt.s32.f32 %v352_v10 }
 0x239   :  { %v356_v47 = vunpack.c.3.s8 %v6824_v13 }
 0x23a   :  { %2076 = vmatmul.bf16.gmra.mxu3 %v13530_v36  ;;  %v1832_v57 = vpop.f32.mrf.mxu2  ;;  %2125 = vmatmul.bf16.gmra.mxu0 %v13471_v17 }
 0x23b   :  { %6598 = vmatmul.msk.bf16.gmra.mxu1 %vm1273_vm0, %v13529_v15  ;;  %v1833_v7 = vadd.f32 %v1832_v57, %v1784_v51  ;;  %v748_v51 = vcvt.s32.f32 %v356_v47 }
 0x23d   :  { %v1881_v16 = vpop.f32.mrf.mxu3  ;;  %v1785_v45 = vpop.f32.mrf.mxu1  ;;  %v1080_v13 = vpack.c.bf16 %v748_v51, %v744_v61 }
 0x23e   :  { %v1882_v33 = vadd.f32 %v1881_v16, %v1833_v7  ;;  %v1786_v49 = vadd.f32 %v1785_v45, %v8764_v62  ;;  %v6826_v62 = vld [vmem:[%s13011_s1 + $0x68] sm:$0xff]  ;;  %v808_v7 = vcvt.s32.f32 %v416_v28  ;;  %v812_v16 = vcvt.s32.f32 %v420_v1  ;;  %v13534_v1 = vld [vmem:[#allocation29_spill] sm:$0xff] }
 0x23f   :  { %v292_v59 = vunpack.c.3.s8 %v6826_v62  ;;  %v680_v45 = vcvt.s32.f32 %v288_v19  ;;  %2377 = vmatpush.bf16.msra.mxu2 %v1080_v13  ;;  %v9188_v19 = vld [vmem:[%s13013_s6] sm:$0xf] }
 0x240   :  { %v9170_v50 = vadd.f32 %v1930_v23, %v1882_v33  ;;  %v1932_v57 = vpop.f32.mrf.mxu0  ;;  %v1112_v21 = vpack.c.bf16 %v812_v16, %v808_v7  ;;  %v9175_v23 = vld [vmem:[%s13013_s6 + $0xc] sm:$0xf]  ;;  %13535 = vst [vmem:[#allocation64_spill] sm:$0xff] %v9188_v19  ;;  %v9191_v62 = vperm.slane %v9188_v19, 1  ;;  %v6829_v16 = vld [vmem:[%s13011_s1 + $0xd0] sm:$0xff] }
 0x241   :  { %v684_v37 = vcvt.s32.f32 %v292_v59  ;;  %13533 = vst [vmem:[#allocation61_spill] sm:$0xff] %v9175_v23  ;;  %v9178_v33 = vperm.slane %v9175_v23, 1  ;;  %v13536_v59 = vld [vmem:[#allocation28_spill] sm:$0xff] }
 0x242   :  { %v1834_v27 = vpop.f32.mrf.mxu2  ;;  %2426 = vmatpush.bf16.msra.mxu3 %v1112_v21 }
 0x243   :  { %v1048_v17 = vpack.c.bf16 %v684_v37, %v680_v45  ;;  %v1835_v36 = vadd.f32 %v1834_v27, %v1786_v49  ;;  %v344_v45 = vunpack.c.3.s8 %v6829_v16  ;;  %v6830_v37 = vld [vmem:[%s13011_s1 + $0xd8] sm:$0xff]  ;;  %v6831_v27 = vld [vmem:[%s13011_s1 + $0x150] sm:$0xff] }
 0x244   :  { %v348_v13 = vunpack.c.3.s8 %v6830_v37  ;;  %v408_v21 = vunpack.c.3.s8 %v6831_v27 }
 0x245   :  { %v1883_v9 = vpop.f32.mrf.mxu3  ;;  %v1944_v41 = vpop.f32.mrf.mxu1  ;;  %2328 = vmatpush.bf16.msra.mxu1 %v1048_v17  ;;  %v736_v16 = vcvt.s32.f32 %v344_v45 }
 0x246   :  { %v1884_v10 = vadd.f32 %v1883_v9, %v1835_v36  ;;  %v1945_v47 = vadd.f32 %v1944_v41, %v8775_v40  ;;  %v13537_v36 = vld [vmem:[#allocation42_spill] sm:$0xff] }
 0x247   :  { %2188 = vmatmul.bf16.vlgmr.msrb.gmra.mxu2 %v13534_v1 }
 0x248   :  { %v9181_v28 = vadd.f32 %v1932_v57, %v1884_v10  ;;  %v2681_v49 = vmul.f32 %v9178_v33, %v1945_v47  ;;  %v2091_v17 = vpop.f32.mrf.mxu0  ;;  %v6833_v47 = vld [vmem:[%s13011_s1 + $0x50] sm:$0xff] }
 0x24a   :  { %2237 = vmatmul.bf16.vlgmr.msrb.gmra.mxu3 %v13537_v36  ;;  %v1993_v40 = vpop.f32.mrf.mxu2  ;;  %6599 = vmatmul.msk.bf16.vlgmr.msrb.gmra.mxu0 %vm1273_vm0, %v13474_v18  ;;  %v9198_v61 = vadd.f32 %v9191_v62, %v2681_v49  ;;  %v280_v49 = vunpack.c.3.s8 %v6833_v47 }
 0x24b   :  { %2139 = vmatmul.bf16.vlgmr.msrb.gmra.mxu1 %v13536_v59 }
 0x24c   :  { %v672_v18 = vcvt.s32.f32 %v280_v49  ;;  %v13198_v2 = vmax.f32 %v9198_v61, 0.0  ;;  %v13539_v49 = vld [vmem:[#allocation32_spill] sm:$0xff] }
 0x24d   :  { %v2042_v41 = vpop.f32.mrf.mxu3  ;;  %v1946_v57 = vpop.f32.mrf.mxu1 }
 0x24e   :  { %v2043_v51 = vadd.f32 %v2042_v41, %v1993_v40  ;;  %v1947_v7 = vadd.f32 %v1946_v57, %v8780_v42  ;;  %v6832_v42 = vld [vmem:[%s13011_s1 + $0x158] sm:$0xff] }
 0x24f   :  { %v412_v10 = vunpack.c.3.s8 %v6832_v42  ;;  %v6834_v40 = vld [vmem:[%s13011_s1 + $0x58] sm:$0xff] }
 0x250   :  { %v9210_v9 = vadd.f32 %v2091_v17, %v2043_v51  ;;  %v284_v41 = vunpack.c.3.s8 %v6834_v40  ;;  %v2685_v57 = vmul.f32 %v9178_v33, %v1947_v7  ;;  %v740_v17 = vcvt.s32.f32 %v348_v13  ;;  %v2093_v37 = vpop.f32.mrf.mxu0 }
 0x251   :  { %v800_v51 = vcvt.s32.f32 %v408_v21  ;;  %v804_v27 = vcvt.s32.f32 %v412_v10 }
 0x252   :  { %v676_v36 = vcvt.s32.f32 %v284_v41  ;;  %v9223_v42 = vadd.f32 %v9191_v62, %v2685_v57  ;;  %v1076_v1 = vpack.c.bf16 %v740_v17, %v736_v16  ;;  %v1995_v19 = vpop.f32.mrf.mxu2 }
 0x253   :  { %v1108_v47 = vpack.c.bf16 %v804_v27, %v800_v51 }
 0x254   :  { %v1044_v23 = vpack.c.bf16 %v676_v36, %v672_v18  ;;  %v13197_v40 = vmax.f32 %v9223_v42, 0.0  ;;  %2378 = vmatpush.bf16.msra.mxu2 %v1076_v1  ;;  %v13538_v36 = vld [vmem:[#allocation33_spill] sm:$0xff] }
 0x255   :  { %v2044_v59 = vpop.f32.mrf.mxu3  ;;  %v1949_v45 = vpop.f32.mrf.mxu1  ;;  %2427 = vmatpush.bf16.msra.mxu3 %v1108_v47  ;;  %v6836_v47 = vld [vmem:[%s13011_s1 + $0xc8] sm:$0xff] }
 0x256   :  { %v2045_v7 = vadd.f32 %v2044_v59, %v1995_v19  ;;  %2329 = vmatpush.bf16.msra.mxu1 %v1044_v23  ;;  %v2903_v13 = vadd.f32 %v13197_v40, %v13198_v2  ;;  %v1950_v21 = vadd.f32 %v1949_v45, %v8852_v55  ;;  %v13540_v23 = vld [vmem:[#allocation44_spill] sm:$0xff] }
 0x257   :  { %2193 = vmatmul.bf16.gmra.mxu2 %v13538_v36 }
 0x258   :  { %v9232_v10 = vadd.f32 %v2093_v37, %v2045_v7  ;;  %v2689_v18 = vmul.f32 %v9178_v33, %v1950_v21  ;;  %v2096_v1 = vpop.f32.mrf.mxu0  ;;  %v6835_v37 = vld [vmem:[%s13011_s1 + $0xc0] sm:$0xff]  ;;  %v340_v7 = vunpack.c.3.s8 %v6836_v47 }
 0x259   :  { %v336_v27 = vunpack.c.3.s8 %v6835_v37  ;;  %v6837_v21 = vld [vmem:[%s13011_s1 + $0x140] sm:$0xff] }
 0x25a   :  { %v9238_v19 = vadd.f32 %v9191_v62, %v2689_v18  ;;  %2242 = vmatmul.bf16.gmra.mxu3 %v13540_v23  ;;  %v1998_v59 = vpop.f32.mrf.mxu2  ;;  %6600 = vmatmul.msk.bf16.gmra.mxu0 %vm1273_vm0, %v13478_v60  ;;  %v400_v18 = vunpack.c.3.s8 %v6837_v21 }
 0x25b   :  { %2144 = vmatmul.bf16.gmra.mxu1 %v13539_v49  ;;  %v728_v37 = vcvt.s32.f32 %v336_v27 }
 0x25c   :  { %v13196_v41 = vmax.f32 %v9238_v19, 0.0 }
 0x25d   :  { %v2047_v57 = vpop.f32.mrf.mxu3  ;;  %v1951_v16 = vpop.f32.mrf.mxu1 }
 0x25e   :  { %v2048_v55 = vadd.f32 %v2047_v57, %v1998_v59  ;;  %v2904_v17 = vadd.f32 %v2903_v13, %v13196_v41  ;;  %v1952_v51 = vadd.f32 %v1951_v16, %v8858_v29  ;;  %v6838_v29 = vld [vmem:[%s13011_s1 + $0x148] sm:$0xff]  ;;  %v6839_v59 = vld [vmem:[%s13011_s1 + $0x40] sm:$0xff]  ;;  %v792_v41 = vcvt.s32.f32 %v400_v18 }
 0x25f   :  { %v404_v13 = vunpack.c.3.s8 %v6838_v29  ;;  %v272_v57 = vunpack.c.3.s8 %v6839_v59 }
 0x260   :  { %v9253_v45 = vadd.f32 %v2096_v1, %v2048_v55  ;;  %v2693_v16 = vmul.f32 %v9178_v33, %v1952_v51  ;;  %v732_v1 = vcvt.s32.f32 %v340_v7  ;;  %v6840_v55 = vld [vmem:[%s13011_s1 + $0x48] sm:$0xff]  ;;  %v2098_v21 = vpop.f32.mrf.mxu0 }
 0x261   :  { %v276_v47 = vunpack.c.3.s8 %v6840_v55  ;;  %v796_v40 = vcvt.s32.f32 %v404_v13  ;;  %v664_v2 = vcvt.s32.f32 %v272_v57  ;;  %v6841_v55 = vld [vmem:[%s13011_s1 + $0xb0] sm:$0xff] }
 0x262   :  { %13541 = vst [vmem:[#allocation65_spill] sm:$0xff] %v9253_v45  ;;  %v9269_v29 = vadd.f32 %v9191_v62, %v2693_v16  ;;  %v1072_v60 = vpack.c.bf16 %v732_v1, %v728_v37  ;;  %v2000_v36 = vpop.f32.mrf.mxu2  ;;  %v13543_v37 = vld [vmem:[#allocation35_spill] sm:$0xff] }
 0x263   :  { %v668_v23 = vcvt.s32.f32 %v276_v47  ;;  %v1104_v59 = vpack.c.bf16 %v796_v40, %v792_v41  ;;  %v13544_v40 = vld [vmem:[#allocation34_spill] sm:$0xff]  ;;  %v328_v47 = vunpack.c.3.s8 %v6841_v55 }
 0x264   :  { %v13201_v51 = vmax.f32 %v9269_v29, 0.0  ;;  %2379 = vmatpush.bf16.msra.mxu2 %v1072_v60  ;;  %v13545_v60 = vld [vmem:[#allocation46_spill] sm:$0xff] }
 0x265   :  { %v2049_v27 = vpop.f32.mrf.mxu3  ;;  %v1040_v7 = vpack.c.bf16 %v668_v23, %v664_v2  ;;  %2428 = vmatpush.bf16.msra.mxu3 %v1104_v59 }
 0x266   :  { %v2050_v45 = vadd.f32 %v2049_v27, %v2000_v36  ;;  %v2905_v18 = vadd.f32 %v2904_v17, %v13201_v51 }
 0x267   :  { %2330 = vmatpush.bf16.msra.mxu1 %v1040_v7  ;;  %2198 = vmatmul.bf16.gmra.mxu2 %v13543_v37  ;;  %v6843_v7 = vld [vmem:[%s13011_s1 + $0x130] sm:$0xff] }
 0x268   :  { %v1954_v49 = vpop.f32.mrf.mxu1  ;;  %v9275_v57 = vadd.f32 %v2098_v21, %v2050_v45  ;;  %v2101_v41 = vpop.f32.mrf.mxu0  ;;  %v6842_v21 = vld [vmem:[%s13011_s1 + $0xb8] sm:$0xff] }
 0x269   :  { %v1955_v13 = vadd.f32 %v1954_v49, %v8862_v6  ;;  %v332_v59 = vunpack.c.3.s8 %v6842_v21 }
 0x26a   :  { %13542 = vst [vmem:[#allocation63_spill] sm:$0xff] %v9275_v57  ;;  %2247 = vmatmul.bf16.gmra.mxu3 %v13545_v60  ;;  %v2003_v36 = vpop.f32.mrf.mxu2  ;;  %6601 = vmatmul.msk.bf16.gmra.mxu0 %vm1273_vm0, %v13512_v38 }
 0x26b   :  { %v2697_v16 = vmul.f32 %v9178_v33, %v1955_v13  ;;  %2149 = vmatmul.bf16.gmra.mxu1 %v13544_v40  ;;  %v392_v13 = vunpack.c.3.s8 %v6843_v7 }
 0x26d   :  { %v9281_v2 = vadd.f32 %v9191_v62, %v2697_v16  ;;  %v2052_v17 = vpop.f32.mrf.mxu3  ;;  %v6845_v16 = vld [vmem:[%s13011_s1 + $0x30] sm:$0xff]  ;;  %v784_v7 = vcvt.s32.f32 %v392_v13 }
 0x26e   :  { %v2053_v6 = vadd.f32 %v2052_v17, %v2003_v36  ;;  %v264_v36 = vunpack.c.3.s8 %v6845_v16 }
 0x26f   :  { %v13200_v23 = vmax.f32 %v9281_v2, 0.0 }
 0x270   :  { %v1956_v49 = vpop.f32.mrf.mxu1  ;;  %v9296_v27 = vadd.f32 %v2101_v41, %v2053_v6  ;;  %v724_v41 = vcvt.s32.f32 %v332_v59  ;;  %v6846_v6 = vld [vmem:[%s13011_s1 + $0x38] sm:$0xff]  ;;  %v2103_v21 = vpop.f32.mrf.mxu0  ;;  %v656_v51 = vcvt.s32.f32 %v264_v36 }
 0x271   :  { %v2906_v45 = vadd.f32 %v2905_v18, %v13200_v23  ;;  %v1957_v1 = vadd.f32 %v1956_v49, %v8865_v53  ;;  %v6844_v53 = vld [vmem:[%s13011_s1 + $0x138] sm:$0xff]  ;;  %v720_v49 = vcvt.s32.f32 %v328_v47  ;;  %v268_v55 = vunpack.c.3.s8 %v6846_v6 }
 0x272   :  { %13546 = vst [vmem:[#allocation66_spill] sm:$0xff] %v9296_v27  ;;  %v396_v18 = vunpack.c.3.s8 %v6844_v53  ;;  %v2005_v37 = vpop.f32.mrf.mxu2 }
 0x273   :  { %v2701_v17 = vmul.f32 %v9178_v33, %v1957_v1  ;;  %v1068_v38 = vpack.c.bf16 %v724_v41, %v720_v49  ;;  %v660_v60 = vcvt.s32.f32 %v268_v55  ;;  %v13548_v49 = vld [vmem:[#allocation37_spill] sm:$0xff] }
 0x274   :  { %v788_v23 = vcvt.s32.f32 %v396_v18 }
 0x275   :  { %v9312_v53 = vadd.f32 %v9191_v62, %v2701_v17  ;;  %v2054_v47 = vpop.f32.mrf.mxu3  ;;  %2380 = vmatpush.bf16.msra.mxu2 %v1068_v38  ;;  %v1036_v59 = vpack.c.bf16 %v660_v60, %v656_v51  ;;  %v13550_v51 = vld [vmem:[#allocation50_spill] sm:$0xff] }
 0x276   :  { %v1100_v16 = vpack.c.bf16 %v788_v23, %v784_v7  ;;  %v2055_v40 = vadd.f32 %v2054_v47, %v2005_v37  ;;  %v13549_v23 = vld [vmem:[#allocation36_spill] sm:$0xff] }
 0x277   :  { %v13204_v1 = vmax.f32 %v9312_v53, 0.0  ;;  %2331 = vmatpush.bf16.msra.mxu1 %v1036_v59  ;;  %2203 = vmatmul.bf16.gmra.mxu2 %v13548_v49  ;;  %v6849_v59 = vld [vmem:[%s13011_s1 + $0x120] sm:$0xff] }
 0x278   :  { %v1959_v27 = vpop.f32.mrf.mxu1  ;;  %2429 = vmatpush.bf16.msra.mxu3 %v1100_v16  ;;  %v9318_v36 = vadd.f32 %v2103_v21, %v2055_v40  ;;  %v2106_v41 = vpop.f32.mrf.mxu0  ;;  %v6847_v21 = vld [vmem:[%s13011_s1 + $0xa0] sm:$0xff]  ;;  %v6848_v16 = vld [vmem:[%s13011_s1 + $0xa8] sm:$0xff] }
 0x279   :  { %v2907_v13 = vadd.f32 %v2906_v45, %v13204_v1  ;;  %v1960_v18 = vadd.f32 %v1959_v27, %v8875_v56  ;;  %v320_v7 = vunpack.c.3.s8 %v6847_v21  ;;  %v324_v47 = vunpack.c.3.s8 %v6848_v16 }
 0x27a   :  { %13547 = vst [vmem:[#allocation67_spill] sm:$0xff] %v9318_v36  ;;  %2252 = vmatmul.bf16.gmra.mxu3 %v13550_v51  ;;  %v2008_v37 = vpop.f32.mrf.mxu2  ;;  %6602 = vmatmul.msk.bf16.gmra.mxu0 %vm1273_vm0, %v13515_v11 }
 0x27b   :  { %v2705_v17 = vmul.f32 %v9178_v33, %v1960_v18  ;;  %2154 = vmatmul.bf16.gmra.mxu1 %v13549_v23  ;;  %v384_v18 = vunpack.c.3.s8 %v6849_v59  ;;  %v712_v21 = vcvt.s32.f32 %v320_v7  ;;  %v716_v16 = vcvt.s32.f32 %v324_v47 }
 0x27d   :  { %v9324_v38 = vadd.f32 %v9191_v62, %v2705_v17  ;;  %v2057_v45 = vpop.f32.mrf.mxu3  ;;  %v776_v59 = vcvt.s32.f32 %v384_v18  ;;  %v1064_v51 = vpack.c.bf16 %v716_v16, %v712_v21  ;;  %v6855_v16 = vld [vmem:[%s13011_s1 + $0x110] sm:$0xff] }
 0x27e   :  { %v2058_v56 = vadd.f32 %v2057_v45, %v2008_v37  ;;  %v6852_v45 = vld [vmem:[%s13011_s1 + $0x28] sm:$0xff] }
 0x27f   :  { %v13203_v60 = vmax.f32 %v9324_v38, 0.0  ;;  %2381 = vmatpush.bf16.msra.mxu2 %v1064_v51 }
 0x280   :  { %v1961_v40 = vpop.f32.mrf.mxu1  ;;  %v9333_v55 = vadd.f32 %v2106_v41, %v2058_v56  ;;  %v6851_v41 = vld [vmem:[%s13011_s1 + $0x20] sm:$0xff]  ;;  %v260_v56 = vunpack.c.3.s8 %v6852_v45  ;;  %v6853_v45 = vld [vmem:[%s13011_s1 + $0x90] sm:$0xff] }
 0x281   :  { %v2908_v27 = vadd.f32 %v2907_v13, %v13203_v60  ;;  %v1962_v6 = vadd.f32 %v1961_v40, %v9018_v26  ;;  %v6850_v26 = vld [vmem:[%s13011_s1 + $0x128] sm:$0xff]  ;;  %v256_v37 = vunpack.c.3.s8 %v6851_v41  ;;  %v2108_v40 = vpop.f32.mrf.mxu0 }
 0x282   :  { %13551 = vst [vmem:[#allocation79_spill] sm:$0xff] %v9333_v55  ;;  %v388_v17 = vunpack.c.3.s8 %v6850_v26  ;;  %v652_v26 = vcvt.s32.f32 %v260_v56  ;;  %v2010_v11 = vpop.f32.mrf.mxu2  ;;  %v312_v56 = vunpack.c.3.s8 %v6853_v45 }
 0x283   :  { %v2709_v13 = vmul.f32 %v9178_v33, %v1962_v6  ;;  %v648_v1 = vcvt.s32.f32 %v256_v37  ;;  %v13553_v37 = vld [vmem:[#allocation38_spill] sm:$0xff] }
 0x284   :  { %v780_v60 = vcvt.s32.f32 %v388_v17  ;;  %v13552_v17 = vld [vmem:[#allocation39_spill] sm:$0xff]  ;;  %v704_v45 = vcvt.s32.f32 %v312_v56 }
 0x285   :  { %v9355_v6 = vadd.f32 %v9191_v62, %v2709_v13  ;;  %v2059_v41 = vpop.f32.mrf.mxu3  ;;  %v1032_v55 = vpack.c.bf16 %v652_v26, %v648_v1  ;;  %v13554_v1 = vld [vmem:[#allocation54_spill] sm:$0xff]  ;;  %v6856_v26 = vld [vmem:[%s13011_s1 + $0x118] sm:$0xff] }
 0x286   :  { %v1096_v23 = vpack.c.bf16 %v780_v60, %v776_v59  ;;  %v2060_v36 = vadd.f32 %v2059_v41, %v2010_v11  ;;  %v376_v59 = vunpack.c.3.s8 %v6855_v16 }
 0x287   :  { %v13207_v49 = vmax.f32 %v9355_v6, 0.0  ;;  %2332 = vmatpush.bf16.msra.mxu1 %v1032_v55  ;;  %2208 = vmatmul.bf16.gmra.mxu2 %v13552_v17 }
 0x288   :  { %v1964_v57 = vpop.f32.mrf.mxu1  ;;  %2430 = vmatpush.bf16.msra.mxu3 %v1096_v23  ;;  %v9361_v18 = vadd.f32 %v2108_v40, %v2060_v36  ;;  %v6854_v40 = vld [vmem:[%s13011_s1 + $0x98] sm:$0xff]  ;;  %v768_v16 = vcvt.s32.f32 %v376_v59 }
 0x289   :  { %v2909_v7 = vadd.f32 %v2908_v27, %v13207_v49  ;;  %v1965_v47 = vadd.f32 %v1964_v57, %v9031_v63  ;;  %v2111_v60 = vpop.f32.mrf.mxu0  ;;  %v316_v21 = vunpack.c.3.s8 %v6854_v40 }
 0x28a   :  { %2257 = vmatmul.bf16.gmra.mxu3 %v13554_v1  ;;  %v2013_v51 = vpop.f32.mrf.mxu2  ;;  %6603 = vmatmul.msk.bf16.gmra.mxu0 %vm1273_vm0, %v13518_v54 }
 0x28b   :  { %v2713_v13 = vmul.f32 %v9178_v33, %v1965_v47  ;;  %2159 = vmatmul.bf16.gmra.mxu1 %v13553_v37  ;;  %v6857_v47 = vld [vmem:[%s13011_s1 + $0x10] sm:$0xff]  ;;  %v708_v40 = vcvt.s32.f32 %v316_v21 }
 0x28d   :  { %v9367_v11 = vadd.f32 %v9191_v62, %v2713_v13  ;;  %v2062_v63 = vpop.f32.mrf.mxu3  ;;  %v248_v13 = vunpack.c.3.s8 %v6857_v47  ;;  %v1060_v49 = vpack.c.bf16 %v708_v40, %v704_v45 }
 0x28e   :  { %v2063_v23 = vadd.f32 %v2062_v63, %v2013_v51  ;;  %v6858_v51 = vld [vmem:[%s13011_s1 + $0x18] sm:$0xff] }
 0x28f   :  { %v13206_v27 = vmax.f32 %v9367_v11, 0.0  ;;  %v252_v63 = vunpack.c.3.s8 %v6858_v51  ;;  %2382 = vmatpush.bf16.msra.mxu2 %v1060_v49  ;;  %v13556_v49 = vld [vmem:[#allocation10_spill] sm:$0xff] }
 0x290   :  { %v1966_v57 = vpop.f32.mrf.mxu1 }
 0x291   :  { %v2910_v36 = vadd.f32 %v2909_v7, %v13206_v27  ;;  %v1967_v55 = vadd.f32 %v1966_v57, %v9051_v14  ;;  %v380_v14 = vunpack.c.3.s8 %v6856_v26  ;;  %v9389_v7 = vadd.f32 %v2111_v60, %v2063_v23  ;;  %v2113_v57 = vpop.f32.mrf.mxu0 }
 0x292   :  { %v640_v60 = vcvt.s32.f32 %v248_v13  ;;  %v644_v23 = vcvt.s32.f32 %v252_v63  ;;  %v492_v13 = vunpack.c.3.s8 %v8902_v32 }
 0x293   :  { %v2717_v41 = vmul.f32 %v9178_v33, %v1967_v55  ;;  %v772_v27 = vcvt.s32.f32 %v380_v14  ;;  %v2015_v55 = vpop.f32.mrf.mxu2 }
 0x294   :  { %v1028_v1 = vpack.c.bf16 %v644_v23, %v640_v60 }
 0x295   :  { %v9398_v26 = vadd.f32 %v9191_v62, %v2717_v41  ;;  %v1092_v54 = vpack.c.bf16 %v772_v27, %v768_v16  ;;  %v2064_v17 = vpop.f32.mrf.mxu3  ;;  %v488_v41 = vunpack.c.3.s8 %v8896_v34  ;;  %v13555_v27 = vld [vmem:[#allocation11_spill] sm:$0xff] }
 0x296   :  { %v2065_v21 = vadd.f32 %v2064_v17, %v2015_v55  ;;  %2333 = vmatpush.bf16.msra.mxu1 %v1028_v1  ;;  %v13557_v17 = vld [vmem:[#allocation58_spill] sm:$0xff]  ;;  %v480_v55 = vunpack.c.3.s8 %v8927_v39 }
 0x297   :  { %v13210_v47 = vmax.f32 %v9398_v26, 0.0  ;;  %2431 = vmatpush.bf16.msra.mxu3 %v1092_v54  ;;  %2213 = vmatmul.bf16.gmra.mxu2 %v13555_v27  ;;  %v880_v45 = vcvt.s32.f32 %v488_v41 }
 0x298   :  { %v1969_v59 = vpop.f32.mrf.mxu1  ;;  %v9406_v51 = vadd.f32 %v2113_v57, %v2065_v21  ;;  %v484_v21 = vunpack.c.3.s8 %v8933_v22 }
 0x299   :  { %v2911_v56 = vadd.f32 %v2910_v36, %v13210_v47  ;;  %v1970_v14 = vadd.f32 %v1969_v59, %v9066_v25  ;;  %v2116_v54 = vpop.f32.mrf.mxu0  ;;  %v884_v36 = vcvt.s32.f32 %v492_v13  ;;  %v6860_v13 = vld [vmem:[%s13011_s1 + $0x88] sm:$0xff]  ;;  %v6863_v47 = vld [vmem:[%s13011_s1] sm:$0xff] }
 0x29a   :  { %2262 = vmatmul.bf16.gmra.mxu3 %v13557_v17  ;;  %6604 = vmatmul.msk.bf16.gmra.mxu0 %vm1273_vm0, %v13522_v20 }
 0x29b   :  { %v2721_v63 = vmul.f32 %v9178_v33, %v1970_v14  ;;  %2164 = vmatmul.bf16.gmra.mxu1 %v13556_v49  ;;  %v2018_v25 = vpop.f32.mrf.mxu2  ;;  %v1148_v34 = vpack.c.bf16 %v884_v36, %v880_v45  ;;  %v6859_v14 = vld [vmem:[%s13011_s1 + $0x80] sm:$0xff]  ;;  %v876_v45 = vcvt.s32.f32 %v484_v21  ;;  %v6862_v36 = vld [vmem:[%s13011_s1 + $0x108] sm:$0xff] }
 0x29c   :  { %v304_v41 = vunpack.c.3.s8 %v6859_v14 }
 0x29d   :  { %v9413_v1 = vadd.f32 %v9191_v62, %v2721_v63  ;;  %v2067_v57 = vpop.f32.mrf.mxu3  ;;  %2474 = vmatpush.bf16.msra.mxu0 %v1148_v34  ;;  %v308_v63 = vunpack.c.3.s8 %v6860_v13 }
 0x29e   :  { %v2068_v40 = vadd.f32 %v2067_v57, %v2018_v25  ;;  %v372_v25 = vunpack.c.3.s8 %v6862_v36  ;;  %v696_v34 = vcvt.s32.f32 %v304_v41  ;;  %v240_v36 = vunpack.c.3.s8 %v6863_v47  ;;  %v6864_v41 = vld [vmem:[%s13011_s1 + $0x8] sm:$0xff] }
 0x29f   :  { %v13209_v32 = vmax.f32 %v9413_v1, 0.0  ;;  %v700_v57 = vcvt.s32.f32 %v308_v63 }
 0x2a0   :  { %v1971_v16 = vpop.f32.mrf.mxu1  ;;  %v9423_v59 = vadd.f32 %v2116_v54, %v2068_v40  ;;  %v872_v54 = vcvt.s32.f32 %v480_v55 }
 0x2a1   :  { %v2912_v60 = vadd.f32 %v2911_v56, %v13209_v32  ;;  %v1972_v23 = vadd.f32 %v1971_v16, %v9111_v4  ;;  %v6861_v4 = vld [vmem:[%s13011_s1 + $0x100] sm:$0xff]  ;;  %v2118_v22 = vpop.f32.mrf.mxu0  ;;  %v472_v16 = vunpack.c.3.s8 %v8957_v0  ;;  %v764_v32 = vcvt.s32.f32 %v372_v25 }
 0x2a2   :  { %v368_v56 = vunpack.c.3.s8 %v6861_v4  ;;  %v1144_v4 = vpack.c.bf16 %v876_v45, %v872_v54  ;;  %v1056_v55 = vpack.c.bf16 %v700_v57, %v696_v34  ;;  %v244_v0 = vunpack.c.3.s8 %v6864_v41  ;;  %v13558_v41 = vld [vmem:[#allocation18_spill] sm:$0xff] }
 0x2a3   :  { %v2725_v39 = vmul.f32 %v9178_v33, %v1972_v23  ;;  %v2020_v13 = vpop.f32.mrf.mxu2  ;;  %v476_v23 = vunpack.c.3.s8 %v8963_v48  ;;  %v864_v21 = vcvt.s32.f32 %v472_v16  ;;  %v632_v25 = vcvt.s32.f32 %v240_v36 }
 0x2a4   :  { %v760_v40 = vcvt.s32.f32 %v368_v56  ;;  %2475 = vmatpush.bf16.msra.mxu0 %v1144_v4  ;;  %2383 = vmatpush.bf16.msra.mxu2 %v1056_v55  ;;  %v636_v34 = vcvt.s32.f32 %v244_v0  ;;  %v13559_v4 = vld [vmem:[#allocation17_spill] sm:$0xff]  ;;  %v460_v36 = vunpack.c.3.s8 %v9024_v12  ;;  %v452_v12 = vunpack.c.3.s8 %v9062_v24 }
 0x2a5   :  { %v9440_v14 = vadd.f32 %v9191_v62, %v2725_v39  ;;  %v2069_v56 = vpop.f32.mrf.mxu3  ;;  %v868_v54 = vcvt.s32.f32 %v476_v23 }
 0x2a6   :  { %v1088_v39 = vpack.c.bf16 %v764_v32, %v760_v40  ;;  %v2070_v45 = vadd.f32 %v2069_v56, %v2020_v13  ;;  %v1024_v17 = vpack.c.bf16 %v636_v34, %v632_v25  ;;  %v464_v32 = vunpack.c.3.s8 %v8983_v35 }
 0x2a7   :  { %v2863_v63 = vmax.f32 %v9440_v14, 0.0  ;;  %v1140_v16 = vpack.c.bf16 %v868_v54, %v864_v21  ;;  %2218 = vmatmul.bf16.gmra.mxu2 %v13558_v41  ;;  %v468_v40 = vunpack.c.3.s8 %v8991_v46  ;;  %v456_v46 = vunpack.c.3.s8 %v9014_v30 }
 0x2a8   :  { %v1974_v48 = vpop.f32.mrf.mxu1  ;;  %2432 = vmatpush.bf16.msra.mxu3 %v1088_v39  ;;  %v9453_v20 = vadd.f32 %v2118_v22, %v2070_v45  ;;  %2334 = vmatpush.bf16.msra.mxu1 %v1024_v17  ;;  %v852_v45 = vcvt.s32.f32 %v460_v36  ;;  %v448_v30 = vunpack.c.3.s8 %v9056_v3 }
 0x2a9   :  { %v2913_v57 = vadd.f32 %v2912_v60, %v2863_v63  ;;  %v1975_v47 = vadd.f32 %v1974_v48, %v9139_v31  ;;  %v2121_v23 = vpop.f32.mrf.mxu0  ;;  %2476 = vmatpush.bf16.msra.mxu0 %v1140_v16  ;;  %v13560_v60 = vld [vmem:[#allocation60_spill] sm:$0xff]  ;;  %v856_v31 = vcvt.s32.f32 %v464_v32  ;;  %v860_v55 = vcvt.s32.f32 %v468_v40 }
 0x2aa   :  { %2267 = vmatmul.bf16.gmra.mxu3 %v13560_v60  ;;  %6605 = vmatmul.msk.bf16.gmra.mxu0 %vm1273_vm0, %v13524_v58  ;;  %v848_v17 = vcvt.s32.f32 %v456_v46  ;;  %v840_v40 = vcvt.s32.f32 %v448_v30 }
 0x2ab   :  { %v2729_v13 = vmul.f32 %v9178_v33, %v1975_v47  ;;  %2169 = vmatmul.bf16.gmra.mxu1 %v13559_v4  ;;  %v2023_v21 = vpop.f32.mrf.mxu2  ;;  %v1136_v35 = vpack.c.bf16 %v860_v55, %v856_v31 }
 0x2ac   :  { %v1132_v47 = vpack.c.bf16 %v852_v45, %v848_v17  ;;  %v13561_v17 = vld [vmem:[#allocation41_spill] sm:$0xff]  ;;  %v436_v45 = vunpack.c.3.s8 %v9117_v52 }
 0x2ad   :  { %v9462_v22 = vadd.f32 %v9191_v62, %v2729_v13  ;;  %v2072_v56 = vpop.f32.mrf.mxu3  ;;  %2477 = vmatpush.bf16.msra.mxu0 %v1136_v35  ;;  %v844_v13 = vcvt.s32.f32 %v452_v12  ;;  %v13563_v12 = vld [vmem:[#allocation62_spill] sm:$0xff] }
 0x2ae   :  { %v2073_v39 = vadd.f32 %v2072_v56, %v2023_v21 }
 0x2af   :  { %v2867_v0 = vmax.f32 %v9462_v22, 0.0 }
 0x2b0   :  { %v1976_v54 = vpop.f32.mrf.mxu1  ;;  %v9472_v34 = vadd.f32 %v2121_v23, %v2073_v39  ;;  %v444_v23 = vunpack.c.3.s8 %v9089_v5  ;;  %v432_v5 = vunpack.c.3.s8 %v9108_v44 }
 0x2b1   :  { %v2914_v48 = vadd.f32 %v2913_v57, %v2867_v0  ;;  %v1977_v25 = vadd.f32 %v1976_v54, %v9148_v8  ;;  %v2123_v32 = vpop.f32.mrf.mxu0  ;;  %2478 = vmatpush.bf16.msra.mxu0 %v1132_v47  ;;  %v1128_v57 = vpack.c.bf16 %v844_v13, %v840_v40  ;;  %v440_v8 = vunpack.c.3.s8 %v9083_v43  ;;  %v13562_v47 = vld [vmem:[#allocation40_spill] sm:$0xff] }
 0x2b2   :  { %v836_v36 = vcvt.s32.f32 %v444_v23 }
 0x2b3   :  { %v2733_v16 = vmul.f32 %v9178_v33, %v1977_v25  ;;  %v2025_v55 = vpop.f32.mrf.mxu2  ;;  %v832_v46 = vcvt.s32.f32 %v440_v8 }
 0x2b5   :  { %v9478_v31 = vadd.f32 %v9191_v62, %v2733_v16  ;;  %v2074_v3 = vpop.f32.mrf.mxu3  ;;  %2479 = vmatpush.bf16.msra.mxu0 %v1128_v57  ;;  %v1124_v43 = vpack.c.bf16 %v836_v36, %v832_v46  ;;  %v828_v16 = vcvt.s32.f32 %v436_v45 }
 0x2b6   :  { %v2075_v35 = vadd.f32 %v2074_v3, %v2025_v55 }
 0x2b7   :  { %v2871_v21 = vmax.f32 %v9478_v31, 0.0  ;;  %2223 = vmatmul.bf16.gmra.mxu2 %v13561_v17 }
 0x2b8   :  { %v1979_v24 = vpop.f32.mrf.mxu1  ;;  %v9486_v54 = vadd.f32 %v2123_v32, %v2075_v35 }
 0x2b9   :  { %v2915_v56 = vadd.f32 %v2914_v48, %v2871_v21  ;;  %v1980_v39 = vadd.f32 %v1979_v24, %v9170_v50  ;;  %v2126_v30 = vpop.f32.mrf.mxu0  ;;  %2480 = vmatpush.bf16.msra.mxu0 %v1124_v43  ;;  %v824_v48 = vcvt.s32.f32 %v432_v5 }
 0x2ba   :  { %2272 = vmatmul.bf16.gmra.mxu3 %v13563_v12  ;;  %6606 = vmatmul.msk.bf16.gmra.mxu0 %vm1273_vm0, %v13529_v15 }
 0x2bb   :  { %v2737_v25 = vmul.f32 %v9178_v33, %v1980_v39  ;;  %2174 = vmatmul.bf16.gmra.mxu1 %v13562_v47  ;;  %v2028_v32 = vpop.f32.mrf.mxu2  ;;  %v1120_v44 = vpack.c.bf16 %v828_v16, %v824_v48 }
 0x2bd   :  { %v9495_v50 = vadd.f32 %v9191_v62, %v2737_v25  ;;  %v2077_v40 = vpop.f32.mrf.mxu3  ;;  %2481 = vmatpush.bf16.msra.mxu0 %v1120_v44  ;;  %v13567_v44 = vld [vmem:[#allocation28_spill] sm:$0xff] }
 0x2be   :  { %v2078_v13 = vadd.f32 %v2077_v40, %v2028_v32 }
 0x2bf   :  { %v2875_v52 = vmax.f32 %v9495_v50, 0.0 }
 0x2c0   :  { %v1981_v55 = vpop.f32.mrf.mxu1  ;;  %v9501_v23 = vadd.f32 %v2126_v30, %v2078_v13  ;;  %v13565_v30 = vld [vmem:[#allocation19_spill] sm:$0xff] }
 0x2c1   :  { %v2916_v57 = vadd.f32 %v2915_v56, %v2875_v52  ;;  %v1982_v8 = vadd.f32 %v1981_v55, %v9181_v28  ;;  %v2128_v35 = vpop.f32.mrf.mxu0  ;;  %v13564_v56 = vld [vmem:[#allocation26_spill] sm:$0xff] }
 0x2c3   :  { %v2741_v3 = vmul.f32 %v9178_v33, %v1982_v8  ;;  %v2030_v46 = vpop.f32.mrf.mxu2  ;;  %v13566_v33 = vld [vmem:[#allocation27_spill] sm:$0xff] }
 0x2c5   :  { %v2815_v24 = vadd.f32 %v9191_v62, %v2741_v3  ;;  %v2079_v39 = vpop.f32.mrf.mxu3 }
 0x2c6   :  { %v2080_v43 = vadd.f32 %v2079_v39, %v2030_v46 }
 0x2c7   :  { %v2879_v36 = vmax.f32 %v2815_v24, 0.0  ;;  %2384 = vmatmul.bf16.vlgmr.msra.gmra.mxu2 %v13564_v56 }
 0x2c8   :  { %v2140_v5 = vpop.f32.mrf.mxu1  ;;  %v9506_v48 = vadd.f32 %v2128_v35, %v2080_v43 }
 0x2c9   :  { %v2917_v45 = vadd.f32 %v2916_v57, %v2879_v36  ;;  %v2141_v25 = vadd.f32 %v2140_v5, %v9210_v9  ;;  %v2287_v16 = vpop.f32.mrf.mxu0  ;;  %v13568_v5 = vld [vmem:[#allocation48_spill] sm:$0xff] }
 0x2ca   :  { %2433 = vmatmul.bf16.vlgmr.msra.gmra.mxu3 %v13566_v33  ;;  %2482 = vmatmul.bf16.vlgmr.msra.gmra.mxu0 %v13567_v44 }
 0x2cb   :  { %v2918_v28 = vrot.slane %v2917_v45, 4  ;;  %2335 = vmatmul.bf16.vlgmr.msra.gmra.mxu1 %v13565_v30  ;;  %v2189_v62 = vpop.f32.mrf.mxu2 }
 0x2cc   :  { %v2190_v32 = vadd.f32 %v2189_v62, %v2141_v25  ;;  %v13570_v62 = vmax.f32 %v9198_v61, 0.0  ;;  %v13578_v61 = vmax.f32 %v9312_v53, 0.0  ;;  %v13588_v53 = vmax.f32 %v9413_v1, 0.0 }
 0x2cd   :  { %v2919_v50 = vadd.f32 %v2918_v28, %v2917_v45  ;;  %v2238_v13 = vpop.f32.mrf.mxu3  ;;  %v13569_v28 = vld [vmem:[#allocation61_spill] sm:$0xff] }
 0x2ce   :  { %v2239_v55 = vadd.f32 %v2238_v13, %v2190_v32  ;;  %v9515_v25 = vperm.slane %v13569_v28, 2 }
 0x2cf   :  { %v2920_v40 = vrot.slane %v2919_v50, 2 }
 0x2d0   :  { %v2142_v57 = vpop.f32.mrf.mxu1  ;;  %v2288_v3 = vadd.f32 %v2287_v16, %v2239_v55  ;;  %v13577_v55 = vmax.f32 %v9281_v2, 0.0  ;;  %v13586_v2 = vmax.f32 %v9398_v26, 0.0 }
 0x2d1   :  { %v2921_v9 = vadd.f32 %v2920_v40, %v2919_v50  ;;  %v2143_v8 = vadd.f32 %v2142_v57, %v9232_v10  ;;  %v2289_v24 = vpop.f32.mrf.mxu0  ;;  %v13572_v10 = vmax.f32 %v9223_v42, 0.0  ;;  %v13574_v50 = vmax.f32 %v9238_v19, 0.0 }
 0x2d2   :  { %v13575_v40 = vmax.f32 %v9269_v29, 0.0  ;;  %v13579_v42 = vmax.f32 %v9324_v38, 0.0  ;;  %v13581_v19 = vmax.f32 %v9355_v6, 0.0  ;;  %v13584_v29 = vmax.f32 %v9367_v11, 0.0  ;;  %v13591_v6 = vld [vmem:[#allocation25_spill] sm:$0xff] }
 0x2d3   :  { %v2922_v35 = vrot.slane %v2921_v9, 1  ;;  %v2191_v39 = vpop.f32.mrf.mxu2 }
 0x2d4   :  { %v2192_v43 = vadd.f32 %v2191_v39, %v2143_v8 }
 0x2d5   :  { %v2923_v46 = vadd.f32 %v2922_v35, %v2921_v9  ;;  %v2240_v45 = vpop.f32.mrf.mxu3 }
 0x2d6   :  { %v2241_v30 = vadd.f32 %v2240_v45, %v2192_v43 }
 0x2d7   :  { %v2974_v56 = vmul.f32 %v13568_v5, %v2923_v46  ;;  %v13583_v46 = vld [vmem:[#allocation30_spill] sm:$0xff] }
 0x2d8   :  { %v2145_v33 = vpop.f32.mrf.mxu1  ;;  %2389 = vmatmul.bf16.gmra.mxu2 %v13583_v46 }
 0x2d9   :  { %v9519_v32 = vsub.f32 %v13570_v62, %v2974_v56  ;;  %v9523_v16 = vsub.f32 %v13572_v10, %v2974_v56  ;;  %v9527_v44 = vsub.f32 %v13574_v50, %v2974_v56  ;;  %v9531_v13 = vsub.f32 %v13575_v40, %v2974_v56  ;;  %v2292_v28 = vpop.f32.mrf.mxu0  ;;  %v13596_v10 = vld [vmem:[#allocation31_spill] sm:$0xff]  ;;  %v13598_v40 = vld [vmem:[#allocation64_spill] sm:$0xff] }
 0x2da   :  { %v9535_v57 = vsub.f32 %v13577_v55, %v2974_v56  ;;  %v9539_v9 = vsub.f32 %v13578_v61, %v2974_v56  ;;  %v9543_v8 = vsub.f32 %v13579_v42, %v2974_v56  ;;  %v9547_v35 = vsub.f32 %v13581_v19, %v2974_v56  ;;  %2438 = vmatmul.bf16.gmra.mxu3 %v13596_v10  ;;  %v13599_v61 = vld [vmem:[#allocation65_spill] sm:$0xff]  ;;  %v13600_v42 = vld [vmem:[#allocation63_spill] sm:$0xff] }
 0x2db   :  { %13571 = vst [vmem:[#allocation38_spill] sm:$0xff] %v9519_v32  ;;  %v9552_v39 = vsub.f32 %v13584_v29, %v2974_v56  ;;  %v9556_v43 = vsub.f32 %v13586_v2, %v2974_v56  ;;  %v9560_v45 = vsub.f32 %v13588_v53, %v2974_v56  ;;  %v9564_v38 = vsub.f32 %v2863_v63, %v2974_v56  ;;  %v2194_v14 = vpop.f32.mrf.mxu2  ;;  %v13597_v63 = vld [vmem:[#allocation32_spill] sm:$0xff] }
 0x2dc   :  { %13573 = vst [vmem:[#allocation11_spill] sm:$0xff] %v9523_v16  ;;  %2340 = vmatmul.bf16.gmra.mxu1 %v13591_v6  ;;  %v9569_v11 = vsub.f32 %v2867_v0, %v2974_v56  ;;  %v9573_v26 = vsub.f32 %v2871_v21, %v2974_v56  ;;  %v9575_v62 = vsub.f32 %v2875_v52, %v2974_v56  ;;  %v9583_v55 = vperm.slane %v13598_v40, 2  ;;  %v13601_v40 = vld [vmem:[#allocation66_spill] sm:$0xff] }
 0x2dd   :  { %13576 = vst [vmem:[#allocation10_spill] sm:$0xff] %v9531_v13  ;;  %v9577_v1 = vsub.f32 %v2879_v36, %v2974_v56  ;;  %2487 = vmatmul.bf16.gmra.mxu0 %v13597_v63  ;;  %v2682_v50 = vmul.f32 %v9515_v25, %v2288_v3  ;;  %v2243_v22 = vpop.f32.mrf.mxu3  ;;  %v2146_v31 = vadd.f32 %v2145_v33, %v13599_v61  ;;  %v13602_v61 = vld [vmem:[#allocation2_spill] sm:$0xff] }
 0x2de   :  { %13580 = vst [vmem:[#allocation18_spill] sm:$0xff] %v9543_v8  ;;  %v2290_v21 = vadd.f32 %v2289_v24, %v2241_v30 }
 0x2df   :  { %13582 = vst [vmem:[#allocation17_spill] sm:$0xff] %v9547_v35  ;;  %v9588_v36 = vadd.f32 %v9583_v55, %v2682_v50  ;;  %v2195_v19 = vadd.f32 %v2194_v14, %v2146_v31 }
 0x2e0   :  { %13585 = vst [vmem:[#allocation60_spill] sm:$0xff] %v9552_v39  ;;  %v2147_v0 = vpop.f32.mrf.mxu1  ;;  %v2686_v56 = vmul.f32 %v9515_v25, %v2290_v21  ;;  %v13603_v21 = vld [vmem:[#allocation12_spill] sm:$0xff] }
 0x2e1   :  { %13587 = vst [vmem:[#allocation41_spill] sm:$0xff] %v9556_v43  ;;  %v2148_v52 = vadd.f32 %v2147_v0, %v13600_v42  ;;  %v2294_v46 = vpop.f32.mrf.mxu0  ;;  %v2244_v3 = vadd.f32 %v2243_v22, %v2195_v19  ;;  %v13217_v6 = vmax.f32 %v9588_v36, 0.0 }
 0x2e2   :  { %13589 = vst [vmem:[#allocation40_spill] sm:$0xff] %v9560_v45  ;;  %v9592_v29 = vadd.f32 %v9583_v55, %v2686_v56 }
 0x2e3   :  { %13590 = vst [vmem:[#allocation62_spill] sm:$0xff] %v9564_v38  ;;  %v2196_v2 = vpop.f32.mrf.mxu2  ;;  %v2293_v24 = vadd.f32 %v2292_v28, %v2244_v3 }
 0x2e4   :  { %13592 = vst [vmem:[#allocation26_spill] sm:$0xff] %v9569_v11  ;;  %v2197_v53 = vadd.f32 %v2196_v2, %v2148_v52  ;;  %v13213_v33 = vmax.f32 %v9592_v29, 0.0  ;;  %v13604_v52 = vld [vmem:[#allocation3_spill] sm:$0xff] }
 0x2e5   :  { %13593 = vst [vmem:[#allocation19_spill] sm:$0xff] %v9573_v26  ;;  %v2245_v30 = vpop.f32.mrf.mxu3  ;;  %v2690_v50 = vmul.f32 %v9515_v25, %v2293_v24 }
 0x2e6   :  { %13594 = vst [vmem:[#allocation27_spill] sm:$0xff] %v9575_v62  ;;  %v2246_v10 = vadd.f32 %v2245_v30, %v2197_v53  ;;  %v2924_v14 = vadd.f32 %v13213_v33, %v13217_v6 }
 0x2e7   :  { %13595 = vst [vmem:[#allocation28_spill] sm:$0xff] %v9577_v1  ;;  %v9604_v31 = vadd.f32 %v9583_v55, %v2690_v50  ;;  %v13606_v50 = vld [vmem:[#allocation67_spill] sm:$0xff] }
 0x2e8   :  { %v2150_v63 = vpop.f32.mrf.mxu1  ;;  %v2295_v22 = vadd.f32 %v2294_v46, %v2246_v10  ;;  %2394 = vmatmul.bf16.gmra.mxu2 %v13602_v61  ;;  %v13605_v46 = vld [vmem:[#allocation34_spill] sm:$0xff] }
 0x2e9   :  { %v2151_v0 = vadd.f32 %v2150_v63, %v13601_v40  ;;  %v2297_v28 = vpop.f32.mrf.mxu0  ;;  %v13212_v56 = vmax.f32 %v9604_v31, 0.0 }
 0x2ea   :  { %v2694_v42 = vmul.f32 %v9515_v25, %v2295_v22  ;;  %2443 = vmatmul.bf16.gmra.mxu3 %v13604_v52 }
 0x2eb   :  { %v2199_v19 = vpop.f32.mrf.mxu2  ;;  %v2925_v53 = vadd.f32 %v2924_v14, %v13212_v56 }
 0x2ec   :  { %2345 = vmatmul.bf16.gmra.mxu1 %v13603_v21  ;;  %v9611_v3 = vadd.f32 %v9583_v55, %v2694_v42  ;;  %v2200_v2 = vadd.f32 %v2199_v19, %v2151_v0 }
 0x2ed   :  { %2492 = vmatmul.bf16.gmra.mxu0 %v13605_v46  ;;  %v2248_v24 = vpop.f32.mrf.mxu3 }
 0x2ee   :  { %v13216_v30 = vmax.f32 %v9611_v3, 0.0  ;;  %v2249_v10 = vadd.f32 %v2248_v24, %v2200_v2  ;;  %v13607_v24 = vld [vmem:[#allocation79_spill] sm:$0xff] }
 0x2f0   :  { %v2152_v63 = vpop.f32.mrf.mxu1  ;;  %v2926_v22 = vadd.f32 %v2925_v53, %v13216_v30  ;;  %v2298_v61 = vadd.f32 %v2297_v28, %v2249_v10  ;;  %v13608_v28 = vld [vmem:[#allocation4_spill] sm:$0xff]  ;;  %v13609_v10 = vld [vmem:[#allocation22_spill] sm:$0xff] }
 0x2f1   :  { %v2153_v40 = vadd.f32 %v2152_v63, %v13606_v50  ;;  %v2299_v21 = vpop.f32.mrf.mxu0 }
 0x2f2   :  { %v2698_v42 = vmul.f32 %v9515_v25, %v2298_v61 }
 0x2f3   :  { %v2201_v0 = vpop.f32.mrf.mxu2 }
 0x2f4   :  { %v9622_v52 = vadd.f32 %v9583_v55, %v2698_v42  ;;  %v2202_v19 = vadd.f32 %v2201_v0, %v2153_v40  ;;  %v13610_v42 = vld [vmem:[#allocation5_spill] sm:$0xff] }
 0x2f5   :  { %v2250_v14 = vpop.f32.mrf.mxu3 }
 0x2f6   :  { %v13215_v46 = vmax.f32 %v9622_v52, 0.0  ;;  %v2251_v56 = vadd.f32 %v2250_v14, %v2202_v19  ;;  %v13611_v14 = vld [vmem:[#allocation36_spill] sm:$0xff] }
 0x2f8   :  { %v2155_v2 = vpop.f32.mrf.mxu1  ;;  %v2927_v63 = vadd.f32 %v2926_v22, %v13215_v46  ;;  %v2300_v53 = vadd.f32 %v2299_v21, %v2251_v56  ;;  %2399 = vmatmul.bf16.gmra.mxu2 %v13608_v28 }
 0x2f9   :  { %v2156_v33 = vadd.f32 %v2155_v2, %v13607_v24  ;;  %v2302_v50 = vpop.f32.mrf.mxu0 }
 0x2fa   :  { %v2702_v61 = vmul.f32 %v9515_v25, %v2300_v53  ;;  %2448 = vmatmul.bf16.gmra.mxu3 %v13610_v42 }
 0x2fb   :  { %v2204_v40 = vpop.f32.mrf.mxu2 }
 0x2fc   :  { %2350 = vmatmul.bf16.gmra.mxu1 %v13609_v10  ;;  %v9633_v0 = vadd.f32 %v9583_v55, %v2702_v61  ;;  %v2205_v19 = vadd.f32 %v2204_v40, %v2156_v33  ;;  %v6865_v33 = vld [vmem:[%s13011_s1 + $0x2f0] sm:$0xff]  ;;  %v6866_v61 = vld [vmem:[%s13011_s1 + $0x2f8] sm:$0xff] }
 0x2fd   :  { %2497 = vmatmul.bf16.gmra.mxu0 %v13611_v14  ;;  %v2253_v2 = vpop.f32.mrf.mxu3  ;;  %v616_v10 = vunpack.c.3.s8 %v6865_v33  ;;  %v620_v42 = vunpack.c.3.s8 %v6866_v61  ;;  %v6869_v14 = vld [vmem:[%s13011_s1 + $0x270] sm:$0xff]  ;;  %v6871_v33 = vld [vmem:[%s13011_s1 + $0x2e0] sm:$0xff] }
 0x2fe   :  { %v13214_v22 = vmax.f32 %v9633_v0, 0.0  ;;  %v2254_v56 = vadd.f32 %v2253_v2, %v2205_v19  ;;  %v552_v2 = vunpack.c.3.s8 %v6869_v14  ;;  %v608_v61 = vunpack.c.3.s8 %v6871_v33  ;;  %v6872_v14 = vld [vmem:[%s13011_s1 + $0x2e8] sm:$0xff] }
 0x2ff   :  { %v612_v62 = vunpack.c.3.s8 %v6872_v14 }
 0x300   :  { %v2157_v21 = vpop.f32.mrf.mxu1  ;;  %v9642_v53 = vadd.f32 %v2927_v63, %v13214_v22  ;;  %v9644_v28 = vadd.f32 %v2302_v50, %v2254_v56  ;;  %v6868_v63 = vld [vmem:[%s13011_s1 + $0x308] sm:$0xff]  ;;  %v6870_v56 = vld [vmem:[%s13011_s1 + $0x278] sm:$0xff]  ;;  %v1012_v22 = vcvt.s32.f32 %v620_v42  ;;  %v944_v6 = vcvt.s32.f32 %v552_v2 }
 0x301   :  { %v9638_v24 = vadd.f32 %v2157_v21, %v9361_v18  ;;  %v6867_v18 = vld [vmem:[%s13011_s1 + $0x300] sm:$0xff]  ;;  %v9655_v19 = vpop.f32.mrf.mxu0  ;;  %v628_v50 = vunpack.c.3.s8 %v6868_v63  ;;  %v556_v21 = vunpack.c.3.s8 %v6870_v56  ;;  %v1000_v11 = vcvt.s32.f32 %v608_v61 }
 0x302   :  { %v624_v40 = vunpack.c.3.s8 %v6867_v18  ;;  %v1008_v18 = vcvt.s32.f32 %v616_v10  ;;  %v6873_v56 = vld [vmem:[%s13011_s1 + $0x260] sm:$0xff] }
 0x303   :  { %v2206_v30 = vpop.f32.mrf.mxu2  ;;  %v1020_v63 = vcvt.s32.f32 %v628_v50  ;;  %v948_v1 = vcvt.s32.f32 %v556_v21  ;;  %v544_v38 = vunpack.c.3.s8 %v6873_v56  ;;  %v6874_v50 = vld [vmem:[%s13011_s1 + $0x268] sm:$0xff] }
 0x304   :  { %v1016_v46 = vcvt.s32.f32 %v624_v40  ;;  %v1212_v26 = vpack.c.bf16 %v1012_v22, %v1008_v18  ;;  %v1004_v40 = vcvt.s32.f32 %v612_v62  ;;  %v548_v2 = vunpack.c.3.s8 %v6874_v50  ;;  %v6875_v22 = vld [vmem:[%s13011_s1 + $0x2d0] sm:$0xff]  ;;  %v6876_v18 = vld [vmem:[%s13011_s1 + $0x2d8] sm:$0xff]  ;;  %v6879_v50 = vld [vmem:[%s13011_s1 + $0x2c0] sm:$0xff] }
 0x305   :  { %v2255_v33 = vpop.f32.mrf.mxu3  ;;  %v1180_v42 = vpack.c.bf16 %v948_v1, %v944_v6  ;;  %v936_v45 = vcvt.s32.f32 %v544_v38  ;;  %v600_v61 = vunpack.c.3.s8 %v6875_v22  ;;  %v6877_v6 = vld [vmem:[%s13011_s1 + $0x250] sm:$0xff]  ;;  %v6878_v38 = vld [vmem:[%s13011_s1 + $0x258] sm:$0xff] }
 0x306   :  { %v1216_v10 = vpack.c.bf16 %v1020_v63, %v1016_v46  ;;  %2572 = vmatpush.bf16.msrb.mxu2 %v1212_v26  ;;  %v604_v46 = vunpack.c.3.s8 %v6876_v18  ;;  %v1208_v62 = vpack.c.bf16 %v1004_v40, %v1000_v11  ;;  %v940_v1 = vcvt.s32.f32 %v548_v2  ;;  %v13613_v11 = vld [vmem:[#allocation6_spill] sm:$0xff] }
 0x307   :  { %2523 = vmatpush.bf16.msrb.mxu1 %v1180_v42  ;;  %v536_v26 = vunpack.c.3.s8 %v6877_v6  ;;  %v540_v63 = vunpack.c.3.s8 %v6878_v38  ;;  %v992_v14 = vcvt.s32.f32 %v600_v61  ;;  %v13612_v42 = vld [vmem:[#allocation13_spill] sm:$0xff]  ;;  %v6880_v6 = vld [vmem:[%s13011_s1 + $0x2c8] sm:$0xff] }
 0x308   :  { %v2160_v21 = vpop.f32.mrf.mxu1  ;;  %2628 = vmatpush.bf16.msrb.mxu3 %v1216_v10  ;;  %v996_v56 = vcvt.s32.f32 %v604_v46  ;;  %v592_v10 = vunpack.c.3.s8 %v6879_v50  ;;  %2404 = vmatmul.bf16.gmra.mxu2 %v13613_v11  ;;  %v1176_v2 = vpack.c.bf16 %v940_v1, %v936_v45  ;;  %v596_v38 = vunpack.c.3.s8 %v6880_v6  ;;  %v13614_v61 = vld [vmem:[#allocation7_spill] sm:$0xff]  ;;  %v6881_v50 = vld [vmem:[%s13011_s1 + $0x240] sm:$0xff] }
 0x309   :  { %v2307_v40 = vpop.f32.mrf.mxu0  ;;  %v928_v22 = vcvt.s32.f32 %v536_v26  ;;  %v932_v18 = vcvt.s32.f32 %v540_v63  ;;  %v6882_v26 = vld [vmem:[%s13011_s1 + $0x248] sm:$0xff]  ;;  %v2706_v6 = vmul.f32 %v9515_v25, %v9644_v28  ;;  %v6883_v28 = vld [vmem:[%s13011_s1 + $0x2b0] sm:$0xff] }
 0x30a   :  { %2453 = vmatmul.bf16.gmra.mxu3 %v13614_v61  ;;  %2573 = vmatpush.bf16.msrb.mxu2 %v1208_v62  ;;  %v1204_v46 = vpack.c.bf16 %v996_v56, %v992_v14  ;;  %v984_v43 = vcvt.s32.f32 %v592_v10  ;;  %v988_v1 = vcvt.s32.f32 %v596_v38  ;;  %v532_v63 = vunpack.c.3.s8 %v6882_v26 }
 0x30b   :  { %v2209_v11 = vpop.f32.mrf.mxu2  ;;  %2524 = vmatpush.bf16.msrb.mxu1 %v1176_v2  ;;  %v1172_v45 = vpack.c.bf16 %v932_v18, %v928_v22  ;;  %v2207_v14 = vadd.f32 %v2206_v30, %v9638_v24  ;;  %v9710_v2 = vadd.f32 %v9583_v55, %v2706_v6  ;;  %v2161_v22 = vadd.f32 %v2160_v21, %v9389_v7 }
 0x30c   :  { %2355 = vmatmul.bf16.gmra.mxu1 %v13612_v42  ;;  %v528_v42 = vunpack.c.3.s8 %v6881_v50  ;;  %v1200_v10 = vpack.c.bf16 %v988_v1, %v984_v43  ;;  %v924_v61 = vcvt.s32.f32 %v532_v63  ;;  %v584_v50 = vunpack.c.3.s8 %v6883_v28  ;;  %v6885_v43 = vld [vmem:[%s13011_s1 + $0x230] sm:$0xff] }
 0x30d   :  { %2502 = vmatmul.bf16.gmra.mxu0 %v13553_v37  ;;  %v2258_v56 = vpop.f32.mrf.mxu3  ;;  %v2256_v38 = vadd.f32 %v2255_v33, %v2207_v14  ;;  %v6884_v37 = vld [vmem:[%s13011_s1 + $0x2b8] sm:$0xff]  ;;  %v520_v24 = vunpack.c.3.s8 %v6885_v43  ;;  %v2844_v21 = vmax.f32 %v9710_v2, 0.0  ;;  %v2210_v33 = vadd.f32 %v2209_v11, %v2161_v22 }
 0x30e   :  { %v920_v62 = vcvt.s32.f32 %v528_v42  ;;  %2574 = vmatpush.bf16.msrb.mxu2 %v1204_v46  ;;  %v588_v30 = vunpack.c.3.s8 %v6884_v37  ;;  %v6886_v46 = vld [vmem:[%s13011_s1 + $0x238] sm:$0xff]  ;;  %v976_v26 = vcvt.s32.f32 %v584_v50  ;;  %v6888_v50 = vld [vmem:[%s13011_s1 + $0x2a8] sm:$0xff] }
 0x30f   :  { %2525 = vmatpush.bf16.msrb.mxu1 %v1172_v45  ;;  %v524_v42 = vunpack.c.3.s8 %v6886_v46  ;;  %v2305_v1 = vadd.f32 %v9655_v19, %v2256_v38  ;;  %v912_v6 = vcvt.s32.f32 %v520_v24  ;;  %v2929_v28 = vadd.f32 %v9642_v53, %v2844_v21  ;;  %v6887_v19 = vld [vmem:[%s13011_s1 + $0x2a0] sm:$0xff] }
 0x310   :  { %v2162_v18 = vpop.f32.mrf.mxu1  ;;  %v1168_v7 = vpack.c.bf16 %v924_v61, %v920_v62  ;;  %v980_v63 = vcvt.s32.f32 %v588_v30  ;;  %v2259_v45 = vadd.f32 %v2258_v56, %v2210_v33  ;;  %v576_v38 = vunpack.c.3.s8 %v6887_v19 }
 0x311   :  { %v2309_v14 = vpop.f32.mrf.mxu0  ;;  %v916_v62 = vcvt.s32.f32 %v524_v42  ;;  %v2163_v61 = vadd.f32 %v2162_v18, %v9406_v51  ;;  %v2710_v11 = vmul.f32 %v9515_v25, %v2305_v1  ;;  %v580_v30 = vunpack.c.3.s8 %v6888_v50  ;;  %v6889_v42 = vld [vmem:[%s13011_s1 + $0x220] sm:$0xff]  ;;  %v13616_v50 = vld [vmem:[#allocation8_spill] sm:$0xff] }
 0x312   :  { %2575 = vmatpush.bf16.msrb.mxu2 %v1200_v10  ;;  %v1196_v22 = vpack.c.bf16 %v980_v63, %v976_v26  ;;  %v2308_v56 = vadd.f32 %v2307_v40, %v2259_v45  ;;  %v968_v43 = vcvt.s32.f32 %v576_v38  ;;  %v512_v1 = vunpack.c.3.s8 %v6889_v42  ;;  %v13615_v38 = vld [vmem:[#allocation23_spill] sm:$0xff] }
 0x313   :  { %v2211_v37 = vpop.f32.mrf.mxu2  ;;  %2526 = vmatpush.bf16.msrb.mxu1 %v1168_v7  ;;  %v1164_v53 = vpack.c.bf16 %v916_v62, %v912_v6  ;;  %v9739_v51 = vadd.f32 %v9583_v55, %v2710_v11  ;;  %v972_v24 = vcvt.s32.f32 %v580_v30  ;;  %v6890_v7 = vld [vmem:[%s13011_s1 + $0x228] sm:$0xff] }
 0x314   :  { %v2212_v10 = vadd.f32 %v2211_v37, %v2163_v61  ;;  %v2714_v33 = vmul.f32 %v9515_v25, %v2308_v56  ;;  %v516_v40 = vunpack.c.3.s8 %v6890_v7  ;;  %v904_v61 = vcvt.s32.f32 %v512_v1  ;;  %v6894_v1 = vld [vmem:[%s13011_s1 + $0x218] sm:$0xff] }
 0x315   :  { %v2260_v18 = vpop.f32.mrf.mxu3  ;;  %v2848_v26 = vmax.f32 %v9739_v51, 0.0  ;;  %v1192_v45 = vpack.c.bf16 %v972_v24, %v968_v43  ;;  %v508_v7 = vunpack.c.3.s8 %v6894_v1 }
 0x316   :  { %2576 = vmatpush.bf16.msrb.mxu2 %v1196_v22  ;;  %v2261_v63 = vadd.f32 %v2260_v18, %v2212_v10  ;;  %v9751_v62 = vadd.f32 %v9583_v55, %v2714_v33  ;;  %v908_v11 = vcvt.s32.f32 %v516_v40  ;;  %v13617_v18 = vld [vmem:[#allocation9_spill] sm:$0xff] }
 0x317   :  { %2527 = vmatpush.bf16.msrb.mxu1 %v1164_v53  ;;  %v2930_v37 = vadd.f32 %v2929_v28, %v2848_v26  ;;  %v6892_v53 = vld [vmem:[%s13011_s1 + $0x298] sm:$0xff]  ;;  %v6893_v28 = vld [vmem:[%s13011_s1 + $0x210] sm:$0xff] }
 0x318   :  { %v2165_v46 = vpop.f32.mrf.mxu1  ;;  %v2310_v19 = vadd.f32 %v2309_v14, %v2261_v63  ;;  %2409 = vmatmul.bf16.gmra.mxu2 %v13616_v50  ;;  %v572_v56 = vunpack.c.3.s8 %v6892_v53  ;;  %v2852_v10 = vmax.f32 %v9751_v62, 0.0  ;;  %v1160_v14 = vpack.c.bf16 %v908_v11, %v904_v61 }
 0x319   :  { %v2166_v6 = vadd.f32 %v2165_v46, %v9423_v59  ;;  %v2312_v30 = vpop.f32.mrf.mxu0  ;;  %v6891_v59 = vld [vmem:[%s13011_s1 + $0x290] sm:$0xff]  ;;  %v504_v43 = vunpack.c.3.s8 %v6893_v28  ;;  %v6897_v28 = vld [vmem:[%s13011_s1 + $0x200] sm:$0xff] }
 0x31a   :  { %v568_v22 = vunpack.c.3.s8 %v6891_v59  ;;  %2458 = vmatmul.bf16.gmra.mxu3 %v13617_v18  ;;  %v2718_v24 = vmul.f32 %v9515_v25, %v2310_v19  ;;  %2577 = vmatpush.bf16.msrb.mxu2 %v1192_v45  ;;  %v964_v42 = vcvt.s32.f32 %v572_v56  ;;  %v2931_v40 = vadd.f32 %v2930_v37, %v2852_v10  ;;  %v6896_v18 = vld [vmem:[%s13011_s1 + $0x288] sm:$0xff] }
 0x31b   :  { %v2214_v33 = vpop.f32.mrf.mxu2  ;;  %2528 = vmatpush.bf16.msrb.mxu1 %v1160_v14  ;;  %v896_v61 = vcvt.s32.f32 %v504_v43  ;;  %v564_v14 = vunpack.c.3.s8 %v6896_v18  ;;  %v496_v43 = vunpack.c.3.s8 %v6897_v28  ;;  %v13619_v28 = vld [vmem:[#allocation15_spill] sm:$0xff] }
 0x31c   :  { %2360 = vmatmul.bf16.gmra.mxu1 %v13615_v38  ;;  %v960_v46 = vcvt.s32.f32 %v568_v22  ;;  %v2215_v63 = vadd.f32 %v2214_v33, %v2166_v6  ;;  %v9776_v11 = vadd.f32 %v9583_v55, %v2718_v24  ;;  %v900_v38 = vcvt.s32.f32 %v508_v7 }
 0x31d   :  { %2507 = vmatmul.bf16.gmra.mxu0 %v13556_v49  ;;  %v2263_v45 = vpop.f32.mrf.mxu3  ;;  %v6895_v49 = vld [vmem:[%s13011_s1 + $0x280] sm:$0xff]  ;;  %v956_v1 = vcvt.s32.f32 %v564_v14  ;;  %v888_v7 = vcvt.s32.f32 %v496_v43 }
 0x31e   :  { %v1188_v19 = vpack.c.bf16 %v964_v42, %v960_v46  ;;  %v2264_v50 = vadd.f32 %v2263_v45, %v2215_v63  ;;  %v2856_v22 = vmax.f32 %v9776_v11, 0.0  ;;  %v1156_v56 = vpack.c.bf16 %v900_v38, %v896_v61  ;;  %v13618_v14 = vld [vmem:[#allocation14_spill] sm:$0xff] }
 0x31f   :  { %v560_v6 = vunpack.c.3.s8 %v6895_v49 }
 0x320   :  { %v2167_v59 = vpop.f32.mrf.mxu1  ;;  %2578 = vmatpush.bf16.msrb.mxu2 %v1188_v19  ;;  %v2313_v37 = vadd.f32 %v2312_v30, %v2264_v50  ;;  %2529 = vmatpush.bf16.msrb.mxu1 %v1156_v56  ;;  %v6898_v30 = vld [vmem:[%s13011_s1 + $0x208] sm:$0xff] }
 0x321   :  { %v2168_v53 = vadd.f32 %v2167_v59, %v9453_v20  ;;  %v2932_v20 = vadd.f32 %v2931_v40, %v2856_v22  ;;  %v2314_v24 = vpop.f32.mrf.mxu0  ;;  %v500_v33 = vunpack.c.3.s8 %v6898_v30  ;;  %v952_v42 = vcvt.s32.f32 %v560_v6  ;;  %v13620_v30 = vld [vmem:[#allocation16_spill] sm:$0xff] }
 0x322   :  { %v2722_v46 = vmul.f32 %v9515_v25, %v2313_v37 }
 0x323   :  { %v2216_v63 = vpop.f32.mrf.mxu2  ;;  %v892_v61 = vcvt.s32.f32 %v500_v33  ;;  %v1184_v38 = vpack.c.bf16 %v956_v1, %v952_v42 }
 0x324   :  { %v9796_v45 = vadd.f32 %v9583_v55, %v2722_v46  ;;  %v2217_v19 = vadd.f32 %v2216_v63, %v2168_v53 }
 0x325   :  { %v2265_v40 = vpop.f32.mrf.mxu3  ;;  %v1152_v50 = vpack.c.bf16 %v892_v61, %v888_v7  ;;  %2579 = vmatpush.bf16.msrb.mxu2 %v1184_v38 }
 0x326   :  { %v2860_v59 = vmax.f32 %v9796_v45, 0.0  ;;  %v2266_v56 = vadd.f32 %v2265_v40, %v2217_v19 }
 0x327   :  { %2530 = vmatpush.bf16.msrb.mxu1 %v1152_v50 }
 0x328   :  { %v2170_v49 = vpop.f32.mrf.mxu1  ;;  %v2933_v37 = vadd.f32 %v2932_v20, %v2860_v59  ;;  %v2315_v6 = vadd.f32 %v2314_v24, %v2266_v56  ;;  %2414 = vmatmul.bf16.gmra.mxu2 %v13619_v28  ;;  %v13621_v28 = vld [vmem:[#allocation24_spill] sm:$0xff] }
 0x329   :  { %v2171_v18 = vadd.f32 %v2170_v49, %v9472_v34  ;;  %v2317_v53 = vpop.f32.mrf.mxu0 }
 0x32a   :  { %v2726_v43 = vmul.f32 %v9515_v25, %v2315_v6  ;;  %2463 = vmatmul.bf16.gmra.mxu3 %v13620_v30 }
 0x32b   :  { %v2219_v33 = vpop.f32.mrf.mxu2 }
 0x32c   :  { %2365 = vmatmul.bf16.gmra.mxu1 %v13618_v14  ;;  %v9807_v46 = vadd.f32 %v9583_v55, %v2726_v43  ;;  %v2220_v42 = vadd.f32 %v2219_v33, %v2171_v18  ;;  %v13623_v33 = vld [vmem:[#allocation21_spill] sm:$0xff] }
 0x32d   :  { %2512 = vmatmul.bf16.gmra.mxu0 %v13559_v4  ;;  %v2268_v34 = vpop.f32.mrf.mxu3 }
 0x32e   :  { %v2864_v20 = vmax.f32 %v9807_v46, 0.0  ;;  %v2269_v24 = vadd.f32 %v2268_v34, %v2220_v42 }
 0x330   :  { %v2172_v1 = vpop.f32.mrf.mxu1  ;;  %v2934_v63 = vadd.f32 %v2933_v37, %v2864_v20  ;;  %v2318_v61 = vadd.f32 %v2317_v53, %v2269_v24  ;;  %v13622_v53 = vld [vmem:[#allocation20_spill] sm:$0xff] }
 0x331   :  { %v2173_v7 = vadd.f32 %v2172_v1, %v9486_v54  ;;  %v2319_v19 = vpop.f32.mrf.mxu0 }
 0x332   :  { %v2730_v38 = vmul.f32 %v9515_v25, %v2318_v61 }
 0x333   :  { %v2221_v40 = vpop.f32.mrf.mxu2 }
 0x334   :  { %v9816_v50 = vadd.f32 %v9583_v55, %v2730_v38  ;;  %v2222_v56 = vadd.f32 %v2221_v40, %v2173_v7 }
 0x335   :  { %v2270_v4 = vpop.f32.mrf.mxu3 }
 0x336   :  { %v2868_v49 = vmax.f32 %v9816_v50, 0.0  ;;  %v2271_v18 = vadd.f32 %v2270_v4, %v2222_v56  ;;  %v13641_v50 = vld [vmem:[#allocation46_spill] sm:$0xff] }
 0x338   :  { %v2175_v6 = vpop.f32.mrf.mxu1  ;;  %v2935_v54 = vadd.f32 %v2934_v63, %v2868_v49  ;;  %v2320_v37 = vadd.f32 %v2319_v19, %v2271_v18  ;;  %2419 = vmatmul.bf16.gmra.mxu2 %v13622_v53 }
 0x339   :  { %v2176_v14 = vadd.f32 %v2175_v6, %v9501_v23  ;;  %v2322_v43 = vpop.f32.mrf.mxu0 }
 0x33a   :  { %v2734_v30 = vmul.f32 %v9515_v25, %v2320_v37  ;;  %2468 = vmatmul.bf16.gmra.mxu3 %v13623_v33  ;;  %v13624_v33 = vld [vmem:[#allocation29_spill] sm:$0xff] }
 0x33b   :  { %v2224_v42 = vpop.f32.mrf.mxu2 }
 0x33c   :  { %2370 = vmatmul.bf16.gmra.mxu1 %v13621_v28  ;;  %v9827_v34 = vadd.f32 %v9583_v55, %v2734_v30  ;;  %v2225_v24 = vadd.f32 %v2224_v42, %v2176_v14 }
 0x33d   :  { %2517 = vmatmul.bf16.gmra.mxu0 %v13562_v47  ;;  %v2273_v23 = vpop.f32.mrf.mxu3 }
 0x33e   :  { %v2872_v1 = vmax.f32 %v9827_v34, 0.0  ;;  %v2274_v7 = vadd.f32 %v2273_v23, %v2225_v24  ;;  %v13642_v34 = vld [vmem:[#allocation47_spill] sm:$0xff] }
 0x340   :  { %v2177_v63 = vpop.f32.mrf.mxu1  ;;  %v2936_v19 = vadd.f32 %v2935_v54, %v2872_v1  ;;  %v2323_v38 = vadd.f32 %v2322_v43, %v2274_v7  ;;  %v13626_v43 = vld [vmem:[#allocation43_spill] sm:$0xff] }
 0x341   :  { %v2178_v61 = vadd.f32 %v2177_v63, %v9506_v48  ;;  %v2324_v40 = vpop.f32.mrf.mxu0  ;;  %v13625_v48 = vld [vmem:[#allocation42_spill] sm:$0xff] }
 0x342   :  { %v2738_v56 = vmul.f32 %v9515_v25, %v2323_v38 }
 0x343   :  { %v2226_v4 = vpop.f32.mrf.mxu2 }
 0x344   :  { %v2812_v18 = vadd.f32 %v9583_v55, %v2738_v56  ;;  %v2227_v6 = vadd.f32 %v2226_v4, %v2178_v61 }
 0x345   :  { %v2275_v14 = vpop.f32.mrf.mxu3 }
 0x346   :  { %v2876_v47 = vmax.f32 %v2812_v18, 0.0  ;;  %v2276_v37 = vadd.f32 %v2275_v14, %v2227_v6 }
 0x348   :  { %v2336_v28 = vpop.f32.mrf.mxu1  ;;  %v2937_v53 = vadd.f32 %v2936_v19, %v2876_v47  ;;  %v2325_v30 = vadd.f32 %v2324_v40, %v2276_v37  ;;  %2580 = vmatmul.bf16.vlgmr.msrb.gmra.mxu2 %v13625_v48 }
 0x349   :  { %v2483_v42 = vpop.f32.mrf.mxu0 }
 0x34a   :  { %v2742_v54 = vmul.f32 %v9515_v25, %v2325_v30  ;;  %6607 = vmatmul.msk.bf16.vlgmr.msrb.gmra.mxu3 %vm1273_vm0, %v13626_v43 }
 0x34b   :  { %v2385_v24 = vpop.f32.mrf.mxu2 }
 0x34c   :  { %2531 = vmatmul.bf16.vlgmr.msrb.gmra.mxu1 %v13624_v33  ;;  %v2816_v23 = vadd.f32 %v9583_v55, %v2742_v54  ;;  %v2386_v7 = vadd.f32 %v2385_v24, %v2336_v28  ;;  %v13627_v28 = vld [vmem:[#allocation33_spill] sm:$0xff]  ;;  %v13628_v54 = vld [vmem:[#allocation44_spill] sm:$0xff] }
 0x34d   :  { %v2434_v63 = vpop.f32.mrf.mxu3 }
 0x34e   :  { %v2880_v61 = vmax.f32 %v2816_v23, 0.0  ;;  %v2435_v38 = vadd.f32 %v2434_v63, %v2386_v7 }
 0x350   :  { %v2338_v56 = vpop.f32.mrf.mxu1  ;;  %v2938_v19 = vadd.f32 %v2937_v53, %v2880_v61  ;;  %v9842_v40 = vadd.f32 %v2483_v42, %v2435_v38  ;;  %v13629_v42 = vld [vmem:[#allocation45_spill] sm:$0xff] }
 0x351   :  { %v9844_v4 = vpop.f32.mrf.mxu0 }
 0x352   :  { %v2939_v18 = vrot.slane %v2938_v19, 4 }
 0x353   :  { %v2387_v6 = vpop.f32.mrf.mxu2 }
 0x354   :  { %v2940_v14 = vadd.f32 %v2939_v18, %v2938_v19  ;;  %v2388_v25 = vadd.f32 %v2387_v6, %v2338_v56  ;;  %v13630_v18 = vmax.f32 %v9588_v36, 0.0  ;;  %v13635_v36 = vmax.f32 %v9633_v0, 0.0 }
 0x355   :  { %v2436_v37 = vpop.f32.mrf.mxu3 }
 0x356   :  { %v2941_v30 = vrot.slane %v2940_v14, 2  ;;  %v9846_v33 = vadd.f32 %v2436_v37, %v2388_v25  ;;  %v13632_v37 = vmax.f32 %v9604_v31, 0.0 }
 0x358   :  { %v2942_v55 = vadd.f32 %v2941_v30, %v2940_v14  ;;  %2585 = vmatmul.bf16.gmra.mxu2 %v13628_v54  ;;  %v13631_v14 = vmax.f32 %v9592_v29, 0.0 }
 0x359   :  { %v2341_v48 = vpop.f32.mrf.mxu1 }
 0x35a   :  { %v2488_v43 = vpop.f32.mrf.mxu0  ;;  %v2943_v53 = vrot.slane %v2942_v55, 1  ;;  %6608 = vmatmul.msk.bf16.gmra.mxu3 %vm1273_vm0, %v13629_v42 }
 0x35b   :  { %v2390_v24 = vpop.f32.mrf.mxu2 }
 0x35c   :  { %2536 = vmatmul.bf16.gmra.mxu1 %v13627_v28  ;;  %v2944_v23 = vadd.f32 %v2943_v53, %v2942_v55  ;;  %v2391_v7 = vadd.f32 %v2390_v24, %v2341_v48  ;;  %v13633_v55 = vmax.f32 %v9611_v3, 0.0  ;;  %v13634_v28 = vmax.f32 %v9622_v52, 0.0 }
 0x35d   :  { %v2439_v63 = vpop.f32.mrf.mxu3 }
 0x35e   :  { %v2975_v38 = vmul.f32 %v13568_v5, %v2944_v23  ;;  %v2440_v56 = vadd.f32 %v2439_v63, %v2391_v7 }
 0x360   :  { %v9855_v6 = vsub.f32 %v13630_v18, %v2975_v38  ;;  %v9859_v25 = vsub.f32 %v13631_v14, %v2975_v38  ;;  %v9863_v30 = vsub.f32 %v13632_v37, %v2975_v38  ;;  %v9867_v48 = vsub.f32 %v13633_v55, %v2975_v38  ;;  %v13643_v18 = vld [vmem:[#allocation37_spill] sm:$0xff]  ;;  %v13644_v14 = vld [vmem:[#allocation50_spill] sm:$0xff]  ;;  %v13645_v37 = vld [vmem:[#allocation51_spill] sm:$0xff] }
 0x361   :  { %v2343_v19 = vpop.f32.mrf.mxu1  ;;  %v9871_v54 = vsub.f32 %v13634_v28, %v2975_v38  ;;  %v9875_v53 = vsub.f32 %v13635_v36, %v2975_v38  ;;  %v9879_v29 = vsub.f32 %v2844_v21, %v2975_v38  ;;  %v9883_v31 = vsub.f32 %v2848_v26, %v2975_v38 }
 0x362   :  { %v9887_v3 = vsub.f32 %v2852_v10, %v2975_v38  ;;  %v9891_v52 = vsub.f32 %v2856_v22, %v2975_v38  ;;  %v9895_v0 = vsub.f32 %v2860_v59, %v2975_v38  ;;  %v9899_v2 = vsub.f32 %v2864_v20, %v2975_v38  ;;  %v9913_v11 = vpop.f32.mrf.mxu0  ;;  %v13640_v20 = vld [vmem:[#allocation35_spill] sm:$0xff] }
 0x363   :  { %v9903_v21 = vsub.f32 %v2868_v49, %v2975_v38  ;;  %v9907_v51 = vsub.f32 %v2872_v1, %v2975_v38  ;;  %v9909_v26 = vsub.f32 %v2876_v47, %v2975_v38  ;;  %v9911_v62 = vsub.f32 %v2880_v61, %v2975_v38  ;;  %v2392_v10 = vpop.f32.mrf.mxu2 }
 0x364   :  { %v9915_v59 = vadd.f32 %v2488_v43, %v2440_v56  ;;  %v2393_v46 = vadd.f32 %v2392_v10, %v2343_v19 }
 0x365   :  { %13636 = vst [vmem:[#allocation61_spill] sm:$0xff] %v9903_v21  ;;  %v2441_v22 = vpop.f32.mrf.mxu3 }
 0x366   :  { %13637 = vst [vmem:[#allocation30_spill] sm:$0xff] %v9907_v51  ;;  %v9919_v49 = vadd.f32 %v2441_v22, %v2393_v46 }
 0x367   :  { %13638 = vst [vmem:[#allocation25_spill] sm:$0xff] %v9909_v26 }
 0x368   :  { %13639 = vst [vmem:[#allocation31_spill] sm:$0xff] %v9911_v62  ;;  %2590 = vmatmul.bf16.gmra.mxu2 %v13641_v50 }
 0x369   :  { %v2346_v45 = vpop.f32.mrf.mxu1 }
 0x36a   :  { %6609 = vmatmul.msk.bf16.gmra.mxu3 %vm1273_vm0, %v13642_v34  ;;  %v2493_v42 = vpop.f32.mrf.mxu0 }
 0x36b   :  { %v2395_v1 = vpop.f32.mrf.mxu2 }
 0x36c   :  { %2541 = vmatmul.bf16.gmra.mxu1 %v13640_v20  ;;  %v2396_v47 = vadd.f32 %v2395_v1, %v2346_v45  ;;  %v13646_v1 = vld [vmem:[#allocation39_spill] sm:$0xff] }
 0x36d   :  { %v2444_v61 = vpop.f32.mrf.mxu3 }
 0x36e   :  { %v2445_v24 = vadd.f32 %v2444_v61, %v2396_v47  ;;  %v13647_v47 = vld [vmem:[#allocation54_spill] sm:$0xff]  ;;  %v13648_v61 = vld [vmem:[#allocation55_spill] sm:$0xff] }
 0x370   :  { %v9923_v7 = vadd.f32 %v2493_v42, %v2445_v24 }
 0x371   :  { %v2348_v23 = vpop.f32.mrf.mxu1 }
 0x373   :  { %v2397_v43 = vpop.f32.mrf.mxu2 }
 0x374   :  { %v2398_v63 = vadd.f32 %v2397_v43, %v2348_v23 }
 0x375   :  { %v2446_v38 = vpop.f32.mrf.mxu3 }
 0x376   :  { %v9925_v56 = vadd.f32 %v2446_v38, %v2398_v63 }
 0x378   :  { %2595 = vmatmul.bf16.gmra.mxu2 %v13644_v14  ;;  %v13649_v14 = vld [vmem:[#allocation58_spill] sm:$0xff] }
 0x379   :  { %v2351_v19 = vpop.f32.mrf.mxu1 }
 0x37a   :  { %6610 = vmatmul.msk.bf16.gmra.mxu3 %vm1273_vm0, %v13645_v37  ;;  %v13650_v37 = vld [vmem:[#allocation59_spill] sm:$0xff] }
 0x37b   :  { %v2400_v55 = vpop.f32.mrf.mxu2 }
 0x37c   :  { %2546 = vmatmul.bf16.gmra.mxu1 %v13643_v18  ;;  %v2401_v28 = vadd.f32 %v2400_v55, %v2351_v19 }
 0x37d   :  { %v2449_v36 = vpop.f32.mrf.mxu3 }
 0x37e   :  { %v9931_v10 = vadd.f32 %v2449_v36, %v2401_v28 }
 0x381   :  { %v2353_v22 = vpop.f32.mrf.mxu1 }
 0x383   :  { %v2402_v45 = vpop.f32.mrf.mxu2 }
 0x384   :  { %v2403_v46 = vadd.f32 %v2402_v45, %v2353_v22 }
 0x385   :  { %v2451_v20 = vpop.f32.mrf.mxu3 }
 0x386   :  { %v9933_v50 = vadd.f32 %v2451_v20, %v2403_v46 }
 0x388   :  { %2600 = vmatmul.bf16.gmra.mxu2 %v13647_v47 }
 0x389   :  { %v2356_v34 = vpop.f32.mrf.mxu1 }
 0x38a   :  { %6611 = vmatmul.msk.bf16.gmra.mxu3 %vm1273_vm0, %v13648_v61 }
 0x38b   :  { %v2405_v42 = vpop.f32.mrf.mxu2 }
 0x38c   :  { %2551 = vmatmul.bf16.gmra.mxu1 %v13646_v1  ;;  %v2406_v24 = vadd.f32 %v2405_v42, %v2356_v34 }
 0x38d   :  { %v2454_v23 = vpop.f32.mrf.mxu3 }
 0x38e   :  { %v9941_v63 = vadd.f32 %v2454_v23, %v2406_v24 }
 0x391   :  { %v9939_v43 = vpop.f32.mrf.mxu1 }
 0x393   :  { %v9943_v38 = vpop.f32.mrf.mxu2 }
 0x395   :  { %v9945_v19 = vpop.f32.mrf.mxu3 }
 0x398   :  { %2605 = vmatmul.bf16.gmra.mxu2 %v13649_v14 }
 0x399   :  { %v2361_v18 = vpop.f32.mrf.mxu1 }
 0x39a   :  { %6612 = vmatmul.msk.bf16.gmra.mxu3 %vm1273_vm0, %v13650_v37 }
 0x39b   :  { %v2410_v55 = vpop.f32.mrf.mxu2 }
 0x39c   :  { %2556 = vmatmul.bf16.gmra.mxu1 %v13555_v27  ;;  %v2411_v28 = vadd.f32 %v2410_v55, %v2361_v18 }
 0x39d   :  { %v2459_v36 = vpop.f32.mrf.mxu3 }
 0x39e   :  { %v9953_v45 = vadd.f32 %v2459_v36, %v2411_v28 }
 0x3a1   :  { %v9951_v22 = vpop.f32.mrf.mxu1 }
 0x3a3   :  { %v9955_v46 = vpop.f32.mrf.mxu2 }
 0x3a5   :  { %v9957_v20 = vpop.f32.mrf.mxu3 }
 0x3a8   :  { %2610 = vmatmul.bf16.gmra.mxu2 %v13560_v60 }
 0x3a9   :  { %v2366_v34 = vpop.f32.mrf.mxu1 }
 0x3aa   :  { %6613 = vmatmul.msk.bf16.gmra.mxu3 %vm1273_vm0, %v13524_v58 }
 0x3ab   :  { %v2415_v27 = vpop.f32.mrf.mxu2 }
 0x3ac   :  { %2561 = vmatmul.bf16.gmra.mxu1 %v13558_v41  ;;  %v2416_v1 = vadd.f32 %v2415_v27, %v2366_v34 }
 0x3ad   :  { %v2464_v47 = vpop.f32.mrf.mxu3 }
 0x3ae   :  { %v9965_v42 = vadd.f32 %v2464_v47, %v2416_v1 }
 0x3b1   :  { %v9963_v61 = vpop.f32.mrf.mxu1 }
 0x3b3   :  { %v9967_v24 = vpop.f32.mrf.mxu2 }
 0x3b5   :  { %v9969_v23 = vpop.f32.mrf.mxu3 }
 0x3b8   :  { %2615 = vmatmul.bf16.gmra.mxu2 %v13563_v12 }
 0x3b9   :  { %v2371_v18 = vpop.f32.mrf.mxu1 }
 0x3ba   :  { %6614 = vmatmul.msk.bf16.gmra.mxu3 %vm1273_vm0, %v13529_v15  ;;  %v2486_v15 = vadd.f32 %v9844_v4, %v9846_v33 }
 0x3bb   :  { %v2420_v58 = vpop.f32.mrf.mxu2 }
 0x3bc   :  { %2566 = vmatmul.bf16.gmra.mxu1 %v13561_v17  ;;  %v2421_v41 = vadd.f32 %v2420_v58, %v2371_v18  ;;  %v6899_v18 = vld [vmem:[%s13013_s6 + $0xc] sm:$0xf] }
 0x3bd   :  { %v2469_v60 = vpop.f32.mrf.mxu3  ;;  %v9989_v58 = vperm.slane %v6899_v18, 3 }
 0x3be   :  { %v9977_v37 = vadd.f32 %v2469_v60, %v2421_v41 }
 0x3c1   :  { %v9975_v14 = vpop.f32.mrf.mxu1 }
 0x3c3   :  { %v9979_v55 = vpop.f32.mrf.mxu2 }
 0x3c4   :  { %13651 = vst [vmem:[#allocation32_spill] sm:$0xff] %v9979_v55 }
 0x3c5   :  { %v9981_v28 = vpop.f32.mrf.mxu3 }
 0x3c6   :  { %13652 = vst [vmem:[#allocation64_spill] sm:$0xff] %v9981_v28 }
 0x3c9   :  { %v2532_v36 = vpop.f32.mrf.mxu1 }
 0x3ca   :  { %v2533_v34 = vadd.f32 %v2532_v36, %v9842_v40  ;;  %v6900_v40 = vld [vmem:[%s13013_s6] sm:$0xf] }
 0x3cb   :  { %v2581_v17 = vpop.f32.mrf.mxu2  ;;  %v9995_v36 = vperm.slane %v6900_v40, 3 }
 0x3cc   :  { %v2582_v27 = vadd.f32 %v2581_v17, %v2533_v34 }
 0x3cd   :  { %v2630_v12 = vpop.f32.mrf.mxu3 }
 0x3ce   :  { %v2631_v47 = vadd.f32 %v2630_v12, %v2582_v27 }
 0x3d0   :  { %v2683_v5 = vmul.f32 %v9989_v58, %v2631_v47 }
 0x3d1   :  { %v2534_v1 = vpop.f32.mrf.mxu1 }
 0x3d2   :  { %v2535_v41 = vadd.f32 %v2534_v1, %v2486_v15  ;;  %v9999_v12 = vadd.f32 %v9995_v36, %v2683_v5  ;;  %v2495_v15 = vpop.f32.mrf.mxu0 }
 0x3d3   :  { %v2583_v60 = vpop.f32.mrf.mxu2 }
 0x3d4   :  { %v2584_v34 = vadd.f32 %v2583_v60, %v2535_v41  ;;  %13653 = vst [vmem:[#allocation65_spill] sm:$0xff] %v9999_v12  ;;  %v13230_v62 = vmax.f32 %v9999_v12, 0.0 }
 0x3d5   :  { %v2632_v17 = vpop.f32.mrf.mxu3 }
 0x3d6   :  { %v2633_v4 = vadd.f32 %v2632_v17, %v2584_v34  ;;  %v2491_v34 = vadd.f32 %v9913_v11, %v9919_v49 }
 0x3d8   :  { %v2687_v1 = vmul.f32 %v9989_v58, %v2633_v4 }
 0x3d9   :  { %v2537_v27 = vpop.f32.mrf.mxu1 }
 0x3da   :  { %v2538_v33 = vadd.f32 %v2537_v27, %v9915_v59  ;;  %v10003_v47 = vadd.f32 %v9995_v36, %v2687_v1  ;;  %v2498_v1 = vpop.f32.mrf.mxu0 }
 0x3db   :  { %v2586_v18 = vpop.f32.mrf.mxu2 }
 0x3dc   :  { %v13229_v40 = vmax.f32 %v10003_v47, 0.0  ;;  %v2587_v41 = vadd.f32 %v2586_v18, %v2538_v33 }
 0x3dd   :  { %v2635_v60 = vpop.f32.mrf.mxu3 }
 0x3de   :  { %v2945_v5 = vadd.f32 %v13229_v40, %v13230_v62  ;;  %v2636_v59 = vadd.f32 %v2635_v60, %v2587_v41 }
 0x3e0   :  { %v2691_v17 = vmul.f32 %v9989_v58, %v2636_v59 }
 0x3e1   :  { %v2539_v28 = vpop.f32.mrf.mxu1 }
 0x3e2   :  { %v10015_v27 = vadd.f32 %v9995_v36, %v2691_v17  ;;  %v2540_v4 = vadd.f32 %v2539_v28, %v2491_v34  ;;  %v2500_v62 = vpop.f32.mrf.mxu0 }
 0x3e3   :  { %v2588_v26 = vpop.f32.mrf.mxu2 }
 0x3e4   :  { %13654 = vst [vmem:[#allocation63_spill] sm:$0xff] %v10015_v27  ;;  %v13232_v33 = vmax.f32 %v10015_v27, 0.0  ;;  %v2589_v18 = vadd.f32 %v2588_v26, %v2540_v4 }
 0x3e5   :  { %v2637_v55 = vpop.f32.mrf.mxu3 }
 0x3e6   :  { %v2946_v40 = vadd.f32 %v2945_v5, %v13232_v33  ;;  %v2638_v41 = vadd.f32 %v2637_v55, %v2589_v18  ;;  %v2496_v55 = vadd.f32 %v2495_v15, %v9925_v56  ;;  %v13657_v18 = vld [vmem:[#allocation52_spill] sm:$0xff] }
 0x3e8   :  { %v2695_v11 = vmul.f32 %v9989_v58, %v2638_v41  ;;  %v3045_v41 = vmul.f32 %v13657_v18, %v13657_v18  ;;  %v2499_v18 = vadd.f32 %v2498_v1, %v9931_v10 }
 0x3e9   :  { %v2542_v12 = vpop.f32.mrf.mxu1 }
 0x3ea   :  { %v2543_v60 = vadd.f32 %v2542_v12, %v9923_v7  ;;  %v10023_v49 = vadd.f32 %v9995_v36, %v2695_v11  ;;  %v13656_v12 = vld [vmem:[#allocation49_spill] sm:$0xff] }
 0x3eb   :  { %v2591_v59 = vpop.f32.mrf.mxu2  ;;  %v3041_v5 = vmul.f32 %v13656_v12, %v13656_v12  ;;  %v2503_v12 = vpop.f32.mrf.mxu0 }
 0x3ec   :  { %13655 = vst [vmem:[#allocation66_spill] sm:$0xff] %v10023_v49  ;;  %v13234_v28 = vmax.f32 %v10023_v49, 0.0  ;;  %v2592_v34 = vadd.f32 %v2591_v59, %v2543_v60 }
 0x3ed   :  { %v2640_v17 = vpop.f32.mrf.mxu3 }
 0x3ee   :  { %v2947_v4 = vadd.f32 %v2946_v40, %v13234_v28  ;;  %v2641_v27 = vadd.f32 %v2640_v17, %v2592_v34  ;;  %v3105_v34 = vadd.f32 %v3045_v41, %v3041_v5  ;;  %v3046_v5 = vmul.f32 %v9523_v16, %v9523_v16  ;;  %v13660_v16 = vld [vmem:[#allocation57_spill] sm:$0xff] }
 0x3f0   :  { %v2699_v7 = vmul.f32 %v9989_v58, %v2641_v27  ;;  %v13658_v27 = vld [vmem:[#allocation53_spill] sm:$0xff] }
 0x3f1   :  { %v2544_v26 = vpop.f32.mrf.mxu1  ;;  %v3049_v28 = vmul.f32 %v13658_v27, %v13658_v27 }
 0x3f2   :  { %v10035_v11 = vadd.f32 %v9995_v36, %v2699_v7  ;;  %v2545_v60 = vadd.f32 %v2544_v26, %v2496_v55  ;;  %v3042_v55 = vmul.f32 %v9519_v32, %v9519_v32 }
 0x3f3   :  { %v2593_v59 = vpop.f32.mrf.mxu2  ;;  %v3106_v26 = vadd.f32 %v3105_v34, %v3049_v28 }
 0x3f4   :  { %v13235_v33 = vmax.f32 %v10035_v11, 0.0  ;;  %v2594_v49 = vadd.f32 %v2593_v59, %v2545_v60  ;;  %v3126_v34 = vadd.f32 %v3046_v5, %v3042_v55  ;;  %v13661_v5 = vld [vmem:[#allocation68_spill] sm:$0xff] }
 0x3f5   :  { %v2642_v40 = vpop.f32.mrf.mxu3 }
 0x3f6   :  { %v2948_v56 = vadd.f32 %v2947_v4, %v13235_v33  ;;  %v2643_v15 = vadd.f32 %v2642_v40, %v2594_v49  ;;  %v13659_v49 = vld [vmem:[#allocation56_spill] sm:$0xff] }
 0x3f7   :  { %v3053_v60 = vmul.f32 %v13659_v49, %v13659_v49 }
 0x3f8   :  { %v2703_v7 = vmul.f32 %v9989_v58, %v2643_v15 }
 0x3f9   :  { %v2547_v17 = vpop.f32.mrf.mxu1  ;;  %v3107_v15 = vadd.f32 %v3106_v26, %v3053_v60  ;;  %v3054_v60 = vmul.f32 %v9531_v13, %v9531_v13  ;;  %v2504_v13 = vadd.f32 %v2503_v12, %v9941_v63  ;;  %v3062_v63 = vmul.f32 %v9539_v9, %v9539_v9 }
 0x3fa   :  { %v10049_v41 = vadd.f32 %v9995_v36, %v2703_v7  ;;  %v2548_v4 = vadd.f32 %v2547_v17, %v2499_v18  ;;  %v3057_v7 = vmul.f32 %v13660_v16, %v13660_v16  ;;  %v3050_v18 = vmul.f32 %v9527_v44, %v9527_v44 }
 0x3fb   :  { %v2596_v59 = vpop.f32.mrf.mxu2  ;;  %v2501_v17 = vadd.f32 %v2500_v62, %v9933_v50  ;;  %v3047_v62 = vmul.f32 %v9859_v25, %v9859_v25 }
 0x3fc   :  { %v13238_v40 = vmax.f32 %v10049_v41, 0.0  ;;  %v2597_v10 = vadd.f32 %v2596_v59, %v2548_v4  ;;  %v3108_v32 = vadd.f32 %v3107_v15, %v3057_v7  ;;  %v2505_v4 = vpop.f32.mrf.mxu0  ;;  %v3127_v59 = vadd.f32 %v3126_v34, %v3050_v18 }
 0x3fd   :  { %v2645_v1 = vpop.f32.mrf.mxu3 }
 0x3fe   :  { %v2949_v33 = vadd.f32 %v2948_v56, %v13238_v40  ;;  %v2646_v27 = vadd.f32 %v2645_v1, %v2597_v10  ;;  %v3061_v56 = vmul.f32 %v13661_v5, %v13661_v5  ;;  %v3043_v1 = vmul.f32 %v9855_v6, %v9855_v6 }
 0x3ff   :  { %v3058_v5 = vmul.f32 %v9535_v57, %v9535_v57 }
 0x400   :  { %v2707_v49 = vmul.f32 %v9989_v58, %v2646_v27  ;;  %v3147_v16 = vadd.f32 %v3047_v62, %v3043_v1 }
 0x401   :  { %v2549_v28 = vpop.f32.mrf.mxu1 }
 0x402   :  { %v10063_v26 = vadd.f32 %v9995_v36, %v2707_v49  ;;  %v2550_v55 = vadd.f32 %v2549_v28, %v2501_v17  ;;  %v3109_v49 = vadd.f32 %v3108_v32, %v3061_v56  ;;  %v3128_v28 = vadd.f32 %v3127_v59, %v3054_v60  ;;  %v13662_v17 = vld [vmem:[#allocation69_spill] sm:$0xff] }
 0x403   :  { %v2598_v10 = vpop.f32.mrf.mxu2  ;;  %v3065_v40 = vmul.f32 %v13662_v17, %v13662_v17 }
 0x404   :  { %v13240_v50 = vmax.f32 %v10063_v26, 0.0  ;;  %v2599_v27 = vadd.f32 %v2598_v10, %v2550_v55  ;;  %v2408_v55 = vadd.f32 %v9943_v38, %v9939_v43  ;;  %v3129_v59 = vadd.f32 %v3128_v28, %v3058_v5  ;;  %v2508_v12 = vpop.f32.mrf.mxu0 }
 0x405   :  { %v2647_v15 = vpop.f32.mrf.mxu3  ;;  %v3110_v56 = vadd.f32 %v3109_v49, %v3065_v40 }
 0x406   :  { %v2950_v7 = vadd.f32 %v2949_v33, %v13240_v50  ;;  %v2648_v18 = vadd.f32 %v2647_v15, %v2599_v27  ;;  %v3051_v33 = vmul.f32 %v9863_v30, %v9863_v30  ;;  %v13663_v27 = vld [vmem:[#allocation70_spill] sm:$0xff]  ;;  %v2457_v38 = vadd.f32 %v9945_v19, %v2408_v55  ;;  %v13664_v50 = vld [vmem:[#allocation71_spill] sm:$0xff] }
 0x407   :  { %v3069_v15 = vmul.f32 %v13663_v27, %v13663_v27  ;;  %v3073_v27 = vmul.f32 %v13664_v50, %v13664_v50  ;;  %v3067_v50 = vmul.f32 %v9879_v29, %v9879_v29 }
 0x408   :  { %v2711_v32 = vmul.f32 %v9989_v58, %v2648_v18  ;;  %v3148_v43 = vadd.f32 %v3147_v16, %v3051_v33  ;;  %v3130_v18 = vadd.f32 %v3129_v59, %v3062_v63  ;;  %v3066_v16 = vmul.f32 %v9543_v8, %v9543_v8  ;;  %v13665_v63 = vld [vmem:[#allocation72_spill] sm:$0xff]  ;;  %v13666_v8 = vld [vmem:[#allocation73_spill] sm:$0xff] }
 0x409   :  { %v2552_v34 = vpop.f32.mrf.mxu1  ;;  %v3111_v49 = vadd.f32 %v3110_v56, %v3069_v15  ;;  %v2506_v55 = vadd.f32 %v2505_v4, %v2457_v38  ;;  %v3059_v59 = vmul.f32 %v9871_v54, %v9871_v54  ;;  %v3081_v17 = vmul.f32 %v13666_v8, %v13666_v8  ;;  %v13669_v8 = vld [vmem:[#allocation74_spill] sm:$0xff] }
 0x40a   :  { %v10087_v60 = vadd.f32 %v9995_v36, %v2711_v32  ;;  %v2553_v10 = vadd.f32 %v2552_v34, %v2504_v13  ;;  %v3055_v13 = vmul.f32 %v9867_v48, %v9867_v48 }
 0x40b   :  { %v2601_v1 = vpop.f32.mrf.mxu2  ;;  %v3112_v56 = vadd.f32 %v3111_v49, %v3073_v27 }
 0x40c   :  { %v13242_v40 = vmax.f32 %v10087_v60, 0.0  ;;  %v2602_v5 = vadd.f32 %v2601_v1, %v2553_v10  ;;  %v3149_v19 = vadd.f32 %v3148_v43, %v3055_v13  ;;  %v3131_v10 = vadd.f32 %v3130_v18, %v3066_v16  ;;  %v2510_v13 = vpop.f32.mrf.mxu0 }
 0x40d   :  { %v2650_v62 = vpop.f32.mrf.mxu3  ;;  %v3077_v1 = vmul.f32 %v13665_v63, %v13665_v63  ;;  %v3074_v18 = vmul.f32 %v9552_v39, %v9552_v39 }
 0x40e   :  { %v2951_v34 = vadd.f32 %v2950_v7, %v13242_v40  ;;  %v2651_v32 = vadd.f32 %v2650_v62, %v2602_v5  ;;  %v3070_v62 = vmul.f32 %v9547_v35, %v9547_v35  ;;  %v3150_v43 = vadd.f32 %v3149_v19, %v3059_v59  ;;  %v10123_v19 = vld [vmem:[%s13014_s2 + $0x108] sm:$0xff] }
 0x40f   :  { %v3113_v49 = vadd.f32 %v3112_v56, %v3077_v1  ;;  %v10128_v56 = vld [vmem:[%s13014_s2 + $0x168] sm:$0xff]  ;;  %v3586_v59 = vunpack.c.2.s8 %v10123_v19 }
 0x410   :  { %v2715_v33 = vmul.f32 %v9989_v58, %v2651_v32  ;;  %v3132_v16 = vadd.f32 %v3131_v10, %v3070_v62  ;;  %v3589_v10 = vunpack.c.3.s8 %v10123_v19  ;;  %v3637_v1 = vunpack.c.3.s8 %v10128_v56 }
 0x411   :  { %v2554_v28 = vpop.f32.mrf.mxu1  ;;  %v2413_v62 = vadd.f32 %v9955_v46, %v9951_v22 }
 0x412   :  { %v10107_v15 = vadd.f32 %v9995_v36, %v2715_v33  ;;  %v2555_v7 = vadd.f32 %v2554_v28, %v2506_v55  ;;  %v3063_v28 = vmul.f32 %v9875_v53, %v9875_v53  ;;  %v3829_v39 = vcvt.s32.f32 %v3637_v1 }
 0x413   :  { %v2603_v5 = vpop.f32.mrf.mxu2  ;;  %v3133_v63 = vadd.f32 %v3132_v16, %v3074_v18 }
 0x414   :  { %v13241_v4 = vmax.f32 %v10107_v15, 0.0  ;;  %v2604_v38 = vadd.f32 %v2603_v5, %v2555_v7  ;;  %v3634_v7 = vunpack.c.2.s8 %v10128_v56  ;;  %v2509_v5 = vadd.f32 %v2508_v12, %v9953_v45 }
 0x415   :  { %v2652_v27 = vpop.f32.mrf.mxu3 }
 0x416   :  { %v2952_v55 = vadd.f32 %v2951_v34, %v13241_v4  ;;  %v2653_v33 = vadd.f32 %v2652_v27, %v2604_v38  ;;  %v3151_v34 = vadd.f32 %v3150_v43, %v3063_v28  ;;  %v3778_v27 = vcvt.s32.f32 %v3586_v59  ;;  %v13667_v43 = vld [vmem:[#allocation41_spill] sm:$0xff] }
 0x417   :  { %v3781_v4 = vcvt.s32.f32 %v3589_v10  ;;  %v3826_v40 = vcvt.s32.f32 %v3634_v7  ;;  %v3078_v45 = vmul.f32 %v13667_v43, %v13667_v43  ;;  %v3114_v10 = vadd.f32 %v3113_v49, %v3081_v17 }
 0x418   :  { %v2719_v38 = vmul.f32 %v9989_v58, %v2653_v33  ;;  %v3152_v46 = vadd.f32 %v3151_v34, %v3067_v50  ;;  %v2462_v33 = vadd.f32 %v9957_v20, %v2413_v62  ;;  %v10155_v20 = vld [vmem:[%s13014_s2 + $0x48] sm:$0xff]  ;;  %v2513_v50 = vpop.f32.mrf.mxu0  ;;  %v3085_v43 = vmul.f32 %v13669_v8, %v13669_v8 }
 0x419   :  { %v2557_v32 = vpop.f32.mrf.mxu1  ;;  %v3901_v28 = vpack.c.bf16 %v3781_v4, %v3778_v27  ;;  %v3925_v22 = vpack.c.bf16 %v3829_v39, %v3826_v40  ;;  %v3071_v4 = vmul.f32 %v9883_v31, %v9883_v31  ;;  %v3490_v17 = vunpack.c.2.s8 %v10155_v20 }
 0x41a   :  { %v2558_v35 = vadd.f32 %v2557_v32, %v2509_v5  ;;  %v10146_v59 = vadd.f32 %v9995_v36, %v2719_v38  ;;  %v13668_v32 = vld [vmem:[#allocation40_spill] sm:$0xff]  ;;  %v3134_v5 = vadd.f32 %v3133_v63, %v3078_v45  ;;  %v3493_v40 = vunpack.c.3.s8 %v10155_v20  ;;  %v13670_v38 = vld [vmem:[#allocation62_spill] sm:$0xff] }
 0x41b   :  { %v2606_v12 = vpop.f32.mrf.mxu2  ;;  %4058 = vmatpush.bf16.msra.mxu2 %v3901_v28  ;;  %4107 = vmatpush.bf16.msra.mxu3 %v3925_v22  ;;  %v3082_v1 = vmul.f32 %v13668_v32, %v13668_v32  ;;  %v3153_v34 = vadd.f32 %v3152_v46, %v3071_v4  ;;  %v2511_v62 = vadd.f32 %v2510_v13, %v2462_v33  ;;  %v3682_v45 = vcvt.s32.f32 %v3490_v17 }
 0x41c   :  { %v2607_v18 = vadd.f32 %v2606_v12, %v2558_v35  ;;  %v10160_v35 = vld [vmem:[%s13014_s2 + $0xa8] sm:$0xff]  ;;  %v3685_v12 = vcvt.s32.f32 %v3493_v40  ;;  %v3075_v46 = vmul.f32 %v9887_v3, %v9887_v3  ;;  %v13671_v17 = vmax.f32 %v10146_v59, 0.0 }
 0x41d   :  { %v2655_v16 = vpop.f32.mrf.mxu3  ;;  %v3538_v63 = vunpack.c.2.s8 %v10160_v35  ;;  %v3541_v49 = vunpack.c.3.s8 %v10160_v35 }
 0x41e   :  { %v2656_v39 = vadd.f32 %v2655_v16, %v2607_v18  ;;  %v3135_v18 = vadd.f32 %v3134_v5, %v3082_v1  ;;  %v3853_v33 = vpack.c.bf16 %v3685_v12, %v3682_v45  ;;  %v2953_v40 = vadd.f32 %v2952_v55, %v13671_v17 }
 0x41f   :  { %v3730_v28 = vcvt.s32.f32 %v3538_v63  ;;  %v3733_v22 = vcvt.s32.f32 %v3541_v49  ;;  %v13672_v49 = vld [vmem:[#allocation26_spill] sm:$0xff]  ;;  %v3079_v55 = vmul.f32 %v9891_v52, %v9891_v52 }
 0x420   :  { %v2723_v27 = vmul.f32 %v9989_v58, %v2656_v39  ;;  %v3086_v39 = vmul.f32 %v13670_v38, %v13670_v38  ;;  %3960 = vmatpush.bf16.msrb.mxu0 %v3853_v33 }
 0x421   :  { %v2559_v7 = vpop.f32.mrf.mxu1  ;;  %v3877_v4 = vpack.c.bf16 %v3733_v22, %v3730_v28  ;;  %v3580_v22 = vunpack.c.0.s8 %v10123_v19 }
 0x422   :  { %v10169_v16 = vadd.f32 %v9995_v36, %v2723_v27  ;;  %v2560_v32 = vadd.f32 %v2559_v7, %v2511_v62  ;;  %v3115_v7 = vadd.f32 %v3114_v10, %v3085_v43  ;;  %v3090_v62 = vmul.f32 %v13672_v49, %v13672_v49 }
 0x423   :  { %v2608_v13 = vpop.f32.mrf.mxu2  ;;  %v3154_v27 = vadd.f32 %v3153_v34, %v3075_v46  ;;  %4009 = vmatpush.bf16.msra.mxu1 %v3877_v4  ;;  %v3136_v45 = vadd.f32 %v3135_v18, %v3086_v39  ;;  %v3628_v43 = vunpack.c.0.s8 %v10128_v56  ;;  %v3631_v10 = vunpack.c.1.s8 %v10128_v56  ;;  %v2515_v4 = vpop.f32.mrf.mxu0 }
 0x424   :  { %v13246_v1 = vmax.f32 %v10169_v16, 0.0  ;;  %v2609_v5 = vadd.f32 %v2608_v13, %v2560_v32  ;;  %v3583_v32 = vunpack.c.1.s8 %v10123_v19  ;;  %v2514_v34 = vadd.f32 %v2513_v50, %v9965_v42  ;;  %v13673_v19 = vld [vmem:[#allocation75_spill] sm:$0xff] }
 0x425   :  { %v2657_v63 = vpop.f32.mrf.mxu3  ;;  %v2418_v18 = vadd.f32 %v9967_v24, %v9963_v61  ;;  %v3772_v13 = vcvt.s32.f32 %v3580_v22  ;;  %v3155_v33 = vadd.f32 %v3154_v27, %v3079_v55  ;;  %v3820_v17 = vcvt.s32.f32 %v3628_v43  ;;  %v13674_v61 = vld [vmem:[#allocation19_spill] sm:$0xff] }
 0x426   :  { %v2954_v12 = vadd.f32 %v2953_v40, %v13246_v1  ;;  %v2658_v28 = vadd.f32 %v2657_v63, %v2609_v5  ;;  %v3775_v39 = vcvt.s32.f32 %v3583_v32  ;;  %v3823_v40 = vcvt.s32.f32 %v3631_v10  ;;  %v13675_v10 = vld [vmem:[#allocation76_spill] sm:$0xff] }
 0x427   :  { %v3137_v5 = vadd.f32 %v3136_v45, %v3090_v62  ;;  %v3089_v1 = vmul.f32 %v13673_v19, %v13673_v19  ;;  %v3083_v56 = vmul.f32 %v9895_v0, %v9895_v0  ;;  %v3094_v24 = vmul.f32 %v13674_v61, %v13674_v61 }
 0x428   :  { %v2727_v46 = vmul.f32 %v9989_v58, %v2658_v28  ;;  %v3898_v50 = vpack.c.bf16 %v3775_v39, %v3772_v13  ;;  %v3922_v49 = vpack.c.bf16 %v3823_v40, %v3820_v17  ;;  %v2467_v27 = vadd.f32 %v9969_v23, %v2418_v18  ;;  %v13676_v39 = vld [vmem:[#allocation27_spill] sm:$0xff] }
 0x429   :  { %v2562_v8 = vpop.f32.mrf.mxu1  ;;  %v3156_v45 = vadd.f32 %v3155_v33, %v3083_v56  ;;  %v3138_v32 = vadd.f32 %v3137_v5, %v3094_v24  ;;  %v3087_v13 = vmul.f32 %v9899_v2, %v9899_v2  ;;  %v3098_v23 = vmul.f32 %v13676_v39, %v13676_v39  ;;  %v13677_v5 = vld [vmem:[#allocation77_spill] sm:$0xff] }
 0x42a   :  { %v2563_v63 = vadd.f32 %v2562_v8, %v2514_v34  ;;  %v10202_v28 = vadd.f32 %v9995_v36, %v2727_v46  ;;  %v3116_v8 = vadd.f32 %v3115_v7, %v3089_v1  ;;  %4059 = vmatpush.bf16.msra.mxu2 %v3898_v50  ;;  %4108 = vmatpush.bf16.msra.mxu3 %v3922_v49 }
 0x42b   :  { %v2611_v42 = vpop.f32.mrf.mxu2  ;;  %v3093_v34 = vmul.f32 %v13675_v10, %v13675_v10  ;;  %v2516_v18 = vadd.f32 %v2515_v4, %v2467_v27  ;;  %v3157_v33 = vadd.f32 %v3156_v45, %v3087_v13  ;;  %v3139_v17 = vadd.f32 %v3138_v32, %v3098_v23  ;;  %v13678_v4 = vld [vmem:[#allocation28_spill] sm:$0xff]  ;;  %v13679_v23 = vld [vmem:[#allocation78_spill] sm:$0xff] }
 0x42c   :  { %v2612_v22 = vadd.f32 %v2611_v42, %v2563_v63  ;;  %v13247_v46 = vmax.f32 %v10202_v28, 0.0  ;;  %v3097_v63 = vmul.f32 %v13677_v5, %v13677_v5  ;;  %v3091_v56 = vmul.f32 %v9903_v21, %v9903_v21  ;;  %v2518_v42 = vpop.f32.mrf.mxu0 }
 0x42d   :  { %v2660_v62 = vpop.f32.mrf.mxu3  ;;  %v3117_v7 = vadd.f32 %v3116_v8, %v3093_v34  ;;  %v3102_v24 = vmul.f32 %v13678_v4, %v13678_v4 }
 0x42e   :  { %v2661_v43 = vadd.f32 %v2660_v62, %v2612_v22  ;;  %v2955_v27 = vadd.f32 %v2954_v12, %v13247_v46  ;;  %v2519_v12 = vadd.f32 %v2518_v42, %v9977_v37  ;;  %v13680_v46 = vld [vmem:[#allocation32_spill] sm:$0xff] }
 0x42f   :  { %v3118_v45 = vadd.f32 %v3117_v7, %v3097_v63 }
 0x430   :  { %v2731_v1 = vmul.f32 %v9989_v58, %v2661_v43  ;;  %v3140_v43 = vadd.f32 %v3139_v17, %v3102_v24 }
 0x431   :  { %v2564_v55 = vpop.f32.mrf.mxu1 }
 0x432   :  { %v10213_v49 = vadd.f32 %v9995_v36, %v2731_v1  ;;  %v2565_v40 = vadd.f32 %v2564_v55, %v2516_v18  ;;  %v3158_v55 = vadd.f32 %v3157_v33, %v3091_v56  ;;  %v3101_v18 = vmul.f32 %v13679_v23, %v13679_v23 }
 0x433   :  { %v2613_v50 = vpop.f32.mrf.mxu2  ;;  %v3095_v1 = vmul.f32 %v9907_v51, %v9907_v51  ;;  %v3141_v17 = vrot.slane %v3140_v43, 4 }
 0x434   :  { %v13248_v22 = vmax.f32 %v10213_v49, 0.0  ;;  %v2614_v62 = vadd.f32 %v2613_v50, %v2565_v40  ;;  %v2423_v40 = vadd.f32 %v13680_v46, %v9975_v14  ;;  %v3119_v33 = vadd.f32 %v3118_v45, %v3101_v18  ;;  %v13681_v50 = vld [vmem:[#allocation25_spill] sm:$0xff]  ;;  %v2520_v14 = vpop.f32.mrf.mxu0  ;;  %v13683_v45 = vld [vmem:[#allocation31_spill] sm:$0xff] }
 0x435   :  { %v2662_v8 = vpop.f32.mrf.mxu3  ;;  %v3159_v63 = vadd.f32 %v3158_v55, %v3095_v1  ;;  %v3099_v24 = vmul.f32 %v13681_v50, %v13681_v50  ;;  %v3142_v46 = vadd.f32 %v3141_v17, %v3140_v43  ;;  %v3103_v55 = vmul.f32 %v13683_v45, %v13683_v45 }
 0x436   :  { %v2956_v34 = vadd.f32 %v2955_v27, %v13248_v22  ;;  %v2663_v13 = vadd.f32 %v2662_v8, %v2614_v62  ;;  %v13682_v62 = vld [vmem:[#allocation64_spill] sm:$0xff]  ;;  %v3120_v42 = vrot.slane %v3119_v33, 4 }
 0x437   :  { %v2472_v8 = vadd.f32 %v13682_v62, %v2423_v40  ;;  %v3160_v39 = vadd.f32 %v3159_v63, %v3099_v24 }
 0x438   :  { %v2735_v7 = vmul.f32 %v9989_v58, %v2663_v13  ;;  %v3121_v40 = vadd.f32 %v3120_v42, %v3119_v33 }
 0x439   :  { %v2567_v32 = vpop.f32.mrf.mxu1  ;;  %v2521_v18 = vadd.f32 %v2520_v14, %v2472_v8  ;;  %v3161_v62 = vadd.f32 %v3160_v39, %v3103_v55 }
 0x43a   :  { %v2568_v56 = vadd.f32 %v2567_v32, %v2519_v12  ;;  %v10238_v22 = vadd.f32 %v9995_v36, %v2735_v7  ;;  %v3143_v7 = vrot.slane %v3142_v46, 2  ;;  %v3122_v17 = vrot.slane %v3121_v40, 2 }
 0x43b   :  { %v2616_v27 = vpop.f32.mrf.mxu2  ;;  %v3162_v24 = vrot.slane %v3161_v62, 4 }
 0x43c   :  { %v2617_v4 = vadd.f32 %v2616_v27, %v2568_v56  ;;  %v13250_v1 = vmax.f32 %v10238_v22, 0.0  ;;  %v3144_v8 = vadd.f32 %v3143_v7, %v3142_v46  ;;  %v3123_v33 = vadd.f32 %v3122_v17, %v3121_v40 }
 0x43d   :  { %v2665_v37 = vpop.f32.mrf.mxu3  ;;  %v3163_v39 = vadd.f32 %v3162_v24, %v3161_v62 }
 0x43e   :  { %v2666_v13 = vadd.f32 %v2665_v37, %v2617_v4  ;;  %v2957_v43 = vadd.f32 %v2956_v34, %v13250_v1  ;;  %v3145_v42 = vrot.slane %v3144_v8, 1 }
 0x43f   :  { %v3164_v34 = vrot.slane %v3163_v39, 2 }
 0x440   :  { %v2739_v12 = vmul.f32 %v9989_v58, %v2666_v13 }
 0x441   :  { %v2569_v32 = vpop.f32.mrf.mxu1  ;;  %v3165_v7 = vadd.f32 %v3164_v34, %v3163_v39 }
 0x442   :  { %v2813_v56 = vadd.f32 %v9995_v36, %v2739_v12  ;;  %v2570_v27 = vadd.f32 %v2569_v32, %v2521_v18  ;;  %v3124_v18 = vrot.slane %v3123_v33, 1  ;;  %v3146_v12 = vadd.f32 %v3145_v42, %v3144_v8 }
 0x443   :  { %v2618_v50 = vpop.f32.mrf.mxu2  ;;  %v3166_v62 = vrot.slane %v3165_v7, 1 }
 0x444   :  { %v2877_v4 = vmax.f32 %v2813_v56, 0.0  ;;  %v2619_v63 = vadd.f32 %v2618_v50, %v2570_v27  ;;  %v3125_v46 = vadd.f32 %v3124_v18, %v3123_v33  ;;  %v13684_v27 = vld [vmem:[#allocation48_spill] sm:$0xff]  ;;  %v13685_v33 = vld [vmem:[#allocation65_spill] sm:$0xff]  ;;  %v13687_v18 = vmax.f32 %v10003_v47, 0.0 }
 0x445   :  { %v2667_v37 = vpop.f32.mrf.mxu3  ;;  %v13686_v39 = vmax.f32 %v13685_v33, 0.0  ;;  %v13693_v47 = vmax.f32 %v10049_v41, 0.0  ;;  %v13697_v41 = vmax.f32 %v10169_v16, 0.0 }
 0x446   :  { %v2958_v14 = vadd.f32 %v2957_v43, %v2877_v4  ;;  %v2668_v45 = vadd.f32 %v2667_v37, %v2619_v63  ;;  %v3190_v43 = vmul.f32 %v3146_v12, %v13684_v27  ;;  %v3189_v40 = vmul.f32 %v3125_v46, %v13684_v27  ;;  %v13688_v12 = vld [vmem:[#allocation63_spill] sm:$0xff]  ;;  %v13690_v46 = vld [vmem:[#allocation66_spill] sm:$0xff] }
 0x447   :  { %v3167_v37 = vadd.f32 %v3166_v62, %v3165_v7  ;;  %v13691_v7 = vmax.f32 %v13690_v46, 0.0  ;;  %v13694_v62 = vmax.f32 %v10063_v26, 0.0  ;;  %v13698_v26 = vmax.f32 %v10213_v49, 0.0 }
 0x448   :  { %v2743_v13 = vmul.f32 %v9989_v58, %v2668_v45  ;;  %v10256_v24 = vadd.f32 1e-05, %v3189_v40 }
 0x44a   :  { %v10249_v55 = vadd.f32 %v9995_v36, %v2743_v13  ;;  %v3195_v36 = vadd.f32 1e-05, %v3190_v43  ;;  %v3191_v13 = vmul.f32 %v3167_v37, %v13684_v27  ;;  %vm3204_vm6 = vweird.f32 %v10256_v24 }
 0x44c   :  { %v13249_v32 = vmax.f32 %v10249_v55, 0.0  ;;  %6647 = vrsqrt.f32 %v3195_v36  ;;  %vm3214_vm3 = vweird.f32 %v3195_v36 }
 0x44d   :  { %6649 = vrsqrt.f32 %v10256_v24 }
 0x44e   :  { %v2959_v50 = vadd.f32 %v2958_v14, %v13249_v32 }
 0x450   :  { %v2960_v56 = vrot.slane %v2959_v50, 4 }
 0x452   :  { %v2961_v58 = vadd.f32 %v2960_v56, %v2959_v50  ;;  %v13689_v50 = vmax.f32 %v13688_v12, 0.0 }
 0x454   :  { %v2962_v45 = vrot.slane %v2961_v58, 2 }
 0x456   :  { %v2963_v63 = vadd.f32 %v2962_v45, %v2961_v58  ;;  %v13692_v58 = vmax.f32 %v10035_v11, 0.0  ;;  %v13696_v11 = vmax.f32 %v10107_v15, 0.0 }
 0x458   :  { %v2964_v17 = vrot.slane %v2963_v63, 1 }
 0x45a   :  { %v2965_v8 = vadd.f32 %v2964_v17, %v2963_v63  ;;  %v13695_v17 = vmax.f32 %v10087_v60, 0.0 }
 0x45c   :  { %v10259_v14 = vmul.f32 %v13684_v27, %v2965_v8  ;;  %v6648_v8 = vpop.eup %6647 }
 0x45d   :  { %v3209_v46 = vmul.f32 %v6648_v8, %v3195_v36  ;;  %vm3215_vm2 = vweird.f32 %v6648_v8 }
 0x45e   :  { %v10266_v42 = vsub.f32 %v13686_v39, %v10259_v14  ;;  %v10271_v34 = vsub.f32 %v13687_v18, %v10259_v14  ;;  %v10276_v56 = vsub.f32 %v13689_v50, %v10259_v14  ;;  %v10281_v43 = vsub.f32 %v13691_v7, %v10259_v14  ;;  %v6650_v50 = vpop.eup %6649  ;;  %vm3216_vm4 = vmor %vm3214_vm3, %vm3215_vm2 }
 0x45f   :  { %v10286_v45 = vsub.f32 %v13692_v58, %v10259_v14  ;;  %v10291_v40 = vsub.f32 %v13693_v47, %v10259_v14  ;;  %v10296_v63 = vsub.f32 %v13694_v62, %v10259_v14  ;;  %v10301_v37 = vsub.f32 %v13695_v17, %v10259_v14 }
 0x460   :  { %v10306_v33 = vsub.f32 %v13696_v11, %v10259_v14  ;;  %v10311_v39 = vsub.f32 %v13697_v41, %v10259_v14  ;;  %v10316_v18 = vsub.f32 %v13698_v26, %v10259_v14  ;;  %v10319_v60 = vsub.f32 %v2877_v4, %v10259_v14 }
 0x461   :  { %v3044_v12 = vmul.f32 %v10266_v42, %v10266_v42  ;;  %v3048_v15 = vmul.f32 %v10271_v34, %v10271_v34  ;;  %v10325_v7 = vadd.f32 1e-05, %v3191_v13  ;;  %v3052_v16 = vmul.f32 %v10276_v56, %v10276_v56 }
 0x462   :  { %13699 = vst [vmem:[#allocation2_spill] sm:$0xff] %v10316_v18  ;;  %v3199_v49 = vmul.f32 %v6650_v50, %v10256_v24  ;;  %v3210_v47 = vmul.f32 %v6648_v8, %v3209_v46  ;;  %v3056_v4 = vmul.f32 %v10281_v43, %v10281_v43  ;;  %v3060_v17 = vmul.f32 %v10286_v45, %v10286_v45 }
 0x463   :  { %13700 = vst [vmem:[#allocation12_spill] sm:$0xff] %v10319_v60  ;;  %v3168_v58 = vadd.f32 %v3048_v15, %v3044_v12  ;;  %6651 = vrsqrt.f32 %v10325_v7  ;;  %v3064_v26 = vmul.f32 %v10291_v40, %v10291_v40  ;;  %v3068_v15 = vmul.f32 %v10296_v63, %v10296_v63 }
 0x464   :  { %v3200_v41 = vmul.f32 %v6650_v50, %v3199_v49  ;;  %v3211_v13 = vmul.f32 0.5, %v3210_v47  ;;  %v3072_v47 = vmul.f32 %v10301_v37, %v10301_v37  ;;  %vm3205_vm5 = vweird.f32 %v6650_v50 }
 0x465   :  { %v3169_v62 = vadd.f32 %v3168_v58, %v3052_v16  ;;  %v13701_v58 = vmax.f32 %v10146_v59, 0.0  ;;  %vm3206_vm7 = vmor %vm3204_vm6, %vm3205_vm5  ;;  %v3484_v24 = vunpack.c.0.s8 %v10155_v20  ;;  %vm3224_vm10 = vweird.f32 %v10325_v7 }
 0x466   :  { %v3201_v1 = vmul.f32 0.5, %v3200_v41  ;;  %v3212_v23 = vsub.f32 1.5, %v3211_v13  ;;  %v13702_v13 = vmax.f32 %v10202_v28, 0.0 }
 0x467   :  { %v3170_v11 = vadd.f32 %v3169_v62, %v3056_v4  ;;  %v10346_v49 = vsub.f32 %v13701_v58, %v10259_v14  ;;  %v3076_v62 = vmul.f32 %v10306_v33, %v10306_v33 }
 0x469   :  { %v3171_v32 = vadd.f32 %v3170_v11, %v3060_v17  ;;  %v10337_v12 = vpop.eup %6651  ;;  %v3202_v11 = vsub.f32 1.5, %v3201_v1  ;;  %v3080_v59 = vmul.f32 %v10346_v49, %v10346_v49 }
 0x46a   :  { %v3219_v16 = vmul.f32 %v10337_v12, %v10325_v7  ;;  %vm3225_vm9 = vweird.f32 %v10337_v12 }
 0x46b   :  { %v3172_v46 = vadd.f32 %v3171_v32, %v3064_v26  ;;  %v3213_v32 = vmul.f32 %v6648_v8, %v3212_v23  ;;  %v10356_v26 = vsub.f32 %v13702_v13, %v10259_v14  ;;  %v3203_v1 = vmul.f32 %v6650_v50, %v3202_v11  ;;  %vm10409_vm11 = vmor %vm3224_vm10, %vm3225_vm9 }
 0x46c   :  { %v3220_v41 = vmul.f32 %v10337_v12, %v3219_v16  ;;  %v13703_v16 = vmax.f32 %v10238_v22, 0.0  ;;  %v13705_v22 = vmax.f32 %v10249_v55, 0.0  ;;  %v3100_v55 = vmul.f32 %v10319_v60, %v10319_v60 }
 0x46d   :  { %v3173_v4 = vadd.f32 %v3172_v46, %v3068_v15  ;;  %v3084_v15 = vmul.f32 %v10311_v39, %v10311_v39  ;;  %v3217_v23 = vsel %vm3216_vm4, %v6648_v8, %v3213_v32  ;;  %v3207_v11 = vsel %vm3206_vm7, %v6650_v50, %v3203_v1 }
 0x46e   :  { %v10365_v28 = vsub.f32 %v13703_v16, %v10259_v14  ;;  %v3242_v36 = vrot.slane %v3217_v23, 7  ;;  %v10375_v32 = vsub.f32 %v13705_v22, %v10259_v14  ;;  %v3676_v1 = vcvt.s32.f32 %v3484_v24 }
 0x46f   :  { %v3174_v17 = vadd.f32 %v3173_v4, %v3072_v47  ;;  %v3221_v47 = vmul.f32 0.5, %v3220_v41  ;;  %v3088_v4 = vmul.f32 %v10356_v26, %v10356_v26 }
 0x470   :  { %13704 = vst [vmem:[#allocation3_spill] sm:$0xff] %v10365_v28  ;;  %v3096_v41 = vmul.f32 %v10365_v28, %v10365_v28  ;;  %v10384_v50 = vsel %vm3245_vm8, %v3207_v11, %v3242_v36  ;;  %v3442_v36 = vld [vmem:[%s13014_s2 + $0x150] sm:$0xff] }
 0x471   :  { %v3175_v58 = vadd.f32 %v3174_v17, %v3076_v62  ;;  %v3092_v62 = vmul.f32 %v10316_v18, %v10316_v18  ;;  %v3222_v8 = vsub.f32 1.5, %v3221_v47  ;;  %13706 = vst [vmem:[#allocation34_spill] sm:$0xff] %v10375_v32  ;;  %v3622_v24 = vunpack.c.2.s8 %v3442_v36 }
 0x473   :  { %v3176_v46 = vadd.f32 %v3175_v58, %v3080_v59  ;;  %v3487_v58 = vunpack.c.1.s8 %v10155_v20  ;;  %v3104_v20 = vmul.f32 %v10375_v32, %v10375_v32  ;;  %v3814_v5 = vcvt.s32.f32 %v3622_v24 }
 0x474   :  { %v3616_v24 = vunpack.c.0.s8 %v3442_v36 }
 0x475   :  { %v3177_v13 = vadd.f32 %v3176_v46, %v3084_v15  ;;  %v3532_v15 = vunpack.c.0.s8 %v10160_v35  ;;  %v3535_v46 = vunpack.c.1.s8 %v10160_v35  ;;  %v3679_v23 = vcvt.s32.f32 %v3487_v58 }
 0x476   :  { %v3625_v58 = vunpack.c.3.s8 %v3442_v36 }
 0x477   :  { %v3178_v17 = vadd.f32 %v3177_v13, %v3088_v4  ;;  %v3724_v47 = vcvt.s32.f32 %v3532_v15  ;;  %v3727_v16 = vcvt.s32.f32 %v3535_v46  ;;  %v10389_v4 = vmul.f32 %v10337_v12, %v3222_v8  ;;  %v3430_v13 = vld [vmem:[%s13014_s2 + $0xf0] sm:$0xff] }
 0x478   :  { %v3574_v8 = vunpack.c.2.s8 %v3430_v13  ;;  %v3577_v22 = vunpack.c.3.s8 %v3430_v13  ;;  %v3568_v51 = vunpack.c.0.s8 %v3430_v13 }
 0x479   :  { %v3179_v59 = vadd.f32 %v3178_v17, %v3092_v62  ;;  %v3406_v62 = vld [vmem:[%s13014_s2 + $0x30] sm:$0xff]  ;;  %v3850_v17 = vpack.c.bf16 %v3679_v23, %v3676_v1  ;;  %v3874_v11 = vpack.c.bf16 %v3727_v16, %v3724_v47  ;;  %v3817_v1 = vcvt.s32.f32 %v3625_v58 }
 0x47a   :  { %v3478_v15 = vunpack.c.2.s8 %v3406_v62  ;;  %v3766_v46 = vcvt.s32.f32 %v3574_v8 }
 0x47b   :  { %v3180_v14 = vadd.f32 %v3179_v59, %v3096_v41  ;;  %v3418_v41 = vld [vmem:[%s13014_s2 + $0x90] sm:$0xff]  ;;  %3961 = vmatpush.bf16.msrb.mxu0 %v3850_v17  ;;  %4010 = vmatpush.bf16.msra.mxu1 %v3874_v11 }
 0x47c   :  { %v3526_v32 = vunpack.c.2.s8 %v3418_v41  ;;  %v3670_v23 = vcvt.s32.f32 %v3478_v15  ;;  %v3529_v28 = vunpack.c.3.s8 %v3418_v41 }
 0x47d   :  { %v3181_v35 = vadd.f32 %v3180_v14, %v3100_v55  ;;  %v3769_v55 = vcvt.s32.f32 %v3577_v22  ;;  %v3481_v14 = vunpack.c.3.s8 %v3406_v62  ;;  %v3571_v22 = vunpack.c.1.s8 %v3430_v13 }
 0x47e   :  { %v3718_v18 = vcvt.s32.f32 %v3526_v32  ;;  %v3721_v8 = vcvt.s32.f32 %v3529_v28  ;;  %v3227_v32 = vsel %vm10409_vm11, %v10337_v12, %v10389_v4  ;;  %v3472_v28 = vunpack.c.0.s8 %v3406_v62  ;;  %v3439_v12 = vld [vmem:[%s13014_s2 + $0x138] sm:$0xff] }
 0x47f   :  { %v3182_v59 = vadd.f32 %v3181_v35, %v3104_v20  ;;  %v3895_v47 = vpack.c.bf16 %v3769_v55, %v3766_v46  ;;  %v3673_v16 = vcvt.s32.f32 %v3481_v14  ;;  %v3919_v35 = vpack.c.bf16 %v3817_v1, %v3814_v5 }
 0x480   :  { %v3760_v5 = vcvt.s32.f32 %v3568_v51  ;;  %v3871_v58 = vpack.c.bf16 %v3721_v8, %v3718_v18  ;;  %v3763_v15 = vcvt.s32.f32 %v3571_v22  ;;  %v3808_v46 = vcvt.s32.f32 %v3616_v24  ;;  %v3403_v18 = vld [vmem:[%s13014_s2 + $0x18] sm:$0xff] }
 0x481   :  { %v3183_v60 = vrot.slane %v3182_v59, 4  ;;  %4060 = vmatpush.bf16.msra.mxu2 %v3895_v47  ;;  %v3847_v11 = vpack.c.bf16 %v3673_v16, %v3670_v23  ;;  %4109 = vmatpush.bf16.msra.mxu3 %v3919_v35  ;;  %v3475_v14 = vunpack.c.1.s8 %v3406_v62  ;;  %v3520_v1 = vunpack.c.0.s8 %v3418_v41  ;;  %v3415_v22 = vld [vmem:[%s13014_s2 + $0x78] sm:$0xff] }
 0x482   :  { %4011 = vmatpush.bf16.msra.mxu1 %v3871_v58  ;;  %v3892_v51 = vpack.c.bf16 %v3763_v15, %v3760_v5  ;;  %v3664_v4 = vcvt.s32.f32 %v3472_v28  ;;  %v3610_v8 = vunpack.c.2.s8 %v3439_v12  ;;  %v3466_v5 = vunpack.c.2.s8 %v3403_v18 }
 0x483   :  { %v3184_v20 = vadd.f32 %v3183_v60, %v3182_v59  ;;  %v3619_v60 = vunpack.c.1.s8 %v3442_v36  ;;  %v3427_v59 = vld [vmem:[%s13014_s2 + $0xd8] sm:$0xff]  ;;  %3962 = vmatpush.bf16.msrb.mxu0 %v3847_v11  ;;  %v3523_v36 = vunpack.c.1.s8 %v3418_v41  ;;  %v3667_v35 = vcvt.s32.f32 %v3475_v14 }
 0x484   :  { %v3562_v23 = vunpack.c.2.s8 %v3427_v59  ;;  %v3565_v17 = vunpack.c.3.s8 %v3427_v59  ;;  %v3802_v15 = vcvt.s32.f32 %v3610_v8  ;;  %v3658_v14 = vcvt.s32.f32 %v3466_v5 }
 0x485   :  { %v3185_v7 = vrot.slane %v3184_v20, 2  ;;  %v3811_v55 = vcvt.s32.f32 %v3619_v60  ;;  %4061 = vmatpush.bf16.msra.mxu2 %v3892_v51  ;;  %v3715_v62 = vcvt.s32.f32 %v3523_v36  ;;  %v3844_v41 = vpack.c.bf16 %v3667_v35, %v3664_v4 }
 0x486   :  { %v3754_v11 = vcvt.s32.f32 %v3562_v23  ;;  %v3757_v58 = vcvt.s32.f32 %v3565_v17  ;;  %v3517_v23 = vunpack.c.3.s8 %v3415_v22  ;;  %v3556_v21 = vunpack.c.0.s8 %v3427_v59 }
 0x487   :  { %v3186_v13 = vadd.f32 %v3185_v7, %v3184_v20  ;;  %v3916_v16 = vpack.c.bf16 %v3811_v55, %v3808_v46  ;;  %v3712_v20 = vcvt.s32.f32 %v3520_v1  ;;  %v3613_v7 = vunpack.c.3.s8 %v3439_v12  ;;  %3963 = vmatpush.bf16.msrb.mxu0 %v3844_v41  ;;  %v3424_v41 = vld [vmem:[%s13014_s2 + $0xc0] sm:$0xff] }
 0x488   :  { %v3469_v46 = vunpack.c.3.s8 %v3403_v18  ;;  %v3514_v1 = vunpack.c.2.s8 %v3415_v22  ;;  %v3889_v51 = vpack.c.bf16 %v3757_v58, %v3754_v11  ;;  %v3604_v17 = vunpack.c.0.s8 %v3439_v12 }
 0x489   :  { %v3187_v47 = vrot.slane %v3186_v13, 1  ;;  %4110 = vmatpush.bf16.msra.mxu3 %v3916_v16  ;;  %v3868_v60 = vpack.c.bf16 %v3715_v62, %v3712_v20  ;;  %v3805_v55 = vcvt.s32.f32 %v3613_v7  ;;  %v3559_v16 = vunpack.c.1.s8 %v3427_v59 }
 0x48a   :  { %v3661_v36 = vcvt.s32.f32 %v3469_v46  ;;  %4062 = vmatpush.bf16.msra.mxu2 %v3889_v51  ;;  %v3709_v20 = vcvt.s32.f32 %v3517_v23  ;;  %v3748_v62 = vcvt.s32.f32 %v3556_v21  ;;  %v10432_v8 = vrot.slane %v3227_v32, 6  ;;  %v3436_v21 = vld [vmem:[%s13014_s2 + $0x120] sm:$0xff] }
 0x48b   :  { %v3188_v24 = vadd.f32 %v3187_v47, %v3186_v13  ;;  %4012 = vmatpush.bf16.msra.mxu1 %v3868_v60  ;;  %v3913_v4 = vpack.c.bf16 %v3805_v55, %v3802_v15  ;;  %v3706_v47 = vcvt.s32.f32 %v3514_v1  ;;  %v3607_v11 = vunpack.c.1.s8 %v3439_v12  ;;  %v3400_v1 = vld [vmem:[%s13014_s2] sm:$0xff] }
 0x48c   :  { %v3841_v35 = vpack.c.bf16 %v3661_v36, %v3658_v14  ;;  %v3796_v5 = vcvt.s32.f32 %v3604_v17  ;;  %v3460_v59 = vunpack.c.0.s8 %v3403_v18  ;;  %v3463_v60 = vunpack.c.1.s8 %v3403_v18 }
 0x48d   :  { %v3192_v28 = vmul.f32 %v3188_v24, %v13684_v27  ;;  %4111 = vmatpush.bf16.msra.mxu3 %v3913_v4  ;;  %v3751_v24 = vcvt.s32.f32 %v3559_v16  ;;  %v3865_v7 = vpack.c.bf16 %v3709_v20, %v3706_v47  ;;  %v3799_v58 = vcvt.s32.f32 %v3607_v11 }
 0x48e   :  { %3964 = vmatpush.bf16.msrb.mxu0 %v3841_v35  ;;  %v3508_v15 = vunpack.c.0.s8 %v3415_v22  ;;  %v3511_v46 = vunpack.c.1.s8 %v3415_v22  ;;  %v3655_v12 = vcvt.s32.f32 %v3463_v60  ;;  %v3550_v55 = vunpack.c.2.s8 %v3424_v41  ;;  %v3412_v22 = vld [vmem:[%s13014_s2 + $0x60] sm:$0xff] }
 0x48f   :  { %v10430_v13 = vadd.f32 1e-05, %v3192_v28  ;;  %v3886_v32 = vpack.c.bf16 %v3751_v24, %v3748_v62  ;;  %4013 = vmatpush.bf16.msra.mxu1 %v3865_v7  ;;  %v3652_v28 = vcvt.s32.f32 %v3460_v59  ;;  %v3553_v14 = vunpack.c.3.s8 %v3424_v41 }
 0x490   :  { %v3910_v51 = vpack.c.bf16 %v3799_v58, %v3796_v5  ;;  %v3700_v18 = vcvt.s32.f32 %v3508_v15  ;;  %v3703_v36 = vcvt.s32.f32 %v3511_v46  ;;  %v3598_v23 = vunpack.c.2.s8 %v3436_v21 }
 0x491   :  { %6653 = vrsqrt.f32 %v10430_v13  ;;  %4063 = vmatpush.bf16.msra.mxu2 %v3886_v32  ;;  %v3838_v4 = vpack.c.bf16 %v3655_v12, %v3652_v28  ;;  %v3742_v47 = vcvt.s32.f32 %v3550_v55  ;;  %v3745_v16 = vcvt.s32.f32 %v3553_v14 }
 0x492   :  { %v3601_v35 = vunpack.c.3.s8 %v3436_v21  ;;  %4112 = vmatpush.bf16.msra.mxu3 %v3910_v51  ;;  %v3862_v62 = vpack.c.bf16 %v3703_v36, %v3700_v18  ;;  %v3790_v17 = vcvt.s32.f32 %v3598_v23  ;;  %v3454_v24 = vunpack.c.2.s8 %v3400_v1 }
 0x493   :  { %v3457_v11 = vunpack.c.3.s8 %v3400_v1  ;;  %vm3234_vm12 = vweird.f32 %v10430_v13  ;;  %3965 = vmatpush.bf16.msrb.mxu0 %v3838_v4  ;;  %v3883_v5 = vpack.c.bf16 %v3745_v16, %v3742_v47  ;;  %v3502_v58 = vunpack.c.2.s8 %v3412_v22 }
 0x494   :  { %v3793_v59 = vcvt.s32.f32 %v3601_v35  ;;  %4014 = vmatpush.bf16.msra.mxu1 %v3862_v62  ;;  %v3646_v60 = vcvt.s32.f32 %v3454_v24  ;;  %v3505_v15 = vunpack.c.3.s8 %v3412_v22  ;;  %v3544_v12 = vunpack.c.0.s8 %v3424_v41  ;;  %v3326_v35 = vld [vmem:[%s13013_s6 + $0x8] sm:$0xf] }
 0x495   :  { %v3649_v32 = vcvt.s32.f32 %v3457_v11  ;;  %4064 = vmatpush.bf16.msra.mxu2 %v3883_v5  ;;  %v3547_v55 = vunpack.c.1.s8 %v3424_v41  ;;  %v3694_v51 = vcvt.s32.f32 %v3502_v58  ;;  %v3592_v36 = vunpack.c.0.s8 %v3436_v21 }
 0x496   :  { %v3907_v28 = vpack.c.bf16 %v3793_v59, %v3790_v17  ;;  %v3697_v18 = vcvt.s32.f32 %v3505_v15  ;;  %v3736_v4 = vcvt.s32.f32 %v3544_v12  ;;  %v3595_v16 = vunpack.c.1.s8 %v3436_v21  ;;  %v3434_v21 = vld [vmem:[%s13014_s2 + $0x110] sm:$0xff] }
 0x497   :  { %v10447_v20 = vpop.eup %6653  ;;  %v3835_v14 = vpack.c.bf16 %v3649_v32, %v3646_v60  ;;  %v3739_v47 = vcvt.s32.f32 %v3547_v55  ;;  %v3784_v24 = vcvt.s32.f32 %v3592_v36  ;;  %v3448_v17 = vunpack.c.0.s8 %v3400_v1 }
 0x498   :  { %v3229_v7 = vmul.f32 %v10447_v20, %v10430_v13  ;;  %vm3235_vm13 = vweird.f32 %v10447_v20  ;;  %4113 = vmatpush.bf16.msra.mxu3 %v3907_v28  ;;  %v3859_v62 = vpack.c.bf16 %v3697_v18, %v3694_v51  ;;  %v3451_v11 = vunpack.c.1.s8 %v3400_v1 }
 0x499   :  { %3966 = vmatpush.bf16.msrb.mxu0 %v3835_v14  ;;  %v3787_v5 = vcvt.s32.f32 %v3595_v16  ;;  %v3496_v59 = vunpack.c.0.s8 %v3412_v22  ;;  %v3640_v60 = vcvt.s32.f32 %v3448_v17  ;;  %v3499_v58 = vunpack.c.1.s8 %v3412_v22  ;;  %v10473_v22 = vld [vmem:[%s13014_s2 + $0x50] sm:$0xff]  ;;  %vm3236_vm0 = vmor %vm3234_vm12, %vm3235_vm13 }
 0x49a   :  { %v3230_v46 = vmul.f32 %v10447_v20, %v3229_v7  ;;  %v3880_v7 = vpack.c.bf16 %v3739_v47, %v3736_v4  ;;  %4015 = vmatpush.bf16.msra.mxu1 %v3859_v62  ;;  %v3643_v32 = vcvt.s32.f32 %v3451_v11  ;;  %v10457_v15 = vperm.slane %v3326_v35, 0  ;;  %v10488_v62 = vld [vmem:[%s13014_s2 + $0xb0] sm:$0xff] }
 0x49b   :  { %v3904_v28 = vpack.c.bf16 %v3787_v5, %v3784_v24  ;;  %v3688_v12 = vcvt.s32.f32 %v3496_v59  ;;  %v10468_v55 = vperm.slane %v3326_v35, 1  ;;  %v3691_v51 = vcvt.s32.f32 %v3499_v58 }
 0x49c   :  { %v3231_v23 = vmul.f32 0.5, %v3230_v46  ;;  %v10465_v46 = vld [vmem:[%s13014_s2 + $0x170] sm:$0xff]  ;;  %4065 = vmatpush.bf16.msra.mxu2 %v3880_v7  ;;  %v3832_v14 = vpack.c.bf16 %v3643_v32, %v3640_v60  ;;  %v10479_v18 = vperm.slane %v3326_v35, 2  ;;  %v10481_v36 = vperm.slane %v3326_v35, 3 }
 0x49d   :  { %4114 = vmatpush.bf16.msra.mxu3 %v3904_v28  ;;  %v3587_v4 = vunpack.c.2.s8 %v3434_v21  ;;  %v3590_v47 = vunpack.c.3.s8 %v3434_v21  ;;  %v3635_v16 = vunpack.c.2.s8 %v10465_v46  ;;  %v3856_v24 = vpack.c.bf16 %v3691_v51, %v3688_v12 }
 0x49e   :  { %v3232_v41 = vsub.f32 1.5, %v3231_v23  ;;  %3967 = vmatpush.bf16.msrb.mxu0 %v3832_v14  ;;  %v3638_v17 = vunpack.c.3.s8 %v10465_v46  ;;  %v3491_v35 = vunpack.c.2.s8 %v10473_v22  ;;  %v3494_v5 = vunpack.c.3.s8 %v10473_v22 }
 0x49f   :  { %v3779_v11 = vcvt.s32.f32 %v3587_v4  ;;  %v3827_v7 = vcvt.s32.f32 %v3635_v16  ;;  %4016 = vmatpush.bf16.msra.mxu1 %v3856_v24  ;;  %v3539_v58 = vunpack.c.2.s8 %v10488_v62  ;;  %v3542_v14 = vunpack.c.3.s8 %v10488_v62 }
 0x4a0   :  { %v3233_v1 = vmul.f32 %v10447_v20, %v3232_v41  ;;  %v3782_v41 = vcvt.s32.f32 %v3590_v47  ;;  %v3830_v60 = vcvt.s32.f32 %v3638_v17  ;;  %v3683_v32 = vcvt.s32.f32 %v3491_v35 }
 0x4a1   :  { %v3686_v12 = vcvt.s32.f32 %v3494_v5  ;;  %v3731_v4 = vcvt.s32.f32 %v3539_v58  ;;  %v3581_v47 = vunpack.c.0.s8 %v3434_v21  ;;  %v3734_v27 = vcvt.s32.f32 %v3542_v14  ;;  %v13709_v5 = vld [vmem:[#allocation49_spill] sm:$0xff] }
 0x4a2   :  { %v3237_v23 = vsel %vm3236_vm0, %v10447_v20, %v3233_v1  ;;  %v3193_v20 = vld [vmem:[%s13013_s6 + $0x4] sm:$0xf]  ;;  %v3902_v28 = vpack.c.bf16 %v3782_v41, %v3779_v11 }
 0x4a3   :  { %v3244_v13 = vrot.slane %v3237_v23, 5  ;;  %v3926_v23 = vpack.c.bf16 %v3830_v60, %v3827_v7  ;;  %v3854_v16 = vpack.c.bf16 %v3686_v12, %v3683_v32  ;;  %v3773_v11 = vcvt.s32.f32 %v3581_v47  ;;  %v13711_v32 = vld [vmem:[#allocation38_spill] sm:$0xff] }
 0x4a4   :  { %4254 = vmatpush.bf16.msrb.mxu2 %v3902_v28  ;;  %v3632_v7 = vunpack.c.1.s8 %v10465_v46 }
 0x4a5   :  { %v3248_v59 = vsel %vm3247_vm14, %v10432_v8, %v3244_v13  ;;  %v3584_v8 = vunpack.c.1.s8 %v3434_v21  ;;  %v3629_v13 = vunpack.c.0.s8 %v10465_v46  ;;  %4303 = vmatpush.bf16.msrb.mxu3 %v3926_v23  ;;  %4156 = vmatpush.bf16.msra.mxu0 %v3854_v16 }
 0x4a6   :  { %v3250_v1 = vsel %vm3249_vm15, %v10384_v50, %v3248_v59  ;;  %v13710_v59 = vld [vmem:[#allocation52_spill] sm:$0xff] }
 0x4a7   :  { %v3252_v51 = vmul.f32 %v3250_v1, %v3193_v20  ;;  %v3878_v20 = vpack.c.bf16 %v3734_v27, %v3731_v4  ;;  %v3776_v41 = vcvt.s32.f32 %v3584_v8  ;;  %v13712_v1 = vld [vmem:[#allocation11_spill] sm:$0xff] }
 0x4a9   :  { %v10503_v24 = vperm.slane %v3252_v51, 0  ;;  %v10505_v17 = vperm.slane %v3252_v51, 1  ;;  %v10507_v35 = vperm.slane %v3252_v51, 2  ;;  %v10509_v50 = vperm.slane %v3252_v51, 3  ;;  %4205 = vmatpush.bf16.msrb.mxu1 %v3878_v20  ;;  %v13713_v20 = vld [vmem:[#allocation53_spill] sm:$0xff] }
 0x4ab   :  { %v3262_v21 = vmul.f32 %v10503_v24, %v13709_v5  ;;  %v3266_v60 = vmul.f32 %v10503_v24, %v13710_v59  ;;  %v3263_v58 = vmul.f32 %v10505_v17, %v13711_v32  ;;  %v3267_v28 = vmul.f32 %v10505_v17, %v13712_v1  ;;  %v13715_v1 = vld [vmem:[#allocation10_spill] sm:$0xff] }
 0x4ac   :  { %v3264_v12 = vmul.f32 %v10507_v35, %v9855_v6  ;;  %v3268_v27 = vmul.f32 %v10507_v35, %v9859_v25  ;;  %v3265_v46 = vmul.f32 %v10509_v50, %v10266_v42  ;;  %v3269_v14 = vmul.f32 %v10509_v50, %v10271_v34 }
 0x4ad   :  { %v3336_v51 = vadd.f32 %v10457_v15, %v3262_v21  ;;  %v3340_v23 = vadd.f32 %v10457_v15, %v3266_v60  ;;  %v3337_v4 = vadd.f32 %v10468_v55, %v3263_v58  ;;  %v3341_v47 = vadd.f32 %v10468_v55, %v3267_v28  ;;  %v13714_v21 = vld [vmem:[#allocation56_spill] sm:$0xff] }
 0x4ae   :  { %v3338_v6 = vadd.f32 %v10479_v18, %v3264_v12  ;;  %v3342_v16 = vadd.f32 %v10479_v18, %v3268_v27  ;;  %v3339_v25 = vadd.f32 %v10481_v36, %v3265_v46  ;;  %v3343_v42 = vadd.f32 %v10481_v36, %v3269_v14 }
 0x4af   :  { %v10536_v8 = vpack.c.bf16 %v3340_v23, %v3336_v51  ;;  %v10538_v34 = vpack.c.bf16 %v3341_v47, %v3337_v4  ;;  %v3270_v5 = vmul.f32 %v10503_v24, %v13713_v20  ;;  %v3274_v59 = vmul.f32 %v10503_v24, %v13714_v21 }
 0x4b0   :  { %v10544_v60 = vpack.c.bf16 %v3342_v16, %v3338_v6  ;;  %v10546_v32 = vpack.c.bf16 %v3343_v42, %v3339_v25  ;;  %v3271_v58 = vmul.f32 %v10505_v17, %v9527_v44  ;;  %v3275_v28 = vmul.f32 %v10505_v17, %v13715_v1 }
 0x4b1   :  { %3968 = vmatmul.bf16.vlgmr.msrb.gmra.mxu0 %v10536_v8  ;;  %4017 = vmatmul.bf16.vlgmr.msra.gmra.mxu1 %v10538_v34  ;;  %v3344_v12 = vadd.f32 %v10457_v15, %v3270_v5  ;;  %v3348_v27 = vadd.f32 %v10457_v15, %v3274_v59  ;;  %v3272_v46 = vmul.f32 %v10507_v35, %v9863_v30  ;;  %v3821_v14 = vcvt.s32.f32 %v3629_v13 }
 0x4b2   :  { %4066 = vmatmul.bf16.vlgmr.msra.gmra.mxu2 %v10544_v60  ;;  %4115 = vmatmul.bf16.vlgmr.msra.gmra.mxu3 %v10546_v32  ;;  %v3345_v44 = vadd.f32 %v10468_v55, %v3271_v58  ;;  %v3349_v51 = vadd.f32 %v10468_v55, %v3275_v28  ;;  %v3276_v23 = vmul.f32 %v10507_v35, %v9867_v48  ;;  %v3824_v4 = vcvt.s32.f32 %v3632_v7  ;;  %v13716_v58 = vld [vmem:[#allocation57_spill] sm:$0xff] }
 0x4b3   :  { %v10564_v47 = vpack.c.bf16 %v3348_v27, %v3344_v12  ;;  %v3346_v6 = vadd.f32 %v10479_v18, %v3272_v46  ;;  %v3273_v30 = vmul.f32 %v10509_v50, %v10276_v56  ;;  %v3277_v13 = vmul.f32 %v10509_v50, %v10281_v43  ;;  %v13717_v12 = vld [vmem:[#allocation68_spill] sm:$0xff] }
 0x4b4   :  { %v10571_v16 = vpack.c.bf16 %v3349_v51, %v3345_v44  ;;  %v3350_v25 = vadd.f32 %v10479_v18, %v3276_v23  ;;  %v3899_v42 = vpack.c.bf16 %v3776_v41, %v3773_v11  ;;  %v3923_v20 = vpack.c.bf16 %v3824_v4, %v3821_v14 }
 0x4b5   :  { %v3347_v5 = vadd.f32 %v10481_v36, %v3273_v30  ;;  %v3351_v48 = vadd.f32 %v10481_v36, %v3277_v13  ;;  %v3485_v7 = vunpack.c.0.s8 %v10473_v22  ;;  %v3488_v21 = vunpack.c.1.s8 %v10473_v22 }
 0x4b6   :  { %v10578_v59 = vpack.c.bf16 %v3350_v25, %v3346_v6  ;;  %4255 = vmatpush.bf16.msrb.mxu2 %v3899_v42  ;;  %4304 = vmatpush.bf16.msrb.mxu3 %v3923_v20  ;;  %v3533_v56 = vunpack.c.0.s8 %v10488_v62  ;;  %v3536_v43 = vunpack.c.1.s8 %v10488_v62  ;;  %v3278_v11 = vmul.f32 %v10503_v24, %v13716_v58  ;;  %v10599_v6 = vld [vmem:[%s13014_s2 + $0xf8] sm:$0xff] }
 0x4b7   :  { %v10584_v41 = vpack.c.bf16 %v3351_v48, %v3347_v5  ;;  %v3677_v1 = vcvt.s32.f32 %v3485_v7  ;;  %v3680_v28 = vcvt.s32.f32 %v3488_v21  ;;  %v3282_v27 = vmul.f32 %v10503_v24, %v13717_v12 }
 0x4b8   :  { %v3725_v46 = vcvt.s32.f32 %v3533_v56  ;;  %v3728_v22 = vcvt.s32.f32 %v3536_v43  ;;  %v3352_v14 = vadd.f32 %v10457_v15, %v3278_v11  ;;  %v3279_v44 = vmul.f32 %v10505_v17, %v9535_v57  ;;  %v10634_v11 = vld [vmem:[%s13014_s2 + $0x98] sm:$0xff] }
 0x4b9   :  { %v3851_v51 = vpack.c.bf16 %v3680_v28, %v3677_v1  ;;  %v3356_v62 = vadd.f32 %v10457_v15, %v3282_v27  ;;  %v3283_v23 = vmul.f32 %v10505_v17, %v9539_v9  ;;  %v3280_v4 = vmul.f32 %v10507_v35, %v9871_v54  ;;  %v10609_v9 = vld [vmem:[%s13014_s2 + $0x158] sm:$0xff] }
 0x4ba   :  { %v3875_v30 = vpack.c.bf16 %v3728_v22, %v3725_v46  ;;  %v3353_v13 = vadd.f32 %v10468_v55, %v3279_v44  ;;  %v3284_v57 = vmul.f32 %v10507_v35, %v9875_v53  ;;  %v3281_v25 = vmul.f32 %v10509_v50, %v10286_v45  ;;  %v10620_v53 = vld [vmem:[%s13014_s2 + $0x38] sm:$0xff] }
 0x4bb   :  { %4157 = vmatpush.bf16.msra.mxu0 %v3851_v51  ;;  %v10611_v54 = vpack.c.bf16 %v3356_v62, %v3352_v14  ;;  %v3357_v42 = vadd.f32 %v10468_v55, %v3283_v23  ;;  %v3354_v20 = vadd.f32 %v10479_v18, %v3280_v4  ;;  %v3285_v5 = vmul.f32 %v10509_v50, %v10291_v40 }
 0x4bc   :  { %4206 = vmatpush.bf16.msrb.mxu1 %v3875_v30  ;;  %v3358_v45 = vadd.f32 %v10479_v18, %v3284_v57  ;;  %v3355_v48 = vadd.f32 %v10481_v36, %v3281_v25  ;;  %v3575_v7 = vunpack.c.2.s8 %v10599_v6  ;;  %v3578_v21 = vunpack.c.3.s8 %v10599_v6  ;;  %v13719_v57 = vld [vmem:[#allocation69_spill] sm:$0xff] }
 0x4bd   :  { %v10626_v56 = vpack.c.bf16 %v3357_v42, %v3353_v13  ;;  %v3359_v43 = vadd.f32 %v10481_v36, %v3285_v5  ;;  %v3623_v40 = vunpack.c.2.s8 %v10609_v9  ;;  %v3626_v58 = vunpack.c.3.s8 %v10609_v9  ;;  %v13720_v42 = vld [vmem:[#allocation70_spill] sm:$0xff] }
 0x4be   :  { %v10636_v1 = vpack.c.bf16 %v3358_v45, %v3354_v20  ;;  %v3767_v28 = vcvt.s32.f32 %v3575_v7  ;;  %v3770_v12 = vcvt.s32.f32 %v3578_v21  ;;  %v3479_v27 = vunpack.c.2.s8 %v10620_v53  ;;  %v13722_v21 = vld [vmem:[#allocation17_spill] sm:$0xff] }
 0x4bf   :  { %v10639_v46 = vpack.c.bf16 %v3359_v43, %v3355_v48  ;;  %v3815_v22 = vcvt.s32.f32 %v3623_v40  ;;  %v3818_v14 = vcvt.s32.f32 %v3626_v58  ;;  %v3482_v44 = vunpack.c.3.s8 %v10620_v53  ;;  %v13721_v48 = vld [vmem:[#allocation18_spill] sm:$0xff] }
 0x4c0   :  { %v3896_v51 = vpack.c.bf16 %v3770_v12, %v3767_v28  ;;  %v3671_v62 = vcvt.s32.f32 %v3479_v27  ;;  %v3527_v23 = vunpack.c.2.s8 %v10634_v11  ;;  %v3530_v4 = vunpack.c.3.s8 %v10634_v11 }
 0x4c1   :  { %13718 = vst [vmem:[#allocation67_spill] sm:$0xff] %v10639_v46  ;;  %3973 = vmatmul.bf16.gmra.mxu0 %v10564_v47  ;;  %4022 = vmatmul.bf16.gmra.mxu1 %v10571_v16  ;;  %v3920_v30 = vpack.c.bf16 %v3818_v14, %v3815_v22  ;;  %v3674_v13 = vcvt.s32.f32 %v3482_v44  ;;  %v3286_v25 = vmul.f32 %v10503_v24, %v13719_v57  ;;  %v3569_v12 = vunpack.c.0.s8 %v10599_v6 }
 0x4c2   :  { %v3290_v20 = vmul.f32 %v10503_v24, %v13720_v42  ;;  %4071 = vmatmul.bf16.gmra.mxu2 %v10578_v59  ;;  %4120 = vmatmul.bf16.gmra.mxu3 %v10584_v41  ;;  %v3719_v5 = vcvt.s32.f32 %v3527_v23  ;;  %v3722_v45 = vcvt.s32.f32 %v3530_v4  ;;  %v3287_v7 = vmul.f32 %v10505_v17, %v13721_v48 }
 0x4c3   :  { %v3291_v43 = vmul.f32 %v10505_v17, %v13722_v21  ;;  %4256 = vmatpush.bf16.msrb.mxu2 %v3896_v51  ;;  %4305 = vmatpush.bf16.msrb.mxu3 %v3920_v30  ;;  %v3848_v40 = vpack.c.bf16 %v3674_v13, %v3671_v62  ;;  %v3360_v58 = vadd.f32 %v10457_v15, %v3286_v25  ;;  %v3572_v57 = vunpack.c.1.s8 %v10599_v6 }
 0x4c4   :  { %v3364_v28 = vadd.f32 %v10457_v15, %v3290_v20  ;;  %v3872_v27 = vpack.c.bf16 %v3722_v45, %v3719_v5  ;;  %v3361_v22 = vadd.f32 %v10468_v55, %v3287_v7  ;;  %v3288_v44 = vmul.f32 %v10507_v35, %v9879_v29 }
 0x4c5   :  { %v3365_v14 = vadd.f32 %v10468_v55, %v3291_v43  ;;  %4158 = vmatpush.bf16.msra.mxu0 %v3848_v40  ;;  %v3292_v51 = vmul.f32 %v10507_v35, %v9883_v31  ;;  %v3289_v62 = vmul.f32 %v10509_v50, %v10296_v63  ;;  %v3293_v4 = vmul.f32 %v10509_v50, %v10301_v37 }
 0x4c6   :  { %v10663_v23 = vpack.c.bf16 %v3364_v28, %v3360_v58  ;;  %4207 = vmatpush.bf16.msrb.mxu1 %v3872_v27  ;;  %v3362_v13 = vadd.f32 %v10479_v18, %v3288_v44  ;;  %v3761_v29 = vcvt.s32.f32 %v3569_v12  ;;  %v3617_v20 = vunpack.c.0.s8 %v10609_v9 }
 0x4c7   :  { %v10671_v30 = vpack.c.bf16 %v3365_v14, %v3361_v22  ;;  %v3366_v25 = vadd.f32 %v10479_v18, %v3292_v51  ;;  %v3363_v42 = vadd.f32 %v10481_v36, %v3289_v62  ;;  %v3367_v31 = vadd.f32 %v10481_v36, %v3293_v4  ;;  %v13727_v22 = vld [vmem:[#allocation71_spill] sm:$0xff]  ;;  %v13728_v14 = vld [vmem:[#allocation72_spill] sm:$0xff] }
 0x4c8   :  { %13723 = vst [vmem:[#allocation79_spill] sm:$0xff] %v10663_v23  ;;  %v3764_v63 = vcvt.s32.f32 %v3572_v57  ;;  %v3620_v5 = vunpack.c.1.s8 %v10609_v9  ;;  %v3473_v37 = vunpack.c.0.s8 %v10620_v53  ;;  %v3476_v45 = vunpack.c.1.s8 %v10620_v53  ;;  %v13729_v62 = vld [vmem:[#allocation60_spill] sm:$0xff] }
 0x4c9   :  { %13724 = vst [vmem:[#allocation4_spill] sm:$0xff] %v10671_v30  ;;  %v10682_v48 = vpack.c.bf16 %v3366_v25, %v3362_v13  ;;  %v10684_v7 = vpack.c.bf16 %v3367_v31, %v3363_v42  ;;  %v3809_v6 = vcvt.s32.f32 %v3617_v20  ;;  %v3521_v21 = vunpack.c.0.s8 %v10634_v11  ;;  %v13730_v13 = vld [vmem:[#allocation41_spill] sm:$0xff] }
 0x4ca   :  { %v3893_v43 = vpack.c.bf16 %v3764_v63, %v3761_v29  ;;  %v3812_v40 = vcvt.s32.f32 %v3620_v5  ;;  %v3665_v58 = vcvt.s32.f32 %v3473_v37  ;;  %v3668_v28 = vcvt.s32.f32 %v3476_v45 }
 0x4cb   :  { %13725 = vst [vmem:[#allocation22_spill] sm:$0xff] %v10682_v48  ;;  %v3524_v12 = vunpack.c.1.s8 %v10634_v11  ;;  %v3713_v27 = vcvt.s32.f32 %v3521_v21  ;;  %v3294_v9 = vmul.f32 %v10503_v24, %v13727_v22  ;;  %v3298_v53 = vmul.f32 %v10503_v24, %v13728_v14  ;;  %v10736_v14 = vld [vmem:[%s13014_s2 + $0x140] sm:$0xff] }
 0x4cc   :  { %13726 = vst [vmem:[#allocation5_spill] sm:$0xff] %v10684_v7  ;;  %4257 = vmatpush.bf16.msrb.mxu2 %v3893_v43  ;;  %v3917_v44 = vpack.c.bf16 %v3812_v40, %v3809_v6  ;;  %v3845_v51 = vpack.c.bf16 %v3668_v28, %v3665_v58  ;;  %v3295_v4 = vmul.f32 %v10505_v17, %v13729_v62  ;;  %v13731_v40 = vld [vmem:[#allocation73_spill] sm:$0xff]  ;;  %v13732_v28 = vld [vmem:[#allocation74_spill] sm:$0xff] }
 0x4cd   :  { %v3299_v57 = vmul.f32 %v10505_v17, %v13730_v13  ;;  %v3716_v29 = vcvt.s32.f32 %v3524_v12  ;;  %v3368_v25 = vadd.f32 %v10457_v15, %v3294_v9  ;;  %v3372_v11 = vadd.f32 %v10457_v15, %v3298_v53  ;;  %v10731_v9 = vld [vmem:[%s13014_s2 + $0xe0] sm:$0xff] }
 0x4ce   :  { %v3296_v42 = vmul.f32 %v10507_v35, %v9887_v3  ;;  %4306 = vmatpush.bf16.msrb.mxu3 %v3917_v44  ;;  %4159 = vmatpush.bf16.msra.mxu0 %v3845_v51  ;;  %v3369_v31 = vadd.f32 %v10468_v55, %v3295_v4  ;;  %v3300_v63 = vmul.f32 %v10507_v35, %v9891_v52  ;;  %v10741_v53 = vld [vmem:[%s13014_s2 + $0x20] sm:$0xff]  ;;  %v3563_v51 = vunpack.c.2.s8 %v10731_v9 }
 0x4cf   :  { %v3373_v20 = vadd.f32 %v10468_v55, %v3299_v57  ;;  %v3869_v5 = vpack.c.bf16 %v3716_v29, %v3713_v27  ;;  %v10704_v37 = vpack.c.bf16 %v3372_v11, %v3368_v25  ;;  %v3297_v6 = vmul.f32 %v10509_v50, %v10306_v33  ;;  %v13733_v33 = vld [vmem:[#allocation40_spill] sm:$0xff]  ;;  %v10751_v57 = vld [vmem:[%s13014_s2 + $0x80] sm:$0xff] }
 0x4d0   :  { %v3370_v45 = vadd.f32 %v10479_v18, %v3296_v42  ;;  %v3374_v3 = vadd.f32 %v10479_v18, %v3300_v63  ;;  %v3301_v43 = vmul.f32 %v10509_v50, %v10346_v49  ;;  %v3302_v58 = vmul.f32 %v10503_v24, %v13731_v40 }
 0x4d1   :  { %v10709_v21 = vpack.c.bf16 %v3373_v20, %v3369_v31  ;;  %3978 = vmatmul.bf16.gmra.mxu0 %v10611_v54  ;;  %4027 = vmatmul.bf16.gmra.mxu1 %v10626_v56  ;;  %v3371_v52 = vadd.f32 %v10481_v36, %v3297_v6  ;;  %v3306_v12 = vmul.f32 %v10503_v24, %v13732_v28  ;;  %v3566_v62 = vunpack.c.3.s8 %v10731_v9 }
 0x4d2   :  { %v3303_v27 = vmul.f32 %v10505_v17, %v13733_v33  ;;  %4076 = vmatmul.bf16.gmra.mxu2 %v10636_v1  ;;  %4125 = vmatmul.bf16.gmra.mxu3 %v10639_v46  ;;  %v10725_v49 = vpack.c.bf16 %v3374_v3, %v3370_v45  ;;  %v3375_v22 = vadd.f32 %v10481_v36, %v3301_v43  ;;  %v3611_v4 = vunpack.c.2.s8 %v10736_v14 }
 0x4d3   :  { %v3376_v44 = vadd.f32 %v10457_v15, %v3302_v58  ;;  %4208 = vmatpush.bf16.msrb.mxu1 %v3869_v5  ;;  %v3614_v13 = vunpack.c.3.s8 %v10736_v14  ;;  %v3467_v25 = vunpack.c.2.s8 %v10741_v53  ;;  %v3470_v11 = vunpack.c.3.s8 %v10741_v53 }
 0x4d4   :  { %v10753_v29 = vpack.c.bf16 %v3375_v22, %v3371_v52  ;;  %v3515_v42 = vunpack.c.2.s8 %v10751_v57  ;;  %v3755_v31 = vcvt.s32.f32 %v3563_v51  ;;  %v3758_v20 = vcvt.s32.f32 %v3566_v62 }
 0x4d5   :  { %v3803_v63 = vcvt.s32.f32 %v3611_v4  ;;  %v3806_v5 = vcvt.s32.f32 %v3614_v13  ;;  %v3659_v45 = vcvt.s32.f32 %v3467_v25  ;;  %v3662_v6 = vcvt.s32.f32 %v3470_v11 }
 0x4d6   :  { %v3518_v3 = vunpack.c.3.s8 %v10751_v57  ;;  %v3707_v43 = vcvt.s32.f32 %v3515_v42  ;;  %v3890_v40 = vpack.c.bf16 %v3758_v20, %v3755_v31  ;;  %v3380_v52 = vadd.f32 %v10457_v15, %v3306_v12  ;;  %v13736_v20 = vld [vmem:[#allocation26_spill] sm:$0xff] }
 0x4d7   :  { %v3914_v58 = vpack.c.bf16 %v3806_v5, %v3803_v63  ;;  %v3307_v28 = vmul.f32 %v10505_v17, %v13670_v38  ;;  %v3842_v33 = vpack.c.bf16 %v3662_v6, %v3659_v45  ;;  %v3377_v46 = vadd.f32 %v10468_v55, %v3303_v27  ;;  %v13738_v5 = vld [vmem:[#allocation61_spill] sm:$0xff] }
 0x4d8   :  { %v3710_v22 = vcvt.s32.f32 %v3518_v3  ;;  %v3304_v51 = vmul.f32 %v10507_v35, %v9895_v0  ;;  %4258 = vmatpush.bf16.msrb.mxu2 %v3890_v40  ;;  %v10765_v62 = vpack.c.bf16 %v3380_v52, %v3376_v44  ;;  %v3308_v13 = vmul.f32 %v10507_v35, %v9899_v2  ;;  %v13741_v52 = vld [vmem:[#allocation2_spill] sm:$0xff] }
 0x4d9   :  { %4307 = vmatpush.bf16.msrb.mxu3 %v3914_v58  ;;  %v3381_v4 = vadd.f32 %v10468_v55, %v3307_v28  ;;  %4160 = vmatpush.bf16.msra.mxu0 %v3842_v33  ;;  %v3305_v25 = vmul.f32 %v10509_v50, %v10311_v39  ;;  %v3309_v27 = vmul.f32 %v10509_v50, %v10356_v26  ;;  %v13742_v33 = vld [vmem:[#allocation3_spill] sm:$0xff] }
 0x4da   :  { %13734 = vst [vmem:[#allocation36_spill] sm:$0xff] %v10765_v62  ;;  %v3866_v12 = vpack.c.bf16 %v3710_v22, %v3707_v43  ;;  %v3378_v38 = vadd.f32 %v10479_v18, %v3304_v51  ;;  %v3382_v44 = vadd.f32 %v10479_v18, %v3308_v13  ;;  %v3310_v11 = vmul.f32 %v10503_v24, %v13673_v19  ;;  %v13740_v43 = vld [vmem:[#allocation30_spill] sm:$0xff]  ;;  %v13743_v13 = vld [vmem:[#allocation77_spill] sm:$0xff] }
 0x4db   :  { %v10775_v0 = vpack.c.bf16 %v3381_v4, %v3377_v46  ;;  %v3314_v2 = vmul.f32 %v10503_v24, %v13675_v10  ;;  %v3379_v42 = vadd.f32 %v10481_v36, %v3305_v25  ;;  %v3383_v31 = vadd.f32 %v10481_v36, %v3309_v27 }
 0x4dc   :  { %4209 = vmatpush.bf16.msrb.mxu1 %v3866_v12  ;;  %v3311_v39 = vmul.f32 %v10505_v17, %v13736_v20  ;;  %v3315_v26 = vmul.f32 %v10505_v17, %v13674_v61  ;;  %v10788_v46 = vpack.c.bf16 %v3382_v44, %v3378_v38  ;;  %v3384_v63 = vadd.f32 %v10457_v15, %v3310_v11  ;;  %v13744_v38 = vld [vmem:[#allocation78_spill] sm:$0xff]  ;;  %v13745_v11 = vld [vmem:[#allocation27_spill] sm:$0xff] }
 0x4dd   :  { %13735 = vst [vmem:[#allocation13_spill] sm:$0xff] %v10775_v0  ;;  %v3388_v19 = vadd.f32 %v10457_v15, %v3314_v2  ;;  %v3312_v10 = vmul.f32 %v10507_v35, %v13738_v5  ;;  %v10794_v45 = vpack.c.bf16 %v3383_v31, %v3379_v42  ;;  %v3316_v40 = vmul.f32 %v10507_v35, %v13740_v43 }
 0x4de   :  { %13737 = vst [vmem:[#allocation6_spill] sm:$0xff] %v10788_v46  ;;  %v3385_v6 = vadd.f32 %v10468_v55, %v3311_v39  ;;  %v3389_v3 = vadd.f32 %v10468_v55, %v3315_v26  ;;  %v3313_v28 = vmul.f32 %v10509_v50, %v13741_v52  ;;  %v3317_v22 = vmul.f32 %v10509_v50, %v13742_v33 }
 0x4df   :  { %13739 = vst [vmem:[#allocation7_spill] sm:$0xff] %v10794_v45  ;;  %v10800_v58 = vpack.c.bf16 %v3388_v19, %v3384_v63  ;;  %v3386_v61 = vadd.f32 %v10479_v18, %v3312_v10  ;;  %v3390_v4 = vadd.f32 %v10479_v18, %v3316_v40  ;;  %v3318_v12 = vmul.f32 %v10503_v24, %v13743_v13 }
 0x4e0   :  { %v10807_v51 = vpack.c.bf16 %v3389_v3, %v3385_v6  ;;  %v3322_v25 = vmul.f32 %v10503_v24, %v13744_v38  ;;  %v3387_v27 = vadd.f32 %v10481_v36, %v3313_v28  ;;  %v3391_v44 = vadd.f32 %v10481_v36, %v3317_v22 }
 0x4e1   :  { %3983 = vmatmul.bf16.gmra.mxu0 %v10663_v23  ;;  %4032 = vmatmul.bf16.gmra.mxu1 %v10671_v30  ;;  %v3319_v2 = vmul.f32 %v10505_v17, %v13745_v11  ;;  %v3557_v42 = vunpack.c.0.s8 %v10731_v9  ;;  %v3560_v31 = vunpack.c.1.s8 %v10731_v9  ;;  %v3605_v24 = vunpack.c.0.s8 %v10736_v14  ;;  %v13746_v11 = vld [vmem:[#allocation28_spill] sm:$0xff] }
 0x4e2   :  { %4081 = vmatmul.bf16.gmra.mxu2 %v10682_v48  ;;  %4130 = vmatmul.bf16.gmra.mxu3 %v10684_v7  ;;  %v3608_v20 = vunpack.c.1.s8 %v10736_v14  ;;  %v3461_v39 = vunpack.c.0.s8 %v10741_v53  ;;  %v3464_v26 = vunpack.c.1.s8 %v10741_v53  ;;  %v3509_v63 = vunpack.c.0.s8 %v10751_v57 }
 0x4e3   :  { %v3512_v19 = vunpack.c.1.s8 %v10751_v57  ;;  %v3749_v5 = vcvt.s32.f32 %v3557_v42  ;;  %v3752_v10 = vcvt.s32.f32 %v3560_v31  ;;  %v3797_v6 = vcvt.s32.f32 %v3605_v24  ;;  %v13747_v24 = vld [vmem:[#allocation25_spill] sm:$0xff] }
 0x4e4   :  { %v3800_v3 = vcvt.s32.f32 %v3608_v20  ;;  %v3653_v43 = vcvt.s32.f32 %v3461_v39  ;;  %v3656_v40 = vcvt.s32.f32 %v3464_v26  ;;  %v3701_v52 = vcvt.s32.f32 %v3509_v63 }
 0x4e5   :  { %v3704_v9 = vcvt.s32.f32 %v3512_v19  ;;  %v3887_v28 = vpack.c.bf16 %v3752_v10, %v3749_v5  ;;  %v10830_v22 = vpack.c.bf16 %v3390_v4, %v3386_v61  ;;  %v10832_v14 = vpack.c.bf16 %v3391_v44, %v3387_v27  ;;  %v13748_v4 = vld [vmem:[#allocation31_spill] sm:$0xff] }
 0x4e6   :  { %v3911_v33 = vpack.c.bf16 %v3800_v3, %v3797_v6  ;;  %v3839_v13 = vpack.c.bf16 %v3656_v40, %v3653_v43  ;;  %v3392_v38 = vadd.f32 %v10457_v15, %v3318_v12  ;;  %v3396_v57 = vadd.f32 %v10457_v15, %v3322_v25  ;;  %v13749_v12 = vld [vmem:[#allocation12_spill] sm:$0xff]  ;;  %v3413_v43 = vld [vmem:[%s13014_s2 + $0x68] sm:$0xff] }
 0x4e7   :  { %v3863_v53 = vpack.c.bf16 %v3704_v9, %v3701_v52  ;;  %4259 = vmatpush.bf16.msrb.mxu2 %v3887_v28  ;;  %v3323_v42 = vmul.f32 %v10505_v17, %v13746_v11  ;;  %v3393_v31 = vadd.f32 %v10468_v55, %v3319_v2  ;;  %v3320_v20 = vmul.f32 %v10507_v35, %v13747_v24  ;;  %v13750_v17 = vld [vmem:[#allocation34_spill] sm:$0xff] }
 0x4e8   :  { %4308 = vmatpush.bf16.msrb.mxu3 %v3911_v33  ;;  %4161 = vmatpush.bf16.msra.mxu0 %v3839_v13  ;;  %v10841_v61 = vpack.c.bf16 %v3396_v57, %v3392_v38  ;;  %v3324_v27 = vmul.f32 %v10507_v35, %v13748_v4  ;;  %v3321_v15 = vmul.f32 %v10509_v50, %v13749_v12  ;;  %v3503_v9 = vunpack.c.2.s8 %v3413_v43 }
 0x4e9   :  { %4210 = vmatpush.bf16.msrb.mxu1 %v3863_v53  ;;  %v3397_v25 = vadd.f32 %v10468_v55, %v3323_v42  ;;  %v3394_v44 = vadd.f32 %v10479_v18, %v3320_v20  ;;  %v3325_v2 = vmul.f32 %v10509_v50, %v13750_v17  ;;  %v3425_v55 = vld [vmem:[%s13014_s2 + $0xc8] sm:$0xff]  ;;  %v3506_v28 = vunpack.c.3.s8 %v3413_v43 }
 0x4ea   :  { %v3398_v39 = vadd.f32 %v10479_v18, %v3324_v27  ;;  %v3395_v26 = vadd.f32 %v10481_v36, %v3321_v15  ;;  %v3437_v18 = vld [vmem:[%s13014_s2 + $0x128] sm:$0xff]  ;;  %v3551_v50 = vunpack.c.2.s8 %v3425_v55  ;;  %v3554_v10 = vunpack.c.3.s8 %v3425_v55 }
 0x4eb   :  { %v10853_v63 = vpack.c.bf16 %v3397_v25, %v3393_v31  ;;  %v3399_v19 = vadd.f32 %v10481_v36, %v3325_v2  ;;  %v3401_v36 = vld [vmem:[%s13014_s2 + $0x8] sm:$0xff]  ;;  %v3599_v6 = vunpack.c.2.s8 %v3437_v18  ;;  %v3602_v3 = vunpack.c.3.s8 %v3437_v18 }
 0x4ec   :  { %v10856_v5 = vpack.c.bf16 %v3398_v39, %v3394_v44  ;;  %v3455_v40 = vunpack.c.2.s8 %v3401_v36  ;;  %v3458_v52 = vunpack.c.3.s8 %v3401_v36  ;;  %v3743_v33 = vcvt.s32.f32 %v3551_v50 }
 0x4ed   :  { %v10858_v35 = vpack.c.bf16 %v3399_v19, %v3395_v26  ;;  %v3746_v13 = vcvt.s32.f32 %v3554_v10  ;;  %v3791_v53 = vcvt.s32.f32 %v3599_v6  ;;  %v3794_v38 = vcvt.s32.f32 %v3602_v3 }
 0x4ee   :  { %v3647_v57 = vcvt.s32.f32 %v3455_v40  ;;  %v3650_v11 = vcvt.s32.f32 %v3458_v52  ;;  %v3695_v42 = vcvt.s32.f32 %v3503_v9  ;;  %v3698_v31 = vcvt.s32.f32 %v3506_v28 }
 0x4ef   :  { %v3884_v24 = vpack.c.bf16 %v3746_v13, %v3743_v33  ;;  %v3908_v20 = vpack.c.bf16 %v3794_v38, %v3791_v53  ;;  %v3545_v12 = vunpack.c.0.s8 %v3425_v55  ;;  %v3548_v15 = vunpack.c.1.s8 %v3425_v55  ;;  %v3435_v55 = vld [vmem:[%s13014_s2 + $0x118] sm:$0xff] }
 0x4f0   :  { %v3836_v4 = vpack.c.bf16 %v3650_v11, %v3647_v57  ;;  %v3860_v27 = vpack.c.bf16 %v3698_v31, %v3695_v42  ;;  %v3593_v25 = vunpack.c.0.s8 %v3437_v18  ;;  %v3596_v44 = vunpack.c.1.s8 %v3437_v18  ;;  %v3447_v18 = vld [vmem:[%s13014_s2 + $0x178] sm:$0xff] }
 0x4f1   :  { %3988 = vmatmul.bf16.gmra.mxu0 %v10704_v37  ;;  %4037 = vmatmul.bf16.gmra.mxu1 %v10709_v21  ;;  %v3449_v17 = vunpack.c.0.s8 %v3401_v36  ;;  %v3452_v2 = vunpack.c.1.s8 %v3401_v36  ;;  %v3497_v39 = vunpack.c.0.s8 %v3413_v43  ;;  %v3500_v26 = vunpack.c.1.s8 %v3413_v43 }
 0x4f2   :  { %4086 = vmatmul.bf16.gmra.mxu2 %v10725_v49  ;;  %4135 = vmatmul.bf16.gmra.mxu3 %v10753_v29  ;;  %v3737_v19 = vcvt.s32.f32 %v3545_v12  ;;  %v3740_v50 = vcvt.s32.f32 %v3548_v15  ;;  %v3785_v10 = vcvt.s32.f32 %v3593_v25  ;;  %v3788_v6 = vcvt.s32.f32 %v3596_v44  ;;  %v3423_v12 = vld [vmem:[%s13014_s2 + $0xb8] sm:$0xff] }
 0x4f3   :  { %4260 = vmatpush.bf16.msrb.mxu2 %v3884_v24  ;;  %4309 = vmatpush.bf16.msrb.mxu3 %v3908_v20  ;;  %v3641_v3 = vcvt.s32.f32 %v3449_v17  ;;  %v3644_v40 = vcvt.s32.f32 %v3452_v2  ;;  %v3689_v52 = vcvt.s32.f32 %v3497_v39  ;;  %v3692_v9 = vcvt.s32.f32 %v3500_v26 }
 0x4f4   :  { %4162 = vmatpush.bf16.msra.mxu0 %v3836_v4  ;;  %4211 = vmatpush.bf16.msrb.mxu1 %v3860_v27  ;;  %v3881_v28 = vpack.c.bf16 %v3740_v50, %v3737_v19  ;;  %v3905_v33 = vpack.c.bf16 %v3788_v6, %v3785_v10  ;;  %v3588_v36 = vunpack.c.2.s8 %v3435_v55  ;;  %v3591_v43 = vunpack.c.3.s8 %v3435_v55  ;;  %v3411_v27 = vld [vmem:[%s13014_s2 + $0x58] sm:$0xff] }
 0x4f5   :  { %v3833_v13 = vpack.c.bf16 %v3644_v40, %v3641_v3  ;;  %v3857_v53 = vpack.c.bf16 %v3692_v9, %v3689_v52  ;;  %v3636_v38 = vunpack.c.2.s8 %v3447_v18  ;;  %v3639_v57 = vunpack.c.3.s8 %v3447_v18 }
 0x4f6   :  { %v3780_v11 = vcvt.s32.f32 %v3588_v36  ;;  %v3783_v42 = vcvt.s32.f32 %v3591_v43  ;;  %v3492_v15 = vunpack.c.2.s8 %v3411_v27  ;;  %v3495_v25 = vunpack.c.3.s8 %v3411_v27 }
 0x4f7   :  { %4261 = vmatpush.bf16.msrb.mxu2 %v3881_v28  ;;  %4310 = vmatpush.bf16.msrb.mxu3 %v3905_v33  ;;  %v3828_v31 = vcvt.s32.f32 %v3636_v38  ;;  %v3831_v24 = vcvt.s32.f32 %v3639_v57  ;;  %v3540_v44 = vunpack.c.2.s8 %v3423_v12  ;;  %v3543_v17 = vunpack.c.3.s8 %v3423_v12 }
 0x4f8   :  { %4163 = vmatpush.bf16.msra.mxu0 %v3833_v13  ;;  %4212 = vmatpush.bf16.msrb.mxu1 %v3857_v53  ;;  %v3903_v20 = vpack.c.bf16 %v3783_v42, %v3780_v11  ;;  %v3684_v2 = vcvt.s32.f32 %v3492_v15  ;;  %v3687_v39 = vcvt.s32.f32 %v3495_v25  ;;  %v3582_v6 = vunpack.c.0.s8 %v3435_v55 }
 0x4f9   :  { %v3927_v4 = vpack.c.bf16 %v3831_v24, %v3828_v31  ;;  %v3732_v26 = vcvt.s32.f32 %v3540_v44  ;;  %v3735_v19 = vcvt.s32.f32 %v3543_v17  ;;  %v3585_v3 = vunpack.c.1.s8 %v3435_v55 }
 0x4fa   :  { %v3855_v50 = vpack.c.bf16 %v3687_v39, %v3684_v2  ;;  %v3630_v40 = vunpack.c.0.s8 %v3447_v18  ;;  %v3633_v52 = vunpack.c.1.s8 %v3447_v18  ;;  %v3774_v9 = vcvt.s32.f32 %v3582_v6 }
 0x4fb   :  { %4450 = vmatpush.bf16.msra.mxu2 %v3903_v20  ;;  %4499 = vmatpush.bf16.msra.mxu3 %v3927_v4  ;;  %v3879_v10 = vpack.c.bf16 %v3735_v19, %v3732_v26  ;;  %v3777_v28 = vcvt.s32.f32 %v3585_v3  ;;  %v3486_v11 = vunpack.c.0.s8 %v3411_v27  ;;  %v3489_v42 = vunpack.c.1.s8 %v3411_v27 }
 0x4fc   :  { %4352 = vmatpush.bf16.msrb.mxu0 %v3855_v50  ;;  %v3822_v33 = vcvt.s32.f32 %v3630_v40  ;;  %v3825_v13 = vcvt.s32.f32 %v3633_v52  ;;  %v3534_v31 = vunpack.c.0.s8 %v3423_v12  ;;  %v3537_v24 = vunpack.c.1.s8 %v3423_v12  ;;  %v10907_v12 = vld [vmem:[%s13013_s6 + $0x19] sm:$0x7]  ;;  %v3432_v50 = vld [vmem:[%s13014_s2 + $0x100] sm:$0xff] }
 0x4fd   :  { %4401 = vmatpush.bf16.msra.mxu1 %v3879_v10  ;;  %v3900_v53 = vpack.c.bf16 %v3777_v28, %v3774_v9  ;;  %v3678_v55 = vcvt.s32.f32 %v3486_v11  ;;  %v3681_v18 = vcvt.s32.f32 %v3489_v42  ;;  %v10915_v10 = vld [vmem:[%s13014_s2 + $0x160] sm:$0xff]  ;;  %v3576_v6 = vunpack.c.2.s8 %v3432_v50  ;;  %v10925_v28 = vld [vmem:[%s13013_s6 + $0x10] sm:$0x7] }
 0x4fe   :  { %v3924_v36 = vpack.c.bf16 %v3825_v13, %v3822_v33  ;;  %v3726_v20 = vcvt.s32.f32 %v3534_v31  ;;  %v3729_v4 = vcvt.s32.f32 %v3537_v24  ;;  %v3579_v3 = vunpack.c.3.s8 %v3432_v50 }
 0x4ff   :  { %4451 = vmatpush.bf16.msra.mxu2 %v3900_v53  ;;  %v3852_v15 = vpack.c.bf16 %v3681_v18, %v3678_v55  ;;  %v3624_v40 = vunpack.c.2.s8 %v10915_v10  ;;  %v3627_v52 = vunpack.c.3.s8 %v10915_v10  ;;  %v10920_v9 = vperm.slane %v10907_v12, 0 }
 0x500   :  { %4500 = vmatpush.bf16.msra.mxu3 %v3924_v36  ;;  %v3876_v25 = vpack.c.bf16 %v3729_v4, %v3726_v20  ;;  %v3768_v33 = vcvt.s32.f32 %v3576_v6  ;;  %v3771_v13 = vcvt.s32.f32 %v3579_v3  ;;  %v10929_v31 = vperm.slane %v10925_v28, 0 }
 0x501   :  { %3993 = vmatmul.bf16.gmra.mxu0 %v10765_v62  ;;  %4042 = vmatmul.bf16.gmra.mxu1 %v10775_v0  ;;  %v3816_v53 = vcvt.s32.f32 %v3624_v40  ;;  %v3819_v36 = vcvt.s32.f32 %v3627_v52 }
 0x502   :  { %4091 = vmatmul.bf16.gmra.mxu2 %v10788_v46  ;;  %4140 = vmatmul.bf16.gmra.mxu3 %v10794_v45 }
 0x503   :  { %4353 = vmatpush.bf16.msrb.mxu0 %v3852_v15  ;;  %4402 = vmatpush.bf16.msra.mxu1 %v3876_v25  ;;  %v3921_v11 = vpack.c.bf16 %v3819_v36, %v3816_v53  ;;  %v10934_v15 = vld [vmem:[%s13014_s2 + $0x40] sm:$0xff] }
 0x504   :  { %v10939_v25 = vld [vmem:[%s13014_s2 + $0xa0] sm:$0xff] }
 0x505   :  { %4501 = vmatpush.bf16.msra.mxu3 %v3921_v11 }
 0x511   :  { %3998 = vmatmul.bf16.gmra.mxu0 %v10800_v58  ;;  %4047 = vmatmul.bf16.gmra.mxu1 %v10807_v51 }
 0x512   :  { %4096 = vmatmul.bf16.gmra.mxu2 %v10830_v22  ;;  %4145 = vmatmul.bf16.gmra.mxu3 %v10832_v14 }
 0x521   :  { %4003 = vmatmul.bf16.gmra.mxu0 %v10841_v61  ;;  %4052 = vmatmul.bf16.gmra.mxu1 %v10853_v63 }
 0x522   :  { %4101 = vmatmul.bf16.gmra.mxu2 %v10856_v5  ;;  %4150 = vmatmul.bf16.gmra.mxu3 %v10858_v35 }
 0x52e   :  { %v3969_v43 = vpop.f32.mrf.mxu0  ;;  %v4018_v38 = vpop.f32.mrf.mxu1 }
 0x52f   :  { %v4019_v57 = vadd.f32 %v4018_v38, %v3969_v43 }
 0x531   :  { %4164 = vmatmul.bf16.vlgmr.msra.gmra.mxu0 %v10536_v8  ;;  %4213 = vmatmul.bf16.vlgmr.msrb.gmra.mxu1 %v10538_v34 }
 0x532   :  { %4262 = vmatmul.bf16.vlgmr.msrb.gmra.mxu2 %v10544_v60  ;;  %4311 = vmatmul.bf16.vlgmr.msrb.gmra.mxu3 %v10546_v32 }
 0x535   :  { %v4067_v44 = vpop.f32.mrf.mxu2  ;;  %v4116_v17 = vpop.f32.mrf.mxu3 }
 0x536   :  { %v4068_v2 = vadd.f32 %v4067_v44, %v4019_v57  ;;  %v3971_v27 = vpop.f32.mrf.mxu0  ;;  %v4020_v39 = vpop.f32.mrf.mxu1  ;;  %v3897_v57 = vpack.c.bf16 %v3771_v13, %v3768_v33  ;;  %v3480_v44 = vunpack.c.2.s8 %v10934_v15 }
 0x537   :  { %v4021_v26 = vadd.f32 %v4020_v39, %v3971_v27  ;;  %v3531_v27 = vunpack.c.3.s8 %v10939_v25 }
 0x538   :  { %v4117_v19 = vadd.f32 %v4116_v17, %v4068_v2  ;;  %4452 = vmatpush.bf16.msra.mxu2 %v3897_v57  ;;  %v3483_v17 = vunpack.c.3.s8 %v10934_v15  ;;  %v3528_v2 = vunpack.c.2.s8 %v10939_v25 }
 0x539   :  { %v3723_v40 = vcvt.s32.f32 %v3531_v27 }
 0x53a   :  { %v4556_v42 = vmul.f32 %v10920_v9, %v4117_v19  ;;  %v3672_v19 = vcvt.s32.f32 %v3480_v44  ;;  %v3675_v6 = vcvt.s32.f32 %v3483_v17  ;;  %v3720_v3 = vcvt.s32.f32 %v3528_v2 }
 0x53b   :  { %v3573_v44 = vunpack.c.1.s8 %v3432_v50  ;;  %v3618_v17 = vunpack.c.0.s8 %v10915_v10  ;;  %v3621_v2 = vunpack.c.1.s8 %v10915_v10 }
 0x53c   :  { %v10948_v39 = vadd.f32 %v10929_v31, %v4556_v42  ;;  %v3849_v53 = vpack.c.bf16 %v3675_v6, %v3672_v19  ;;  %v3873_v36 = vpack.c.bf16 %v3723_v40, %v3720_v3 }
 0x53d   :  { %v4069_v43 = vpop.f32.mrf.mxu2  ;;  %v4118_v38 = vpop.f32.mrf.mxu3  ;;  %v3810_v19 = vcvt.s32.f32 %v3618_v17  ;;  %v3813_v6 = vcvt.s32.f32 %v3621_v2  ;;  %v3522_v17 = vunpack.c.0.s8 %v10939_v25 }
 0x53e   :  { %v4070_v24 = vadd.f32 %v4069_v43, %v4021_v26  ;;  %v3974_v55 = vpop.f32.mrf.mxu0  ;;  %v4023_v18 = vpop.f32.mrf.mxu1  ;;  %v13263_v43 = vmax.f32 %v10948_v39, 0.0  ;;  %4354 = vmatpush.bf16.msrb.mxu0 %v3849_v53  ;;  %4403 = vmatpush.bf16.msra.mxu1 %v3873_v36 }
 0x53f   :  { %v4024_v20 = vadd.f32 %v4023_v18, %v3974_v55  ;;  %v3918_v36 = vpack.c.bf16 %v3813_v6, %v3810_v19 }
 0x540   :  { %v4119_v4 = vadd.f32 %v4118_v38, %v4070_v24 }
 0x541   :  { %4169 = vmatmul.bf16.gmra.mxu0 %v10564_v47  ;;  %4218 = vmatmul.bf16.gmra.mxu1 %v10571_v16 }
 0x542   :  { %v4559_v26 = vmul.f32 %v10920_v9, %v4119_v4  ;;  %4267 = vmatmul.bf16.gmra.mxu2 %v10578_v59  ;;  %4316 = vmatmul.bf16.gmra.mxu3 %v10584_v41  ;;  %v3570_v4 = vunpack.c.0.s8 %v3432_v50 }
 0x543   :  { %4502 = vmatpush.bf16.msra.mxu3 %v3918_v36 }
 0x544   :  { %v10954_v52 = vadd.f32 %v10929_v31, %v4559_v26  ;;  %v3765_v26 = vcvt.s32.f32 %v3573_v44  ;;  %v3477_v44 = vunpack.c.1.s8 %v10934_v15 }
 0x545   :  { %v4072_v33 = vpop.f32.mrf.mxu2  ;;  %v4121_v13 = vpop.f32.mrf.mxu3 }
 0x546   :  { %v13262_v38 = vmax.f32 %v10954_v52, 0.0  ;;  %v4073_v57 = vadd.f32 %v4072_v33, %v4024_v20  ;;  %v3976_v11 = vpop.f32.mrf.mxu0  ;;  %v4025_v42 = vpop.f32.mrf.mxu1  ;;  %v3762_v20 = vcvt.s32.f32 %v3570_v4  ;;  %v3474_v4 = vunpack.c.0.s8 %v10934_v15 }
 0x547   :  { %v4026_v24 = vadd.f32 %v4025_v42, %v3976_v11 }
 0x548   :  { %v4708_v55 = vadd.f32 %v13262_v38, %v13263_v43  ;;  %v4122_v18 = vadd.f32 %v4121_v13, %v4073_v57  ;;  %v3894_v40 = vpack.c.bf16 %v3765_v26, %v3762_v20  ;;  %v3669_v20 = vcvt.s32.f32 %v3477_v44  ;;  %v3429_v44 = vld [vmem:[%s13014_s2 + $0xe8] sm:$0xff] }
 0x549   :  { %v3714_v26 = vcvt.s32.f32 %v3522_v17  ;;  %v3441_v17 = vld [vmem:[%s13014_s2 + $0x148] sm:$0xff] }
 0x54a   :  { %v4562_v27 = vmul.f32 %v10920_v9, %v4122_v18  ;;  %4453 = vmatpush.bf16.msra.mxu2 %v3894_v40 }
 0x54c   :  { %v10966_v3 = vadd.f32 %v10929_v31, %v4562_v27  ;;  %v13751_v27 = vld [vmem:[#allocation67_spill] sm:$0xff] }
 0x54d   :  { %v4074_v33 = vpop.f32.mrf.mxu2  ;;  %v4123_v53 = vpop.f32.mrf.mxu3 }
 0x54e   :  { %v13261_v13 = vmax.f32 %v10966_v3, 0.0  ;;  %v4075_v50 = vadd.f32 %v4074_v33, %v4026_v24  ;;  %v3979_v57 = vpop.f32.mrf.mxu0  ;;  %v4028_v11 = vpop.f32.mrf.mxu1  ;;  %v3525_v24 = vunpack.c.1.s8 %v10939_v25 }
 0x54f   :  { %v4029_v10 = vadd.f32 %v4028_v11, %v3979_v57 }
 0x550   :  { %v4709_v42 = vadd.f32 %v4708_v55, %v13261_v13  ;;  %v4124_v18 = vadd.f32 %v4123_v53, %v4075_v50  ;;  %v3666_v55 = vcvt.s32.f32 %v3474_v4  ;;  %v3717_v19 = vcvt.s32.f32 %v3525_v24 }
 0x551   :  { %4174 = vmatmul.bf16.gmra.mxu0 %v10611_v54  ;;  %4223 = vmatmul.bf16.gmra.mxu1 %v10626_v56  ;;  %v3564_v24 = vunpack.c.2.s8 %v3429_v44 }
 0x552   :  { %v4565_v2 = vmul.f32 %v10920_v9, %v4124_v18  ;;  %4272 = vmatmul.bf16.gmra.mxu2 %v10636_v1  ;;  %4321 = vmatmul.bf16.gmra.mxu3 %v13751_v27  ;;  %v3846_v6 = vpack.c.bf16 %v3669_v20, %v3666_v55  ;;  %v3870_v53 = vpack.c.bf16 %v3717_v19, %v3714_v26  ;;  %v3615_v55 = vunpack.c.3.s8 %v3441_v17 }
 0x553   :  { %v3756_v26 = vcvt.s32.f32 %v3564_v24 }
 0x554   :  { %v10981_v15 = vadd.f32 %v10929_v31, %v4565_v2  ;;  %4355 = vmatpush.bf16.msrb.mxu0 %v3846_v6  ;;  %4404 = vmatpush.bf16.msra.mxu1 %v3870_v53  ;;  %v3567_v2 = vunpack.c.3.s8 %v3429_v44 }
 0x555   :  { %v4077_v40 = vpop.f32.mrf.mxu2  ;;  %v4126_v33 = vpop.f32.mrf.mxu3 }
 0x556   :  { %v13260_v36 = vmax.f32 %v10981_v15, 0.0  ;;  %v4078_v25 = vadd.f32 %v4077_v40, %v4029_v10  ;;  %v3981_v50 = vpop.f32.mrf.mxu0  ;;  %v4030_v57 = vpop.f32.mrf.mxu1  ;;  %v3612_v10 = vunpack.c.2.s8 %v3441_v17  ;;  %v3759_v19 = vcvt.s32.f32 %v3567_v2  ;;  %v3405_v2 = vld [vmem:[%s13014_s2 + $0x28] sm:$0xff] }
 0x557   :  { %v4031_v11 = vadd.f32 %v4030_v57, %v3981_v50  ;;  %v3807_v40 = vcvt.s32.f32 %v3615_v55 }
 0x558   :  { %v4710_v18 = vadd.f32 %v4709_v42, %v13260_v36  ;;  %v4127_v4 = vadd.f32 %v4126_v33, %v4078_v25  ;;  %v3804_v6 = vcvt.s32.f32 %v3612_v10  ;;  %v3891_v25 = vpack.c.bf16 %v3759_v19, %v3756_v26  ;;  %v11005_v10 = vld [vmem:[%s13014_s2 + $0x88] sm:$0xff] }
 0x55a   :  { %v4568_v20 = vmul.f32 %v10920_v9, %v4127_v4  ;;  %v3915_v50 = vpack.c.bf16 %v3807_v40, %v3804_v6  ;;  %4454 = vmatpush.bf16.msra.mxu2 %v3891_v25 }
 0x55c   :  { %v10994_v42 = vadd.f32 %v10929_v31, %v4568_v20  ;;  %4503 = vmatpush.bf16.msra.mxu3 %v3915_v50 }
 0x55d   :  { %v4079_v33 = vpop.f32.mrf.mxu2  ;;  %v4128_v53 = vpop.f32.mrf.mxu3 }
 0x55e   :  { %v13264_v57 = vmax.f32 %v10994_v42, 0.0  ;;  %v4080_v36 = vadd.f32 %v4079_v33, %v4031_v11  ;;  %v3984_v13 = vpop.f32.mrf.mxu0  ;;  %v4033_v38 = vpop.f32.mrf.mxu1  ;;  %v3516_v11 = vunpack.c.2.s8 %v11005_v10 }
 0x55f   :  { %v4034_v43 = vadd.f32 %v4033_v38, %v3984_v13  ;;  %v3468_v38 = vunpack.c.2.s8 %v3405_v2  ;;  %v3471_v13 = vunpack.c.3.s8 %v3405_v2 }
 0x560   :  { %v4711_v4 = vadd.f32 %v4710_v18, %v13264_v57  ;;  %v4129_v24 = vadd.f32 %v4128_v53, %v4080_v36  ;;  %v3519_v18 = vunpack.c.3.s8 %v11005_v10  ;;  %v3708_v26 = vcvt.s32.f32 %v3516_v11 }
 0x561   :  { %4179 = vmatmul.bf16.gmra.mxu0 %v10663_v23  ;;  %4228 = vmatmul.bf16.gmra.mxu1 %v10671_v30  ;;  %v3660_v55 = vcvt.s32.f32 %v3468_v38  ;;  %v3663_v20 = vcvt.s32.f32 %v3471_v13  ;;  %v3558_v11 = vunpack.c.0.s8 %v3429_v44 }
 0x562   :  { %v4571_v36 = vmul.f32 %v10920_v9, %v4129_v24  ;;  %4277 = vmatmul.bf16.gmra.mxu2 %v10682_v48  ;;  %4326 = vmatmul.bf16.gmra.mxu3 %v10684_v7  ;;  %v3711_v19 = vcvt.s32.f32 %v3519_v18  ;;  %v3561_v18 = vunpack.c.1.s8 %v3429_v44  ;;  %v3609_v7 = vunpack.c.1.s8 %v3441_v17 }
 0x563   :  { %v3843_v53 = vpack.c.bf16 %v3663_v20, %v3660_v55  ;;  %v3750_v55 = vcvt.s32.f32 %v3558_v11  ;;  %v3465_v11 = vunpack.c.1.s8 %v3405_v2 }
 0x564   :  { %v11015_v6 = vadd.f32 %v10929_v31, %v4571_v36  ;;  %v3867_v25 = vpack.c.bf16 %v3711_v19, %v3708_v26  ;;  %v3606_v36 = vunpack.c.0.s8 %v3441_v17  ;;  %v3753_v20 = vcvt.s32.f32 %v3561_v18 }
 0x565   :  { %v4082_v40 = vpop.f32.mrf.mxu2  ;;  %v4131_v33 = vpop.f32.mrf.mxu3  ;;  %4356 = vmatpush.bf16.msrb.mxu0 %v3843_v53  ;;  %v3801_v19 = vcvt.s32.f32 %v3609_v7  ;;  %v3462_v7 = vunpack.c.0.s8 %v3405_v2  ;;  %v3513_v18 = vunpack.c.1.s8 %v11005_v10 }
 0x566   :  { %v13271_v50 = vmax.f32 %v11015_v6, 0.0  ;;  %v4083_v57 = vadd.f32 %v4082_v40, %v4034_v43  ;;  %v3986_v30 = vpop.f32.mrf.mxu0  ;;  %v4035_v24 = vpop.f32.mrf.mxu1  ;;  %4405 = vmatpush.bf16.msra.mxu1 %v3867_v25  ;;  %v3798_v26 = vcvt.s32.f32 %v3606_v36 }
 0x567   :  { %v4036_v23 = vadd.f32 %v4035_v24, %v3986_v30  ;;  %v3888_v30 = vpack.c.bf16 %v3753_v20, %v3750_v55  ;;  %v3654_v36 = vcvt.s32.f32 %v3462_v7  ;;  %v3657_v55 = vcvt.s32.f32 %v3465_v11  ;;  %v3426_v7 = vld [vmem:[%s13014_s2 + $0xd0] sm:$0xff] }
 0x568   :  { %v4712_v38 = vadd.f32 %v4711_v4, %v13271_v50  ;;  %v4132_v13 = vadd.f32 %v4131_v33, %v4083_v57  ;;  %v3912_v25 = vpack.c.bf16 %v3801_v19, %v3798_v26  ;;  %v3705_v20 = vcvt.s32.f32 %v3513_v18  ;;  %v3438_v11 = vld [vmem:[%s13014_s2 + $0x130] sm:$0xff] }
 0x569   :  { %4455 = vmatpush.bf16.msra.mxu2 %v3888_v30  ;;  %v3840_v26 = vpack.c.bf16 %v3657_v55, %v3654_v36  ;;  %v3555_v18 = vunpack.c.3.s8 %v3426_v7 }
 0x56a   :  { %v4574_v48 = vmul.f32 %v10920_v9, %v4132_v13  ;;  %4504 = vmatpush.bf16.msra.mxu3 %v3912_v25 }
 0x56b   :  { %4357 = vmatpush.bf16.msrb.mxu0 %v3840_v26 }
 0x56c   :  { %v11022_v43 = vadd.f32 %v10929_v31, %v4574_v48  ;;  %v3510_v48 = vunpack.c.0.s8 %v11005_v10 }
 0x56d   :  { %v4084_v40 = vpop.f32.mrf.mxu2  ;;  %v4133_v53 = vpop.f32.mrf.mxu3 }
 0x56e   :  { %v13270_v4 = vmax.f32 %v11022_v43, 0.0  ;;  %v4085_v57 = vadd.f32 %v4084_v40, %v4036_v23  ;;  %v3989_v33 = vpop.f32.mrf.mxu0  ;;  %v4038_v44 = vpop.f32.mrf.mxu1 }
 0x56f   :  { %v4039_v17 = vadd.f32 %v4038_v44, %v3989_v33 }
 0x570   :  { %v4713_v24 = vadd.f32 %v4712_v38, %v13270_v4  ;;  %v4134_v13 = vadd.f32 %v4133_v53, %v4085_v57  ;;  %v3702_v38 = vcvt.s32.f32 %v3510_v48  ;;  %v3552_v48 = vunpack.c.2.s8 %v3426_v7 }
 0x571   :  { %4184 = vmatmul.bf16.gmra.mxu0 %v10704_v37  ;;  %4233 = vmatmul.bf16.gmra.mxu1 %v10709_v21 }
 0x572   :  { %v4577_v23 = vmul.f32 %v10920_v9, %v4134_v13  ;;  %4282 = vmatmul.bf16.gmra.mxu2 %v10725_v49  ;;  %4331 = vmatmul.bf16.gmra.mxu3 %v10753_v29  ;;  %v3864_v40 = vpack.c.bf16 %v3705_v20, %v3702_v38  ;;  %v3744_v55 = vcvt.s32.f32 %v3552_v48  ;;  %v3747_v38 = vcvt.s32.f32 %v3555_v18  ;;  %v3402_v18 = vld [vmem:[%s13014_s2 + $0x10] sm:$0xff] }
 0x574   :  { %v11035_v2 = vadd.f32 %v10929_v31, %v4577_v23  ;;  %4406 = vmatpush.bf16.msra.mxu1 %v3864_v40  ;;  %v3603_v23 = vunpack.c.3.s8 %v3438_v11  ;;  %v3885_v40 = vpack.c.bf16 %v3747_v38, %v3744_v55 }
 0x575   :  { %v4087_v19 = vpop.f32.mrf.mxu2  ;;  %v4136_v30 = vpop.f32.mrf.mxu3 }
 0x576   :  { %v13269_v53 = vmax.f32 %v11035_v2, 0.0  ;;  %v4088_v10 = vadd.f32 %v4087_v19, %v4039_v17  ;;  %v3991_v25 = vpop.f32.mrf.mxu0  ;;  %v4040_v57 = vpop.f32.mrf.mxu1  ;;  %v3600_v17 = vunpack.c.2.s8 %v3438_v11  ;;  %v3795_v26 = vcvt.s32.f32 %v3603_v23  ;;  %4456 = vmatpush.bf16.msra.mxu2 %v3885_v40 }
 0x577   :  { %v4041_v33 = vadd.f32 %v4040_v57, %v3991_v25 }
 0x578   :  { %v4714_v44 = vadd.f32 %v4713_v24, %v13269_v53  ;;  %v4137_v13 = vadd.f32 %v4136_v30, %v4088_v10  ;;  %v3792_v20 = vcvt.s32.f32 %v3600_v17  ;;  %v11059_v17 = vld [vmem:[%s13014_s2 + $0x70] sm:$0xff] }
 0x57a   :  { %v4580_v36 = vmul.f32 %v10920_v9, %v4137_v13  ;;  %v3909_v10 = vpack.c.bf16 %v3795_v26, %v3792_v20 }
 0x57c   :  { %v11048_v24 = vadd.f32 %v10929_v31, %v4580_v36  ;;  %4505 = vmatpush.bf16.msra.mxu3 %v3909_v10 }
 0x57d   :  { %v4089_v19 = vpop.f32.mrf.mxu2  ;;  %v4138_v30 = vpop.f32.mrf.mxu3 }
 0x57e   :  { %v13272_v25 = vmax.f32 %v11048_v24, 0.0  ;;  %v4090_v57 = vadd.f32 %v4089_v19, %v4041_v33  ;;  %v3994_v53 = vpop.f32.mrf.mxu0  ;;  %v4043_v4 = vpop.f32.mrf.mxu1  ;;  %v3504_v33 = vunpack.c.2.s8 %v11059_v17 }
 0x57f   :  { %v4044_v50 = vadd.f32 %v4043_v4, %v3994_v53  ;;  %v3456_v4 = vunpack.c.2.s8 %v3402_v18  ;;  %v3459_v53 = vunpack.c.3.s8 %v3402_v18 }
 0x580   :  { %v4715_v13 = vadd.f32 %v4714_v44, %v13272_v25  ;;  %v4139_v48 = vadd.f32 %v4138_v30, %v4090_v57  ;;  %v3507_v44 = vunpack.c.3.s8 %v11059_v17  ;;  %v3696_v38 = vcvt.s32.f32 %v3504_v33 }
 0x581   :  { %4189 = vmatmul.bf16.gmra.mxu0 %v10765_v62  ;;  %4238 = vmatmul.bf16.gmra.mxu1 %v10775_v0  ;;  %v3648_v36 = vcvt.s32.f32 %v3456_v4  ;;  %v3651_v55 = vcvt.s32.f32 %v3459_v53  ;;  %v3546_v33 = vunpack.c.0.s8 %v3426_v7 }
 0x582   :  { %v4583_v23 = vmul.f32 %v10920_v9, %v4139_v48  ;;  %4287 = vmatmul.bf16.gmra.mxu2 %v10788_v46  ;;  %4336 = vmatmul.bf16.gmra.mxu3 %v10794_v45  ;;  %v3699_v20 = vcvt.s32.f32 %v3507_v44  ;;  %v3549_v44 = vunpack.c.1.s8 %v3426_v7  ;;  %v3597_v45 = vunpack.c.1.s8 %v3438_v11 }
 0x583   :  { %v3837_v40 = vpack.c.bf16 %v3651_v55, %v3648_v36  ;;  %v3738_v36 = vcvt.s32.f32 %v3546_v33  ;;  %v3453_v33 = vunpack.c.1.s8 %v3402_v18 }
 0x584   :  { %v11069_v26 = vadd.f32 %v10929_v31, %v4583_v23  ;;  %v3861_v10 = vpack.c.bf16 %v3699_v20, %v3696_v38  ;;  %v3594_v23 = vunpack.c.0.s8 %v3438_v11  ;;  %v3741_v55 = vcvt.s32.f32 %v3549_v44 }
 0x585   :  { %v4092_v19 = vpop.f32.mrf.mxu2  ;;  %v4141_v30 = vpop.f32.mrf.mxu3  ;;  %4358 = vmatpush.bf16.msrb.mxu0 %v3837_v40  ;;  %v3789_v20 = vcvt.s32.f32 %v3597_v45  ;;  %v3450_v45 = vunpack.c.0.s8 %v3402_v18  ;;  %v3501_v44 = vunpack.c.1.s8 %v11059_v17 }
 0x586   :  { %v4687_v57 = vmax.f32 %v11069_v26, 0.0  ;;  %v4093_v25 = vadd.f32 %v4092_v19, %v4044_v50  ;;  %v3996_v0 = vpop.f32.mrf.mxu0  ;;  %v4045_v48 = vpop.f32.mrf.mxu1  ;;  %4407 = vmatpush.bf16.msra.mxu1 %v3861_v10  ;;  %v3786_v38 = vcvt.s32.f32 %v3594_v23 }
 0x587   :  { %v4046_v62 = vadd.f32 %v4045_v48, %v3996_v0  ;;  %v3882_v0 = vpack.c.bf16 %v3741_v55, %v3738_v36  ;;  %v3642_v23 = vcvt.s32.f32 %v3450_v45  ;;  %v3645_v36 = vcvt.s32.f32 %v3453_v33 }
 0x588   :  { %v4716_v4 = vadd.f32 %v4715_v13, %v4687_v57  ;;  %v4142_v53 = vadd.f32 %v4141_v30, %v4093_v25  ;;  %v3906_v10 = vpack.c.bf16 %v3789_v20, %v3786_v38  ;;  %v3693_v55 = vcvt.s32.f32 %v3501_v44 }
 0x589   :  { %4457 = vmatpush.bf16.msra.mxu2 %v3882_v0  ;;  %v3834_v38 = vpack.c.bf16 %v3645_v36, %v3642_v23 }
 0x58a   :  { %v4586_v46 = vmul.f32 %v10920_v9, %v4142_v53  ;;  %4506 = vmatpush.bf16.msra.mxu3 %v3906_v10 }
 0x58b   :  { %4359 = vmatpush.bf16.msrb.mxu0 %v3834_v38 }
 0x58c   :  { %v11076_v50 = vadd.f32 %v10929_v31, %v4586_v46  ;;  %v3498_v46 = vunpack.c.0.s8 %v11059_v17 }
 0x58d   :  { %v4094_v19 = vpop.f32.mrf.mxu2  ;;  %v4143_v40 = vpop.f32.mrf.mxu3 }
 0x58e   :  { %v4690_v13 = vmax.f32 %v11076_v50, 0.0  ;;  %v4095_v25 = vadd.f32 %v4094_v19, %v4046_v62  ;;  %v3999_v30 = vpop.f32.mrf.mxu0  ;;  %v4048_v7 = vpop.f32.mrf.mxu1 }
 0x58f   :  { %v4049_v11 = vadd.f32 %v4048_v7, %v3999_v30 }
 0x590   :  { %v4717_v48 = vadd.f32 %v4716_v4, %v4690_v13  ;;  %v4144_v53 = vadd.f32 %v4143_v40, %v4095_v25  ;;  %v3690_v4 = vcvt.s32.f32 %v3498_v46 }
 0x591   :  { %4194 = vmatmul.bf16.gmra.mxu0 %v10800_v58  ;;  %4243 = vmatmul.bf16.gmra.mxu1 %v10807_v51 }
 0x592   :  { %v4589_v62 = vmul.f32 %v10920_v9, %v4144_v53  ;;  %4292 = vmatmul.bf16.gmra.mxu2 %v10830_v22  ;;  %4341 = vmatmul.bf16.gmra.mxu3 %v10832_v14  ;;  %v3858_v19 = vpack.c.bf16 %v3693_v55, %v3690_v4 }
 0x594   :  { %v11089_v18 = vadd.f32 %v10929_v31, %v4589_v62  ;;  %4408 = vmatpush.bf16.msra.mxu1 %v3858_v19 }
 0x595   :  { %v4097_v20 = vpop.f32.mrf.mxu2  ;;  %v4146_v0 = vpop.f32.mrf.mxu3 }
 0x596   :  { %v13277_v40 = vmax.f32 %v11089_v18, 0.0  ;;  %v4098_v17 = vadd.f32 %v4097_v20, %v4049_v11  ;;  %v4001_v10 = vpop.f32.mrf.mxu0  ;;  %v4050_v25 = vpop.f32.mrf.mxu1 }
 0x597   :  { %v4051_v30 = vadd.f32 %v4050_v25, %v4001_v10 }
 0x598   :  { %v4718_v7 = vadd.f32 %v4717_v48, %v13277_v40  ;;  %v4147_v53 = vadd.f32 %v4146_v0, %v4098_v17 }
 0x59a   :  { %v4592_v45 = vmul.f32 %v10920_v9, %v4147_v53 }
 0x59c   :  { %v11096_v33 = vadd.f32 %v10929_v31, %v4592_v45 }
 0x59d   :  { %v4099_v46 = vpop.f32.mrf.mxu2  ;;  %v4148_v44 = vpop.f32.mrf.mxu3 }
 0x59e   :  { %v4696_v62 = vmax.f32 %v11096_v33, 0.0  ;;  %v4100_v23 = vadd.f32 %v4099_v46, %v4051_v30  ;;  %v4004_v11 = vpop.f32.mrf.mxu0  ;;  %v4053_v36 = vpop.f32.mrf.mxu1 }
 0x59f   :  { %v4054_v4 = vadd.f32 %v4053_v36, %v4004_v11 }
 0x5a0   :  { %v4719_v55 = vadd.f32 %v4718_v7, %v4696_v62  ;;  %v4149_v38 = vadd.f32 %v4148_v44, %v4100_v23 }
 0x5a1   :  { %4199 = vmatmul.bf16.gmra.mxu0 %v10841_v61  ;;  %4248 = vmatmul.bf16.gmra.mxu1 %v10853_v63 }
 0x5a2   :  { %v4595_v48 = vmul.f32 %v10920_v9, %v4149_v38  ;;  %4297 = vmatmul.bf16.gmra.mxu2 %v10856_v5  ;;  %4346 = vmatmul.bf16.gmra.mxu3 %v10858_v35 }
 0x5a4   :  { %v4651_v20 = vadd.f32 %v10929_v31, %v4595_v48 }
 0x5a5   :  { %v4102_v0 = vpop.f32.mrf.mxu2  ;;  %v4151_v19 = vpop.f32.mrf.mxu3 }
 0x5a6   :  { %v4699_v17 = vmax.f32 %v4651_v20, 0.0  ;;  %v4103_v10 = vadd.f32 %v4102_v0, %v4054_v4  ;;  %v4006_v25 = vpop.f32.mrf.mxu0  ;;  %v4055_v30 = vpop.f32.mrf.mxu1 }
 0x5a7   :  { %v4056_v7 = vadd.f32 %v4055_v30, %v4006_v25 }
 0x5a8   :  { %v4720_v53 = vadd.f32 %v4719_v55, %v4699_v17  ;;  %v4152_v45 = vadd.f32 %v4151_v19, %v4103_v10 }
 0x5aa   :  { %v4598_v33 = vmul.f32 %v10920_v9, %v4152_v45 }
 0x5ac   :  { %v4654_v46 = vadd.f32 %v10929_v31, %v4598_v33 }
 0x5ad   :  { %v4104_v44 = vpop.f32.mrf.mxu2  ;;  %v4153_v36 = vpop.f32.mrf.mxu3 }
 0x5ae   :  { %v4702_v23 = vmax.f32 %v4654_v46, 0.0  ;;  %v4105_v11 = vadd.f32 %v4104_v44, %v4056_v7  ;;  %v4214_v26 = vpop.f32.mrf.mxu1 }
 0x5b0   :  { %v4721_v38 = vadd.f32 %v4720_v53, %v4702_v23  ;;  %v4154_v40 = vadd.f32 %v4153_v36, %v4105_v11 }
 0x5b1   :  { %4360 = vmatmul.bf16.vlgmr.msrb.gmra.mxu0 %v10536_v8  ;;  %4409 = vmatmul.bf16.vlgmr.msra.gmra.mxu1 %v10538_v34 }
 0x5b2   :  { %v4601_v4 = vmul.f32 %v10920_v9, %v4154_v40  ;;  %4458 = vmatmul.bf16.vlgmr.msra.gmra.mxu2 %v10544_v60  ;;  %4507 = vmatmul.bf16.vlgmr.msra.gmra.mxu3 %v10546_v32  ;;  %v13752_v60 = vld [vmem:[#allocation48_spill] sm:$0xff]  ;;  %v13753_v9 = vmax.f32 %v10948_v39, 0.0  ;;  %v13755_v40 = vmax.f32 %v10954_v52, 0.0  ;;  %v13763_v39 = vmax.f32 %v11015_v6, 0.0 }
 0x5b3   :  { %v13764_v52 = vmax.f32 %v11022_v43, 0.0  ;;  %v13769_v43 = vmax.f32 %v11089_v18, 0.0 }
 0x5b4   :  { %v4657_v55 = vadd.f32 %v10929_v31, %v4601_v4  ;;  %v4165_v4 = vpop.f32.mrf.mxu0 }
 0x5b5   :  { %v4263_v50 = vpop.f32.mrf.mxu2 }
 0x5b6   :  { %v4705_v48 = vmax.f32 %v4657_v55, 0.0 }
 0x5b8   :  { %v4722_v20 = vadd.f32 %v4721_v38, %v4705_v48 }
 0x5ba   :  { %v4723_v0 = vrot.slane %v4722_v20, 4 }
 0x5bc   :  { %v4724_v19 = vadd.f32 %v4723_v0, %v4722_v20 }
 0x5bd   :  { %v4265_v20 = vpop.f32.mrf.mxu2 }
 0x5be   :  { %v4725_v10 = vrot.slane %v4724_v19, 2 }
 0x5c0   :  { %v4726_v25 = vadd.f32 %v4725_v10, %v4724_v19 }
 0x5c1   :  { %4365 = vmatmul.bf16.gmra.mxu0 %v10564_v47  ;;  %4414 = vmatmul.bf16.gmra.mxu1 %v10571_v16  ;;  %v13757_v47 = vmax.f32 %v10966_v3, 0.0  ;;  %v13759_v16 = vmax.f32 %v10981_v15, 0.0  ;;  %v13766_v3 = vmax.f32 %v11035_v2, 0.0  ;;  %v13768_v15 = vmax.f32 %v11048_v24, 0.0 }
 0x5c2   :  { %v4727_v8 = vrot.slane %v4726_v25, 1  ;;  %4463 = vmatmul.bf16.gmra.mxu2 %v10578_v59  ;;  %4512 = vmatmul.bf16.gmra.mxu3 %v10584_v41  ;;  %v13761_v41 = vmax.f32 %v10994_v42, 0.0 }
 0x5c4   :  { %v4728_v34 = vadd.f32 %v4727_v8, %v4726_v25 }
 0x5c6   :  { %v4771_v32 = vmul.f32 %v4728_v34, %v13752_v60 }
 0x5c8   :  { %v11120_v31 = vsub.f32 %v13753_v9, %v4771_v32  ;;  %v11124_v30 = vsub.f32 %v13755_v40, %v4771_v32  ;;  %v11128_v7 = vsub.f32 %v13757_v47, %v4771_v32  ;;  %v11132_v59 = vsub.f32 %v13759_v16, %v4771_v32  ;;  %v13776_v40 = vld [vmem:[#allocation22_spill] sm:$0xff]  ;;  %v4268_v47 = vpop.f32.mrf.mxu2 }
 0x5c9   :  { %v11136_v53 = vsub.f32 %v13761_v41, %v4771_v32  ;;  %v11140_v45 = vsub.f32 %v13763_v39, %v4771_v32  ;;  %v11144_v33 = vsub.f32 %v13764_v52, %v4771_v32  ;;  %v11148_v46 = vsub.f32 %v13766_v3, %v4771_v32 }
 0x5ca   :  { %13754 = vst [vmem:[#allocation23_spill] sm:$0xff] %v11120_v31  ;;  %v11152_v44 = vsub.f32 %v13768_v15, %v4771_v32  ;;  %v11156_v42 = vsub.f32 %v4687_v57, %v4771_v32  ;;  %v11160_v6 = vsub.f32 %v4690_v13, %v4771_v32  ;;  %v11164_v11 = vsub.f32 %v13769_v43, %v4771_v32  ;;  %v4312_v13 = vpop.f32.mrf.mxu3 }
 0x5cb   :  { %13756 = vst [vmem:[#allocation8_spill] sm:$0xff] %v11124_v30  ;;  %v11166_v36 = vsub.f32 %v4696_v62, %v4771_v32  ;;  %v11168_v2 = vsub.f32 %v4699_v17, %v4771_v32  ;;  %v11170_v38 = vsub.f32 %v4702_v23, %v4771_v32  ;;  %v11172_v24 = vsub.f32 %v4705_v48, %v4771_v32  ;;  %v4167_v62 = vpop.f32.mrf.mxu0  ;;  %v4216_v17 = vpop.f32.mrf.mxu1  ;;  %v13774_v32 = vld [vmem:[#allocation79_spill] sm:$0xff] }
 0x5cc   :  { %13758 = vst [vmem:[#allocation9_spill] sm:$0xff] %v11128_v7  ;;  %v4215_v57 = vadd.f32 %v4214_v26, %v4165_v4  ;;  %v4217_v55 = vadd.f32 %v4216_v17, %v4167_v62  ;;  %v11179_v48 = vperm.slane %v10907_v12, 1  ;;  %v13775_v12 = vld [vmem:[#allocation4_spill] sm:$0xff] }
 0x5cd   :  { %13760 = vst [vmem:[#allocation14_spill] sm:$0xff] %v11132_v59 }
 0x5ce   :  { %13762 = vst [vmem:[#allocation15_spill] sm:$0xff] %v11136_v53  ;;  %v4264_v18 = vadd.f32 %v4263_v50, %v4215_v57 }
 0x5cf   :  { %13765 = vst [vmem:[#allocation16_spill] sm:$0xff] %v11144_v33 }
 0x5d0   :  { %13767 = vst [vmem:[#allocation24_spill] sm:$0xff] %v11148_v46  ;;  %v4313_v23 = vadd.f32 %v4312_v13, %v4264_v18  ;;  %v4270_v13 = vpop.f32.mrf.mxu2 }
 0x5d1   :  { %13770 = vst [vmem:[#allocation20_spill] sm:$0xff] %v11166_v36  ;;  %4370 = vmatmul.bf16.gmra.mxu0 %v10611_v54  ;;  %4419 = vmatmul.bf16.gmra.mxu1 %v10626_v56  ;;  %v11183_v56 = vperm.slane %v10925_v28, 1  ;;  %v13777_v28 = vld [vmem:[#allocation5_spill] sm:$0xff] }
 0x5d2   :  { %13771 = vst [vmem:[#allocation21_spill] sm:$0xff] %v11168_v2  ;;  %4468 = vmatmul.bf16.gmra.mxu2 %v10636_v1  ;;  %4517 = vmatmul.bf16.gmra.mxu3 %v13751_v27  ;;  %v4314_v0 = vpop.f32.mrf.mxu3  ;;  %v4557_v54 = vmul.f32 %v11179_v48, %v4313_v23  ;;  %v4266_v1 = vadd.f32 %v4265_v20, %v4217_v55 }
 0x5d3   :  { %13772 = vst [vmem:[#allocation29_spill] sm:$0xff] %v11170_v38  ;;  %v4170_v19 = vpop.f32.mrf.mxu0  ;;  %v4219_v27 = vpop.f32.mrf.mxu1 }
 0x5d4   :  { %13773 = vst [vmem:[#allocation42_spill] sm:$0xff] %v11172_v24  ;;  %v4315_v10 = vadd.f32 %v4314_v0, %v4266_v1  ;;  %v4220_v25 = vadd.f32 %v4219_v27, %v4170_v19  ;;  %v11186_v8 = vadd.f32 %v11183_v56, %v4557_v54 }
 0x5d6   :  { %v4560_v34 = vmul.f32 %v11179_v48, %v4315_v10  ;;  %v4661_v41 = vmax.f32 %v11186_v8, 0.0  ;;  %v4269_v52 = vadd.f32 %v4268_v47, %v4220_v25 }
 0x5d8   :  { %v11192_v9 = vadd.f32 %v11183_v56, %v4560_v34  ;;  %v4273_v27 = vpop.f32.mrf.mxu2 }
 0x5da   :  { %v4317_v16 = vpop.f32.mrf.mxu3  ;;  %v4664_v39 = vmax.f32 %v11192_v9, 0.0 }
 0x5db   :  { %v4172_v3 = vpop.f32.mrf.mxu0  ;;  %v4221_v15 = vpop.f32.mrf.mxu1  ;;  %v4318_v4 = vadd.f32 %v4317_v16, %v4269_v52 }
 0x5dc   :  { %v4729_v43 = vadd.f32 %v4664_v39, %v4661_v41  ;;  %v4222_v26 = vadd.f32 %v4221_v15, %v4172_v3 }
 0x5dd   :  { %v4563_v57 = vmul.f32 %v11179_v48, %v4318_v4 }
 0x5de   :  { %v4271_v17 = vadd.f32 %v4270_v13, %v4222_v26  ;;  %v13778_v13 = vld [vmem:[#allocation36_spill] sm:$0xff] }
 0x5df   :  { %v11204_v50 = vadd.f32 %v11183_v56, %v4563_v57 }
 0x5e1   :  { %4375 = vmatmul.bf16.gmra.mxu0 %v13774_v32  ;;  %4424 = vmatmul.bf16.gmra.mxu1 %v13775_v12  ;;  %v4667_v62 = vmax.f32 %v11204_v50, 0.0 }
 0x5e2   :  { %4473 = vmatmul.bf16.gmra.mxu2 %v13776_v40  ;;  %4522 = vmatmul.bf16.gmra.mxu3 %v13777_v28  ;;  %v4319_v18 = vpop.f32.mrf.mxu3 }
 0x5e3   :  { %v4175_v23 = vpop.f32.mrf.mxu0  ;;  %v4224_v55 = vpop.f32.mrf.mxu1  ;;  %v4730_v20 = vadd.f32 %v4729_v43, %v4667_v62  ;;  %v4320_v0 = vadd.f32 %v4319_v18, %v4271_v17  ;;  %v13779_v18 = vld [vmem:[#allocation13_spill] sm:$0xff] }
 0x5e4   :  { %v4225_v54 = vadd.f32 %v4224_v55, %v4175_v23  ;;  %v13780_v23 = vld [vmem:[#allocation6_spill] sm:$0xff]  ;;  %v13781_v55 = vld [vmem:[#allocation7_spill] sm:$0xff] }
 0x5e5   :  { %v4566_v1 = vmul.f32 %v11179_v48, %v4320_v0 }
 0x5e6   :  { %v4274_v34 = vadd.f32 %v4273_v27, %v4225_v54 }
 0x5e7   :  { %v11213_v19 = vadd.f32 %v11183_v56, %v4566_v1 }
 0x5e9   :  { %v4670_v25 = vmax.f32 %v11213_v19, 0.0 }
 0x5ea   :  { %v4322_v10 = vpop.f32.mrf.mxu3 }
 0x5eb   :  { %v4177_v32 = vpop.f32.mrf.mxu0  ;;  %v4226_v12 = vpop.f32.mrf.mxu1  ;;  %v4731_v40 = vadd.f32 %v4730_v20, %v4670_v25 }
 0x5ec   :  { %v4227_v28 = vadd.f32 %v4226_v12, %v4177_v32 }
 0x5f1   :  { %4380 = vmatmul.bf16.gmra.mxu0 %v10704_v37  ;;  %4429 = vmatmul.bf16.gmra.mxu1 %v10709_v21  ;;  %v4323_v37 = vadd.f32 %v4322_v10, %v4274_v34 }
 0x5f2   :  { %4478 = vmatmul.bf16.gmra.mxu2 %v10725_v49  ;;  %4527 = vmatmul.bf16.gmra.mxu3 %v10753_v29  ;;  %v4275_v49 = vpop.f32.mrf.mxu2  ;;  %v4324_v16 = vpop.f32.mrf.mxu3 }
 0x5f3   :  { %v4569_v21 = vmul.f32 %v11179_v48, %v4323_v37  ;;  %v4276_v52 = vadd.f32 %v4275_v49, %v4227_v28  ;;  %v4180_v3 = vpop.f32.mrf.mxu0  ;;  %v4229_v15 = vpop.f32.mrf.mxu1 }
 0x5f4   :  { %v4230_v26 = vadd.f32 %v4229_v15, %v4180_v3 }
 0x5f5   :  { %v11222_v47 = vadd.f32 %v11183_v56, %v4569_v21  ;;  %v4325_v4 = vadd.f32 %v4324_v16, %v4276_v52 }
 0x5f7   :  { %v4673_v29 = vmax.f32 %v11222_v47, 0.0  ;;  %v4572_v57 = vmul.f32 %v11179_v48, %v4325_v4 }
 0x5f9   :  { %v4732_v43 = vadd.f32 %v4731_v40, %v4673_v29  ;;  %v11231_v17 = vadd.f32 %v11183_v56, %v4572_v57 }
 0x5fa   :  { %v4278_v20 = vpop.f32.mrf.mxu2  ;;  %v4327_v0 = vpop.f32.mrf.mxu3 }
 0x5fb   :  { %v4676_v54 = vmax.f32 %v11231_v17, 0.0  ;;  %v4279_v1 = vadd.f32 %v4278_v20, %v4230_v26  ;;  %v4182_v27 = vpop.f32.mrf.mxu0  ;;  %v4231_v10 = vpop.f32.mrf.mxu1 }
 0x5fc   :  { %v4232_v12 = vadd.f32 %v4231_v10, %v4182_v27 }
 0x5fd   :  { %v4733_v34 = vadd.f32 %v4732_v43, %v4676_v54  ;;  %v4328_v32 = vadd.f32 %v4327_v0, %v4279_v1 }
 0x5ff   :  { %v4575_v40 = vmul.f32 %v11179_v48, %v4328_v32 }
 0x601   :  { %4385 = vmatmul.bf16.gmra.mxu0 %v13778_v13  ;;  %4434 = vmatmul.bf16.gmra.mxu1 %v13779_v18  ;;  %v11240_v37 = vadd.f32 %v11183_v56, %v4575_v40 }
 0x602   :  { %4483 = vmatmul.bf16.gmra.mxu2 %v13780_v23  ;;  %4532 = vmatmul.bf16.gmra.mxu3 %v13781_v55  ;;  %v4280_v28 = vpop.f32.mrf.mxu2  ;;  %v4329_v21 = vpop.f32.mrf.mxu3 }
 0x603   :  { %v4679_v49 = vmax.f32 %v11240_v37, 0.0  ;;  %v4281_v16 = vadd.f32 %v4280_v28, %v4232_v12  ;;  %v4185_v52 = vpop.f32.mrf.mxu0  ;;  %v4234_v3 = vpop.f32.mrf.mxu1 }
 0x604   :  { %v4235_v26 = vadd.f32 %v4234_v3, %v4185_v52 }
 0x605   :  { %v4734_v15 = vadd.f32 %v4733_v34, %v4679_v49  ;;  %v4330_v4 = vadd.f32 %v4329_v21, %v4281_v16 }
 0x607   :  { %v4578_v43 = vmul.f32 %v11179_v48, %v4330_v4 }
 0x609   :  { %v11249_v57 = vadd.f32 %v11183_v56, %v4578_v43 }
 0x60a   :  { %v4283_v13 = vpop.f32.mrf.mxu2  ;;  %v4332_v18 = vpop.f32.mrf.mxu3 }
 0x60b   :  { %v13284_v23 = vmax.f32 %v11249_v57, 0.0  ;;  %v4284_v55 = vadd.f32 %v4283_v13, %v4235_v26  ;;  %v4187_v20 = vpop.f32.mrf.mxu0  ;;  %v4236_v0 = vpop.f32.mrf.mxu1 }
 0x60c   :  { %v4237_v10 = vadd.f32 %v4236_v0, %v4187_v20 }
 0x60d   :  { %v4735_v1 = vadd.f32 %v4734_v15, %v13284_v23 }
 0x611   :  { %4390 = vmatmul.bf16.gmra.mxu0 %v10800_v58  ;;  %4439 = vmatmul.bf16.gmra.mxu1 %v10807_v51  ;;  %v4333_v58 = vadd.f32 %v4332_v18, %v4284_v55 }
 0x612   :  { %4488 = vmatmul.bf16.gmra.mxu2 %v10830_v22  ;;  %4537 = vmatmul.bf16.gmra.mxu3 %v10832_v14  ;;  %v4285_v22 = vpop.f32.mrf.mxu2  ;;  %v4334_v34 = vpop.f32.mrf.mxu3 }
 0x613   :  { %v4581_v51 = vmul.f32 %v11179_v48, %v4333_v58  ;;  %v4286_v32 = vadd.f32 %v4285_v22, %v4237_v10  ;;  %v4190_v12 = vpop.f32.mrf.mxu0  ;;  %v4239_v40 = vpop.f32.mrf.mxu1 }
 0x614   :  { %v4240_v16 = vadd.f32 %v4239_v40, %v4190_v12 }
 0x615   :  { %v11258_v27 = vadd.f32 %v11183_v56, %v4581_v51  ;;  %v4335_v21 = vadd.f32 %v4334_v34, %v4286_v32 }
 0x617   :  { %v13283_v14 = vmax.f32 %v11258_v27, 0.0  ;;  %v4584_v52 = vmul.f32 %v11179_v48, %v4335_v21 }
 0x619   :  { %v4736_v28 = vadd.f32 %v4735_v1, %v13283_v14  ;;  %v11269_v4 = vadd.f32 %v11183_v56, %v4584_v52 }
 0x61a   :  { %v4288_v3 = vpop.f32.mrf.mxu2  ;;  %v4337_v15 = vpop.f32.mrf.mxu3 }
 0x61b   :  { %v4289_v26 = vadd.f32 %v4288_v3, %v4240_v16  ;;  %v4192_v43 = vpop.f32.mrf.mxu0  ;;  %v4241_v13 = vpop.f32.mrf.mxu1  ;;  %v13279_v55 = vmax.f32 %v11269_v4, 0.0 }
 0x61d   :  { %v4338_v18 = vadd.f32 %v4337_v15, %v4289_v26 }
 0x61f   :  { %v4587_v20 = vmul.f32 %v11179_v48, %v4338_v18 }
 0x621   :  { %4395 = vmatmul.bf16.gmra.mxu0 %v10841_v61  ;;  %4444 = vmatmul.bf16.gmra.mxu1 %v10853_v63  ;;  %v11274_v61 = vadd.f32 %v11183_v56, %v4587_v20  ;;  %v4242_v63 = vadd.f32 %v4241_v13, %v4192_v43 }
 0x622   :  { %4493 = vmatmul.bf16.gmra.mxu2 %v10856_v5  ;;  %4542 = vmatmul.bf16.gmra.mxu3 %v10858_v35  ;;  %v4290_v5 = vpop.f32.mrf.mxu2  ;;  %v4339_v0 = vpop.f32.mrf.mxu3  ;;  %v4737_v35 = vadd.f32 %v4736_v28, %v13279_v55 }
 0x623   :  { %v13281_v1 = vmax.f32 %v11274_v61, 0.0  ;;  %v4291_v58 = vadd.f32 %v4290_v5, %v4242_v63  ;;  %v4195_v51 = vpop.f32.mrf.mxu0  ;;  %v4244_v10 = vpop.f32.mrf.mxu1 }
 0x624   :  { %v4245_v32 = vadd.f32 %v4244_v10, %v4195_v51 }
 0x625   :  { %v4738_v22 = vadd.f32 %v4737_v35, %v13281_v1  ;;  %v4340_v34 = vadd.f32 %v4339_v0, %v4291_v58 }
 0x627   :  { %v4590_v12 = vmul.f32 %v11179_v48, %v4340_v34 }
 0x629   :  { %v11283_v16 = vadd.f32 %v11183_v56, %v4590_v12 }
 0x62a   :  { %v4293_v40 = vpop.f32.mrf.mxu2  ;;  %v4342_v21 = vpop.f32.mrf.mxu3 }
 0x62b   :  { %v4294_v52 = vadd.f32 %v4293_v40, %v4245_v32  ;;  %v4197_v3 = vpop.f32.mrf.mxu0  ;;  %v4246_v28 = vpop.f32.mrf.mxu1  ;;  %v13278_v26 = vmax.f32 %v11283_v16, 0.0 }
 0x62c   :  { %v4247_v18 = vadd.f32 %v4246_v28, %v4197_v3 }
 0x62d   :  { %v4343_v15 = vadd.f32 %v4342_v21, %v4294_v52  ;;  %v4739_v5 = vadd.f32 %v4738_v22, %v13278_v26 }
 0x62f   :  { %v4593_v43 = vmul.f32 %v11179_v48, %v4343_v15 }
 0x631   :  { %v11288_v13 = vadd.f32 %v11183_v56, %v4593_v43 }
 0x632   :  { %v4295_v20 = vpop.f32.mrf.mxu2  ;;  %v4344_v63 = vpop.f32.mrf.mxu3 }
 0x633   :  { %v13280_v0 = vmax.f32 %v11288_v13, 0.0  ;;  %v4296_v35 = vadd.f32 %v4295_v20, %v4247_v18  ;;  %v4200_v58 = vpop.f32.mrf.mxu0  ;;  %v4249_v51 = vpop.f32.mrf.mxu1  ;;  %v13794_v17 = vmax.f32 %v11288_v13, 0.0 }
 0x634   :  { %v4250_v32 = vadd.f32 %v4249_v51, %v4200_v58 }
 0x635   :  { %v4740_v10 = vadd.f32 %v4739_v5, %v13280_v0  ;;  %v4345_v34 = vadd.f32 %v4344_v63, %v4296_v35 }
 0x637   :  { %v4596_v12 = vmul.f32 %v11179_v48, %v4345_v34 }
 0x639   :  { %v11297_v52 = vadd.f32 %v11183_v56, %v4596_v12 }
 0x63a   :  { %v4298_v40 = vpop.f32.mrf.mxu2  ;;  %v4347_v21 = vpop.f32.mrf.mxu3 }
 0x63b   :  { %v4299_v3 = vadd.f32 %v4298_v40, %v4250_v32  ;;  %v4202_v28 = vpop.f32.mrf.mxu0  ;;  %v4251_v22 = vpop.f32.mrf.mxu1  ;;  %v13282_v43 = vmax.f32 %v11297_v52, 0.0 }
 0x63c   :  { %v4252_v5 = vadd.f32 %v4251_v22, %v4202_v28 }
 0x63d   :  { %v4348_v15 = vadd.f32 %v4347_v21, %v4299_v3  ;;  %v4741_v58 = vadd.f32 %v4740_v10, %v13282_v43 }
 0x63f   :  { %v4599_v18 = vmul.f32 %v11179_v48, %v4348_v15 }
 0x641   :  { %v4655_v20 = vadd.f32 %v11183_v56, %v4599_v18 }
 0x642   :  { %v4300_v63 = vpop.f32.mrf.mxu2  ;;  %v4349_v35 = vpop.f32.mrf.mxu3 }
 0x643   :  { %v4703_v51 = vmax.f32 %v4655_v20, 0.0  ;;  %v4301_v34 = vadd.f32 %v4300_v63, %v4252_v5  ;;  %v4361_v12 = vpop.f32.mrf.mxu0  ;;  %v4410_v26 = vpop.f32.mrf.mxu1 }
 0x644   :  { %v4411_v55 = vadd.f32 %v4410_v26, %v4361_v12 }
 0x645   :  { %v4742_v32 = vadd.f32 %v4741_v58, %v4703_v51  ;;  %v4350_v40 = vadd.f32 %v4349_v35, %v4301_v34 }
 0x647   :  { %v4602_v21 = vmul.f32 %v11179_v48, %v4350_v40 }
 0x649   :  { %v11306_v3 = vadd.f32 %v11183_v56, %v4602_v21 }
 0x64a   :  { %v4459_v15 = vpop.f32.mrf.mxu2  ;;  %v4508_v18 = vpop.f32.mrf.mxu3 }
 0x64b   :  { %13782 = vst [vmem:[#allocation43_spill] sm:$0xff] %v11306_v3  ;;  %v13290_v28 = vmax.f32 %v11306_v3, 0.0  ;;  %v4460_v22 = vadd.f32 %v4459_v15, %v4411_v55  ;;  %v4363_v0 = vpop.f32.mrf.mxu0  ;;  %v4412_v1 = vpop.f32.mrf.mxu1 }
 0x64c   :  { %v4413_v12 = vadd.f32 %v4412_v1, %v4363_v0 }
 0x64d   :  { %v4743_v10 = vadd.f32 %v4742_v32, %v13290_v28  ;;  %v4509_v20 = vadd.f32 %v4508_v18, %v4460_v22  ;;  %v6901_v22 = vld [vmem:[%s13013_s6 + $0x19] sm:$0x7] }
 0x64f   :  { %v4744_v5 = vrot.slane %v4743_v10, 4 }
 0x651   :  { %v4745_v63 = vadd.f32 %v4744_v5, %v4743_v10  ;;  %v11317_v10 = vperm.slane %v6901_v22, 2 }
 0x652   :  { %v4461_v35 = vpop.f32.mrf.mxu2  ;;  %v4510_v26 = vpop.f32.mrf.mxu3 }
 0x653   :  { %v4746_v58 = vrot.slane %v4745_v63, 2  ;;  %v4366_v48 = vpop.f32.mrf.mxu0  ;;  %v4415_v34 = vpop.f32.mrf.mxu1  ;;  %v4462_v43 = vadd.f32 %v4461_v35, %v4413_v12 }
 0x654   :  { %v4416_v40 = vadd.f32 %v4415_v34, %v4366_v48 }
 0x655   :  { %v4747_v56 = vadd.f32 %v4746_v58, %v4745_v63  ;;  %v4511_v32 = vadd.f32 %v4510_v26, %v4462_v43 }
 0x657   :  { %v4748_v21 = vrot.slane %v4747_v56, 1 }
 0x659   :  { %v4749_v14 = vadd.f32 %v4748_v21, %v4747_v56 }
 0x65a   :  { %v4464_v55 = vpop.f32.mrf.mxu2  ;;  %v4513_v15 = vpop.f32.mrf.mxu3 }
 0x65b   :  { %v11312_v23 = vmul.f32 %v4749_v14, %v13752_v60  ;;  %v4465_v18 = vadd.f32 %v4464_v55, %v4416_v40  ;;  %v4368_v5 = vpop.f32.mrf.mxu0  ;;  %v4417_v63 = vpop.f32.mrf.mxu1 }
 0x65c   :  { %v4418_v34 = vadd.f32 %v4417_v63, %v4368_v5 }
 0x65d   :  { %v11322_v1 = vsub.f32 %v4661_v41, %v11312_v23  ;;  %v11327_v14 = vsub.f32 %v4664_v39, %v11312_v23  ;;  %v11332_v0 = vsub.f32 %v4667_v62, %v11312_v23  ;;  %v11337_v43 = vsub.f32 %v4670_v25, %v11312_v23 }
 0x65e   :  { %v11342_v8 = vsub.f32 %v4673_v29, %v11312_v23  ;;  %v11347_v9 = vsub.f32 %v4676_v54, %v11312_v23  ;;  %v11352_v41 = vsub.f32 %v4679_v49, %v11312_v23  ;;  %v13790_v39 = vmax.f32 %v11249_v57, 0.0  ;;  %v6902_v57 = vld [vmem:[%s13013_s6 + $0x10] sm:$0x7] }
 0x65f   :  { %13783 = vst [vmem:[#allocation33_spill] sm:$0xff] %v11322_v1  ;;  %v13792_v62 = vmax.f32 %v11258_v27, 0.0  ;;  %v13793_v25 = vmax.f32 %v11274_v61, 0.0  ;;  %v4561_v29 = vmul.f32 %v11317_v10, %v4511_v32  ;;  %v11373_v54 = vsub.f32 %v13794_v17, %v11312_v23 }
 0x660   :  { %13784 = vst [vmem:[#allocation44_spill] sm:$0xff] %v11327_v14  ;;  %v11357_v50 = vsub.f32 %v13790_v39, %v11312_v23  ;;  %v11376_v37 = vsub.f32 %v4703_v51, %v11312_v23  ;;  %v4558_v49 = vmul.f32 %v11317_v10, %v4509_v20  ;;  %v11382_v27 = vperm.slane %v6902_v57, 2 }
 0x661   :  { %13785 = vst [vmem:[#allocation45_spill] sm:$0xff] %v11332_v0  ;;  %v11362_v19 = vsub.f32 %v13792_v62, %v11312_v23  ;;  %v11367_v47 = vsub.f32 %v13793_v25, %v11312_v23  ;;  %v4514_v51 = vadd.f32 %v4513_v15, %v4465_v18  ;;  %v4841_v24 = vmul.f32 %v11352_v41, %v11352_v41 }
 0x662   :  { %13786 = vst [vmem:[#allocation35_spill] sm:$0xff] %v11337_v43  ;;  %v4466_v61 = vpop.f32.mrf.mxu2  ;;  %v4515_v35 = vpop.f32.mrf.mxu3  ;;  %v11385_v26 = vadd.f32 %v11382_v27, %v4561_v29  ;;  %v11388_v48 = vadd.f32 %v11382_v27, %v4558_v49 }
 0x663   :  { %13787 = vst [vmem:[#allocation46_spill] sm:$0xff] %v11342_v8  ;;  %v4371_v58 = vpop.f32.mrf.mxu0  ;;  %v4420_v13 = vpop.f32.mrf.mxu1  ;;  %v4564_v12 = vmul.f32 %v11317_v10, %v4514_v51  ;;  %v4467_v40 = vadd.f32 %v4466_v61, %v4418_v34 }
 0x664   :  { %13788 = vst [vmem:[#allocation47_spill] sm:$0xff] %v11347_v9  ;;  %v4421_v56 = vadd.f32 %v4420_v13, %v4371_v58  ;;  %v13288_v20 = vmax.f32 %v11385_v26, 0.0  ;;  %v13289_v21 = vmax.f32 %v11388_v48, 0.0 }
 0x665   :  { %13789 = vst [vmem:[#allocation37_spill] sm:$0xff] %v11352_v41  ;;  %v11394_v55 = vadd.f32 %v11382_v27, %v4564_v12  ;;  %v4516_v32 = vadd.f32 %v4515_v35, %v4467_v40 }
 0x666   :  { %13791 = vst [vmem:[#allocation50_spill] sm:$0xff] %v11357_v50  ;;  %v4750_v15 = vadd.f32 %v13288_v20, %v13289_v21  ;;  %v4829_v20 = vmul.f32 %v11332_v0, %v11332_v0  ;;  %v4835_v0 = vmul.f32 %v11342_v8, %v11342_v8 }
 0x667   :  { %13795 = vst [vmem:[#allocation51_spill] sm:$0xff] %v11376_v37  ;;  %v13287_v18 = vmax.f32 %v11394_v55, 0.0  ;;  %v4567_v5 = vmul.f32 %v11317_v10, %v4516_v32 }
 0x668   :  { %13796 = vst [vmem:[#allocation39_spill] sm:$0xff] %v11385_v26 }
 0x669   :  { %13797 = vst [vmem:[#allocation54_spill] sm:$0xff] %v11388_v48  ;;  %v4751_v29 = vadd.f32 %v4750_v15, %v13287_v18  ;;  %v11409_v17 = vadd.f32 %v11382_v27, %v4567_v5  ;;  %v4825_v18 = vmul.f32 %v11124_v30, %v11124_v30 }
 0x66a   :  { %13798 = vst [vmem:[#allocation55_spill] sm:$0xff] %v11394_v55  ;;  %v4469_v22 = vpop.f32.mrf.mxu2  ;;  %v4518_v39 = vpop.f32.mrf.mxu3 }
 0x66b   :  { %v4470_v63 = vadd.f32 %v4469_v22, %v4421_v56  ;;  %v11402_v62 = vpop.f32.mrf.mxu0  ;;  %v11404_v25 = vpop.f32.mrf.mxu1  ;;  %13799 = vst [vmem:[#allocation58_spill] sm:$0xff] %v11409_v17  ;;  %v13285_v57 = vmax.f32 %v11409_v17, 0.0 }
 0x66d   :  { %v4519_v49 = vadd.f32 %v4518_v39, %v4470_v63  ;;  %v4752_v51 = vadd.f32 %v4751_v29, %v13285_v57  ;;  %v4823_v29 = vmul.f32 %v11322_v1, %v11322_v1 }
 0x66f   :  { %v4570_v61 = vmul.f32 %v11317_v10, %v4519_v49  ;;  %v4826_v49 = vmul.f32 %v11327_v14, %v11327_v14 }
 0x671   :  { %v11414_v35 = vadd.f32 %v11382_v27, %v4570_v61  ;;  %v4891_v57 = vadd.f32 %v4826_v49, %v4823_v29  ;;  %v4832_v29 = vmul.f32 %v11337_v43, %v11337_v43  ;;  %v4828_v49 = vmul.f32 %v11128_v7, %v11128_v7 }
 0x672   :  { %v11416_v58 = vpop.f32.mrf.mxu2  ;;  %v11418_v13 = vpop.f32.mrf.mxu3 }
 0x673   :  { %13800 = vst [vmem:[#allocation59_spill] sm:$0xff] %v11414_v35  ;;  %v13286_v34 = vmax.f32 %v11414_v35, 0.0  ;;  %v11423_v56 = vpop.f32.mrf.mxu0  ;;  %v11425_v12 = vpop.f32.mrf.mxu1  ;;  %v4892_v1 = vadd.f32 %v4891_v57, %v4829_v20  ;;  %v4831_v20 = vmul.f32 %v11132_v59, %v11132_v59 }
 0x675   :  { %v11429_v40 = vadd.f32 %v4752_v51, %v13286_v34  ;;  %v4822_v34 = vmul.f32 %v11120_v31, %v11120_v31  ;;  %v4893_v30 = vadd.f32 %v4892_v1, %v4832_v29  ;;  %v4838_v1 = vmul.f32 %v11347_v9, %v11347_v9  ;;  %v5104_v29 = vld [vmem:[%s13015_s3 + $0x70] sm:$0xff] }
 0x676   :  { %v5174_v59 = vunpack.c.2.s8 %v5104_v29 }
 0x677   :  { %13801 = vst [vmem:[#allocation62_spill] sm:$0xff] %v11429_v40  ;;  %v4870_v35 = vadd.f32 %v4825_v18, %v4822_v34  ;;  %v4894_v57 = vadd.f32 %v4893_v30, %v4835_v0  ;;  %v5176_v30 = vunpack.c.3.s8 %v5104_v29  ;;  %v4834_v0 = vmul.f32 %v11136_v53, %v11136_v53 }
 0x678   :  { %v5270_v48 = vcvt.s32.f32 %v5174_v59  ;;  %v4837_v40 = vmul.f32 %v11140_v45, %v11140_v45 }
 0x679   :  { %v4871_v31 = vadd.f32 %v4870_v35, %v4828_v49  ;;  %v5096_v35 = vld [vmem:[%s13015_s3 + $0x30] sm:$0xff]  ;;  %v4895_v7 = vadd.f32 %v4894_v57, %v4838_v1  ;;  %v5272_v9 = vcvt.s32.f32 %v5176_v30 }
 0x67a   :  { %v11431_v32 = vpop.f32.mrf.mxu2  ;;  %v11433_v22 = vpop.f32.mrf.mxu3  ;;  %v5142_v49 = vunpack.c.2.s8 %v5096_v35  ;;  %v5144_v8 = vunpack.c.3.s8 %v5096_v35 }
 0x67b   :  { %v11435_v39 = vpop.f32.mrf.mxu0  ;;  %v11437_v15 = vpop.f32.mrf.mxu1  ;;  %v4872_v43 = vadd.f32 %v4871_v31, %v4831_v20  ;;  %v5336_v3 = vpack.c.bf16 %v5272_v9, %v5270_v48  ;;  %v4896_v36 = vadd.f32 %v4895_v7, %v4841_v24  ;;  %v13802_v9 = vmax.f32 %v11269_v4, 0.0 }
 0x67c   :  { %v5238_v31 = vcvt.s32.f32 %v5142_v49  ;;  %v5240_v20 = vcvt.s32.f32 %v5144_v8  ;;  %v4840_v8 = vmul.f32 %v11144_v33, %v11144_v33  ;;  %v4847_v7 = vmul.f32 %v11362_v19, %v11362_v19 }
 0x67d   :  { %v4873_v60 = vadd.f32 %v4872_v43, %v4834_v0  ;;  %5427 = vmatpush.bf16.msrb.mxu1 %v5336_v3  ;;  %v4844_v43 = vmul.f32 %v11357_v50, %v11357_v50  ;;  %v11506_v48 = vsub.f32 %v13802_v9, %v11312_v23  ;;  %v4423_v24 = vadd.f32 %v11404_v25, %v11402_v62 }
 0x67e   :  { %v5320_v37 = vpack.c.bf16 %v5240_v20, %v5238_v31  ;;  %v4426_v4 = vadd.f32 %v11425_v12, %v11423_v56  ;;  %v4428_v25 = vadd.f32 %v11437_v15, %v11435_v39  ;;  %v13803_v39 = vmax.f32 %v11283_v16, 0.0 }
 0x67f   :  { %v4874_v59 = vadd.f32 %v4873_v60, %v4837_v40  ;;  %v4897_v1 = vadd.f32 %v4896_v36, %v4844_v43  ;;  %v4472_v36 = vadd.f32 %v11416_v58, %v4423_v24  ;;  %v4850_v20 = vmul.f32 %v11506_v48, %v11506_v48 }
 0x680   :  { %5378 = vmatpush.bf16.msra.mxu0 %v5320_v37  ;;  %v4843_v37 = vmul.f32 %v11148_v46, %v11148_v46  ;;  %v4475_v62 = vadd.f32 %v11431_v32, %v4426_v4  ;;  %v5140_v43 = vunpack.c.1.s8 %v5096_v35  ;;  %v4846_v58 = vmul.f32 %v11152_v44, %v11152_v44 }
 0x681   :  { %v4875_v49 = vadd.f32 %v4874_v59, %v4840_v8  ;;  %v4898_v40 = vadd.f32 %v4897_v1, %v4847_v7  ;;  %v5138_v59 = vunpack.c.0.s8 %v5096_v35  ;;  %v5170_v8 = vunpack.c.0.s8 %v5104_v29 }
 0x682   :  { %v11439_v5 = vpop.f32.mrf.mxu2  ;;  %v11441_v63 = vpop.f32.mrf.mxu3  ;;  %v5172_v1 = vunpack.c.1.s8 %v5104_v29  ;;  %v4521_v56 = vadd.f32 %v11418_v13, %v4472_v36  ;;  %v5236_v7 = vcvt.s32.f32 %v5140_v43  ;;  %v11531_v15 = vsub.f32 %v13803_v39, %v11312_v23 }
 0x683   :  { %v11447_v61 = vpop.f32.mrf.mxu0  ;;  %v11449_v51 = vpop.f32.mrf.mxu1  ;;  %v4876_v31 = vadd.f32 %v4875_v49, %v4843_v37  ;;  %v4899_v9 = vadd.f32 %v4898_v40, %v4850_v20  ;;  %v4477_v12 = vadd.f32 %v11439_v5, %v4428_v25  ;;  %v5234_v49 = vcvt.s32.f32 %v5138_v59 }
 0x684   :  { %v5266_v24 = vcvt.s32.f32 %v5170_v8  ;;  %v5268_v37 = vcvt.s32.f32 %v5172_v1  ;;  %v4431_v35 = vadd.f32 %v11449_v51, %v11447_v61  ;;  %v4853_v29 = vmul.f32 %v11367_v47, %v11367_v47 }
 0x685   :  { %v4877_v32 = vadd.f32 %v4876_v31, %v4846_v58  ;;  %v4524_v13 = vadd.f32 %v11433_v22, %v4475_v62  ;;  %v5318_v36 = vpack.c.bf16 %v5236_v7, %v5234_v49  ;;  %v4849_v31 = vmul.f32 %v11156_v42, %v11156_v42 }
 0x686   :  { %v5334_v4 = vpack.c.bf16 %v5268_v37, %v5266_v24  ;;  %v4900_v25 = vadd.f32 %v4899_v9, %v4853_v29  ;;  %v4573_v61 = vmul.f32 %v11317_v10, %v4521_v56  ;;  %v4526_v51 = vadd.f32 %v11441_v63, %v4477_v12 }
 0x687   :  { %5379 = vmatpush.bf16.msra.mxu0 %v5318_v36  ;;  %v4878_v8 = vadd.f32 %v4877_v32, %v4849_v31  ;;  %v4852_v58 = vmul.f32 %v11160_v6, %v11160_v6 }
 0x688   :  { %5428 = vmatpush.bf16.msrb.mxu1 %v5334_v4 }
 0x689   :  { %v4879_v49 = vadd.f32 %v4878_v8, %v4852_v58  ;;  %v13809_v58 = vld [vmem:[#allocation51_spill] sm:$0xff] }
 0x68a   :  { %v11457_v21 = vpop.f32.mrf.mxu2  ;;  %v11459_v28 = vpop.f32.mrf.mxu3 }
 0x68b   :  { %v11461_v14 = vpop.f32.mrf.mxu0  ;;  %v11463_v17 = vpop.f32.mrf.mxu1  ;;  %v4480_v20 = vadd.f32 %v11457_v21, %v4431_v35  ;;  %v4856_v21 = vmul.f32 %v11531_v15, %v11531_v15 }
 0x68c   :  { %v4433_v16 = vadd.f32 %v11463_v17, %v11461_v14  ;;  %v4576_v14 = vmul.f32 %v11317_v10, %v4524_v13 }
 0x68d   :  { %v4529_v17 = vadd.f32 %v11459_v28, %v4480_v20  ;;  %v4901_v9 = vadd.f32 %v4900_v25, %v4856_v21  ;;  %v13804_v28 = vmax.f32 %v11297_v52, 0.0 }
 0x68f   :  { %v11563_v7 = vsub.f32 %v13804_v28, %v11312_v23  ;;  %v4582_v37 = vmul.f32 %v11317_v10, %v4529_v17 }
 0x691   :  { %v11584_v20 = vadd.f32 %v11382_v27, %v4582_v37 }
 0x692   :  { %v11471_v55 = vpop.f32.mrf.mxu2  ;;  %v11473_v26 = vpop.f32.mrf.mxu3 }
 0x693   :  { %v11477_v18 = vpop.f32.mrf.mxu0  ;;  %v11479_v34 = vpop.f32.mrf.mxu1  ;;  %v4482_v22 = vadd.f32 %v11471_v55, %v4433_v16  ;;  %v11556_v55 = vadd.f32 %v11382_v27, %v4573_v61  ;;  %v13805_v61 = vld [vmem:[#allocation20_spill] sm:$0xff] }
 0x694   :  { %v4436_v62 = vadd.f32 %v11479_v34, %v11477_v18  ;;  %v4579_v18 = vmul.f32 %v11317_v10, %v4526_v51  ;;  %v4858_v51 = vmul.f32 %v13805_v61, %v13805_v61 }
 0x695   :  { %v4531_v34 = vadd.f32 %v11473_v26, %v4482_v22  ;;  %v4677_v32 = vmax.f32 %v11556_v55, 0.0 }
 0x696   :  { %v11576_v39 = vadd.f32 %v11382_v27, %v4579_v18 }
 0x697   :  { %v4585_v13 = vmul.f32 %v11317_v10, %v4531_v34 }
 0x698   :  { %v4683_v22 = vmax.f32 %v11576_v39, 0.0 }
 0x69a   :  { %v11493_v38 = vpop.f32.mrf.mxu2  ;;  %v11495_v2 = vpop.f32.mrf.mxu3 }
 0x69b   :  { %v4388_v53 = vpop.f32.mrf.mxu0  ;;  %v4437_v57 = vpop.f32.mrf.mxu1  ;;  %v4485_v1 = vadd.f32 %v11493_v38, %v4436_v62  ;;  %v11568_v38 = vadd.f32 %v11382_v27, %v4576_v14  ;;  %v11594_v62 = vadd.f32 %v11382_v27, %v4585_v13 }
 0x69c   :  { %v4438_v63 = vadd.f32 %v4437_v57, %v4388_v53  ;;  %v4859_v53 = vmul.f32 %v11373_v54, %v11373_v54 }
 0x69d   :  { %v4534_v26 = vadd.f32 %v11495_v2, %v4485_v1  ;;  %v4862_v2 = vmul.f32 %v11563_v7, %v11563_v7 }
 0x69e   :  { %v4902_v52 = vadd.f32 %v4901_v9, %v4859_v53  ;;  %v4865_v9 = vmul.f32 %v13809_v58, %v13809_v58 }
 0x69f   :  { %v4588_v16 = vmul.f32 %v11317_v10, %v4534_v26  ;;  %v4689_v26 = vmax.f32 %v11594_v62, 0.0 }
 0x6a2   :  { %v4486_v60 = vpop.f32.mrf.mxu2  ;;  %v11512_v3 = vpop.f32.mrf.mxu3 }
 0x6a3   :  { %v4391_v30 = vpop.f32.mrf.mxu0  ;;  %v4440_v0 = vpop.f32.mrf.mxu1  ;;  %v4487_v56 = vadd.f32 %v4486_v60, %v4438_v63 }
 0x6a4   :  { %v4441_v12 = vadd.f32 %v4440_v0, %v4391_v30  ;;  %v4855_v0 = vmul.f32 %v11164_v11, %v11164_v11 }
 0x6a5   :  { %v4536_v36 = vadd.f32 %v11512_v3, %v4487_v56  ;;  %v13806_v3 = vld [vmem:[#allocation62_spill] sm:$0xff] }
 0x6a6   :  { %v4880_v31 = vadd.f32 %v4879_v49, %v4855_v0  ;;  %v11608_v49 = vadd.f32 %v11382_v27, %v4588_v16  ;;  %v13811_v16 = vld [vmem:[#allocation29_spill] sm:$0xff] }
 0x6a7   :  { %v4591_v8 = vmul.f32 %v11317_v10, %v4536_v36 }
 0x6a8   :  { %v4881_v17 = vadd.f32 %v4880_v31, %v4858_v51 }
 0x6aa   :  { %v4489_v40 = vpop.f32.mrf.mxu2  ;;  %v4538_v5 = vpop.f32.mrf.mxu3 }
 0x6ab   :  { %v4393_v59 = vpop.f32.mrf.mxu0  ;;  %v4442_v43 = vpop.f32.mrf.mxu1  ;;  %v4490_v60 = vadd.f32 %v4489_v40, %v4441_v12  ;;  %v4680_v40 = vmax.f32 %v11568_v38, 0.0  ;;  %v4686_v12 = vmax.f32 %v11584_v20, 0.0 }
 0x6ac   :  { %v4443_v30 = vadd.f32 %v4442_v43, %v4393_v59  ;;  %v4903_v59 = vadd.f32 %v4902_v52, %v4862_v2  ;;  %v4754_v43 = vadd.f32 %v13806_v3, %v4677_v32 }
 0x6ad   :  { %v4539_v25 = vadd.f32 %v4538_v5, %v4490_v60  ;;  %v13807_v5 = vld [vmem:[#allocation43_spill] sm:$0xff]  ;;  %v11617_v60 = vadd.f32 %v11382_v27, %v4591_v8 }
 0x6ae   :  { %v13808_v1 = vmax.f32 %v13807_v5, 0.0  ;;  %v4755_v18 = vadd.f32 %v4754_v43, %v4680_v40 }
 0x6af   :  { %v4594_v28 = vmul.f32 %v11317_v10, %v4539_v25  ;;  %v4864_v25 = vmul.f32 %v13811_v16, %v13811_v16  ;;  %v4695_v3 = vmax.f32 %v11617_v60, 0.0 }
 0x6b0   :  { %v11600_v63 = vsub.f32 %v13808_v1, %v11312_v23  ;;  %v4756_v37 = vadd.f32 %v4755_v18, %v4683_v22  ;;  %v13812_v18 = vld [vmem:[#allocation42_spill] sm:$0xff] }
 0x6b1   :  { %v11626_v31 = vadd.f32 %v11382_v27, %v4594_v28 }
 0x6b2   :  { %v4491_v57 = vpop.f32.mrf.mxu2  ;;  %v4540_v24 = vpop.f32.mrf.mxu3  ;;  %v4757_v36 = vadd.f32 %v4756_v37, %v4686_v12 }
 0x6b3   :  { %v4396_v35 = vpop.f32.mrf.mxu0  ;;  %v4445_v29 = vpop.f32.mrf.mxu1  ;;  %v4492_v4 = vadd.f32 %v4491_v57, %v4443_v30  ;;  %v13810_v57 = vld [vmem:[#allocation21_spill] sm:$0xff]  ;;  %v13316_v5 = vmax.f32 %v11626_v31, 0.0 }
 0x6b4   :  { %v4446_v14 = vadd.f32 %v4445_v29, %v4396_v35  ;;  %v4861_v23 = vmul.f32 %v13810_v57, %v13810_v57  ;;  %v4868_v35 = vmul.f32 %v11600_v63, %v11600_v63 }
 0x6b5   :  { %v4541_v21 = vadd.f32 %v4540_v24, %v4492_v4  ;;  %v4904_v24 = vadd.f32 %v4903_v59, %v4865_v9  ;;  %v4692_v4 = vmax.f32 %v11608_v49, 0.0  ;;  %v4758_v59 = vadd.f32 %v4757_v36, %v4689_v26 }
 0x6b6   :  { %v4882_v52 = vadd.f32 %v4881_v17, %v4861_v23 }
 0x6b7   :  { %v4597_v30 = vmul.f32 %v11317_v10, %v4541_v21  ;;  %v4905_v51 = vadd.f32 %v4904_v24, %v4868_v35  ;;  %v4759_v17 = vadd.f32 %v4758_v59, %v4692_v4 }
 0x6b8   :  { %v4883_v21 = vadd.f32 %v4882_v52, %v4864_v25 }
 0x6b9   :  { %v11635_v43 = vadd.f32 %v11382_v27, %v4597_v30  ;;  %v4906_v28 = vrot.slane %v4905_v51, 4 }
 0x6ba   :  { %v4494_v34 = vpop.f32.mrf.mxu2  ;;  %v4543_v56 = vpop.f32.mrf.mxu3 }
 0x6bb   :  { %v4495_v53 = vadd.f32 %v4494_v34, %v4446_v14  ;;  %v4398_v29 = vpop.f32.mrf.mxu0  ;;  %v4447_v13 = vpop.f32.mrf.mxu1  ;;  %v4867_v34 = vmul.f32 %v13812_v18, %v13812_v18  ;;  %v13315_v23 = vmax.f32 %v11635_v43, 0.0  ;;  %v4907_v35 = vadd.f32 %v4906_v28, %v4905_v51 }
 0x6bc   :  { %v4448_v8 = vadd.f32 %v4447_v13, %v4398_v29 }
 0x6bd   :  { %v4544_v0 = vadd.f32 %v4543_v56, %v4495_v53  ;;  %v4760_v53 = vadd.f32 %v4759_v17, %v4695_v3  ;;  %v4884_v37 = vadd.f32 %v4883_v21, %v4867_v34  ;;  %v4908_v59 = vrot.slane %v4907_v35, 2 }
 0x6bf   :  { %v4600_v2 = vmul.f32 %v11317_v10, %v4544_v0  ;;  %v4761_v30 = vadd.f32 %v4760_v53, %v13316_v5  ;;  %v4885_v36 = vrot.slane %v4884_v37, 4 }
 0x6c1   :  { %v11641_v1 = vadd.f32 %v11382_v27, %v4600_v2  ;;  %v4762_v29 = vadd.f32 %v4761_v30, %v13315_v23  ;;  %v4886_v21 = vadd.f32 %v4885_v36, %v4884_v37  ;;  %v13814_v23 = vld [vmem:[#allocation54_spill] sm:$0xff]  ;;  %v13816_v37 = vld [vmem:[#allocation39_spill] sm:$0xff] }
 0x6c2   :  { %v4496_v14 = vpop.f32.mrf.mxu2  ;;  %v4545_v56 = vpop.f32.mrf.mxu3  ;;  %v13815_v5 = vmax.f32 %v13814_v23, 0.0 }
 0x6c3   :  { %v4497_v9 = vadd.f32 %v4496_v14, %v4448_v8  ;;  %v13314_v0 = vmax.f32 %v11641_v1, 0.0  ;;  %v4887_v17 = vrot.slane %v4886_v21, 2 }
 0x6c5   :  { %v4546_v24 = vadd.f32 %v4545_v56, %v4497_v9  ;;  %v4763_v2 = vadd.f32 %v4762_v29, %v13314_v0 }
 0x6c7   :  { %v4603_v52 = vmul.f32 %v11317_v10, %v4546_v24  ;;  %v4909_v10 = vadd.f32 %v4908_v59, %v4907_v35  ;;  %v13817_v35 = vmax.f32 %v13816_v37, 0.0  ;;  %v13818_v59 = vld [vmem:[#allocation55_spill] sm:$0xff] }
 0x6c9   :  { %v11655_v13 = vadd.f32 %v11382_v27, %v4603_v52  ;;  %v4910_v34 = vrot.slane %v4909_v10, 1  ;;  %v4888_v27 = vadd.f32 %v4887_v17, %v4886_v21  ;;  %v13813_v52 = vld [vmem:[#allocation48_spill] sm:$0xff]  ;;  %v13820_v21 = vld [vmem:[#allocation59_spill] sm:$0xff] }
 0x6cb   :  { %v4707_v25 = vmax.f32 %v11655_v13, 0.0  ;;  %v4911_v53 = vadd.f32 %v4910_v34, %v4909_v10  ;;  %v4889_v30 = vrot.slane %v4888_v27, 1  ;;  %v13821_v10 = vmax.f32 %v13820_v21, 0.0 }
 0x6cd   :  { %v4764_v8 = vadd.f32 %v4763_v2, %v4707_v25  ;;  %v4934_v0 = vmul.f32 %v4911_v53, %v13813_v52  ;;  %v4890_v17 = vadd.f32 %v4889_v30, %v4888_v27 }
 0x6cf   :  { %v4765_v14 = vrot.slane %v4764_v8, 4  ;;  %v4933_v23 = vmul.f32 %v4890_v17, %v13813_v52 }
 0x6d1   :  { %v4766_v51 = vadd.f32 %v4765_v14, %v4764_v8  ;;  %v13819_v8 = vmax.f32 %v13818_v59, 0.0 }
 0x6d3   :  { %v4767_v9 = vrot.slane %v4766_v51, 2 }
 0x6d5   :  { %v4768_v56 = vadd.f32 %v4767_v9, %v4766_v51  ;;  %v4938_v9 = vadd.f32 1e-05, %v4934_v0 }
 0x6d7   :  { %v4769_v28 = vrot.slane %v4768_v56, 1  ;;  %6655 = vrsqrt.f32 %v4938_v9  ;;  %vm4956_vm2 = vweird.f32 %v4938_v9 }
 0x6d9   :  { %v4770_v24 = vadd.f32 %v4769_v28, %v4768_v56  ;;  %v13822_v56 = vld [vmem:[#allocation58_spill] sm:$0xff] }
 0x6da   :  { %v13823_v28 = vmax.f32 %v13822_v56, 0.0 }
 0x6db   :  { %v4773_v29 = vmul.f32 %v4770_v24, %v13813_v52 }
 0x6dd   :  { %v11666_v2 = vsub.f32 %v13815_v5, %v4773_v29  ;;  %v11670_v36 = vsub.f32 %v13817_v35, %v4773_v29  ;;  %v11674_v14 = vsub.f32 %v13819_v8, %v4773_v29  ;;  %v11678_v51 = vsub.f32 %v13821_v10, %v4773_v29  ;;  %v6656_v10 = vpop.eup %6655 }
 0x6de   :  { %v11687_v53 = vsub.f32 %v13823_v28, %v4773_v29  ;;  %v4937_v35 = vadd.f32 1e-05, %v4933_v23  ;;  %v11693_v0 = vsub.f32 %v4677_v32, %v4773_v29  ;;  %v11699_v59 = vsub.f32 %v4680_v40, %v4773_v29 }
 0x6df   :  { %v4824_v34 = vmul.f32 %v11666_v2, %v11666_v2  ;;  %v4827_v5 = vmul.f32 %v11670_v36, %v11670_v36  ;;  %v4830_v24 = vmul.f32 %v11674_v14, %v11674_v14  ;;  %v4836_v8 = vmul.f32 %v11678_v51, %v11678_v51 }
 0x6e0   :  { %v4833_v27 = vmul.f32 %v11687_v53, %v11687_v53  ;;  %13824 = vst [vmem:[#allocation75_spill] sm:$0xff] %v11699_v59  ;;  %6657 = vrsqrt.f32 %v4937_v35  ;;  %v11705_v17 = vsub.f32 %v4683_v22, %v4773_v29  ;;  %v4839_v55 = vmul.f32 %v11693_v0, %v11693_v0 }
 0x6e1   :  { %v4912_v37 = vadd.f32 %v4827_v5, %v4824_v34  ;;  %v11711_v34 = vsub.f32 %v4686_v12, %v4773_v29  ;;  %v4842_v38 = vmul.f32 %v11699_v59, %v11699_v59  ;;  %v4951_v5 = vmul.f32 %v6656_v10, %v4938_v9  ;;  %v11769_v9 = vld [vmem:[%s13015_s3 + $0x38] sm:$0xff] }
 0x6e2   :  { %13825 = vst [vmem:[#allocation19_spill] sm:$0xff] %v11705_v17  ;;  %v11717_v23 = vsub.f32 %v4689_v26, %v4773_v29  ;;  %v4845_v39 = vmul.f32 %v11705_v17, %v11705_v17  ;;  %v11723_v28 = vsub.f32 %v4692_v4, %v4773_v29  ;;  %vm4957_vm1 = vweird.f32 %v6656_v10  ;;  %v5100_v17 = vld [vmem:[%s13015_s3 + $0x50] sm:$0xff] }
 0x6e3   :  { %v4913_v30 = vadd.f32 %v4912_v37, %v4830_v24  ;;  %v4848_v20 = vmul.f32 %v11711_v34, %v11711_v34  ;;  %v4952_v24 = vmul.f32 %v6656_v10, %v4951_v5  ;;  %v11729_v37 = vsub.f32 %v4695_v3, %v4773_v29  ;;  %vm4958_vm3 = vmor %vm4956_vm2, %vm4957_vm1 }
 0x6e4   :  { %v4851_v62 = vmul.f32 %v11717_v23, %v11717_v23  ;;  %v4854_v49 = vmul.f32 %v11723_v28, %v11723_v28  ;;  %vm4946_vm5 = vweird.f32 %v4937_v35 }
 0x6e5   :  { %v4914_v21 = vadd.f32 %v4913_v30, %v4833_v27  ;;  %v13826_v30 = vmax.f32 %v11626_v31, 0.0  ;;  %v4857_v60 = vmul.f32 %v11729_v37, %v11729_v37 }
 0x6e6   :  { %v6658_v56 = vpop.eup %6657 }
 0x6e7   :  { %v4915_v32 = vadd.f32 %v4914_v21, %v4836_v8  ;;  %v4941_v27 = vmul.f32 %v6658_v56, %v4937_v35  ;;  %v11735_v8 = vsub.f32 %v13826_v30, %v4773_v29  ;;  %v4953_v21 = vmul.f32 0.5, %v4952_v24 }
 0x6e8   :  { %vm4947_vm4 = vweird.f32 %v6658_v56 }
 0x6e9   :  { %v4916_v40 = vadd.f32 %v4915_v32, %v4839_v55  ;;  %v13827_v55 = vmax.f32 %v11635_v43, 0.0  ;;  %v4860_v31 = vmul.f32 %v11735_v8, %v11735_v8  ;;  %vm4948_vm6 = vmor %vm4946_vm5, %vm4947_vm4 }
 0x6eb   :  { %v4917_v22 = vadd.f32 %v4916_v40, %v4842_v38  ;;  %v11741_v32 = vsub.f32 %v13827_v55, %v4773_v29  ;;  %v4942_v38 = vmul.f32 %v6658_v56, %v4941_v27  ;;  %v13828_v40 = vmax.f32 %v11641_v1, 0.0 }
 0x6ed   :  { %v4918_v12 = vadd.f32 %v4917_v22, %v4845_v39  ;;  %v11747_v5 = vsub.f32 %v13828_v40, %v4773_v29  ;;  %v4954_v22 = vsub.f32 1.5, %v4953_v21  ;;  %v4863_v43 = vmul.f32 %v11741_v32, %v11741_v32 }
 0x6ee   :  { %v4943_v24 = vmul.f32 0.5, %v4942_v38  ;;  %v11764_v38 = vld [vmem:[%s13015_s3 + $0xb0] sm:$0xff] }
 0x6ef   :  { %v4919_v26 = vadd.f32 %v4918_v12, %v4848_v20  ;;  %13829 = vst [vmem:[#allocation76_spill] sm:$0xff] %v11747_v5  ;;  %v11753_v20 = vsub.f32 %v4707_v25, %v4773_v29  ;;  %v5208_v35 = vunpack.c.3.s8 %v11764_v38 }
 0x6f1   :  { %v4920_v4 = vadd.f32 %v4919_v26, %v4851_v62  ;;  %13830 = vst [vmem:[#allocation32_spill] sm:$0xff] %v11753_v20  ;;  %v4866_v62 = vmul.f32 %v11747_v5, %v11747_v5  ;;  %v4955_v26 = vmul.f32 %v6656_v10, %v4954_v22  ;;  %v4869_v27 = vmul.f32 %v11753_v20, %v11753_v20 }
 0x6f2   :  { %v5143_v22 = vunpack.c.2.s8 %v11769_v9 }
 0x6f3   :  { %v4921_v3 = vadd.f32 %v4920_v4, %v4854_v49  ;;  %v4944_v49 = vsub.f32 1.5, %v4943_v24  ;;  %v4959_v25 = vsel %vm4958_vm3, %v6656_v10, %v4955_v26 }
 0x6f4   :  { %v4973_v21 = vrot.slane %v4959_v25, 7 }
 0x6f5   :  { %v4922_v39 = vadd.f32 %v4921_v3, %v4857_v60  ;;  %v4945_v4 = vmul.f32 %v6658_v56, %v4944_v49 }
 0x6f7   :  { %v4923_v12 = vadd.f32 %v4922_v39, %v4860_v31  ;;  %v4949_v3 = vsel %vm4948_vm6, %v6658_v56, %v4945_v4  ;;  %v5206_v31 = vunpack.c.2.s8 %v11764_v38  ;;  %v5094_v56 = vld [vmem:[%s13015_s3 + $0x20] sm:$0xff] }
 0x6f8   :  { %v11772_v10 = vsel %vm3245_vm8, %v4949_v3, %v4973_v21  ;;  %v5102_v39 = vld [vmem:[%s13015_s3 + $0x60] sm:$0xff]  ;;  %v5136_v26 = vunpack.c.3.s8 %v5094_v56  ;;  %v5130_v49 = vunpack.c.0.s8 %v5094_v56 }
 0x6f9   :  { %v4924_v1 = vadd.f32 %v4923_v12, %v4863_v43  ;;  %v5162_v25 = vunpack.c.0.s8 %v5102_v39  ;;  %v5164_v24 = vunpack.c.1.s8 %v5102_v39 }
 0x6fa   :  { %v5226_v12 = vcvt.s32.f32 %v5130_v49 }
 0x6fb   :  { %v4925_v30 = vadd.f32 %v4924_v1, %v4866_v62  ;;  %v5134_v1 = vunpack.c.2.s8 %v5094_v56  ;;  %v5258_v50 = vcvt.s32.f32 %v5162_v25  ;;  %v5260_v20 = vcvt.s32.f32 %v5164_v24  ;;  %v11798_v25 = vld [vmem:[%s13015_s3] sm:$0xff] }
 0x6fd   :  { %v4926_v13 = vadd.f32 %v4925_v30, %v4869_v27  ;;  %v5166_v27 = vunpack.c.2.s8 %v5102_v39  ;;  %v5168_v30 = vunpack.c.3.s8 %v5102_v39  ;;  %v5230_v21 = vcvt.s32.f32 %v5134_v1 }
 0x6fe   :  { %v5330_v39 = vpack.c.bf16 %v5260_v20, %v5258_v50  ;;  %v5156_v50 = vunpack.c.1.s8 %v5100_v17  ;;  %v5118_v20 = vunpack.c.2.s8 %v11798_v25 }
 0x6ff   :  { %v4927_v29 = vrot.slane %v4926_v13, 4  ;;  %v5264_v3 = vcvt.s32.f32 %v5168_v30 }
 0x701   :  { %v4928_v55 = vadd.f32 %v4927_v29, %v4926_v13  ;;  %v5132_v13 = vunpack.c.1.s8 %v5094_v56  ;;  %v5092_v29 = vld [vmem:[%s13015_s3 + $0x10] sm:$0xff] }
 0x702   :  { %v5126_v41 = vunpack.c.2.s8 %v5092_v29  ;;  %v5122_v49 = vunpack.c.0.s8 %v5092_v29 }
 0x703   :  { %v4929_v60 = vrot.slane %v4928_v55, 2  ;;  %v5228_v43 = vcvt.s32.f32 %v5132_v13  ;;  %v5124_v13 = vunpack.c.1.s8 %v5092_v29 }
 0x704   :  { %v5222_v1 = vcvt.s32.f32 %v5126_v41  ;;  %v5218_v41 = vcvt.s32.f32 %v5122_v49 }
 0x705   :  { %v4930_v40 = vadd.f32 %v4929_v60, %v4928_v55  ;;  %v5232_v55 = vcvt.s32.f32 %v5136_v26  ;;  %v5262_v60 = vcvt.s32.f32 %v5166_v27  ;;  %v5314_v33 = vpack.c.bf16 %v5228_v43, %v5226_v12 }
 0x706   :  { %v5158_v26 = vunpack.c.2.s8 %v5100_v17  ;;  %v5160_v27 = vunpack.c.3.s8 %v5100_v17 }
 0x707   :  { %v4931_v62 = vrot.slane %v4930_v40, 1  ;;  %v5316_v56 = vpack.c.bf16 %v5232_v55, %v5230_v21  ;;  %v5332_v46 = vpack.c.bf16 %v5264_v3, %v5262_v60  ;;  %v5154_v21 = vunpack.c.0.s8 %v5100_v17  ;;  %v11807_v55 = vld [vmem:[%s13015_s3 + $0x40] sm:$0xff] }
 0x708   :  { %v5254_v43 = vcvt.s32.f32 %v5158_v26  ;;  %v5256_v12 = vcvt.s32.f32 %v5160_v27  ;;  %v5214_v26 = vcvt.s32.f32 %v5118_v20  ;;  %v13831_v17 = vunpack.c.3.s8 %v11769_v9 }
 0x709   :  { %v4932_v4 = vadd.f32 %v4931_v62, %v4930_v40  ;;  %v5128_v40 = vunpack.c.3.s8 %v5092_v29  ;;  %5380 = vmatpush.bf16.msra.mxu0 %v5316_v56  ;;  %5429 = vmatpush.bf16.msrb.mxu1 %v5332_v46  ;;  %v5120_v29 = vunpack.c.3.s8 %v11798_v25  ;;  %v5250_v3 = vcvt.s32.f32 %v5154_v21 }
 0x70a   :  { %v5328_v46 = vpack.c.bf16 %v5256_v12, %v5254_v43  ;;  %v5302_v56 = vcvt.s32.f32 %v5206_v31  ;;  %v5241_v49 = vcvt.s32.f32 %v13831_v17  ;;  %v5152_v43 = vunpack.c.3.s8 %v11807_v55 }
 0x70b   :  { %v4935_v59 = vmul.f32 %v4932_v4, %v13813_v52  ;;  %v5224_v30 = vcvt.s32.f32 %v5128_v40  ;;  %v5220_v4 = vcvt.s32.f32 %v5124_v13  ;;  %v5304_v40 = vcvt.s32.f32 %v5208_v35 }
 0x70c   :  { %v5216_v27 = vcvt.s32.f32 %v5120_v29  ;;  %v5150_v13 = vunpack.c.2.s8 %v11807_v55  ;;  %v13832_v31 = vunpack.c.0.s8 %v11764_v38  ;;  %v5248_v29 = vcvt.s32.f32 %v5152_v43 }
 0x70d   :  { %v11793_v62 = vadd.f32 1e-05, %v4935_v59  ;;  %v5139_v59 = vunpack.c.0.s8 %v11769_v9  ;;  %v5312_v24 = vpack.c.bf16 %v5224_v30, %v5222_v1  ;;  %5381 = vmatpush.bf16.msra.mxu0 %v5314_v33  ;;  %5430 = vmatpush.bf16.msrb.mxu1 %v5330_v39  ;;  %v5310_v60 = vpack.c.bf16 %v5220_v4, %v5218_v41 }
 0x70e   :  { %v5252_v1 = vcvt.s32.f32 %v5156_v50  ;;  %v5239_v33 = vcvt.s32.f32 %v5143_v22  ;;  %v5352_v30 = vpack.c.bf16 %v5304_v40, %v5302_v56  ;;  %v5308_v41 = vpack.c.bf16 %v5216_v27, %v5214_v26  ;;  %v5110_v22 = vld [vmem:[%s13015_s3 + $0xa0] sm:$0xff]  ;;  %v5095_v50 = vld [vmem:[%s13015_s3 + $0x28] sm:$0xff] }
 0x70f   :  { %6659 = vrsqrt.f32 %v11793_v62  ;;  %v5298_v35 = vcvt.s32.f32 %v13832_v31  ;;  %v13833_v4 = vunpack.c.1.s8 %v11764_v38  ;;  %vm4966_vm7 = vweird.f32 %v11793_v62 }
 0x710   :  { %v5326_v39 = vpack.c.bf16 %v5252_v1, %v5250_v3  ;;  %5476 = vmatpush.bf16.msrb.mxu2 %v5352_v30  ;;  %v5246_v38 = vcvt.s32.f32 %v5150_v13  ;;  %v5141_v56 = vunpack.c.1.s8 %v11769_v9  ;;  %v5235_v40 = vcvt.s32.f32 %v5139_v59 }
 0x711   :  { %5382 = vmatpush.bf16.msra.mxu0 %v5312_v24  ;;  %v5300_v21 = vcvt.s32.f32 %v13833_v4  ;;  %5431 = vmatpush.bf16.msrb.mxu1 %v5328_v46  ;;  %v5321_v24 = vpack.c.bf16 %v5241_v49, %v5239_v33  ;;  %v5198_v26 = vunpack.c.2.s8 %v5110_v22  ;;  %v5200_v27 = vunpack.c.3.s8 %v5110_v22 }
 0x712   :  { %v5135_v17 = vunpack.c.2.s8 %v5095_v50  ;;  %v5324_v31 = vpack.c.bf16 %v5248_v29, %v5246_v38  ;;  %v5237_v4 = vcvt.s32.f32 %v5141_v56  ;;  %v5137_v52 = vunpack.c.3.s8 %v5095_v50 }
 0x713   :  { %v5350_v3 = vpack.c.bf16 %v5300_v21, %v5298_v35  ;;  %5525 = vmatpush.bf16.msrb.mxu3 %v5321_v24  ;;  %v5194_v5 = vunpack.c.0.s8 %v5110_v22  ;;  %v5294_v33 = vcvt.s32.f32 %v5198_v26  ;;  %v5296_v30 = vcvt.s32.f32 %v5200_v27  ;;  %v5108_v35 = vld [vmem:[%s13015_s3 + $0x90] sm:$0xff] }
 0x714   :  { %v5231_v49 = vcvt.s32.f32 %v5135_v17  ;;  %v5319_v13 = vpack.c.bf16 %v5237_v4, %v5235_v40  ;;  %v5233_v9 = vcvt.s32.f32 %v5137_v52  ;;  %v5196_v59 = vunpack.c.1.s8 %v5110_v22  ;;  %v5093_v52 = vld [vmem:[%s13015_s3 + $0x18] sm:$0xff] }
 0x715   :  { %v11813_v12 = vpop.eup %6659  ;;  %5383 = vmatpush.bf16.msra.mxu0 %v5310_v60  ;;  %5432 = vmatpush.bf16.msrb.mxu1 %v5326_v39  ;;  %v5290_v43 = vcvt.s32.f32 %v5194_v5  ;;  %v5348_v60 = vpack.c.bf16 %v5296_v30, %v5294_v33  ;;  %v5133_v24 = vunpack.c.1.s8 %v5095_v50  ;;  %v5114_v29 = vunpack.c.0.s8 %v11798_v25 }
 0x716   :  { %v4961_v20 = vmul.f32 %v11813_v12, %v11793_v62  ;;  %vm4967_vm9 = vweird.f32 %v11813_v12  ;;  %5477 = vmatpush.bf16.msrb.mxu2 %v5350_v3  ;;  %v5317_v38 = vpack.c.bf16 %v5233_v9, %v5231_v49  ;;  %v5292_v39 = vcvt.s32.f32 %v5196_v59 }
 0x717   :  { %5526 = vmatpush.bf16.msrb.mxu3 %v5319_v13  ;;  %v5116_v3 = vunpack.c.1.s8 %v11798_v25  ;;  %v5229_v56 = vcvt.s32.f32 %v5133_v24  ;;  %v5190_v40 = vunpack.c.2.s8 %v5108_v35  ;;  %vm4968_vm10 = vmor %vm4966_vm7, %vm4967_vm9  ;;  %v5192_v25 = vunpack.c.3.s8 %v5108_v35 }
 0x718   :  { %v4962_v1 = vmul.f32 %v11813_v12, %v4961_v20  ;;  %v5131_v20 = vunpack.c.0.s8 %v5095_v50  ;;  %v5210_v50 = vcvt.s32.f32 %v5114_v29  ;;  %v5127_v4 = vunpack.c.2.s8 %v5093_v52  ;;  %v5106_v29 = vld [vmem:[%s13015_s3 + $0x80] sm:$0xff] }
 0x719   :  { %5384 = vmatpush.bf16.msra.mxu0 %v5308_v41  ;;  %5433 = vmatpush.bf16.msrb.mxu1 %v5324_v31  ;;  %v5346_v41 = vpack.c.bf16 %v5292_v39, %v5290_v43  ;;  %v5286_v17 = vcvt.s32.f32 %v5190_v40  ;;  %v4936_v31 = vld [vmem:[%s13013_s6 + $0x13] sm:$0x7]  ;;  %v5288_v30 = vcvt.s32.f32 %v5192_v25  ;;  %v5129_v49 = vunpack.c.3.s8 %v5093_v52 }
 0x71a   :  { %v4963_v46 = vmul.f32 0.5, %v4962_v1  ;;  %5478 = vmatpush.bf16.msrb.mxu2 %v5348_v60  ;;  %v5227_v22 = vcvt.s32.f32 %v5131_v20  ;;  %v5212_v1 = vcvt.s32.f32 %v5116_v3  ;;  %v5223_v62 = vcvt.s32.f32 %v5127_v4 }
 0x71b   :  { %5527 = vmatpush.bf16.msrb.mxu3 %v5317_v38  ;;  %v5146_v13 = vunpack.c.0.s8 %v11807_v55  ;;  %v5148_v9 = vunpack.c.1.s8 %v11807_v55  ;;  %v5186_v59 = vunpack.c.0.s8 %v5108_v35  ;;  %v5344_v43 = vpack.c.bf16 %v5288_v30, %v5286_v17 }
 0x71c   :  { %v4964_v21 = vsub.f32 1.5, %v4963_v46  ;;  %v5315_v27 = vpack.c.bf16 %v5229_v56, %v5227_v22  ;;  %v5306_v33 = vpack.c.bf16 %v5212_v1, %v5210_v50  ;;  %v5188_v60 = vunpack.c.1.s8 %v5108_v35 }
 0x71d   :  { %v5242_v24 = vcvt.s32.f32 %v5146_v13  ;;  %v5244_v38 = vcvt.s32.f32 %v5148_v9  ;;  %v5282_v39 = vcvt.s32.f32 %v5186_v59  ;;  %v5123_v55 = vunpack.c.0.s8 %v5093_v52 }
 0x71e   :  { %v4965_v5 = vmul.f32 %v11813_v12, %v4964_v21  ;;  %5479 = vmatpush.bf16.msrb.mxu2 %v5346_v41  ;;  %5385 = vmatpush.bf16.msra.mxu0 %v5306_v33  ;;  %v5225_v21 = vcvt.s32.f32 %v5129_v49  ;;  %v5125_v22 = vunpack.c.1.s8 %v5093_v52  ;;  %v5178_v4 = vunpack.c.0.s8 %v5106_v29  ;;  %v5034_v49 = vld [vmem:[%s13013_s6 + $0x16] sm:$0x7] }
 0x71f   :  { %5528 = vmatpush.bf16.msrb.mxu3 %v5315_v27  ;;  %v5322_v41 = vpack.c.bf16 %v5244_v38, %v5242_v24  ;;  %v5219_v1 = vcvt.s32.f32 %v5123_v55  ;;  %v5184_v27 = vunpack.c.3.s8 %v5106_v29  ;;  %v5180_v33 = vunpack.c.1.s8 %v5106_v29 }
 0x720   :  { %v4969_v26 = vsel %vm4968_vm10, %v11813_v12, %v4965_v5  ;;  %v5313_v3 = vpack.c.bf16 %v5225_v21, %v5223_v62  ;;  %v5284_v5 = vcvt.s32.f32 %v5188_v60  ;;  %v5221_v25 = vcvt.s32.f32 %v5125_v22  ;;  %v13834_v60 = vld [vmem:[#allocation23_spill] sm:$0xff] }
 0x721   :  { %v4974_v46 = vrot.slane %v4969_v26, 6  ;;  %v5182_v26 = vunpack.c.2.s8 %v5106_v29  ;;  %5434 = vmatpush.bf16.msrb.mxu1 %v5322_v41  ;;  %v5280_v62 = vcvt.s32.f32 %v5184_v27  ;;  %v5274_v59 = vcvt.s32.f32 %v5178_v4  ;;  %v13836_v41 = vld [vmem:[#allocation33_spill] sm:$0xff] }
 0x722   :  { %5480 = vmatpush.bf16.msrb.mxu2 %v5344_v43  ;;  %v5342_v50 = vpack.c.bf16 %v5284_v5, %v5282_v39  ;;  %v13835_v39 = vld [vmem:[#allocation8_spill] sm:$0xff]  ;;  %v5105_v5 = vld [vmem:[%s13015_s3 + $0x78] sm:$0xff]  ;;  %v11882_v27 = vperm.slane %v5034_v49, 1 }
 0x723   :  { %v4976_v12 = vsel %vm3249_vm15, %v11772_v10, %v4974_v46  ;;  %v5091_v10 = vld [vmem:[%s13015_s3 + $0x8] sm:$0xff]  ;;  %5529 = vmatpush.bf16.msrb.mxu3 %v5313_v3  ;;  %v5278_v46 = vcvt.s32.f32 %v5182_v26  ;;  %v11871_v3 = vperm.slane %v5034_v49, 0 }
 0x724   :  { %v4978_v20 = vmul.f32 %v4976_v12, %v4936_v31  ;;  %v5119_v17 = vunpack.c.2.s8 %v5091_v10  ;;  %v5121_v52 = vunpack.c.3.s8 %v5091_v10  ;;  %v5311_v31 = vpack.c.bf16 %v5221_v25, %v5219_v1 }
 0x725   :  { %v5115_v30 = vunpack.c.0.s8 %v5091_v10  ;;  %v5276_v12 = vcvt.s32.f32 %v5180_v33  ;;  %v5117_v43 = vunpack.c.1.s8 %v5091_v10  ;;  %v5340_v24 = vpack.c.bf16 %v5280_v62, %v5278_v46 }
 0x726   :  { %v11858_v56 = vperm.slane %v4978_v20, 0  ;;  %v11860_v35 = vperm.slane %v4978_v20, 1  ;;  %v11862_v40 = vperm.slane %v4978_v20, 2  ;;  %5481 = vmatpush.bf16.msrb.mxu2 %v5342_v50  ;;  %v5215_v13 = vcvt.s32.f32 %v5119_v17  ;;  %v13837_v50 = vld [vmem:[#allocation44_spill] sm:$0xff] }
 0x727   :  { %v5217_v9 = vcvt.s32.f32 %v5121_v52  ;;  %v5211_v21 = vcvt.s32.f32 %v5115_v30  ;;  %5530 = vmatpush.bf16.msrb.mxu3 %v5311_v31  ;;  %v5338_v55 = vpack.c.bf16 %v5276_v12, %v5274_v59  ;;  %v5213_v22 = vcvt.s32.f32 %v5117_v43  ;;  %v5113_v52 = vld [vmem:[%s13015_s3 + $0xb8] sm:$0xff] }
 0x728   :  { %v4986_v20 = vmul.f32 %v11858_v56, %v13834_v60  ;;  %v4989_v29 = vmul.f32 %v11858_v56, %v13835_v39  ;;  %v4987_v10 = vmul.f32 %v11860_v35, %v13836_v41  ;;  %v4990_v1 = vmul.f32 %v11860_v35, %v13837_v50  ;;  %v13840_v50 = vld [vmem:[#allocation45_spill] sm:$0xff] }
 0x729   :  { %v5309_v38 = vpack.c.bf16 %v5217_v9, %v5215_v13  ;;  %v4988_v17 = vmul.f32 %v11862_v40, %v11666_v2  ;;  %v5307_v4 = vpack.c.bf16 %v5213_v22, %v5211_v21  ;;  %v4991_v31 = vmul.f32 %v11862_v40, %v11670_v36  ;;  %v13839_v22 = vld [vmem:[#allocation14_spill] sm:$0xff] }
 0x72a   :  { %5482 = vmatpush.bf16.msrb.mxu2 %v5340_v24  ;;  %v5042_v25 = vadd.f32 %v11871_v3, %v4986_v20  ;;  %v5045_v26 = vadd.f32 %v11871_v3, %v4989_v29  ;;  %v11891_v46 = vperm.slane %v5034_v49, 2  ;;  %v5175_v33 = vunpack.c.2.s8 %v5105_v5 }
 0x72b   :  { %v5043_v62 = vadd.f32 %v11882_v27, %v4987_v10  ;;  %v5046_v13 = vadd.f32 %v11882_v27, %v4990_v1  ;;  %v5177_v9 = vunpack.c.3.s8 %v5105_v5  ;;  %5531 = vmatpush.bf16.msrb.mxu3 %v5309_v38  ;;  %v5207_v43 = vunpack.c.2.s8 %v5113_v52  ;;  %v13838_v38 = vld [vmem:[#allocation9_spill] sm:$0xff] }
 0x72c   :  { %v5354_v30 = vpack.c.bf16 %v5045_v26, %v5042_v25  ;;  %v5044_v2 = vadd.f32 %v11891_v46, %v4988_v17  ;;  %v5047_v59 = vadd.f32 %v11891_v46, %v4991_v31  ;;  %v5271_v12 = vcvt.s32.f32 %v5175_v33  ;;  %v13841_v26 = vld [vmem:[#allocation35_spill] sm:$0xff] }
 0x72d   :  { %v11897_v21 = vpack.c.bf16 %v5046_v13, %v5043_v62  ;;  %v5273_v36 = vcvt.s32.f32 %v5177_v9  ;;  %v5209_v49 = vunpack.c.3.s8 %v5113_v52  ;;  %v5303_v20 = vcvt.s32.f32 %v5207_v43 }
 0x72e   :  { %5483 = vmatpush.bf16.msrb.mxu2 %v5338_v55  ;;  %5386 = vmatmul.bf16.vlgmr.msra.gmra.mxu0 %v5354_v30  ;;  %v11899_v60 = vpack.c.bf16 %v5047_v59, %v5044_v2  ;;  %v4992_v29 = vmul.f32 %v11858_v56, %v13838_v38  ;;  %v4995_v55 = vmul.f32 %v11858_v56, %v13839_v22  ;;  %v5171_v41 = vunpack.c.0.s8 %v5105_v5  ;;  %v13843_v38 = vld [vmem:[#allocation46_spill] sm:$0xff]  ;;  %v13844_v22 = vld [vmem:[#allocation47_spill] sm:$0xff] }
 0x72f   :  { %5435 = vmatmul.bf16.vlgmr.msrb.gmra.mxu1 %v11897_v21  ;;  %v5337_v24 = vpack.c.bf16 %v5273_v36, %v5271_v12  ;;  %v5305_v39 = vcvt.s32.f32 %v5209_v49  ;;  %5532 = vmatpush.bf16.msrb.mxu3 %v5307_v4  ;;  %v4993_v1 = vmul.f32 %v11860_v35, %v13840_v50  ;;  %v5173_v25 = vunpack.c.1.s8 %v5105_v5  ;;  %v11918_v5 = vld [vmem:[%s13015_s3 + $0x68] sm:$0xff] }
 0x730   :  { %v4996_v17 = vmul.f32 %v11860_v35, %v13841_v26  ;;  %v5267_v31 = vcvt.s32.f32 %v5171_v41  ;;  %v5203_v4 = vunpack.c.0.s8 %v5113_v52  ;;  %v5205_v62 = vunpack.c.1.s8 %v5113_v52  ;;  %v11924_v52 = vld [vmem:[%s13015_s3 + $0xa8] sm:$0xff] }
 0x731   :  { %5484 = vmatmul.bf16.vlgmr.msrb.gmra.mxu2 %v11899_v60  ;;  %5574 = vmatpush.bf16.msrb.mxu0 %v5337_v24  ;;  %v5353_v10 = vpack.c.bf16 %v5305_v39, %v5303_v20  ;;  %v5269_v33 = vcvt.s32.f32 %v5173_v25  ;;  %v5048_v13 = vadd.f32 %v11871_v3, %v4992_v29  ;;  %v5051_v9 = vadd.f32 %v11871_v3, %v4995_v55  ;;  %v13842_v49 = vld [vmem:[#allocation15_spill] sm:$0xff] }
 0x732   :  { %5533 = vmatmul.bf16.vlgmr.msrb.gmra.mxu3 %v5354_v30  ;;  %v4994_v2 = vmul.f32 %v11862_v40, %v11674_v14  ;;  %v5299_v59 = vcvt.s32.f32 %v5203_v4  ;;  %v5049_v12 = vadd.f32 %v11882_v27, %v4993_v1  ;;  %v5301_v30 = vcvt.s32.f32 %v5205_v62 }
 0x733   :  { %5623 = vmatpush.bf16.msra.mxu1 %v5353_v10  ;;  %v5335_v43 = vpack.c.bf16 %v5269_v33, %v5267_v31  ;;  %v5052_v36 = vadd.f32 %v11882_v27, %v4996_v17  ;;  %v4997_v14 = vmul.f32 %v11862_v40, %v11687_v53  ;;  %v4998_v20 = vmul.f32 %v11858_v56, %v13842_v49 }
 0x734   :  { %v5001_v24 = vmul.f32 %v11858_v56, %v11140_v45  ;;  %v5351_v39 = vpack.c.bf16 %v5301_v30, %v5299_v59  ;;  %v4999_v29 = vmul.f32 %v11860_v35, %v13843_v38  ;;  %v5002_v55 = vmul.f32 %v11860_v35, %v13844_v22 }
 0x735   :  { %5575 = vmatpush.bf16.msrb.mxu0 %v5335_v43  ;;  %v5167_v41 = vunpack.c.2.s8 %v11918_v5  ;;  %v5357_v10 = vpack.c.bf16 %v5051_v9, %v5048_v13  ;;  %v5050_v50 = vadd.f32 %v11891_v46, %v4994_v2  ;;  %v5169_v53 = vunpack.c.3.s8 %v11918_v5 }
 0x736   :  { %v5199_v1 = vunpack.c.2.s8 %v11924_v52  ;;  %v5000_v45 = vmul.f32 %v11862_v40, %v11678_v51  ;;  %v5003_v25 = vmul.f32 %v11862_v40, %v11693_v0  ;;  %v5201_v17 = vunpack.c.3.s8 %v11924_v52 }
 0x737   :  { %5624 = vmatpush.bf16.msra.mxu1 %v5351_v39  ;;  %v5263_v26 = vcvt.s32.f32 %v5167_v41  ;;  %v5053_v31 = vadd.f32 %v11891_v46, %v4997_v14  ;;  %v5054_v4 = vadd.f32 %v11871_v3, %v4998_v20  ;;  %v5265_v33 = vcvt.s32.f32 %v5169_v53 }
 0x738   :  { %v5295_v62 = vcvt.s32.f32 %v5199_v1  ;;  %v5057_v13 = vadd.f32 %v11871_v3, %v5001_v24  ;;  %v5055_v9 = vadd.f32 %v11882_v27, %v4999_v29  ;;  %v5058_v2 = vadd.f32 %v11882_v27, %v5002_v55 }
 0x739   :  { %v5297_v59 = vcvt.s32.f32 %v5201_v17  ;;  %v5333_v51 = vpack.c.bf16 %v5265_v33, %v5263_v26  ;;  %v11951_v43 = vpack.c.bf16 %v5052_v36, %v5049_v12  ;;  %v5056_v0 = vadd.f32 %v11891_v46, %v5000_v45 }
 0x73a   :  { %v5059_v30 = vadd.f32 %v11891_v46, %v5003_v25  ;;  %v11955_v49 = vpack.c.bf16 %v5053_v31, %v5050_v50  ;;  %v5010_v20 = vmul.f32 %v11858_v56, %v11152_v44  ;;  %v5013_v24 = vmul.f32 %v11858_v56, %v11156_v42 }
 0x73b   :  { %v5349_v14 = vpack.c.bf16 %v5297_v59, %v5295_v62  ;;  %5576 = vmatpush.bf16.msrb.mxu0 %v5333_v51  ;;  %v11962_v39 = vpack.c.bf16 %v5057_v13, %v5054_v4  ;;  %v11964_v12 = vpack.c.bf16 %v5058_v2, %v5055_v9  ;;  %v5011_v36 = vmul.f32 %v11860_v35, %v11362_v19 }
 0x73c   :  { %v5014_v38 = vmul.f32 %v11860_v35, %v11506_v48  ;;  %v5066_v44 = vadd.f32 %v11871_v3, %v5010_v20  ;;  %v5069_v29 = vadd.f32 %v11871_v3, %v5013_v24  ;;  %v5012_v42 = vmul.f32 %v11862_v40, %v11711_v34 }
 0x73d   :  { %5625 = vmatpush.bf16.msra.mxu1 %v5349_v14  ;;  %v11975_v22 = vpack.c.bf16 %v5059_v30, %v5056_v0  ;;  %v5067_v55 = vadd.f32 %v11882_v27, %v5011_v36  ;;  %v5015_v19 = vmul.f32 %v11862_v40, %v11717_v23  ;;  %v5016_v53 = vmul.f32 %v11858_v56, %v11160_v6 }
 0x73e   :  { %5391 = vmatmul.bf16.gmra.mxu0 %v5357_v10  ;;  %v5070_v41 = vadd.f32 %v11882_v27, %v5014_v38  ;;  %v11981_v48 = vpack.c.bf16 %v5069_v29, %v5066_v44  ;;  %v5068_v50 = vadd.f32 %v11891_v46, %v5012_v42  ;;  %v5019_v1 = vmul.f32 %v11858_v56, %v11164_v11 }
 0x73f   :  { %5440 = vmatmul.bf16.gmra.mxu1 %v11951_v43  ;;  %v5163_v34 = vunpack.c.0.s8 %v11918_v5  ;;  %v5165_v45 = vunpack.c.1.s8 %v11918_v5  ;;  %v5195_v25 = vunpack.c.0.s8 %v11924_v52  ;;  %v5197_v26 = vunpack.c.1.s8 %v11924_v52 }
 0x740   :  { %v11992_v23 = vpack.c.bf16 %v5070_v41, %v5067_v55  ;;  %v5071_v17 = vadd.f32 %v11891_v46, %v5015_v19  ;;  %v5072_v31 = vadd.f32 %v11871_v3, %v5016_v53  ;;  %v5075_v6 = vadd.f32 %v11871_v3, %v5019_v1  ;;  %v13845_v1 = vld [vmem:[#allocation76_spill] sm:$0xff] }
 0x741   :  { %5489 = vmatmul.bf16.gmra.mxu2 %v11955_v49  ;;  %v5259_v4 = vcvt.s32.f32 %v5163_v34  ;;  %v5261_v33 = vcvt.s32.f32 %v5165_v45  ;;  %v5291_v11 = vcvt.s32.f32 %v5195_v25  ;;  %v5017_v5 = vmul.f32 %v11860_v35, %v11367_v47  ;;  %v13846_v25 = vld [vmem:[#allocation32_spill] sm:$0xff] }
 0x742   :  { %5538 = vmatmul.bf16.gmra.mxu3 %v5357_v10  ;;  %v5293_v10 = vcvt.s32.f32 %v5197_v26  ;;  %v11997_v62 = vpack.c.bf16 %v5071_v17, %v5068_v50  ;;  %v11999_v13 = vpack.c.bf16 %v5075_v6, %v5072_v31  ;;  %v5020_v52 = vmul.f32 %v11860_v35, %v11531_v15 }
 0x743   :  { %v5331_v9 = vpack.c.bf16 %v5261_v33, %v5259_v4  ;;  %v5018_v59 = vmul.f32 %v11862_v40, %v11723_v28  ;;  %v5021_v51 = vmul.f32 %v11862_v40, %v11729_v37  ;;  %v5073_v0 = vadd.f32 %v11882_v27, %v5017_v5  ;;  %v13847_v4 = vld [vmem:[#allocation16_spill] sm:$0xff]  ;;  %v5101_v5 = vld [vmem:[%s13015_s3 + $0x58] sm:$0xff] }
 0x744   :  { %v5347_v2 = vpack.c.bf16 %v5293_v10, %v5291_v11  ;;  %v5076_v30 = vadd.f32 %v11882_v27, %v5020_v52  ;;  %v5022_v14 = vmul.f32 %v11858_v56, %v13805_v61  ;;  %v5025_v47 = vmul.f32 %v11858_v56, %v13810_v57  ;;  %v13848_v11 = vld [vmem:[#allocation24_spill] sm:$0xff]  ;;  %v5109_v52 = vld [vmem:[%s13015_s3 + $0x98] sm:$0xff] }
 0x745   :  { %5577 = vmatpush.bf16.msrb.mxu0 %v5331_v9  ;;  %v5074_v15 = vadd.f32 %v11891_v46, %v5018_v59  ;;  %v5077_v20 = vadd.f32 %v11891_v46, %v5021_v51  ;;  %v5023_v28 = vmul.f32 %v11860_v35, %v11373_v54  ;;  %v5026_v61 = vmul.f32 %v11860_v35, %v11563_v7 }
 0x746   :  { %5626 = vmatpush.bf16.msra.mxu1 %v5347_v2  ;;  %v12019_v37 = vpack.c.bf16 %v5076_v30, %v5073_v0  ;;  %v5078_v24 = vadd.f32 %v11871_v3, %v5022_v14  ;;  %v5081_v36 = vadd.f32 %v11871_v3, %v5025_v47  ;;  %v5024_v44 = vmul.f32 %v11862_v40, %v11735_v8  ;;  %v13849_v0 = vld [vmem:[#allocation37_spill] sm:$0xff]  ;;  %v13850_v14 = vld [vmem:[#allocation50_spill] sm:$0xff]  ;;  %v13851_v47 = vld [vmem:[#allocation75_spill] sm:$0xff] }
 0x747   :  { %v12025_v38 = vpack.c.bf16 %v5077_v20, %v5074_v15  ;;  %v5079_v57 = vadd.f32 %v11882_v27, %v5023_v28  ;;  %v5027_v29 = vmul.f32 %v11862_v40, %v11741_v32  ;;  %v5082_v42 = vadd.f32 %v11882_v27, %v5026_v61  ;;  %v13852_v20 = vld [vmem:[#allocation19_spill] sm:$0xff] }
 0x748   :  { %v12032_v54 = vpack.c.bf16 %v5081_v36, %v5078_v24  ;;  %v5028_v55 = vmul.f32 %v11858_v56, %v13811_v16  ;;  %v5031_v7 = vmul.f32 %v11858_v56, %v13812_v18  ;;  %v5080_v41 = vadd.f32 %v11891_v46, %v5024_v44 }
 0x749   :  { %v5083_v19 = vadd.f32 %v11891_v46, %v5027_v29  ;;  %v5029_v8 = vmul.f32 %v11860_v35, %v13809_v58  ;;  %v5032_v32 = vmul.f32 %v11860_v35, %v11600_v63  ;;  %v12046_v50 = vpack.c.bf16 %v5082_v42, %v5079_v57 }
 0x74a   :  { %v5084_v53 = vadd.f32 %v11871_v3, %v5028_v55  ;;  %v5087_v16 = vadd.f32 %v11871_v3, %v5031_v7  ;;  %v5030_v18 = vmul.f32 %v11862_v40, %v13845_v1  ;;  %v5033_v63 = vmul.f32 %v11862_v40, %v13846_v25 }
 0x74b   :  { %v12053_v34 = vpack.c.bf16 %v5083_v19, %v5080_v41  ;;  %v5085_v45 = vadd.f32 %v11882_v27, %v5029_v8  ;;  %v5088_v58 = vadd.f32 %v11882_v27, %v5032_v32  ;;  %v5004_v33 = vmul.f32 %v11858_v56, %v13847_v4 }
 0x74c   :  { %v12060_v26 = vpack.c.bf16 %v5087_v16, %v5084_v53  ;;  %v5086_v17 = vadd.f32 %v11891_v46, %v5030_v18  ;;  %v5089_v6 = vadd.f32 %v11891_v46, %v5033_v63  ;;  %v5007_v10 = vmul.f32 %v11858_v56, %v13848_v11  ;;  %v5099_v63 = vld [vmem:[%s13015_s3 + $0x48] sm:$0xff] }
 0x74d   :  { %v12063_v31 = vpack.c.bf16 %v5088_v58, %v5085_v45  ;;  %v5159_v2 = vunpack.c.2.s8 %v5101_v5  ;;  %v5161_v59 = vunpack.c.3.s8 %v5101_v5  ;;  %v5191_v51 = vunpack.c.2.s8 %v5109_v52 }
 0x74e   :  { %5396 = vmatmul.bf16.gmra.mxu0 %v11962_v39  ;;  %v12077_v9 = vpack.c.bf16 %v5089_v6, %v5086_v17  ;;  %v5005_v30 = vmul.f32 %v11860_v35, %v13849_v0  ;;  %v5008_v56 = vmul.f32 %v11860_v35, %v13850_v14  ;;  %v5006_v15 = vmul.f32 %v11862_v40, %v13851_v47  ;;  %v5107_v17 = vld [vmem:[%s13015_s3 + $0x88] sm:$0xff] }
 0x74f   :  { %5445 = vmatmul.bf16.gmra.mxu1 %v11964_v12  ;;  %v5009_v28 = vmul.f32 %v11862_v40, %v13852_v20  ;;  %v5255_v24 = vcvt.s32.f32 %v5159_v2  ;;  %v5257_v36 = vcvt.s32.f32 %v5161_v59  ;;  %v5287_v61 = vcvt.s32.f32 %v5191_v51 }
 0x750   :  { %v5060_v44 = vadd.f32 %v11871_v3, %v5004_v33  ;;  %v5063_v29 = vadd.f32 %v11871_v3, %v5007_v10  ;;  %v5061_v7 = vadd.f32 %v11882_v27, %v5005_v30  ;;  %v5064_v35 = vadd.f32 %v11882_v27, %v5008_v56 }
 0x751   :  { %5494 = vmatmul.bf16.gmra.mxu2 %v11975_v22  ;;  %v5329_v42 = vpack.c.bf16 %v5257_v36, %v5255_v24  ;;  %v5062_v41 = vadd.f32 %v11891_v46, %v5006_v15  ;;  %v5065_v19 = vadd.f32 %v11891_v46, %v5009_v28  ;;  %v5155_v3 = vunpack.c.0.s8 %v5101_v5 }
 0x752   :  { %5543 = vmatmul.bf16.gmra.mxu3 %v11962_v39  ;;  %v5193_v39 = vunpack.c.3.s8 %v5109_v52  ;;  %v5363_v40 = vpack.c.bf16 %v5063_v29, %v5060_v44  ;;  %v12093_v8 = vpack.c.bf16 %v5064_v35, %v5061_v7  ;;  %v5157_v53 = vunpack.c.1.s8 %v5101_v5 }
 0x753   :  { %5578 = vmatpush.bf16.msrb.mxu0 %v5329_v42  ;;  %v12095_v32 = vpack.c.bf16 %v5065_v19, %v5062_v41  ;;  %v5187_v27 = vunpack.c.0.s8 %v5109_v52  ;;  %v5189_v16 = vunpack.c.1.s8 %v5109_v52  ;;  %v5251_v1 = vcvt.s32.f32 %v5155_v3 }
 0x754   :  { %v5289_v57 = vcvt.s32.f32 %v5193_v39  ;;  %v5253_v18 = vcvt.s32.f32 %v5157_v53  ;;  %v5151_v6 = vunpack.c.2.s8 %v5099_v63  ;;  %v5153_v4 = vunpack.c.3.s8 %v5099_v63 }
 0x755   :  { %v5283_v46 = vcvt.s32.f32 %v5187_v27  ;;  %v5285_v45 = vcvt.s32.f32 %v5189_v16  ;;  %v5183_v33 = vunpack.c.2.s8 %v5107_v17  ;;  %v5185_v11 = vunpack.c.3.s8 %v5107_v17 }
 0x756   :  { %v5345_v55 = vpack.c.bf16 %v5289_v57, %v5287_v61  ;;  %v5327_v58 = vpack.c.bf16 %v5253_v18, %v5251_v1  ;;  %v5247_v10 = vcvt.s32.f32 %v5151_v6  ;;  %v5249_v5 = vcvt.s32.f32 %v5153_v4 }
 0x757   :  { %v5343_v25 = vpack.c.bf16 %v5285_v45, %v5283_v46  ;;  %v5279_v52 = vcvt.s32.f32 %v5183_v33  ;;  %v5281_v2 = vcvt.s32.f32 %v5185_v11  ;;  %v5149_v39 = vunpack.c.1.s8 %v5099_v63 }
 0x758   :  { %5627 = vmatpush.bf16.msra.mxu1 %v5345_v55  ;;  %5579 = vmatpush.bf16.msrb.mxu0 %v5327_v58  ;;  %v5325_v59 = vpack.c.bf16 %v5249_v5, %v5247_v10  ;;  %v5179_v0 = vunpack.c.0.s8 %v5107_v17  ;;  %v5181_v30 = vunpack.c.1.s8 %v5107_v17 }
 0x759   :  { %v5341_v51 = vpack.c.bf16 %v5281_v2, %v5279_v52  ;;  %v5245_v56 = vcvt.s32.f32 %v5149_v39 }
 0x75a   :  { %v5275_v47 = vcvt.s32.f32 %v5179_v0  ;;  %v5277_v15 = vcvt.s32.f32 %v5181_v30 }
 0x75c   :  { %5628 = vmatpush.bf16.msra.mxu1 %v5343_v25  ;;  %5580 = vmatpush.bf16.msrb.mxu0 %v5325_v59  ;;  %v5339_v28 = vpack.c.bf16 %v5277_v15, %v5275_v47 }
 0x75e   :  { %5401 = vmatmul.bf16.gmra.mxu0 %v5363_v40 }
 0x75f   :  { %5450 = vmatmul.bf16.gmra.mxu1 %v12093_v8 }
 0x760   :  { %5629 = vmatpush.bf16.msra.mxu1 %v5341_v51 }
 0x761   :  { %5499 = vmatmul.bf16.gmra.mxu2 %v12095_v32 }
 0x762   :  { %5548 = vmatmul.bf16.gmra.mxu3 %v5363_v40 }
 0x764   :  { %5630 = vmatpush.bf16.msra.mxu1 %v5339_v28 }
 0x76e   :  { %5406 = vmatmul.bf16.gmra.mxu0 %v11981_v48 }
 0x76f   :  { %5455 = vmatmul.bf16.gmra.mxu1 %v11992_v23 }
 0x771   :  { %5504 = vmatmul.bf16.gmra.mxu2 %v11997_v62 }
 0x772   :  { %5553 = vmatmul.bf16.gmra.mxu3 %v11981_v48  ;;  %v5147_v48 = vunpack.c.0.s8 %v5099_v63 }
 0x774   :  { %v5243_v14 = vcvt.s32.f32 %v5147_v48 }
 0x776   :  { %v5323_v20 = vpack.c.bf16 %v5245_v56, %v5243_v14 }
 0x778   :  { %5581 = vmatpush.bf16.msrb.mxu0 %v5323_v20 }
 0x77e   :  { %5411 = vmatmul.bf16.gmra.mxu0 %v11999_v13 }
 0x77f   :  { %5460 = vmatmul.bf16.gmra.mxu1 %v12019_v37 }
 0x781   :  { %5509 = vmatmul.bf16.gmra.mxu2 %v12025_v38 }
 0x782   :  { %5558 = vmatmul.bf16.gmra.mxu3 %v11999_v13 }
 0x78e   :  { %5416 = vmatmul.bf16.gmra.mxu0 %v12032_v54 }
 0x78f   :  { %5465 = vmatmul.bf16.gmra.mxu1 %v12046_v50 }
 0x791   :  { %5514 = vmatmul.bf16.gmra.mxu2 %v12053_v34 }
 0x792   :  { %5563 = vmatmul.bf16.gmra.mxu3 %v12032_v54  ;;  %v12126_v54 = vld [vmem:[%s13013_s6 + $0x22] sm:$0x3] }
 0x793   :  { %v12129_v55 = vperm.slane %v12126_v54, 0 }
 0x79e   :  { %5421 = vmatmul.bf16.gmra.mxu0 %v12060_v26 }
 0x79f   :  { %5470 = vmatmul.bf16.gmra.mxu1 %v12063_v31 }
 0x7a1   :  { %5519 = vmatmul.bf16.gmra.mxu2 %v12077_v9 }
 0x7a2   :  { %5568 = vmatmul.bf16.gmra.mxu3 %v12060_v26  ;;  %v12134_v26 = vld [vmem:[%s13013_s6 + $0x1c] sm:$0x3] }
 0x7ab   :  { %v5387_v13 = vpop.f32.mrf.mxu0 }
 0x7ac   :  { %v5436_v24 = vpop.f32.mrf.mxu1 }
 0x7ad   :  { %v5437_v36 = vadd.f32 %v5436_v24, %v5387_v13 }
 0x7ae   :  { %5582 = vmatmul.bf16.vlgmr.msrb.gmra.mxu0 %v11897_v21 }
 0x7af   :  { %5631 = vmatmul.bf16.vlgmr.msra.gmra.mxu1 %v11899_v60  ;;  %v12138_v60 = vperm.slane %v12134_v26, 0 }
 0x7b3   :  { %v5389_v61 = vpop.f32.mrf.mxu0 }
 0x7b4   :  { %v5485_v57 = vpop.f32.mrf.mxu2  ;;  %v5438_v29 = vpop.f32.mrf.mxu1 }
 0x7b5   :  { %v5486_v44 = vadd.f32 %v5485_v57, %v5437_v36  ;;  %v5439_v42 = vadd.f32 %v5438_v29, %v5389_v61 }
 0x7b7   :  { %v5678_v21 = vmul.f32 %v12129_v55, %v5486_v44 }
 0x7b9   :  { %v12142_v3 = vadd.f32 %v12138_v60, %v5678_v21 }
 0x7bb   :  { %v5392_v7 = vpop.f32.mrf.mxu0  ;;  %v5748_v16 = vmax.f32 %v12142_v3, 0.0 }
 0x7bc   :  { %v5487_v35 = vpop.f32.mrf.mxu2  ;;  %v5441_v19 = vpop.f32.mrf.mxu1 }
 0x7bd   :  { %v5488_v41 = vadd.f32 %v5487_v35, %v5439_v42  ;;  %v5442_v40 = vadd.f32 %v5441_v19, %v5392_v7 }
 0x7be   :  { %5587 = vmatmul.bf16.gmra.mxu0 %v11951_v43 }
 0x7bf   :  { %v5680_v53 = vmul.f32 %v12129_v55, %v5488_v41  ;;  %5636 = vmatmul.bf16.gmra.mxu1 %v11955_v49 }
 0x7c1   :  { %v12147_v27 = vadd.f32 %v12138_v60, %v5680_v53 }
 0x7c3   :  { %v5750_v1 = vmax.f32 %v12147_v27, 0.0  ;;  %v5394_v18 = vpop.f32.mrf.mxu0 }
 0x7c4   :  { %v5490_v46 = vpop.f32.mrf.mxu2  ;;  %v5443_v58 = vpop.f32.mrf.mxu1 }
 0x7c5   :  { %v5780_v43 = vadd.f32 %v5750_v1, %v5748_v16  ;;  %v5491_v45 = vadd.f32 %v5490_v46, %v5442_v40  ;;  %v5444_v25 = vadd.f32 %v5443_v58, %v5394_v18 }
 0x7c7   :  { %v5682_v63 = vmul.f32 %v12129_v55, %v5491_v45 }
 0x7c9   :  { %v12157_v49 = vadd.f32 %v12138_v60, %v5682_v63 }
 0x7cb   :  { %v5752_v17 = vmax.f32 %v12157_v49, 0.0  ;;  %v5397_v6 = vpop.f32.mrf.mxu0 }
 0x7cc   :  { %v5492_v4 = vpop.f32.mrf.mxu2  ;;  %v5446_v10 = vpop.f32.mrf.mxu1 }
 0x7cd   :  { %v5781_v33 = vadd.f32 %v5780_v43, %v5752_v17  ;;  %v5493_v11 = vadd.f32 %v5492_v4, %v5444_v25  ;;  %v5447_v5 = vadd.f32 %v5446_v10, %v5397_v6 }
 0x7ce   :  { %5592 = vmatmul.bf16.gmra.mxu0 %v11964_v12 }
 0x7cf   :  { %v5684_v52 = vmul.f32 %v12129_v55, %v5493_v11  ;;  %5641 = vmatmul.bf16.gmra.mxu1 %v11975_v22 }
 0x7d1   :  { %v12166_v2 = vadd.f32 %v12138_v60, %v5684_v52 }
 0x7d3   :  { %v5754_v59 = vmax.f32 %v12166_v2, 0.0  ;;  %v5399_v51 = vpop.f32.mrf.mxu0 }
 0x7d4   :  { %v5495_v48 = vpop.f32.mrf.mxu2  ;;  %v5448_v30 = vpop.f32.mrf.mxu1 }
 0x7d5   :  { %v5782_v39 = vadd.f32 %v5781_v33, %v5754_v59  ;;  %v5496_v0 = vadd.f32 %v5495_v48, %v5447_v5  ;;  %v5449_v14 = vadd.f32 %v5448_v30, %v5399_v51 }
 0x7d7   :  { %v5686_v56 = vmul.f32 %v12129_v55, %v5496_v0 }
 0x7d9   :  { %v12173_v12 = vadd.f32 %v12138_v60, %v5686_v56 }
 0x7db   :  { %v5756_v22 = vmax.f32 %v12173_v12, 0.0  ;;  %v5402_v47 = vpop.f32.mrf.mxu0 }
 0x7dc   :  { %v5497_v15 = vpop.f32.mrf.mxu2  ;;  %v5451_v13 = vpop.f32.mrf.mxu1 }
 0x7dd   :  { %v5783_v20 = vadd.f32 %v5782_v39, %v5756_v22  ;;  %v5498_v28 = vadd.f32 %v5497_v15, %v5449_v14  ;;  %v5452_v24 = vadd.f32 %v5451_v13, %v5402_v47 }
 0x7de   :  { %5597 = vmatmul.bf16.gmra.mxu0 %v12093_v8 }
 0x7df   :  { %v5688_v36 = vmul.f32 %v12129_v55, %v5498_v28  ;;  %5646 = vmatmul.bf16.gmra.mxu1 %v12095_v32 }
 0x7e1   :  { %v12182_v61 = vadd.f32 %v12138_v60, %v5688_v36 }
 0x7e3   :  { %v5758_v57 = vmax.f32 %v12182_v61, 0.0  ;;  %v5404_v44 = vpop.f32.mrf.mxu0 }
 0x7e4   :  { %v5500_v29 = vpop.f32.mrf.mxu2  ;;  %v5453_v7 = vpop.f32.mrf.mxu1 }
 0x7e5   :  { %v5784_v42 = vadd.f32 %v5783_v20, %v5758_v57  ;;  %v5501_v21 = vadd.f32 %v5500_v29, %v5452_v24  ;;  %v5454_v35 = vadd.f32 %v5453_v7, %v5404_v44 }
 0x7e7   :  { %v5690_v41 = vmul.f32 %v12129_v55, %v5501_v21 }
 0x7e9   :  { %v12189_v8 = vadd.f32 %v12138_v60, %v5690_v41 }
 0x7eb   :  { %v5760_v32 = vmax.f32 %v12189_v8, 0.0  ;;  %v5407_v19 = vpop.f32.mrf.mxu0 }
 0x7ec   :  { %v5502_v40 = vpop.f32.mrf.mxu2  ;;  %v5456_v46 = vpop.f32.mrf.mxu1 }
 0x7ed   :  { %v5785_v53 = vadd.f32 %v5784_v42, %v5760_v32  ;;  %v5503_v18 = vadd.f32 %v5502_v40, %v5454_v35  ;;  %v5457_v43 = vadd.f32 %v5456_v46, %v5407_v19 }
 0x7ee   :  { %5602 = vmatmul.bf16.gmra.mxu0 %v11992_v23 }
 0x7ef   :  { %v5692_v45 = vmul.f32 %v12129_v55, %v5503_v18  ;;  %5651 = vmatmul.bf16.gmra.mxu1 %v11997_v62 }
 0x7f1   :  { %v12198_v58 = vadd.f32 %v12138_v60, %v5692_v45 }
 0x7f3   :  { %v5762_v25 = vmax.f32 %v12198_v58, 0.0  ;;  %v5409_v63 = vpop.f32.mrf.mxu0 }
 0x7f4   :  { %v5505_v6 = vpop.f32.mrf.mxu2  ;;  %v5458_v11 = vpop.f32.mrf.mxu1 }
 0x7f5   :  { %v5786_v4 = vadd.f32 %v5785_v53, %v5762_v25  ;;  %v5506_v33 = vadd.f32 %v5505_v6, %v5457_v43  ;;  %v5459_v62 = vadd.f32 %v5458_v11, %v5409_v63  ;;  %v5534_v53 = vpop.f32.mrf.mxu3 }
 0x7f7   :  { %v5694_v10 = vmul.f32 %v12129_v55, %v5506_v33 }
 0x7f9   :  { %v12205_v23 = vadd.f32 %v12138_v60, %v5694_v10 }
 0x7fb   :  { %v5764_v5 = vmax.f32 %v12205_v23, 0.0  ;;  %v5412_v52 = vpop.f32.mrf.mxu0 }
 0x7fc   :  { %v5507_v51 = vpop.f32.mrf.mxu2  ;;  %v5461_v0 = vpop.f32.mrf.mxu1 }
 0x7fd   :  { %v5787_v48 = vadd.f32 %v5786_v4, %v5764_v5  ;;  %v5508_v39 = vadd.f32 %v5507_v51, %v5459_v62  ;;  %v5462_v30 = vadd.f32 %v5461_v0, %v5412_v52  ;;  %v5536_v62 = vpop.f32.mrf.mxu3 }
 0x7fe   :  { %5607 = vmatmul.bf16.gmra.mxu0 %v12019_v37 }
 0x7ff   :  { %v5696_v14 = vmul.f32 %v12129_v55, %v5508_v39  ;;  %5656 = vmatmul.bf16.gmra.mxu1 %v12025_v38 }
 0x801   :  { %v12214_v56 = vadd.f32 %v12138_v60, %v5696_v14 }
 0x803   :  { %v5766_v47 = vmax.f32 %v12214_v56, 0.0  ;;  %v5414_v15 = vpop.f32.mrf.mxu0 }
 0x804   :  { %v5510_v20 = vpop.f32.mrf.mxu2  ;;  %v5463_v24 = vpop.f32.mrf.mxu1 }
 0x805   :  { %v5788_v28 = vadd.f32 %v5787_v48, %v5766_v47  ;;  %v5511_v13 = vadd.f32 %v5510_v20, %v5462_v30  ;;  %v5464_v38 = vadd.f32 %v5463_v24, %v5414_v15 }
 0x807   :  { %v5698_v36 = vmul.f32 %v12129_v55, %v5511_v13  ;;  %v5539_v13 = vpop.f32.mrf.mxu3 }
 0x809   :  { %v12221_v37 = vadd.f32 %v12138_v60, %v5698_v36 }
 0x80b   :  { %v5768_v44 = vmax.f32 %v12221_v37, 0.0  ;;  %v5417_v29 = vpop.f32.mrf.mxu0 }
 0x80c   :  { %v5512_v42 = vpop.f32.mrf.mxu2  ;;  %v5466_v35 = vpop.f32.mrf.mxu1 }
 0x80d   :  { %v5789_v21 = vadd.f32 %v5788_v28, %v5768_v44  ;;  %v5513_v7 = vadd.f32 %v5512_v42, %v5464_v38  ;;  %v5467_v41 = vadd.f32 %v5466_v35, %v5417_v29 }
 0x80e   :  { %5612 = vmatmul.bf16.gmra.mxu0 %v12046_v50 }
 0x80f   :  { %v5700_v19 = vmul.f32 %v12129_v55, %v5513_v7  ;;  %5661 = vmatmul.bf16.gmra.mxu1 %v12053_v34 }
 0x811   :  { %v12230_v40 = vadd.f32 %v12138_v60, %v5700_v19  ;;  %v5541_v19 = vpop.f32.mrf.mxu3 }
 0x813   :  { %v5770_v18 = vmax.f32 %v12230_v40, 0.0  ;;  %v5419_v46 = vpop.f32.mrf.mxu0 }
 0x814   :  { %v5515_v43 = vpop.f32.mrf.mxu2  ;;  %v5468_v6 = vpop.f32.mrf.mxu1 }
 0x815   :  { %v5790_v45 = vadd.f32 %v5789_v21, %v5770_v18  ;;  %v5516_v63 = vadd.f32 %v5515_v43, %v5467_v41  ;;  %v5469_v33 = vadd.f32 %v5468_v6, %v5419_v46 }
 0x817   :  { %v5702_v4 = vmul.f32 %v12129_v55, %v5516_v63 }
 0x819   :  { %v12237_v50 = vadd.f32 %v12138_v60, %v5702_v4 }
 0x81b   :  { %v5772_v34 = vmax.f32 %v12237_v50, 0.0  ;;  %v5422_v11 = vpop.f32.mrf.mxu0 }
 0x81c   :  { %v5517_v10 = vpop.f32.mrf.mxu2  ;;  %v5471_v48 = vpop.f32.mrf.mxu1 }
 0x81d   :  { %v5791_v52 = vadd.f32 %v5790_v45, %v5772_v34  ;;  %v5518_v51 = vadd.f32 %v5517_v10, %v5469_v33  ;;  %v5472_v39 = vadd.f32 %v5471_v48, %v5422_v11  ;;  %v5544_v48 = vpop.f32.mrf.mxu3 }
 0x81e   :  { %5617 = vmatmul.bf16.gmra.mxu0 %v12063_v31 }
 0x81f   :  { %v5704_v0 = vmul.f32 %v12129_v55, %v5518_v51  ;;  %5666 = vmatmul.bf16.gmra.mxu1 %v12077_v9 }
 0x821   :  { %v5742_v30 = vadd.f32 %v12138_v60, %v5704_v0 }
 0x823   :  { %v5774_v14 = vmax.f32 %v5742_v30, 0.0  ;;  %v5424_v36 = vpop.f32.mrf.mxu0 }
 0x824   :  { %v5520_v15 = vpop.f32.mrf.mxu2  ;;  %v5473_v38 = vpop.f32.mrf.mxu1 }
 0x825   :  { %v5792_v20 = vadd.f32 %v5791_v52, %v5774_v14  ;;  %v5521_v28 = vadd.f32 %v5520_v15, %v5472_v39  ;;  %v5474_v21 = vadd.f32 %v5473_v38, %v5424_v36  ;;  %v12251_v39 = vperm.slane %v12126_v54, 1 }
 0x827   :  { %v5706_v24 = vmul.f32 %v12129_v55, %v5521_v28 }
 0x829   :  { %v5744_v29 = vadd.f32 %v12138_v60, %v5706_v24  ;;  %v13853_v24 = vld [vmem:[#allocation48_spill] sm:$0xff] }
 0x82b   :  { %v5776_v42 = vmax.f32 %v5744_v29, 0.0  ;;  %v5583_v43 = vpop.f32.mrf.mxu0 }
 0x82c   :  { %v5522_v31 = vpop.f32.mrf.mxu2  ;;  %v5632_v45 = vpop.f32.mrf.mxu1  ;;  %v5584_v63 = vadd.f32 %v5583_v43, %v5534_v53 }
 0x82d   :  { %v5793_v7 = vadd.f32 %v5792_v20, %v5776_v42  ;;  %v5523_v35 = vadd.f32 %v5522_v31, %v5474_v21  ;;  %v12255_v20 = vperm.slane %v12134_v26, 1 }
 0x82e   :  { %v5633_v4 = vadd.f32 %v5632_v45, %v5584_v63 }
 0x82f   :  { %v5708_v9 = vmul.f32 %v12129_v55, %v5523_v35  ;;  %v12281_v35 = vpop.f32.mrf.mxu3 }
 0x830   :  { %v5679_v15 = vmul.f32 %v12251_v39, %v5633_v4 }
 0x831   :  { %v5746_v41 = vadd.f32 %v12138_v60, %v5708_v9 }
 0x832   :  { %v12260_v21 = vadd.f32 %v12255_v20, %v5679_v15 }
 0x833   :  { %v5778_v46 = vmax.f32 %v5746_v41, 0.0  ;;  %v5585_v52 = vpop.f32.mrf.mxu0 }
 0x834   :  { %v5634_v51 = vpop.f32.mrf.mxu1  ;;  %v5586_v0 = vadd.f32 %v5585_v52, %v5536_v62 }
 0x835   :  { %v5794_v6 = vadd.f32 %v5793_v7, %v5778_v46 }
 0x836   :  { %v5635_v30 = vadd.f32 %v5634_v51, %v5586_v0 }
 0x837   :  { %v5795_v33 = vrot.slane %v5794_v6, 4 }
 0x838   :  { %v5681_v53 = vmul.f32 %v12251_v39, %v5635_v30 }
 0x839   :  { %v5796_v11 = vadd.f32 %v5795_v33, %v5794_v6 }
 0x83a   :  { %v12263_v54 = vadd.f32 %v12255_v20, %v5681_v53 }
 0x83b   :  { %v5797_v10 = vrot.slane %v5796_v11, 2  ;;  %v5588_v38 = vpop.f32.mrf.mxu0 }
 0x83c   :  { %v5637_v29 = vpop.f32.mrf.mxu1  ;;  %v5589_v8 = vadd.f32 %v5588_v38, %v5539_v13  ;;  %v6039_v38 = vld [vmem:[%s13016_s4 + $0x18] sm:$0xff] }
 0x83d   :  { %v5798_v55 = vadd.f32 %v5797_v10, %v5796_v11 }
 0x83f   :  { %v5799_v60 = vrot.slane %v5798_v55, 1 }
 0x841   :  { %v5800_v28 = vadd.f32 %v5799_v60, %v5798_v55 }
 0x843   :  { %v5822_v36 = vmul.f32 %v5800_v28, %v13853_v24  ;;  %v5590_v58 = vpop.f32.mrf.mxu0 }
 0x844   :  { %v5591_v56 = vadd.f32 %v5590_v58, %v5541_v19  ;;  %v6059_v58 = vunpack.c.3.s8 %v6039_v38 }
 0x845   :  { %v12267_v62 = vsub.f32 %v5748_v16, %v5822_v36  ;;  %v12271_v26 = vsub.f32 %v5750_v1, %v5822_v36  ;;  %v12275_v31 = vsub.f32 %v5752_v17, %v5822_v36  ;;  %v12279_v7 = vsub.f32 %v5754_v59, %v5822_v36 }
 0x846   :  { %v12285_v9 = vsub.f32 %v5756_v22, %v5822_v36  ;;  %v12289_v3 = vsub.f32 %v5758_v57, %v5822_v36  ;;  %v12293_v27 = vsub.f32 %v5760_v32, %v5822_v36  ;;  %v12297_v16 = vsub.f32 %v5762_v25, %v5822_v36  ;;  %v5639_v25 = vpop.f32.mrf.mxu1 }
 0x847   :  { %13854 = vst [vmem:[#allocation64_spill] sm:$0xff] %v12267_v62  ;;  %v12301_v1 = vsub.f32 %v5764_v5, %v5822_v36  ;;  %v12305_v49 = vsub.f32 %v5766_v47, %v5822_v36  ;;  %v12309_v17 = vsub.f32 %v5768_v44, %v5822_v36  ;;  %v12313_v2 = vsub.f32 %v5770_v18, %v5822_v36  ;;  %v5549_v44 = vpop.f32.mrf.mxu3 }
 0x848   :  { %13855 = vst [vmem:[#allocation65_spill] sm:$0xff] %v12271_v26  ;;  %v12317_v59 = vsub.f32 %v5772_v34, %v5822_v36  ;;  %v12319_v12 = vsub.f32 %v5774_v14, %v5822_v36  ;;  %v12321_v22 = vsub.f32 %v5776_v42, %v5822_v36  ;;  %v12323_v61 = vsub.f32 %v5778_v46, %v5822_v36 }
 0x849   :  { %13856 = vst [vmem:[#allocation63_spill] sm:$0xff] %v12275_v31  ;;  %v13329_v57 = vmax.f32 %v12263_v54, 0.0  ;;  %v13330_v32 = vmax.f32 %v12260_v21, 0.0  ;;  %v5638_v5 = vadd.f32 %v5637_v29, %v5589_v8  ;;  %v5640_v37 = vadd.f32 %v5639_v25, %v5591_v56  ;;  %v6043_v29 = vld [vmem:[%s13016_s4 + $0x38] sm:$0xff] }
 0x84a   :  { %v6058_v8 = vunpack.c.2.s8 %v6039_v38  ;;  %v6074_v25 = vunpack.c.2.s8 %v6043_v29  ;;  %v6091_v56 = vcvt.s32.f32 %v6059_v58 }
 0x84b   :  { %v5801_v23 = vadd.f32 %v13329_v57, %v13330_v32  ;;  %v5683_v47 = vmul.f32 %v12251_v39, %v5638_v5  ;;  %v5685_v18 = vmul.f32 %v12251_v39, %v5640_v37  ;;  %v5593_v14 = vpop.f32.mrf.mxu0 }
 0x84c   :  { %v5594_v42 = vadd.f32 %v5593_v14, %v5544_v48  ;;  %v6090_v5 = vcvt.s32.f32 %v6058_v8 }
 0x84d   :  { %v12333_v40 = vadd.f32 %v12255_v20, %v5683_v47  ;;  %v12338_v34 = vadd.f32 %v12255_v20, %v5685_v18  ;;  %v6106_v47 = vcvt.s32.f32 %v6074_v25  ;;  %v5860_v25 = vmul.f32 %v12275_v31, %v12275_v31 }
 0x84e   :  { %v5642_v13 = vpop.f32.mrf.mxu1 }
 0x84f   :  { %v13328_v50 = vmax.f32 %v12333_v40, 0.0  ;;  %13857 = vst [vmem:[#allocation66_spill] sm:$0xff] %v12338_v34  ;;  %v13327_v19 = vmax.f32 %v12338_v34, 0.0  ;;  %v5643_v46 = vadd.f32 %v5642_v13, %v5594_v42  ;;  %v5551_v63 = vpop.f32.mrf.mxu3  ;;  %v6115_v42 = vpack.c.bf16 %v6091_v56, %v6090_v5 }
 0x850   :  { %v6057_v5 = vunpack.c.1.s8 %v6039_v38 }
 0x851   :  { %v5802_v41 = vadd.f32 %v5801_v23, %v13328_v50  ;;  %v5687_v45 = vmul.f32 %v12251_v39, %v5643_v46  ;;  %v6075_v23 = vunpack.c.3.s8 %v6043_v29  ;;  %6140 = vmatpush.bf16.msra.mxu2 %v6115_v42  ;;  %v5856_v46 = vmul.f32 %v12267_v62, %v12267_v62 }
 0x852   :  { %v6089_v50 = vcvt.s32.f32 %v6057_v5 }
 0x853   :  { %v5803_v43 = vadd.f32 %v5802_v41, %v13327_v19  ;;  %v12347_v6 = vadd.f32 %v12255_v20, %v5687_v45  ;;  %v5595_v4 = vpop.f32.mrf.mxu0  ;;  %v6107_v37 = vcvt.s32.f32 %v6075_v23  ;;  %v6056_v23 = vunpack.c.0.s8 %v6039_v38 }
 0x854   :  { %v5596_v58 = vadd.f32 %v5595_v4, %v12281_v35 }
 0x855   :  { %13858 = vst [vmem:[#allocation49_spill] sm:$0xff] %v12347_v6  ;;  %v13326_v11 = vmax.f32 %v12347_v6, 0.0  ;;  %v6123_v41 = vpack.c.bf16 %v6107_v37, %v6106_v47  ;;  %v6072_v47 = vunpack.c.0.s8 %v6043_v29  ;;  %v6073_v37 = vunpack.c.1.s8 %v6043_v29 }
 0x856   :  { %v5644_v33 = vpop.f32.mrf.mxu1 }
 0x857   :  { %v12352_v10 = vadd.f32 %v5803_v43, %v13326_v11  ;;  %v5554_v48 = vpop.f32.mrf.mxu3  ;;  %6189 = vmatpush.bf16.msra.mxu3 %v6123_v41  ;;  %v5858_v43 = vmul.f32 %v12271_v26, %v12271_v26  ;;  %v6088_v41 = vcvt.s32.f32 %v6056_v23  ;;  %v5645_v57 = vadd.f32 %v5644_v33, %v5596_v58 }
 0x858   :  { %v6104_v26 = vcvt.s32.f32 %v6072_v47  ;;  %v6105_v62 = vcvt.s32.f32 %v6073_v37 }
 0x859   :  { %v5888_v19 = vadd.f32 %v5858_v43, %v5856_v46  ;;  %v6114_v6 = vpack.c.bf16 %v6089_v50, %v6088_v41  ;;  %v5862_v46 = vmul.f32 %v12279_v7, %v12279_v7  ;;  %v5870_v41 = vmul.f32 %v12297_v16, %v12297_v16 }
 0x85a   :  { %v6122_v31 = vpack.c.bf16 %v6105_v62, %v6104_v26 }
 0x85b   :  { %v5598_v52 = vpop.f32.mrf.mxu0  ;;  %v5889_v42 = vadd.f32 %v5888_v19, %v5860_v25  ;;  %6141 = vmatpush.bf16.msra.mxu2 %v6114_v6 }
 0x85c   :  { %v5599_v56 = vadd.f32 %v5598_v52, %v5549_v44  ;;  %v5689_v52 = vmul.f32 %v12251_v39, %v5645_v57  ;;  %6190 = vmatpush.bf16.msra.mxu3 %v6122_v31  ;;  %v5866_v31 = vmul.f32 %v12289_v3, %v12289_v3 }
 0x85d   :  { %v5890_v44 = vadd.f32 %v5889_v42, %v5862_v46 }
 0x85e   :  { %v5647_v51 = vpop.f32.mrf.mxu1  ;;  %v12374_v58 = vadd.f32 %v12255_v20, %v5689_v52 }
 0x85f   :  { %v5556_v30 = vpop.f32.mrf.mxu3  ;;  %v5648_v35 = vadd.f32 %v5647_v51, %v5599_v56 }
 0x861   :  { %v5691_v50 = vmul.f32 %v12251_v39, %v5648_v35 }
 0x863   :  { %v5600_v0 = vpop.f32.mrf.mxu0  ;;  %v12380_v57 = vadd.f32 %v12255_v20, %v5691_v50 }
 0x864   :  { %v5601_v32 = vadd.f32 %v5600_v0, %v5551_v63  ;;  %v5864_v63 = vmul.f32 %v12285_v9, %v12285_v9 }
 0x866   :  { %v5649_v55 = vpop.f32.mrf.mxu1  ;;  %v5891_v51 = vadd.f32 %v5890_v44, %v5864_v63 }
 0x867   :  { %v5559_v53 = vpop.f32.mrf.mxu3  ;;  %v5650_v19 = vadd.f32 %v5649_v55, %v5601_v32 }
 0x869   :  { %v5693_v62 = vmul.f32 %v12251_v39, %v5650_v19 }
 0x86b   :  { %v5603_v60 = vpop.f32.mrf.mxu0 }
 0x86c   :  { %v5604_v34 = vadd.f32 %v5603_v60, %v5554_v48  ;;  %v5892_v60 = vadd.f32 %v5891_v51, %v5866_v31 }
 0x86e   :  { %v5652_v15 = vpop.f32.mrf.mxu1 }
 0x86f   :  { %v5561_v18 = vpop.f32.mrf.mxu3  ;;  %v5653_v0 = vadd.f32 %v5652_v15, %v5604_v34  ;;  %v5759_v15 = vmax.f32 %v12374_v58, 0.0 }
 0x871   :  { %v5695_v55 = vmul.f32 %v12251_v39, %v5653_v0  ;;  %v5805_v56 = vadd.f32 %v12352_v10, %v5759_v15 }
 0x873   :  { %v5605_v28 = vpop.f32.mrf.mxu0  ;;  %v12392_v25 = vadd.f32 %v12255_v20, %v5695_v55 }
 0x874   :  { %v5606_v38 = vadd.f32 %v5605_v28, %v5556_v30 }
 0x876   :  { %v5654_v36 = vpop.f32.mrf.mxu1 }
 0x877   :  { %v5564_v8 = vpop.f32.mrf.mxu3  ;;  %v5655_v26 = vadd.f32 %v5654_v36, %v5606_v38 }
 0x879   :  { %v5697_v28 = vmul.f32 %v12251_v39, %v5655_v26 }
 0x87b   :  { %v5608_v14 = vpop.f32.mrf.mxu0  ;;  %v12400_v47 = vadd.f32 %v12255_v20, %v5697_v28 }
 0x87c   :  { %v5609_v29 = vadd.f32 %v5608_v14, %v5559_v53  ;;  %v12385_v53 = vadd.f32 %v12255_v20, %v5693_v62  ;;  %v5868_v14 = vmul.f32 %v12293_v27, %v12293_v27 }
 0x87e   :  { %v5657_v13 = vpop.f32.mrf.mxu1  ;;  %v5893_v5 = vadd.f32 %v5892_v60, %v5868_v14 }
 0x87f   :  { %v5566_v33 = vpop.f32.mrf.mxu3  ;;  %v5658_v34 = vadd.f32 %v5657_v13, %v5609_v29  ;;  %v5872_v29 = vmul.f32 %v12301_v1, %v12301_v1 }
 0x880   :  { %v5894_v19 = vadd.f32 %v5893_v5, %v5870_v41 }
 0x881   :  { %v5699_v13 = vmul.f32 %v12251_v39, %v5658_v34  ;;  %v5874_v34 = vmul.f32 %v12305_v49, %v12305_v49 }
 0x882   :  { %v5895_v31 = vadd.f32 %v5894_v19, %v5872_v29 }
 0x883   :  { %v5610_v45 = vpop.f32.mrf.mxu0  ;;  %v12409_v10 = vadd.f32 %v12255_v20, %v5699_v13 }
 0x884   :  { %v5611_v6 = vadd.f32 %v5610_v45, %v5561_v18  ;;  %v5761_v45 = vmax.f32 %v12380_v57, 0.0  ;;  %v5896_v13 = vadd.f32 %v5895_v31, %v5874_v34 }
 0x885   :  { %v5769_v62 = vmax.f32 %v12409_v10, 0.0 }
 0x886   :  { %v5659_v11 = vpop.f32.mrf.mxu1  ;;  %v5806_v46 = vadd.f32 %v5805_v56, %v5761_v45 }
 0x887   :  { %v5660_v36 = vadd.f32 %v5659_v11, %v5611_v6  ;;  %v5569_v23 = vpop.f32.mrf.mxu3  ;;  %v5763_v11 = vmax.f32 %v12385_v53, 0.0 }
 0x889   :  { %v5701_v37 = vmul.f32 %v12251_v39, %v5660_v36  ;;  %v5807_v38 = vadd.f32 %v5806_v46, %v5763_v11 }
 0x88b   :  { %v5613_v4 = vpop.f32.mrf.mxu0  ;;  %v12416_v63 = vadd.f32 %v12255_v20, %v5701_v37  ;;  %v5876_v37 = vmul.f32 %v12309_v17, %v12309_v17 }
 0x88c   :  { %v5614_v30 = vadd.f32 %v5613_v4, %v5564_v8 }
 0x88e   :  { %v5662_v43 = vpop.f32.mrf.mxu1 }
 0x88f   :  { %v5663_v8 = vadd.f32 %v5662_v43, %v5614_v30  ;;  %v5765_v43 = vmax.f32 %v12392_v25, 0.0  ;;  %v5571_v30 = vpop.f32.mrf.mxu3 }
 0x891   :  { %v5703_v44 = vmul.f32 %v12251_v39, %v5663_v8  ;;  %v5808_v51 = vadd.f32 %v5807_v38, %v5765_v43 }
 0x893   :  { %v5615_v32 = vpop.f32.mrf.mxu0  ;;  %v12425_v26 = vadd.f32 %v12255_v20, %v5703_v44 }
 0x894   :  { %v5616_v18 = vadd.f32 %v5615_v32, %v5566_v33  ;;  %v5767_v33 = vmax.f32 %v12400_v47, 0.0 }
 0x895   :  { %v5773_v36 = vmax.f32 %v12425_v26, 0.0 }
 0x896   :  { %v5664_v48 = vpop.f32.mrf.mxu1  ;;  %v5809_v32 = vadd.f32 %v5808_v51, %v5767_v33 }
 0x897   :  { %v5665_v42 = vadd.f32 %v5664_v48, %v5616_v18  ;;  %v5771_v48 = vmax.f32 %v12416_v63, 0.0 }
 0x898   :  { %v5810_v28 = vadd.f32 %v5809_v32, %v5769_v62 }
 0x899   :  { %v5705_v50 = vmul.f32 %v12251_v39, %v5665_v42 }
 0x89b   :  { %v5618_v35 = vpop.f32.mrf.mxu0  ;;  %v12432_v55 = vadd.f32 %v12255_v20, %v5705_v50 }
 0x89c   :  { %v5619_v52 = vadd.f32 %v5618_v35, %v5569_v23  ;;  %v5811_v23 = vadd.f32 %v5810_v28, %v5771_v48  ;;  %v5897_v35 = vadd.f32 %v5896_v13, %v5876_v37  ;;  %v5886_v13 = vmul.f32 %v12323_v61, %v12323_v61 }
 0x89d   :  { %v5775_v5 = vmax.f32 %v12432_v55, 0.0 }
 0x89e   :  { %v5667_v4 = vpop.f32.mrf.mxu1  ;;  %v5812_v42 = vadd.f32 %v5811_v23, %v5773_v36 }
 0x89f   :  { %v5668_v0 = vadd.f32 %v5667_v4, %v5619_v52  ;;  %v5878_v52 = vmul.f32 %v12313_v2, %v12313_v2 }
 0x8a0   :  { %v5813_v4 = vadd.f32 %v5812_v42, %v5775_v5  ;;  %v13860_v42 = vmax.f32 %v12263_v54, 0.0 }
 0x8a1   :  { %v5707_v6 = vmul.f32 %v12251_v39, %v5668_v0  ;;  %v5898_v50 = vadd.f32 %v5897_v35, %v5878_v52  ;;  %v13861_v35 = vmax.f32 %v12333_v40, 0.0  ;;  %v13862_v52 = vld [vmem:[#allocation66_spill] sm:$0xff] }
 0x8a3   :  { %v5620_v60 = vpop.f32.mrf.mxu0  ;;  %v12440_v18 = vadd.f32 %v12255_v20, %v5707_v6 }
 0x8a4   :  { %v5621_v14 = vadd.f32 %v5620_v60, %v5571_v30  ;;  %v5884_v30 = vmul.f32 %v12321_v22, %v12321_v22 }
 0x8a5   :  { %v5777_v41 = vmax.f32 %v12440_v18, 0.0 }
 0x8a6   :  { %v5669_v8 = vpop.f32.mrf.mxu1 }
 0x8a7   :  { %v5670_v56 = vadd.f32 %v5669_v8, %v5621_v14  ;;  %v5814_v19 = vadd.f32 %v5813_v4, %v5777_v41 }
 0x8a9   :  { %v5709_v46 = vmul.f32 %v12251_v39, %v5670_v56  ;;  %v5880_v39 = vmul.f32 %v12317_v59, %v12317_v59  ;;  %v13859_v56 = vmax.f32 %v12260_v21, 0.0 }
 0x8ab   :  { %v12454_v44 = vadd.f32 %v12255_v20, %v5709_v46  ;;  %v5899_v51 = vadd.f32 %v5898_v50, %v5880_v39  ;;  %v5882_v20 = vmul.f32 %v12319_v12, %v12319_v12 }
 0x8ad   :  { %v5779_v38 = vmax.f32 %v12454_v44, 0.0  ;;  %v5900_v32 = vadd.f32 %v5899_v51, %v5882_v20 }
 0x8af   :  { %v5815_v0 = vadd.f32 %v5814_v19, %v5779_v38  ;;  %v5901_v28 = vadd.f32 %v5900_v32, %v5884_v30  ;;  %v13863_v19 = vmax.f32 %v13862_v52, 0.0 }
 0x8b1   :  { %v5816_v29 = vrot.slane %v5815_v0, 4  ;;  %v5902_v23 = vadd.f32 %v5901_v28, %v5886_v13 }
 0x8b3   :  { %v5817_v6 = vadd.f32 %v5816_v29, %v5815_v0  ;;  %v13864_v0 = vld [vmem:[#allocation49_spill] sm:$0xff]  ;;  %v5903_v51 = vrot.slane %v5902_v23, 4 }
 0x8b4   :  { %v13865_v39 = vmax.f32 %v13864_v0, 0.0 }
 0x8b5   :  { %v5818_v31 = vrot.slane %v5817_v6, 2 }
 0x8b7   :  { %v5819_v34 = vadd.f32 %v5818_v31, %v5817_v6  ;;  %v5904_v6 = vadd.f32 %v5903_v51, %v5902_v23 }
 0x8b9   :  { %v5820_v60 = vrot.slane %v5819_v34, 1  ;;  %v5905_v30 = vrot.slane %v5904_v6, 2 }
 0x8bb   :  { %v5821_v14 = vadd.f32 %v5820_v60, %v5819_v34  ;;  %v5906_v23 = vadd.f32 %v5905_v30, %v5904_v6 }
 0x8bd   :  { %v5823_v8 = vmul.f32 %v5821_v14, %v13853_v24 }
 0x8bf   :  { %v12474_v37 = vsub.f32 %v13859_v56, %v5823_v8  ;;  %v12478_v46 = vsub.f32 %v13860_v42, %v5823_v8  ;;  %v12482_v4 = vsub.f32 %v13861_v35, %v5823_v8  ;;  %v12486_v50 = vsub.f32 %v13863_v19, %v5823_v8 }
 0x8c0   :  { %v12490_v29 = vsub.f32 %v13865_v39, %v5823_v8  ;;  %v12500_v31 = vsub.f32 %v5759_v15, %v5823_v8  ;;  %v12506_v60 = vsub.f32 %v5761_v45, %v5823_v8  ;;  %v12512_v13 = vsub.f32 %v5763_v11, %v5823_v8 }
 0x8c1   :  { %v5857_v21 = vmul.f32 %v12474_v37, %v12474_v37  ;;  %v5859_v54 = vmul.f32 %v12478_v46, %v12478_v46  ;;  %v5861_v40 = vmul.f32 %v12482_v4, %v12482_v4  ;;  %v5863_v32 = vmul.f32 %v12486_v50, %v12486_v50 }
 0x8c2   :  { %v5865_v28 = vmul.f32 %v12490_v29, %v12490_v29  ;;  %v5867_v58 = vmul.f32 %v12500_v31, %v12500_v31  ;;  %v12518_v56 = vsub.f32 %v5765_v43, %v5823_v8  ;;  %v5869_v57 = vmul.f32 %v12506_v60, %v12506_v60 }
 0x8c3   :  { %v5909_v20 = vadd.f32 %v5859_v54, %v5857_v21  ;;  %v12524_v42 = vsub.f32 %v5767_v33, %v5823_v8  ;;  %v5871_v53 = vmul.f32 %v12512_v13, %v12512_v13  ;;  %v5907_v35 = vrot.slane %v5906_v23, 1 }
 0x8c4   :  { %v12530_v52 = vsub.f32 %v5769_v62, %v5823_v8  ;;  %v5873_v25 = vmul.f32 %v12518_v56, %v12518_v56  ;;  %v12536_v19 = vsub.f32 %v5771_v48, %v5823_v8  ;;  %v12542_v39 = vsub.f32 %v5773_v36, %v5823_v8 }
 0x8c5   :  { %v5910_v34 = vadd.f32 %v5909_v20, %v5861_v40  ;;  %v5875_v47 = vmul.f32 %v12524_v42, %v12524_v42  ;;  %v5908_v0 = vadd.f32 %v5907_v35, %v5906_v23  ;;  %v12548_v51 = vsub.f32 %v5775_v5, %v5823_v8 }
 0x8c6   :  { %v5877_v10 = vmul.f32 %v12530_v52, %v12530_v52  ;;  %v5879_v63 = vmul.f32 %v12536_v19, %v12536_v19  ;;  %v12555_v54 = vsub.f32 %v5777_v41, %v5823_v8  ;;  %v5881_v26 = vmul.f32 %v12542_v39, %v12542_v39 }
 0x8c7   :  { %v5911_v14 = vadd.f32 %v5910_v34, %v5863_v32  ;;  %v5930_v21 = vmul.f32 %v5908_v0, %v13853_v24  ;;  %v12561_v6 = vsub.f32 %v5779_v38, %v5823_v8  ;;  %v5883_v55 = vmul.f32 %v12548_v51, %v12548_v51 }
 0x8c8   :  { %v5885_v20 = vmul.f32 %v12555_v54, %v12555_v54 }
 0x8c9   :  { %v5912_v15 = vadd.f32 %v5911_v14, %v5865_v28  ;;  %v12565_v40 = vadd.f32 1e-05, %v5930_v21  ;;  %v5887_v41 = vmul.f32 %v12561_v6, %v12561_v6 }
 0x8cb   :  { %v5913_v45 = vadd.f32 %v5912_v15, %v5867_v58  ;;  %6661 = vrsqrt.f32 %v12565_v40  ;;  %v6038_v58 = vld [vmem:[%s13016_s4 + $0x10] sm:$0xff]  ;;  %vm5941_vm15 = vweird.f32 %v12565_v40 }
 0x8cc   :  { %v6042_v15 = vld [vmem:[%s13016_s4 + $0x30] sm:$0xff]  ;;  %v6052_v35 = vunpack.c.0.s8 %v6038_v58 }
 0x8cd   :  { %v5914_v11 = vadd.f32 %v5913_v45, %v5869_v57  ;;  %v6054_v57 = vunpack.c.2.s8 %v6038_v58  ;;  %v6055_v45 = vunpack.c.3.s8 %v6038_v58 }
 0x8cf   :  { %v5915_v43 = vadd.f32 %v5914_v11, %v5871_v53  ;;  %v6070_v53 = vunpack.c.2.s8 %v6042_v15  ;;  %v6071_v11 = vunpack.c.3.s8 %v6042_v15  ;;  %v6086_v0 = vcvt.s32.f32 %v6054_v57 }
 0x8d1   :  { %v5916_v33 = vadd.f32 %v5915_v43, %v5873_v25  ;;  %v12572_v8 = vpop.eup %6661  ;;  %v6053_v25 = vunpack.c.1.s8 %v6038_v58  ;;  %v6068_v43 = vunpack.c.0.s8 %v6042_v15 }
 0x8d2   :  { %v5936_v14 = vmul.f32 %v12572_v8, %v12565_v40  ;;  %vm5942_vm12 = vweird.f32 %v12572_v8 }
 0x8d3   :  { %v5917_v62 = vadd.f32 %v5916_v33, %v5875_v47  ;;  %v6037_v47 = vld [vmem:[%s13016_s4 + $0x8] sm:$0xff]  ;;  %v6085_v21 = vcvt.s32.f32 %v6053_v25  ;;  %v6040_v25 = vld [vmem:[%s13016_s4 + $0x20] sm:$0xff]  ;;  %vm5943_vm0 = vmor %vm5941_vm15, %vm5942_vm12 }
 0x8d4   :  { %v6048_v57 = vunpack.c.0.s8 %v6037_v47 }
 0x8d5   :  { %v5918_v48 = vadd.f32 %v5917_v62, %v5877_v10  ;;  %v6087_v10 = vcvt.s32.f32 %v6055_v45  ;;  %v6102_v62 = vcvt.s32.f32 %v6070_v53  ;;  %v6049_v45 = vunpack.c.1.s8 %v6037_v47  ;;  %v6036_v53 = vld [vmem:[%s13016_s4] sm:$0xff] }
 0x8d7   :  { %v5919_v36 = vadd.f32 %v5918_v48, %v5879_v63  ;;  %v6103_v63 = vcvt.s32.f32 %v6071_v11  ;;  %v6084_v48 = vcvt.s32.f32 %v6052_v35 }
 0x8d9   :  { %v5920_v5 = vadd.f32 %v5919_v36, %v5881_v26  ;;  %v6069_v26 = vunpack.c.1.s8 %v6042_v15  ;;  %v6041_v36 = vld [vmem:[%s13016_s4 + $0x28] sm:$0xff] }
 0x8da   :  { %v6067_v58 = vunpack.c.3.s8 %v6041_v36 }
 0x8db   :  { %v5921_v18 = vadd.f32 %v5920_v5, %v5883_v55  ;;  %v6113_v5 = vpack.c.bf16 %v6087_v10, %v6086_v0  ;;  %v6081_v0 = vcvt.s32.f32 %v6049_v45  ;;  %v6064_v10 = vunpack.c.0.s8 %v6041_v36 }
 0x8dc   :  { %v6099_v35 = vcvt.s32.f32 %v6067_v58 }
 0x8dd   :  { %v5922_v32 = vadd.f32 %v5921_v18, %v5885_v20  ;;  %v6100_v20 = vcvt.s32.f32 %v6068_v43  ;;  %v6050_v18 = vunpack.c.2.s8 %v6037_v47  ;;  %6142 = vmatpush.bf16.msra.mxu2 %v6113_v5  ;;  %v5937_v43 = vmul.f32 %v12572_v8, %v5936_v14 }
 0x8de   :  { %v6063_v5 = vunpack.c.3.s8 %v6040_v25 }
 0x8df   :  { %v5923_v34 = vadd.f32 %v5922_v32, %v5887_v41  ;;  %v6121_v41 = vpack.c.bf16 %v6103_v63, %v6102_v62  ;;  %v6112_v32 = vpack.c.bf16 %v6085_v21, %v6084_v48  ;;  %v6046_v63 = vunpack.c.2.s8 %v6036_v53 }
 0x8e0   :  { %v6047_v48 = vunpack.c.3.s8 %v6036_v53  ;;  %v6095_v58 = vcvt.s32.f32 %v6063_v5 }
 0x8e1   :  { %v5924_v44 = vrot.slane %v5923_v34, 4  ;;  %6191 = vmatpush.bf16.msra.mxu3 %v6121_v41  ;;  %6143 = vmatpush.bf16.msra.mxu2 %v6112_v32  ;;  %v6045_v32 = vunpack.c.1.s8 %v6036_v53 }
 0x8e3   :  { %v5925_v38 = vadd.f32 %v5924_v44, %v5923_v34  ;;  %v6101_v34 = vcvt.s32.f32 %v6069_v26  ;;  %v6051_v44 = vunpack.c.3.s8 %v6037_v47  ;;  %v6065_v47 = vunpack.c.1.s8 %v6041_v36 }
 0x8e4   :  { %v6096_v26 = vcvt.s32.f32 %v6064_v10 }
 0x8e5   :  { %v5926_v30 = vrot.slane %v5925_v38, 2  ;;  %v6120_v15 = vpack.c.bf16 %v6101_v34, %v6100_v20  ;;  %v6097_v20 = vcvt.s32.f32 %v6065_v47  ;;  %v6078_v34 = vcvt.s32.f32 %v6046_v63 }
 0x8e7   :  { %v5927_v28 = vadd.f32 %v5926_v30, %v5925_v38  ;;  %v6082_v30 = vcvt.s32.f32 %v6050_v18  ;;  %6192 = vmatpush.bf16.msra.mxu3 %v6120_v15  ;;  %v5938_v18 = vmul.f32 0.5, %v5937_v43  ;;  %v6060_v15 = vunpack.c.0.s8 %v6040_v25 }
 0x8e9   :  { %v5928_v23 = vrot.slane %v5927_v28, 1 }
 0x8eb   :  { %v5929_v33 = vadd.f32 %v5928_v23, %v5927_v28  ;;  %v6066_v28 = vunpack.c.2.s8 %v6041_v36  ;;  %v6083_v23 = vcvt.s32.f32 %v6051_v44  ;;  %v6079_v44 = vcvt.s32.f32 %v6047_v48 }
 0x8ed   :  { %v5931_v55 = vmul.f32 %v5929_v33, %v13853_v24  ;;  %v6098_v11 = vcvt.s32.f32 %v6066_v28  ;;  %v6080_v33 = vcvt.s32.f32 %v6048_v57  ;;  %v6111_v62 = vpack.c.bf16 %v6083_v23, %v6082_v30 }
 0x8ee   :  { %v6044_v57 = vunpack.c.0.s8 %v6036_v53  ;;  %v6118_v30 = vpack.c.bf16 %v6097_v20, %v6096_v26  ;;  %v6061_v23 = vunpack.c.1.s8 %v6040_v25 }
 0x8ef   :  { %v12589_v38 = vadd.f32 1e-05, %v5931_v55  ;;  %v6119_v21 = vpack.c.bf16 %v6099_v35, %v6098_v11  ;;  %v6062_v55 = vunpack.c.2.s8 %v6040_v25  ;;  %v6110_v41 = vpack.c.bf16 %v6081_v0, %v6080_v33  ;;  %6144 = vmatpush.bf16.msra.mxu2 %v6111_v62 }
 0x8f0   :  { %v5939_v11 = vsub.f32 1.5, %v5938_v18  ;;  %v6109_v35 = vpack.c.bf16 %v6079_v44, %v6078_v34  ;;  %v6076_v43 = vcvt.s32.f32 %v6044_v57  ;;  %v6077_v33 = vcvt.s32.f32 %v6045_v32 }
 0x8f1   :  { %6663 = vrsqrt.f32 %v12589_v38  ;;  %v6094_v14 = vcvt.s32.f32 %v6062_v55  ;;  %6193 = vmatpush.bf16.msra.mxu3 %v6119_v21  ;;  %v6092_v62 = vcvt.s32.f32 %v6060_v15  ;;  %v6093_v47 = vcvt.s32.f32 %v6061_v23  ;;  %v5932_v55 = vld [vmem:[%s13013_s6 + $0x1e] sm:$0x3] }
 0x8f2   :  { %v6108_v53 = vpack.c.bf16 %v6077_v33, %v6076_v43  ;;  %v5940_v48 = vmul.f32 %v12572_v8, %v5939_v11  ;;  %vm5951_vm13 = vweird.f32 %v12589_v38  ;;  %v13868_v43 = vld [vmem:[#allocation63_spill] sm:$0xff] }
 0x8f3   :  { %6145 = vmatpush.bf16.msra.mxu2 %v6110_v41  ;;  %v6117_v10 = vpack.c.bf16 %v6095_v58, %v6094_v14  ;;  %v6116_v21 = vpack.c.bf16 %v6093_v47, %v6092_v62  ;;  %v13866_v14 = vld [vmem:[#allocation64_spill] sm:$0xff] }
 0x8f4   :  { %v5944_v20 = vsel %vm5943_vm0, %v12572_v8, %v5940_v48  ;;  %v13867_v8 = vld [vmem:[#allocation65_spill] sm:$0xff] }
 0x8f5   :  { %6194 = vmatpush.bf16.msra.mxu3 %v6118_v30 }
 0x8f7   :  { %v6664_v28 = vpop.eup %6663  ;;  %6146 = vmatpush.bf16.msra.mxu2 %v6109_v35 }
 0x8f8   :  { %v5946_v36 = vmul.f32 %v6664_v28, %v12589_v38  ;;  %vm5952_vm11 = vweird.f32 %v6664_v28  ;;  %v5998_v38 = vld [vmem:[%s13013_s6 + $0x20] sm:$0x3] }
 0x8f9   :  { %6195 = vmatpush.bf16.msra.mxu3 %v6117_v10  ;;  %vm5953_vm14 = vmor %vm5951_vm13, %vm5952_vm11  ;;  %v12616_v44 = vperm.slane %v5998_v38, 0 }
 0x8fa   :  { %v5947_v45 = vmul.f32 %v6664_v28, %v5946_v36 }
 0x8fb   :  { %6147 = vmatpush.bf16.msra.mxu2 %v6108_v53 }
 0x8fc   :  { %v5948_v0 = vmul.f32 0.5, %v5947_v45 }
 0x8fd   :  { %6196 = vmatpush.bf16.msra.mxu3 %v6116_v21 }
 0x8fe   :  { %v5949_v63 = vsub.f32 1.5, %v5948_v0 }
 0x900   :  { %v5950_v25 = vmul.f32 %v6664_v28, %v5949_v63 }
 0x902   :  { %v5954_v26 = vsel %vm5953_vm14, %v6664_v28, %v5950_v25  ;;  %v12618_v28 = vperm.slane %v5998_v38, 1 }
 0x903   :  { %v5957_v5 = vrot.slane %v5954_v26, 7 }
 0x905   :  { %v5958_v18 = vsel %vm3245_vm8, %v5944_v20, %v5957_v5 }
 0x906   :  { %v5960_v41 = vmul.f32 %v5958_v18, %v5932_v55 }
 0x908   :  { %v12612_v34 = vperm.slane %v5960_v41, 0  ;;  %v12614_v40 = vperm.slane %v5960_v41, 1 }
 0x90a   :  { %v5966_v58 = vmul.f32 %v12612_v34, %v13866_v14  ;;  %v5968_v57 = vmul.f32 %v12612_v34, %v13867_v8  ;;  %v5967_v32 = vmul.f32 %v12614_v40, %v12474_v37  ;;  %v5969_v36 = vmul.f32 %v12614_v40, %v12478_v46 }
 0x90b   :  { %v5970_v33 = vmul.f32 %v12612_v34, %v13868_v43  ;;  %v5972_v37 = vmul.f32 %v12612_v34, %v12279_v7  ;;  %v5971_v46 = vmul.f32 %v12614_v40, %v12482_v4  ;;  %v5973_v0 = vmul.f32 %v12614_v40, %v12486_v50 }
 0x90c   :  { %v6004_v30 = vadd.f32 %v12616_v44, %v5966_v58  ;;  %v6006_v15 = vadd.f32 %v12616_v44, %v5968_v57  ;;  %v6005_v23 = vadd.f32 %v12618_v28, %v5967_v32  ;;  %v6007_v45 = vadd.f32 %v12618_v28, %v5969_v36 }
 0x90d   :  { %v5982_v10 = vmul.f32 %v12612_v34, %v12301_v1  ;;  %v6008_v62 = vadd.f32 %v12616_v44, %v5970_v33  ;;  %v5984_v47 = vmul.f32 %v12612_v34, %v12305_v49  ;;  %v6010_v63 = vadd.f32 %v12616_v44, %v5972_v37 }
 0x90e   :  { %v6124_v11 = vpack.c.bf16 %v6006_v15, %v6004_v30  ;;  %v6125_v35 = vpack.c.bf16 %v6007_v45, %v6005_v23  ;;  %v5983_v7 = vmul.f32 %v12614_v40, %v12518_v56  ;;  %v5985_v4 = vmul.f32 %v12614_v40, %v12524_v42 }
 0x90f   :  { %v12647_v53 = vadd.f32 %v12616_v44, %v5982_v10  ;;  %v6009_v50 = vadd.f32 %v12618_v28, %v5971_v46  ;;  %v12655_v1 = vadd.f32 %v12616_v44, %v5984_v47  ;;  %v5986_v48 = vmul.f32 %v12612_v34, %v12309_v17 }
 0x910   :  { %6148 = vmatmul.bf16.vlgmr.msra.gmra.mxu2 %v6124_v11  ;;  %6197 = vmatmul.bf16.vlgmr.msra.gmra.mxu3 %v6125_v35  ;;  %v5988_v49 = vmul.f32 %v12612_v34, %v12313_v2  ;;  %v6011_v25 = vadd.f32 %v12618_v28, %v5973_v0  ;;  %v6021_v21 = vadd.f32 %v12618_v28, %v5983_v7 }
 0x911   :  { %v6023_v56 = vadd.f32 %v12618_v28, %v5985_v4  ;;  %v5987_v42 = vmul.f32 %v12614_v40, %v12530_v52  ;;  %v6132_v26 = vpack.c.bf16 %v12655_v1, %v12647_v53  ;;  %v6024_v55 = vadd.f32 %v12616_v44, %v5986_v48 }
 0x912   :  { %v6026_v5 = vadd.f32 %v12616_v44, %v5988_v49  ;;  %v5989_v17 = vmul.f32 %v12614_v40, %v12536_v19  ;;  %v5990_v18 = vmul.f32 %v12612_v34, %v12317_v59  ;;  %v5992_v38 = vmul.f32 %v12612_v34, %v12319_v12 }
 0x913   :  { %v6133_v2 = vpack.c.bf16 %v6023_v56, %v6021_v21  ;;  %v6025_v20 = vadd.f32 %v12618_v28, %v5987_v42  ;;  %v5991_v14 = vmul.f32 %v12614_v40, %v12542_v39  ;;  %v5993_v58 = vmul.f32 %v12614_v40, %v12548_v51 }
 0x914   :  { %v6134_v52 = vpack.c.bf16 %v6026_v5, %v6024_v55  ;;  %v6027_v41 = vadd.f32 %v12618_v28, %v5989_v17  ;;  %v6028_v19 = vadd.f32 %v12616_v44, %v5990_v18  ;;  %v6030_v8 = vadd.f32 %v12616_v44, %v5992_v38 }
 0x915   :  { %v5994_v57 = vmul.f32 %v12612_v34, %v12321_v22  ;;  %v5996_v59 = vmul.f32 %v12612_v34, %v12323_v61  ;;  %v6029_v32 = vadd.f32 %v12618_v28, %v5991_v14  ;;  %v6031_v36 = vadd.f32 %v12618_v28, %v5993_v58 }
 0x916   :  { %v6135_v12 = vpack.c.bf16 %v6027_v41, %v6025_v20  ;;  %v5995_v39 = vmul.f32 %v12614_v40, %v12555_v54  ;;  %v6136_v30 = vpack.c.bf16 %v6030_v8, %v6028_v19  ;;  %v5997_v23 = vmul.f32 %v12614_v40, %v12561_v6 }
 0x917   :  { %v6032_v51 = vadd.f32 %v12616_v44, %v5994_v57  ;;  %v6034_v15 = vadd.f32 %v12616_v44, %v5996_v59  ;;  %v6137_v22 = vpack.c.bf16 %v6031_v36, %v6029_v32  ;;  %v6126_v61 = vpack.c.bf16 %v6010_v63, %v6008_v62 }
 0x918   :  { %v6033_v45 = vadd.f32 %v12618_v28, %v5995_v39  ;;  %v6127_v11 = vpack.c.bf16 %v6011_v25, %v6009_v50  ;;  %v6035_v43 = vadd.f32 %v12618_v28, %v5997_v23  ;;  %v5974_v54 = vmul.f32 %v12612_v34, %v12285_v9 }
 0x919   :  { %v6138_v35 = vpack.c.bf16 %v6034_v15, %v6032_v51  ;;  %v5976_v37 = vmul.f32 %v12612_v34, %v12289_v3  ;;  %v5975_v6 = vmul.f32 %v12614_v40, %v12490_v29  ;;  %v5977_v46 = vmul.f32 %v12614_v40, %v12500_v31 }
 0x91a   :  { %v6139_v33 = vpack.c.bf16 %v6035_v43, %v6033_v45  ;;  %v6012_v0 = vadd.f32 %v12616_v44, %v5974_v54  ;;  %v5978_v9 = vmul.f32 %v12612_v34, %v12293_v27  ;;  %v5980_v3 = vmul.f32 %v12612_v34, %v12297_v16 }
 0x91b   :  { %v6014_v10 = vadd.f32 %v12616_v44, %v5976_v37  ;;  %v6013_v62 = vadd.f32 %v12618_v28, %v5975_v6  ;;  %v6015_v47 = vadd.f32 %v12618_v28, %v5977_v46  ;;  %v5979_v29 = vmul.f32 %v12614_v40, %v12506_v60  ;;  %v6425_v37 = vld [vmem:[%s13017_s5 + $0x18] sm:$0xff] }
 0x91c   :  { %v5981_v31 = vmul.f32 %v12614_v40, %v12512_v13  ;;  %v6016_v7 = vadd.f32 %v12616_v44, %v5978_v9  ;;  %v6018_v4 = vadd.f32 %v12616_v44, %v5980_v3  ;;  %v12725_v13 = vld [vmem:[%s13013_s6 + $0x27] ss:$0 sm:$0xff]  ;;  %v12731_v40 = vld [vmem:[%s13013_s6 + $0x24] ss:$0 sm:$0xff]  ;;  %v6440_v6 = vunpack.c.2.s8 %v6425_v37 }
 0x91d   :  { %v6128_v63 = vpack.c.bf16 %v6014_v10, %v6012_v0  ;;  %v6129_v53 = vpack.c.bf16 %v6015_v47, %v6013_v62  ;;  %v6017_v50 = vadd.f32 %v12618_v28, %v5979_v29  ;;  %v6441_v46 = vunpack.c.3.s8 %v6425_v37 }
 0x91e   :  { %v6019_v1 = vadd.f32 %v12618_v28, %v5981_v31  ;;  %v6130_v48 = vpack.c.bf16 %v6018_v4, %v6016_v7  ;;  %v6456_v0 = vcvt.s32.f32 %v6440_v6  ;;  %v6438_v3 = vunpack.c.0.s8 %v6425_v37 }
 0x91f   :  { %v6457_v10 = vcvt.s32.f32 %v6441_v46  ;;  %v6439_v29 = vunpack.c.1.s8 %v6425_v37 }
 0x920   :  { %6153 = vmatmul.bf16.gmra.mxu2 %v6126_v61  ;;  %6202 = vmatmul.bf16.gmra.mxu3 %v6127_v11  ;;  %v6131_v49 = vpack.c.bf16 %v6019_v1, %v6017_v50  ;;  %v6454_v31 = vcvt.s32.f32 %v6438_v3 }
 0x921   :  { %v6465_v62 = vpack.c.bf16 %v6457_v10, %v6456_v0  ;;  %v6455_v7 = vcvt.s32.f32 %v6439_v29 }
 0x923   :  { %6474 = vmatpush.bf16.msra.mxu0 %v6465_v62  ;;  %v6464_v4 = vpack.c.bf16 %v6455_v7, %v6454_v31 }
 0x927   :  { %6475 = vmatpush.bf16.msra.mxu0 %v6464_v4 }
 0x930   :  { %6158 = vmatmul.bf16.gmra.mxu2 %v6128_v63  ;;  %6207 = vmatmul.bf16.gmra.mxu3 %v6129_v53 }
 0x940   :  { %6163 = vmatmul.bf16.gmra.mxu2 %v6130_v48  ;;  %6212 = vmatmul.bf16.gmra.mxu3 %v6131_v49 }
 0x950   :  { %6168 = vmatmul.bf16.gmra.mxu2 %v6132_v26  ;;  %6217 = vmatmul.bf16.gmra.mxu3 %v6133_v2 }
 0x960   :  { %6173 = vmatmul.bf16.gmra.mxu2 %v6134_v52  ;;  %6222 = vmatmul.bf16.gmra.mxu3 %v6135_v12 }
 0x970   :  { %6178 = vmatmul.bf16.gmra.mxu2 %v6136_v30  ;;  %6227 = vmatmul.bf16.gmra.mxu3 %v6137_v22 }
 0x980   :  { %6183 = vmatmul.bf16.gmra.mxu2 %v6138_v35  ;;  %6232 = vmatmul.bf16.gmra.mxu3 %v6139_v33 }
 0x993   :  { %v6149_v27 = vpop.f32.mrf.mxu2  ;;  %v6198_v16 = vpop.f32.mrf.mxu3 }
 0x994   :  { %v6199_v60 = vadd.f32 %v6198_v16, %v6149_v27 }
 0x996   :  { %v6242_v34 = vmul.f32 %v12725_v13, %v6199_v60 }
 0x998   :  { %v12734_v21 = vadd.f32 %v12731_v40, %v6242_v34 }
 0x99a   :  { %v6278_v26 = vmax.f32 %v12734_v21, 0.0 }
 0x99b   :  { %v6151_v44 = vpop.f32.mrf.mxu2  ;;  %v6200_v28 = vpop.f32.mrf.mxu3 }
 0x99c   :  { %v6201_v25 = vadd.f32 %v6200_v28, %v6151_v44 }
 0x99e   :  { %v6243_v56 = vmul.f32 %v12725_v13, %v6201_v25 }
 0x9a0   :  { %v12738_v42 = vadd.f32 %v12731_v40, %v6243_v56 }
 0x9a2   :  { %v6279_v55 = vmax.f32 %v12738_v42, 0.0 }
 0x9a3   :  { %v6154_v5 = vpop.f32.mrf.mxu2  ;;  %v6203_v17 = vpop.f32.mrf.mxu3 }
 0x9a4   :  { %v6294_v2 = vadd.f32 %v6279_v55, %v6278_v26  ;;  %v6204_v20 = vadd.f32 %v6203_v17, %v6154_v5 }
 0x9a6   :  { %v6244_v18 = vmul.f32 %v12725_v13, %v6204_v20 }
 0x9a8   :  { %v12748_v38 = vadd.f32 %v12731_v40, %v6244_v18 }
 0x9aa   :  { %v6280_v52 = vmax.f32 %v12748_v38, 0.0 }
 0x9ab   :  { %v6156_v41 = vpop.f32.mrf.mxu2  ;;  %v6205_v14 = vpop.f32.mrf.mxu3 }
 0x9ac   :  { %v6295_v58 = vadd.f32 %v6294_v2, %v6280_v52  ;;  %v6206_v19 = vadd.f32 %v6205_v14, %v6156_v41 }
 0x9ae   :  { %v6245_v8 = vmul.f32 %v12725_v13, %v6206_v19 }
 0x9b0   :  { %v12755_v57 = vadd.f32 %v12731_v40, %v6245_v8 }
 0x9b2   :  { %v6281_v59 = vmax.f32 %v12755_v57, 0.0 }
 0x9b3   :  { %v6159_v12 = vpop.f32.mrf.mxu2  ;;  %v6208_v32 = vpop.f32.mrf.mxu3 }
 0x9b4   :  { %v6296_v36 = vadd.f32 %v6295_v58, %v6281_v59  ;;  %v6209_v39 = vadd.f32 %v6208_v32, %v6159_v12 }
 0x9b6   :  { %v6246_v30 = vmul.f32 %v12725_v13, %v6209_v39 }
 0x9b8   :  { %v12762_v51 = vadd.f32 %v12731_v40, %v6246_v30 }
 0x9ba   :  { %v6282_v15 = vmax.f32 %v12762_v51, 0.0 }
 0x9bb   :  { %v6161_v23 = vpop.f32.mrf.mxu2  ;;  %v6210_v22 = vpop.f32.mrf.mxu3 }
 0x9bc   :  { %v6297_v45 = vadd.f32 %v6296_v36, %v6282_v15  ;;  %v6211_v48 = vadd.f32 %v6210_v22, %v6161_v23 }
 0x9be   :  { %v6247_v27 = vmul.f32 %v12725_v13, %v6211_v48 }
 0x9c0   :  { %v12773_v25 = vadd.f32 %v12731_v40, %v6247_v27 }
 0x9c2   :  { %v6283_v18 = vmax.f32 %v12773_v25, 0.0 }
 0x9c3   :  { %v6164_v61 = vpop.f32.mrf.mxu2  ;;  %v6213_v11 = vpop.f32.mrf.mxu3 }
 0x9c4   :  { %v6214_v49 = vadd.f32 %v6213_v11, %v6164_v61  ;;  %v6298_v30 = vadd.f32 %v6297_v45, %v6283_v18 }
 0x9c6   :  { %v6248_v44 = vmul.f32 %v12725_v13, %v6214_v49 }
 0x9c8   :  { %v12777_v17 = vadd.f32 %v12731_v40, %v6248_v44 }
 0x9ca   :  { %v6284_v12 = vmax.f32 %v12777_v17, 0.0 }
 0x9cb   :  { %v6166_v35 = vpop.f32.mrf.mxu2  ;;  %v6215_v43 = vpop.f32.mrf.mxu3 }
 0x9cc   :  { %v6216_v16 = vadd.f32 %v6215_v43, %v6166_v35  ;;  %v6299_v35 = vadd.f32 %v6298_v30, %v6284_v12 }
 0x9ce   :  { %v6249_v56 = vmul.f32 %v12725_v13, %v6216_v16 }
 0x9d0   :  { %v12782_v41 = vadd.f32 %v12731_v40, %v6249_v56 }
 0x9d2   :  { %v6285_v23 = vmax.f32 %v12782_v41, 0.0 }
 0x9d3   :  { %v6169_v33 = vpop.f32.mrf.mxu2  ;;  %v6218_v54 = vpop.f32.mrf.mxu3 }
 0x9d4   :  { %v6219_v28 = vadd.f32 %v6218_v54, %v6169_v33  ;;  %v6300_v37 = vadd.f32 %v6299_v35, %v6285_v23 }
 0x9d6   :  { %v6250_v2 = vmul.f32 %v12725_v13, %v6219_v28 }
 0x9d8   :  { %v12787_v32 = vadd.f32 %v12731_v40, %v6250_v2 }
 0x9da   :  { %v6286_v43 = vmax.f32 %v12787_v32, 0.0 }
 0x9db   :  { %v6171_v47 = vpop.f32.mrf.mxu2  ;;  %v6220_v63 = vpop.f32.mrf.mxu3 }
 0x9dc   :  { %v6221_v5 = vadd.f32 %v6220_v63, %v6171_v47  ;;  %v6301_v47 = vadd.f32 %v6300_v37, %v6286_v43 }
 0x9de   :  { %v6251_v19 = vmul.f32 %v12725_v13, %v6221_v5 }
 0x9e0   :  { %v12794_v22 = vadd.f32 %v12731_v40, %v6251_v19 }
 0x9e2   :  { %v6287_v45 = vmax.f32 %v12794_v22, 0.0 }
 0x9e3   :  { %v6174_v53 = vpop.f32.mrf.mxu2  ;;  %v6223_v9 = vpop.f32.mrf.mxu3 }
 0x9e4   :  { %v6224_v20 = vadd.f32 %v6223_v9, %v6174_v53  ;;  %v6302_v3 = vadd.f32 %v6301_v47, %v6287_v45 }
 0x9e6   :  { %v6252_v36 = vmul.f32 %v12725_v13, %v6224_v20 }
 0x9e8   :  { %v12799_v33 = vadd.f32 %v12731_v40, %v6252_v36 }
 0x9ea   :  { %v6288_v63 = vmax.f32 %v12799_v33, 0.0 }
 0x9eb   :  { %v6176_v50 = vpop.f32.mrf.mxu2  ;;  %v6225_v1 = vpop.f32.mrf.mxu3 }
 0x9ec   :  { %v6226_v8 = vadd.f32 %v6225_v1, %v6176_v50  ;;  %v6303_v7 = vadd.f32 %v6302_v3, %v6288_v63 }
 0x9ee   :  { %v6253_v61 = vmul.f32 %v12725_v13, %v6226_v8 }
 0x9f0   :  { %v6273_v0 = vadd.f32 %v12731_v40, %v6253_v61 }
 0x9f2   :  { %v6289_v29 = vmax.f32 %v6273_v0, 0.0 }
 0x9f3   :  { %v6179_v60 = vpop.f32.mrf.mxu2  ;;  %v6228_v34 = vpop.f32.mrf.mxu3 }
 0x9f4   :  { %v6229_v39 = vadd.f32 %v6228_v34, %v6179_v60  ;;  %v6304_v49 = vadd.f32 %v6303_v7, %v6289_v29 }
 0x9f6   :  { %v6254_v54 = vmul.f32 %v12725_v13, %v6229_v39 }
 0x9f8   :  { %v6274_v53 = vadd.f32 %v12731_v40, %v6254_v54 }
 0x9fa   :  { %v6290_v4 = vmax.f32 %v6274_v53, 0.0 }
 0x9fb   :  { %v6181_v14 = vpop.f32.mrf.mxu2  ;;  %v6230_v58 = vpop.f32.mrf.mxu3 }
 0x9fc   :  { %v6231_v11 = vadd.f32 %v6230_v58, %v6181_v14  ;;  %v6305_v60 = vadd.f32 %v6304_v49, %v6290_v4 }
 0x9fe   :  { %v6255_v10 = vmul.f32 %v12725_v13, %v6231_v11 }
 0xa00   :  { %v6275_v31 = vadd.f32 %v12731_v40, %v6255_v10 }
 0xa02   :  { %v6291_v27 = vmax.f32 %v6275_v31, 0.0 }
 0xa03   :  { %v6184_v6 = vpop.f32.mrf.mxu2  ;;  %v6233_v46 = vpop.f32.mrf.mxu3 }
 0xa04   :  { %v6234_v62 = vadd.f32 %v6233_v46, %v6184_v6  ;;  %v6306_v28 = vadd.f32 %v6305_v60, %v6291_v27 }
 0xa06   :  { %v6256_v9 = vmul.f32 %v12725_v13, %v6234_v62 }
 0xa08   :  { %v6276_v50 = vadd.f32 %v12731_v40, %v6256_v9 }
 0xa0a   :  { %v6292_v34 = vmax.f32 %v6276_v50, 0.0 }
 0xa0b   :  { %v6186_v1 = vpop.f32.mrf.mxu2  ;;  %v6235_v48 = vpop.f32.mrf.mxu3 }
 0xa0c   :  { %v6236_v16 = vadd.f32 %v6235_v48, %v6186_v1  ;;  %v6307_v5 = vadd.f32 %v6306_v28, %v6292_v34  ;;  %v6423_v28 = vld [vmem:[%s13017_s5 + $0x8] sm:$0xff] }
 0xa0e   :  { %v6257_v44 = vmul.f32 %v12725_v13, %v6236_v16 }
 0xa10   :  { %v6277_v56 = vadd.f32 %v12731_v40, %v6257_v44  ;;  %v6424_v44 = vld [vmem:[%s13017_s5 + $0x10] sm:$0xff] }
 0xa12   :  { %v6293_v17 = vmax.f32 %v6277_v56, 0.0  ;;  %v6436_v56 = vunpack.c.2.s8 %v6424_v44 }
 0xa14   :  { %v6308_v2 = vadd.f32 %v6307_v5, %v6293_v17  ;;  %v6437_v5 = vunpack.c.3.s8 %v6424_v44 }
 0xa16   :  { %v6309_v20 = vrot.slane %v6308_v2, 4 }
 0xa18   :  { %v6310_v41 = vadd.f32 %v6309_v20, %v6308_v2  ;;  %v6435_v2 = vunpack.c.1.s8 %v6424_v44 }
 0xa1a   :  { %v6311_v14 = vrot.slane %v6310_v41, 2 }
 0xa1c   :  { %v6312_v58 = vadd.f32 %v6311_v14, %v6310_v41  ;;  %v6432_v41 = vunpack.c.2.s8 %v6423_v28  ;;  %v6433_v14 = vunpack.c.3.s8 %v6423_v28 }
 0xa1e   :  { %v6313_v19 = vrot.slane %v6312_v58, 1 }
 0xa20   :  { %v6314_v8 = vadd.f32 %v6313_v19, %v6312_v58  ;;  %v6452_v58 = vcvt.s32.f32 %v6436_v56  ;;  %v6453_v19 = vcvt.s32.f32 %v6437_v5 }
 0xa22   :  { %v6315_v32 = vmul.f32 %v6314_v8, %v13853_v24 }
 0xa24   :  { %v12815_v36 = vsub.f32 %v6278_v26, %v6315_v32  ;;  %v12819_v13 = vsub.f32 %v6279_v55, %v6315_v32  ;;  %v12823_v40 = vsub.f32 %v6280_v52, %v6315_v32  ;;  %v12827_v39 = vsub.f32 %v6281_v59, %v6315_v32 }
 0xa25   :  { %v12831_v30 = vsub.f32 %v6282_v15, %v6315_v32  ;;  %v12841_v38 = vsub.f32 %v6283_v18, %v6315_v32  ;;  %v12845_v59 = vsub.f32 %v6284_v12, %v6315_v32  ;;  %v12849_v22 = vsub.f32 %v6285_v23, %v6315_v32 }
 0xa26   :  { %v6332_v21 = vmul.f32 %v12815_v36, %v12815_v36  ;;  %v6333_v42 = vmul.f32 %v12819_v13, %v12819_v13  ;;  %v6334_v26 = vmul.f32 %v12823_v40, %v12823_v40  ;;  %v6335_v52 = vmul.f32 %v12827_v39, %v12827_v39 }
 0xa27   :  { %v6336_v51 = vmul.f32 %v12831_v30, %v12831_v30  ;;  %v6337_v61 = vmul.f32 %v12841_v38, %v12841_v38  ;;  %v12853_v35 = vsub.f32 %v6286_v43, %v6315_v32  ;;  %v6338_v25 = vmul.f32 %v12845_v59, %v12845_v59 }
 0xa28   :  { %v6348_v55 = vadd.f32 %v6333_v42, %v6332_v21  ;;  %v12857_v33 = vsub.f32 %v6287_v45, %v6315_v32  ;;  %v6339_v12 = vmul.f32 %v12849_v22, %v12849_v22  ;;  %v12861_v37 = vsub.f32 %v6288_v63, %v6315_v32 }
 0xa29   :  { %v6340_v23 = vmul.f32 %v12853_v35, %v12853_v35  ;;  %v12865_v46 = vsub.f32 %v6289_v29, %v6315_v32  ;;  %v12869_v10 = vsub.f32 %v6290_v4, %v6315_v32  ;;  %v12873_v47 = vsub.f32 %v6291_v27, %v6315_v32 }
 0xa2a   :  { %v6349_v57 = vadd.f32 %v6348_v55, %v6334_v26  ;;  %v6341_v43 = vmul.f32 %v12857_v33, %v12857_v33  ;;  %v6342_v45 = vmul.f32 %v12861_v37, %v12861_v37  ;;  %v12877_v9 = vsub.f32 %v6292_v34, %v6315_v32 }
 0xa2b   :  { %v6343_v63 = vmul.f32 %v12865_v46, %v12865_v46  ;;  %v6344_v3 = vmul.f32 %v12869_v10, %v12869_v10  ;;  %v12881_v31 = vsub.f32 %v6293_v17, %v6315_v32  ;;  %v6345_v7 = vmul.f32 %v12873_v47, %v12873_v47 }
 0xa2c   :  { %v6350_v15 = vadd.f32 %v6349_v57, %v6335_v52  ;;  %v6346_v50 = vmul.f32 %v12877_v9, %v12877_v9  ;;  %v6434_v17 = vunpack.c.0.s8 %v6424_v44  ;;  %v6451_v32 = vcvt.s32.f32 %v6435_v2  ;;  %v6642_v44 = vld [vmem:[%s13013_s6 + $0x26] ss:$0 sm:$0xff] }
 0xa2d   :  { %v6347_v48 = vmul.f32 %v12881_v31, %v12881_v31  ;;  %v6463_v42 = vpack.c.bf16 %v6453_v19, %v6452_v58  ;;  %v6430_v55 = vunpack.c.0.s8 %v6423_v28  ;;  %v6448_v57 = vcvt.s32.f32 %v6432_v41 }
 0xa2e   :  { %v6351_v11 = vadd.f32 %v6350_v15, %v6336_v51  ;;  %v6450_v8 = vcvt.s32.f32 %v6434_v17  ;;  %v6449_v51 = vcvt.s32.f32 %v6433_v14  ;;  %v6431_v15 = vunpack.c.1.s8 %v6423_v28 }
 0xa2f   :  { %6476 = vmatpush.bf16.msra.mxu0 %v6463_v42 }
 0xa30   :  { %v6352_v18 = vadd.f32 %v6351_v11, %v6337_v61  ;;  %v6462_v52 = vpack.c.bf16 %v6451_v32, %v6450_v8  ;;  %v6422_v61 = vld [vmem:[%s13017_s5] sm:$0xff] }
 0xa32   :  { %v6353_v54 = vadd.f32 %v6352_v18, %v6338_v25  ;;  %v6428_v18 = vunpack.c.2.s8 %v6422_v61 }
 0xa33   :  { %6477 = vmatpush.bf16.msra.mxu0 %v6462_v52 }
 0xa34   :  { %v6354_v6 = vadd.f32 %v6353_v54, %v6339_v12  ;;  %v6461_v12 = vpack.c.bf16 %v6449_v51, %v6448_v57  ;;  %v6446_v54 = vcvt.s32.f32 %v6430_v55 }
 0xa36   :  { %v6355_v0 = vadd.f32 %v6354_v6, %v6340_v23  ;;  %v6447_v23 = vcvt.s32.f32 %v6431_v15  ;;  %v6429_v6 = vunpack.c.3.s8 %v6422_v61 }
 0xa37   :  { %6478 = vmatpush.bf16.msra.mxu0 %v6461_v12 }
 0xa38   :  { %v6356_v62 = vadd.f32 %v6355_v0, %v6341_v43  ;;  %v6444_v43 = vcvt.s32.f32 %v6428_v18  ;;  %v6460_v0 = vpack.c.bf16 %v6447_v23, %v6446_v54 }
 0xa3a   :  { %v6357_v53 = vadd.f32 %v6356_v62, %v6342_v45  ;;  %v6445_v45 = vcvt.s32.f32 %v6429_v6  ;;  %v6426_v62 = vunpack.c.0.s8 %v6422_v61 }
 0xa3b   :  { %6479 = vmatpush.bf16.msra.mxu0 %v6460_v0 }
 0xa3c   :  { %v6358_v29 = vadd.f32 %v6357_v53, %v6343_v63  ;;  %v6427_v63 = vunpack.c.1.s8 %v6422_v61 }
 0xa3e   :  { %v6359_v4 = vadd.f32 %v6358_v29, %v6344_v3  ;;  %v6459_v29 = vpack.c.bf16 %v6445_v45, %v6444_v43 }
 0xa40   :  { %v6360_v1 = vadd.f32 %v6359_v4, %v6345_v7  ;;  %v6442_v7 = vcvt.s32.f32 %v6426_v62  ;;  %6480 = vmatpush.bf16.msra.mxu0 %v6459_v29 }
 0xa42   :  { %v6361_v49 = vadd.f32 %v6360_v1, %v6346_v50 }
 0xa44   :  { %v6362_v27 = vadd.f32 %v6361_v49, %v6347_v48  ;;  %v6370_v49 = vld [vmem:[%s13013_s6 + $0x25] sm:$0x1] }
 0xa46   :  { %v6363_v16 = vrot.slane %v6362_v27, 4 }
 0xa48   :  { %v6364_v60 = vadd.f32 %v6363_v16, %v6362_v27 }
 0xa4a   :  { %v6365_v34 = vrot.slane %v6364_v60, 2 }
 0xa4c   :  { %v6366_v20 = vadd.f32 %v6365_v34, %v6364_v60 }
 0xa4e   :  { %v6367_v21 = vrot.slane %v6366_v20, 1 }
 0xa50   :  { %v6368_v26 = vadd.f32 %v6367_v21, %v6366_v20 }
 0xa52   :  { %v6369_v11 = vmul.f32 %v6368_v26, %v13853_v24  ;;  %v6443_v24 = vcvt.s32.f32 %v6427_v63 }
 0xa54   :  { %v6371_v25 = vadd.f32 1e-05, %v6369_v11  ;;  %v6458_v1 = vpack.c.bf16 %v6443_v24, %v6442_v7 }
 0xa56   :  { %6665 = vrsqrt.f32 %v6371_v25  ;;  %vm6378_vm1 = vweird.f32 %v6371_v25  ;;  %6481 = vmatpush.bf16.msra.mxu0 %v6458_v1 }
 0xa5c   :  { %v6666_v53 = vpop.eup %6665 }
 0xa5d   :  { %v6373_v3 = vmul.f32 %v6666_v53, %v6371_v25  ;;  %vm6379_vm8 = vweird.f32 %v6666_v53 }
 0xa5e   :  { %vm6380_vm2 = vmor %vm6378_vm1, %vm6379_vm8 }
 0xa5f   :  { %v6374_v4 = vmul.f32 %v6666_v53, %v6373_v3 }
 0xa61   :  { %v6375_v50 = vmul.f32 0.5, %v6374_v4 }
 0xa63   :  { %v6376_v48 = vsub.f32 1.5, %v6375_v50 }
 0xa65   :  { %v6377_v27 = vmul.f32 %v6666_v53, %v6376_v48 }
 0xa67   :  { %v6381_v16 = vsel %vm6380_vm2, %v6666_v53, %v6377_v27 }
 0xa68   :  { %v6382_v60 = vmul.f32 %v6381_v16, %v6370_v49 }
 0xa6a   :  { %v6384_v34 = vperm.slane %v6382_v60, 0 }
 0xa6c   :  { %v6386_v28 = vmul.f32 %v6384_v34, %v12815_v36  ;;  %v6387_v56 = vmul.f32 %v6384_v34, %v12819_v13  ;;  %v6394_v20 = vmul.f32 %v6384_v34, %v12853_v35  ;;  %v6395_v41 = vmul.f32 %v6384_v34, %v12857_v33 }
 0xa6d   :  { %v6396_v14 = vmul.f32 %v6384_v34, %v12861_v37  ;;  %v6397_v58 = vmul.f32 %v6384_v34, %v12865_v46  ;;  %v6398_v32 = vmul.f32 %v6384_v34, %v12869_v10  ;;  %v6399_v36 = vmul.f32 %v6384_v34, %v12873_v47 }
 0xa6e   :  { %v6406_v5 = vadd.f32 %v6642_v44, %v6386_v28  ;;  %v6407_v17 = vadd.f32 %v6642_v44, %v6387_v56  ;;  %v6414_v19 = vadd.f32 %v6642_v44, %v6394_v20  ;;  %v6415_v8 = vadd.f32 %v6642_v44, %v6395_v41 }
 0xa6f   :  { %v6416_v21 = vadd.f32 %v6642_v44, %v6396_v14  ;;  %v6417_v13 = vadd.f32 %v6642_v44, %v6397_v58  ;;  %v6400_v42 = vmul.f32 %v6384_v34, %v12877_v9  ;;  %v6401_v26 = vmul.f32 %v6384_v34, %v12881_v31 }
 0xa70   :  { %v6466_v2 = vpack.c.bf16 %v6407_v17, %v6406_v5  ;;  %v6470_v35 = vpack.c.bf16 %v6415_v8, %v6414_v19  ;;  %v6418_v55 = vadd.f32 %v6642_v44, %v6398_v32  ;;  %v6419_v33 = vadd.f32 %v6642_v44, %v6399_v36 }
 0xa71   :  { %v6471_v52 = vpack.c.bf16 %v6417_v13, %v6416_v21  ;;  %v6420_v37 = vadd.f32 %v6642_v44, %v6400_v42  ;;  %v6421_v57 = vadd.f32 %v6642_v44, %v6401_v26  ;;  %v6388_v15 = vmul.f32 %v6384_v34, %v12823_v40 }
 0xa72   :  { %6482 = vmatmul.bf16.vlgmr.msra.gmra.mxu0 %v6466_v2  ;;  %v6472_v46 = vpack.c.bf16 %v6419_v33, %v6418_v55  ;;  %v6389_v10 = vmul.f32 %v6384_v34, %v12827_v39  ;;  %v6390_v9 = vmul.f32 %v6384_v34, %v12831_v30  ;;  %v6391_v31 = vmul.f32 %v6384_v34, %v12841_v38  ;;  %v12924_v39 = vld [vmem:[%s13013_s6 + $0x29] ss:$0 sm:$0xff]  ;;  %v12929_v30 = vld [vmem:[%s13013_s6 + $0x28] ss:$0 sm:$0xff] }
 0xa73   :  { %v6473_v51 = vpack.c.bf16 %v6421_v57, %v6420_v37  ;;  %v6408_v61 = vadd.f32 %v6642_v44, %v6388_v15  ;;  %v6392_v54 = vmul.f32 %v6384_v34, %v12845_v59  ;;  %v6393_v23 = vmul.f32 %v6384_v34, %v12849_v22 }
 0xa74   :  { %v6409_v47 = vadd.f32 %v6642_v44, %v6389_v10  ;;  %v6410_v25 = vadd.f32 %v6642_v44, %v6390_v9  ;;  %v6411_v18 = vadd.f32 %v6642_v44, %v6391_v31 }
 0xa75   :  { %v6412_v6 = vadd.f32 %v6642_v44, %v6392_v54  ;;  %v6413_v40 = vadd.f32 %v6642_v44, %v6393_v23 }
 0xa76   :  { %v6467_v11 = vpack.c.bf16 %v6409_v47, %v6408_v61  ;;  %v6468_v12 = vpack.c.bf16 %v6411_v18, %v6410_v25 }
 0xa77   :  { %v6469_v43 = vpack.c.bf16 %v6413_v40, %v6412_v6 }
 0xa82   :  { %6487 = vmatmul.bf16.gmra.mxu0 %v6467_v11 }
 0xa92   :  { %6492 = vmatmul.bf16.gmra.mxu0 %v6468_v12 }
 0xaa2   :  { %6497 = vmatmul.bf16.gmra.mxu0 %v6469_v43 }
 0xab2   :  { %6502 = vmatmul.bf16.gmra.mxu0 %v6470_v35 }
 0xac2   :  { %6507 = vmatmul.bf16.gmra.mxu0 %v6471_v52 }
 0xad2   :  { %6512 = vmatmul.bf16.gmra.mxu0 %v6472_v46 }
 0xae2   :  { %6517 = vmatmul.bf16.gmra.mxu0 %v6473_v51 }
 0xaef   :  { %v6483_v38 = vpop.f32.mrf.mxu0 }
 0xaf0   :  { %v6527_v59 = vmul.f32 %v12924_v39, %v6483_v38 }
 0xaf2   :  { %v6547_v22 = vadd.f32 %v12929_v30, %v6527_v59 }
 0xaf4   :  { %6563 = vst [vmem:[%s13018_s7] sm:$0xff] %v6547_v22 }
 0xaf7   :  { %v6485_v0 = vpop.f32.mrf.mxu0 }
 0xaf8   :  { %v6528_v45 = vmul.f32 %v12924_v39, %v6485_v0 }
 0xafa   :  { %v6548_v62 = vadd.f32 %v12929_v30, %v6528_v45 }
 0xafc   :  { %6564 = vst [vmem:[%s13018_s7 + $0x8] sm:$0xff] %v6548_v62 }
 0xaff   :  { %v6488_v63 = vpop.f32.mrf.mxu0 }
 0xb00   :  { %v6529_v53 = vmul.f32 %v12924_v39, %v6488_v63 }
 0xb02   :  { %v6549_v3 = vadd.f32 %v12929_v30, %v6529_v53 }
 0xb04   :  { %6565 = vst [vmem:[%s13018_s7 + $0x10] sm:$0xff] %v6549_v3 }
 0xb07   :  { %v6490_v29 = vpop.f32.mrf.mxu0 }
 0xb08   :  { %v6530_v7 = vmul.f32 %v12924_v39, %v6490_v29 }
 0xb0a   :  { %v6550_v24 = vadd.f32 %v12929_v30, %v6530_v7 }
 0xb0c   :  { %6566 = vst [vmem:[%s13018_s7 + $0x18] sm:$0xff] %v6550_v24 }
 0xb0f   :  { %v6493_v4 = vpop.f32.mrf.mxu0 }
 0xb10   :  { %v6531_v50 = vmul.f32 %v12924_v39, %v6493_v4 }
 0xb12   :  { %v6551_v1 = vadd.f32 %v12929_v30, %v6531_v50 }
 0xb14   :  { %6567 = vst [vmem:[%s13018_s7 + $0x20] sm:$0xff] %v6551_v1 }
 0xb17   :  { %v6495_v48 = vpop.f32.mrf.mxu0 }
 0xb18   :  { %v6532_v49 = vmul.f32 %v12924_v39, %v6495_v48 }
 0xb1a   :  { %v6552_v27 = vadd.f32 %v12929_v30, %v6532_v49 }
 0xb1c   :  { %6568 = vst [vmem:[%s13018_s7 + $0x28] sm:$0xff] %v6552_v27 }
 0xb1f   :  { %v6498_v16 = vpop.f32.mrf.mxu0 }
 0xb20   :  { %v6533_v60 = vmul.f32 %v12924_v39, %v6498_v16 }
 0xb22   :  { %v6553_v34 = vadd.f32 %v12929_v30, %v6533_v60 }
 0xb24   :  { %6569 = vst [vmem:[%s13018_s7 + $0x30] sm:$0xff] %v6553_v34 }
 0xb27   :  { %v6500_v44 = vpop.f32.mrf.mxu0 }
 0xb28   :  { %v6534_v28 = vmul.f32 %v12924_v39, %v6500_v44 }
 0xb2a   :  { %v6554_v56 = vadd.f32 %v12929_v30, %v6534_v28 }
 0xb2c   :  { %6570 = vst [vmem:[%s13018_s7 + $0x38] sm:$0xff] %v6554_v56 }
 0xb2f   :  { %v6503_v5 = vpop.f32.mrf.mxu0 }
 0xb30   :  { %v6535_v17 = vmul.f32 %v12924_v39, %v6503_v5 }
 0xb32   :  { %v6555_v2 = vadd.f32 %v12929_v30, %v6535_v17 }
 0xb34   :  { %6571 = vst [vmem:[%s13018_s7 + $0x40] sm:$0xff] %v6555_v2 }
 0xb37   :  { %v6505_v20 = vpop.f32.mrf.mxu0 }
 0xb38   :  { %v6536_v41 = vmul.f32 %v12924_v39, %v6505_v20 }
 0xb3a   :  { %v6556_v14 = vadd.f32 %v12929_v30, %v6536_v41 }
 0xb3c   :  { %6572 = vst [vmem:[%s13018_s7 + $0x48] sm:$0xff] %v6556_v14 }
 0xb3f   :  { %v6508_v58 = vpop.f32.mrf.mxu0 }
 0xb40   :  { %v6537_v19 = vmul.f32 %v12924_v39, %v6508_v58 }
 0xb42   :  { %v6557_v8 = vadd.f32 %v12929_v30, %v6537_v19 }
 0xb44   :  { %6573 = vst [vmem:[%s13018_s7 + $0x50] sm:$0xff] %v6557_v8 }
 0xb47   :  { %v6510_v32 = vpop.f32.mrf.mxu0 }
 0xb48   :  { %v6538_v36 = vmul.f32 %v12924_v39, %v6510_v32 }
 0xb4a   :  { %v6558_v21 = vadd.f32 %v12929_v30, %v6538_v36 }
 0xb4c   :  { %6574 = vst [vmem:[%s13018_s7 + $0x58] sm:$0xff] %v6558_v21 }
 0xb4f   :  { %v6513_v13 = vpop.f32.mrf.mxu0 }
 0xb50   :  { %v6539_v42 = vmul.f32 %v12924_v39, %v6513_v13 }
 0xb52   :  { %v6559_v26 = vadd.f32 %v12929_v30, %v6539_v42 }
 0xb54   :  { %6575 = vst [vmem:[%s13018_s7 + $0x60] sm:$0xff] %v6559_v26 }
 0xb57   :  { %v6515_v35 = vpop.f32.mrf.mxu0 }
 0xb58   :  { %v6540_v55 = vmul.f32 %v12924_v39, %v6515_v35 }
 0xb5a   :  { %v6560_v33 = vadd.f32 %v12929_v30, %v6540_v55 }
 0xb5c   :  { %6576 = vst [vmem:[%s13018_s7 + $0x68] sm:$0xff] %v6560_v33 }
 0xb5f   :  { %v6518_v52 = vpop.f32.mrf.mxu0 }
 0xb60   :  { %v6541_v37 = vmul.f32 %v12924_v39, %v6518_v52 }
 0xb62   :  { %v6561_v57 = vadd.f32 %v12929_v30, %v6541_v37 }
 0xb64   :  { %6577 = vst [vmem:[%s13018_s7 + $0x70] sm:$0xff] %v6561_v57 }
 0xb67   :  { %v6520_v46 = vpop.f32.mrf.mxu0 }
 0xb68   :  { %v6542_v51 = vmul.f32 %v12924_v39, %v6520_v46 }
 0xb6a   :  { %v6562_v15 = vadd.f32 %v12929_v30, %v6542_v51 }
 0xb6c   :  { %6578 = vst [vmem:[%s13018_s7 + $0x78] sm:$0xff] %v6562_v15 }

</bundles_post_ra>
